<compile_context>
chip_gen: v6e
topology: v6e:2x2x1
jax: 0.10.0
libtpu: 0.0.40
codegen_flags: <defaults>
</compile_context>

<pallas_src>
import jax
import jax.numpy as jnp
from jax.experimental import pallas as pl
from jax.experimental.pallas import tpu as pltpu

_LANE = 128


def _leaky_relu(x, slope=0.1):
    # 2 VPU ops (mul + max) instead of cmp + mul + select.
    return jnp.maximum(x, slope * x)


def _round_up(x, m):
    return ((x + m - 1) // m) * m


def _classifier_kernel(graph_ref, fp_ref, smi_ref,
                       w1_ref, b1_ref,
                       w2_ref, b2_ref,
                       w3_ref, b3_ref,
                       w4_ref, b4_ref,
                       o_ref):
    """Fused 4-layer MLP on a (TB, .) batch tile. bf16 operands, f32 accumulation."""
    # Fused concat([graph, fp, smi, fp], axis=1): each view width is a multiple
    # of 128 lanes so this is layout-only (no XLU shuffles); a single K=Cin dot
    # runs the MXU at full systolic depth on v6e/v7x and lets the result buffer
    # accumulate instead of round-tripping partials through f32 VPU adds.
    x = jnp.concatenate(
        [graph_ref[...], fp_ref[...], smi_ref[...], fp_ref[...]], axis=1)

    h1 = jnp.dot(x, w1_ref[...], preferred_element_type=jnp.float32)
    h1 = _leaky_relu(h1 + b1_ref[...])          # Dropout(0.1): identity at eval

    h2 = jnp.dot(h1.astype(jnp.bfloat16), w2_ref[...],
                 preferred_element_type=jnp.float32)
    h2 = _leaky_relu(h2 + b2_ref[...])          # Dropout(0.1): identity at eval

    h3 = jnp.dot(h2.astype(jnp.bfloat16), w3_ref[...],
                 preferred_element_type=jnp.float32)
    h3 = _leaky_relu(h3 + b3_ref[...])          # Dropout(0.1): identity at eval

    out = jnp.dot(h3.astype(jnp.bfloat16), w4_ref[...],
                  preferred_element_type=jnp.float32) + b4_ref[...]
    o_ref[...] = out.astype(o_ref.dtype)


def multiview_classifier(graph, fp, smi, params, out_channels, *, batch_tile=512):
    """Runs the fused classifier kernel on (graph, fp, smi) row-wise views.

    params: ((w1,b1),(w2,b2),(w3,b3),(w4,b4)); weights bf16, biases f32; w4/b4
    lane-padded to a multiple of 128 columns. Returns (B, out_channels) f32.
    """
    (w1, b1), (w2, b2), (w3, b3), (w4, b4) = params
    B = graph.shape[0]
    d_graph, d_fp, d_smi = graph.shape[1], fp.shape[1], smi.shape[1]
    cin = d_graph + 2 * d_fp + d_smi
    assert w1.shape[0] == cin
    # Keep the in-kernel concat layout-only / tile-aligned (perf, not correctness).
    assert d_graph % 16 == 0 and d_fp % 16 == 0 and d_smi % 16 == 0
    n_out_pad = w4.shape[1]

    # bf16 packs 16 rows per sublane tile -> TB must be a multiple of 16.
    TB = min(_round_up(batch_tile, 16), _round_up(B, 16))
    Bp = _round_up(B, TB)
    if Bp != B:
        pad = ((0, Bp - B), (0, 0))
        graph = jnp.pad(graph, pad)
        fp = jnp.pad(fp, pad)
        smi = jnp.pad(smi, pad)

    graph = graph.astype(jnp.bfloat16)
    fp = fp.astype(jnp.bfloat16)
    smi = smi.astype(jnp.bfloat16)

    grid = (Bp // TB,)

    def row_spec(d):
        return pl.BlockSpec((TB, d), lambda i: (i, 0),
                            memory_space=pltpu.MemorySpace.VMEM)

    def resident_spec(shape, buffered):
        # Constant index_map: block fetched once, resident across grid steps.
        kwargs = dict(memory_space=pltpu.MemorySpace.VMEM)
        if buffered:
            # Weights never change -> no need for a second pipeline buffer.
            kwargs["pipeline_mode"] = pl.Buffered(1)
        return pl.BlockSpec(shape, lambda i: (0, 0), **kwargs)

    weight_bytes = sum(int(w.size) * w.dtype.itemsize for w, _ in params)
    bias_bytes = sum(int(b.size) * b.dtype.itemsize for _, b in params)

    def build(buffered):
        in_specs = [row_spec(d_graph), row_spec(d_fp), row_spec(d_smi)]
        for w, b in params:
            in_specs.append(resident_spec(w.shape, buffered))
            in_specs.append(resident_spec(b.shape, buffered))
        out_specs = pl.BlockSpec((TB, n_out_pad), lambda i: (i, 0),
                                 memory_space=pltpu.MemorySpace.VMEM)

        # VMEM budget from actual tile / weight sizes (well under v7x's 64 MiB),
        # with headroom for pipeline buffers + compiler scratch.
        wb_factor = 1 if buffered else 2
        in_tile_bytes = TB * (d_graph + d_fp + d_smi) * 2        # bf16 inputs
        out_tile_bytes = TB * n_out_pad * 4                      # f32 output
        act_bytes = TB * (cin * 2 + (3 * 1024 + 256 + n_out_pad) * 4)
        vmem_limit = int(wb_factor * (weight_bytes + bias_bytes)
                         + 2 * (in_tile_bytes + out_tile_bytes)
                         + act_bytes + (16 << 20))

        flops = 2 * Bp * (cin * 1024 + 1024 * 1024 + 1024 * 256 + 256 * n_out_pad)
        bytes_accessed = (weight_bytes + bias_bytes
                          + Bp * (d_graph + d_fp + d_smi) * 2
                          + Bp * n_out_pad * 4)

        return pl.pallas_call(
            _classifier_kernel,
            out_shape=jax.ShapeDtypeStruct((Bp, n_out_pad), jnp.float32),
            grid=grid,
            in_specs=in_specs,
            out_specs=out_specs,
            compiler_params=pltpu.CompilerParams(
                dimension_semantics=("parallel",),
                vmem_limit_bytes=vmem_limit),
            cost_estimate=pl.CostEstimate(flops=flops, transcendentals=0,
                                          bytes_accessed=bytes_accessed),
        )

    args = (graph, fp, smi, w1, b1, w2, b2, w3, b3, w4, b4)
    try:
        out = build(buffered=hasattr(pl, "Buffered"))(*args)
    except Exception:
        # Fallback if single-buffered pipeline_mode is not supported by this
        # jax version; real kernel errors will resurface from this call.
        out = build(buffered=False)(*args)

    return out[:B, :out_channels]


def _linear_params(key, fan_in, fan_out, pad_out=None):
    """nn.Linear default init: U(-1/sqrt(fan_in), 1/sqrt(fan_in)).

    Weights stored bf16 (MXU operands), biases kept f32 (tiny, DMA'd once).
    If pad_out is given, weight/bias columns are zero-padded to pad_out so the
    kernel output stays lane-dense (multiple of 128)."""
    kw, kb = jax.random.split(key)
    bound = 1.0 / jnp.sqrt(float(fan_in))
    w = jax.random.uniform(kw, (fan_in, fan_out), jnp.float32, -bound, bound)
    b = jax.random.uniform(kb, (1, fan_out), jnp.float32, -bound, bound)
    if pad_out is not None and pad_out > fan_out:
        w = jnp.pad(w, ((0, 0), (0, pad_out - fan_out)))
        b = jnp.pad(b, ((0, 0), (0, pad_out - fan_out)))
    return w.astype(jnp.bfloat16), b.astype(jnp.float32)


def encoder_placeholder(fp, smi, graph):
    # TODO(synk): CrossAttentionBlock internals unavailable; pass-through views.
    graph_x, fp_x2, smi_x, fp_x1 = graph, fp, smi, fp
    return graph_x, fp_x2, smi_x, fp_x1


def multiview_net_forward(fp, smi, graph, params, out_channels):
    graph_x, fp_x2, smi_x, fp_x1 = encoder_placeholder(fp, smi, graph)
    # torch.cat([graph_x, fp_x2, smi_x, fp_x1], dim=1) is fused into the
    # kernel's first matmul (fp_x1 == fp_x2 with the placeholder encoder, so
    # fp is passed once and reused in-kernel).
    return multiview_classifier(graph_x, fp_x2, smi_x, params, out_channels)


if __name__ == "__main__":
    key = jax.random.PRNGKey(0)

    # Small, shape-consistent configuration:
    #   d_graph + d_fp + d_smi + d_fp = in_channels
    B = 8
    d_fp, d_smi, d_graph = 128, 128, 128
    in_channels = d_graph + d_fp + d_smi + d_fp   # 512
    out_channels = 2
    n_out_pad = _round_up(out_channels, _LANE)    # 128 (lane-dense output)

    k_fp, k_smi, k_g, k1, k2, k3, k4 = jax.random.split(key, 7)
    fp = jax.random.normal(k_fp, (B, d_fp), jnp.float32)
    smi = jax.random.normal(k_smi, (B, d_smi), jnp.float32)
    graph = jax.random.normal(k_g, (B, d_graph), jnp.float32)

    params = (
        _linear_params(k1, in_channels, 1024),
        _linear_params(k2, 1024, 1024),
        _linear_params(k3, 1024, 256),
        _linear_params(k4, 256, out_channels, pad_out=n_out_pad),
    )

    out = multiview_net_forward(fp, smi, graph, params, out_channels)
    jax.block_until_ready(out)

    # Plain-JAX reference in the same precision (bf16 operands, f32 accumulation,
    # f32 biases).
    h = jnp.concatenate([graph, fp, smi, fp], axis=1).astype(jnp.bfloat16)
    for i, (w, b) in enumerate(params):
        h = jnp.dot(h.astype(jnp.bfloat16), w,
                    preferred_element_type=jnp.float32) + b
        if i < 3:
            h = jnp.maximum(h, 0.1 * h)
    ref = h[:, :out_channels]

    assert out.shape == (B, out_channels)
    assert jnp.allclose(out, ref, atol=2e-2, rtol=2e-2), \
        float(jnp.max(jnp.abs(out - ref)))

    print("KERNEL_OK")
</pallas_src>

<mosaic_0001>
module attributes {stable_mosaic.version = 11 : i64} {
  func.func @_classifier_kernel(%arg0: i32, %arg1: memref<16x128xbf16, #tpu.memory_space<vmem>>, %arg2: memref<16x128xbf16, #tpu.memory_space<vmem>>, %arg3: memref<16x128xbf16, #tpu.memory_space<vmem>>, %arg4: memref<512x1024xbf16, #tpu.memory_space<vmem>>, %arg5: memref<1x1024xf32, #tpu.memory_space<vmem>>, %arg6: memref<1024x1024xbf16, #tpu.memory_space<vmem>>, %arg7: memref<1x1024xf32, #tpu.memory_space<vmem>>, %arg8: memref<1024x256xbf16, #tpu.memory_space<vmem>>, %arg9: memref<1x256xf32, #tpu.memory_space<vmem>>, %arg10: memref<256x128xbf16, #tpu.memory_space<vmem>>, %arg11: memref<1x128xf32, #tpu.memory_space<vmem>>, %arg12: memref<16x128xf32, #tpu.memory_space<vmem>>) attributes {dimension_semantics = [#tpu.dimension_semantics<parallel>], iteration_bounds = array<i64: 1>, scalar_prefetch = 0 : i64, scratch_operands = 0 : i64, tpu.core_type = #tpu.core_type<tc>, window_params = [{transform_indices = @transform_0, window_bounds = array<i64: 16, 128>}, {transform_indices = @transform_1, window_bounds = array<i64: 16, 128>}, {transform_indices = @transform_2, window_bounds = array<i64: 16, 128>}, {pipeline_mode = #tpu.pipeline_mode<synchronous>, transform_indices = @transform_3, window_bounds = array<i64: 512, 1024>}, {pipeline_mode = #tpu.pipeline_mode<synchronous>, transform_indices = @transform_4, window_bounds = array<i64: 1, 1024>}, {pipeline_mode = #tpu.pipeline_mode<synchronous>, transform_indices = @transform_5, window_bounds = array<i64: 1024, 1024>}, {pipeline_mode = #tpu.pipeline_mode<synchronous>, transform_indices = @transform_6, window_bounds = array<i64: 1, 1024>}, {pipeline_mode = #tpu.pipeline_mode<synchronous>, transform_indices = @transform_7, window_bounds = array<i64: 1024, 256>}, {pipeline_mode = #tpu.pipeline_mode<synchronous>, transform_indices = @transform_8, window_bounds = array<i64: 1, 256>}, {pipeline_mode = #tpu.pipeline_mode<synchronous>, transform_indices = @transform_9, window_bounds = array<i64: 256, 128>}, {pipeline_mode = #tpu.pipeline_mode<synchronous>, transform_indices = @transform_10, window_bounds = array<i64: 1, 128>}, {transform_indices = @transform_11, window_bounds = array<i64: 16, 128>}]} {
    %c0 = arith.constant 0 : index
    %c0_0 = arith.constant 0 : index
    %0 = vector.load %arg1[%c0, %c0_0] : memref<16x128xbf16, #tpu.memory_space<vmem>>, vector<16x128xbf16>
    %c0_1 = arith.constant 0 : index
    %c0_2 = arith.constant 0 : index
    %1 = vector.load %arg2[%c0_1, %c0_2] : memref<16x128xbf16, #tpu.memory_space<vmem>>, vector<16x128xbf16>
    %c0_3 = arith.constant 0 : index
    %c0_4 = arith.constant 0 : index
    %2 = vector.load %arg3[%c0_3, %c0_4] : memref<16x128xbf16, #tpu.memory_space<vmem>>, vector<16x128xbf16>
    %c0_5 = arith.constant 0 : index
    %c0_6 = arith.constant 0 : index
    %3 = vector.load %arg2[%c0_5, %c0_6] : memref<16x128xbf16, #tpu.memory_space<vmem>>, vector<16x128xbf16>
    %4 = tpu.concatenate %0, %1, %2, %3 in 1 : vector<16x128xbf16>, vector<16x128xbf16>, vector<16x128xbf16>, vector<16x128xbf16> -> vector<16x512xbf16>
    %c0_7 = arith.constant 0 : index
    %c0_8 = arith.constant 0 : index
    %5 = vector.load %arg4[%c0_7, %c0_8] : memref<512x1024xbf16, #tpu.memory_space<vmem>>, vector<512x1024xbf16>
    %cst = arith.constant dense<0.000000e+00> : vector<16x1024xf32>
    %6 = tpu.matmul %4, %5, %cst {dimension_numbers = #tpu.dot_dimension_numbers<[1], [0], [0], [1], [0, 0, 1, 1], [], []>} : vector<16x512xbf16>, vector<512x1024xbf16>, vector<16x1024xf32> -> vector<16x1024xf32>
    %c0_9 = arith.constant 0 : index
    %c0_10 = arith.constant 0 : index
    %7 = vector.load %arg5[%c0_9, %c0_10] : memref<1x1024xf32, #tpu.memory_space<vmem>>, vector<1x1024xf32>
    %8 = vector.broadcast %7 : vector<1x1024xf32> to vector<16x1024xf32>
    %9 = arith.addf %6, %8 : vector<16x1024xf32>
    %cst_11 = arith.constant 1.000000e-01 : f32
    %10 = vector.broadcast %cst_11 : f32 to vector<16x1024xf32>
    %11 = arith.mulf %10, %9 : vector<16x1024xf32>
    %12 = arith.maximumf %9, %11 : vector<16x1024xf32>
    %13 = arith.truncf %12 : vector<16x1024xf32> to vector<16x1024xbf16>
    %c0_12 = arith.constant 0 : index
    %c0_13 = arith.constant 0 : index
    %14 = vector.load %arg6[%c0_12, %c0_13] : memref<1024x1024xbf16, #tpu.memory_space<vmem>>, vector<1024x1024xbf16>
    %cst_14 = arith.constant dense<0.000000e+00> : vector<16x1024xf32>
    %15 = tpu.matmul %13, %14, %cst_14 {dimension_numbers = #tpu.dot_dimension_numbers<[1], [0], [0], [1], [0, 0, 1, 1], [], []>} : vector<16x1024xbf16>, vector<1024x1024xbf16>, vector<16x1024xf32> -> vector<16x1024xf32>
    %c0_15 = arith.constant 0 : index
    %c0_16 = arith.constant 0 : index
    %16 = vector.load %arg7[%c0_15, %c0_16] : memref<1x1024xf32, #tpu.memory_space<vmem>>, vector<1x1024xf32>
    %17 = vector.broadcast %16 : vector<1x1024xf32> to vector<16x1024xf32>
    %18 = arith.addf %15, %17 : vector<16x1024xf32>
    %cst_17 = arith.constant 1.000000e-01 : f32
    %19 = vector.broadcast %cst_17 : f32 to vector<16x1024xf32>
    %20 = arith.mulf %19, %18 : vector<16x1024xf32>
    %21 = arith.maximumf %18, %20 : vector<16x1024xf32>
    %22 = arith.truncf %21 : vector<16x1024xf32> to vector<16x1024xbf16>
    %c0_18 = arith.constant 0 : index
    %c0_19 = arith.constant 0 : index
    %23 = vector.load %arg8[%c0_18, %c0_19] : memref<1024x256xbf16, #tpu.memory_space<vmem>>, vector<1024x256xbf16>
    %cst_20 = arith.constant dense<0.000000e+00> : vector<16x256xf32>
    %24 = tpu.matmul %22, %23, %cst_20 {dimension_numbers = #tpu.dot_dimension_numbers<[1], [0], [0], [1], [0, 0, 1, 1], [], []>} : vector<16x1024xbf16>, vector<1024x256xbf16>, vector<16x256xf32> -> vector<16x256xf32>
    %c0_21 = arith.constant 0 : index
    %c0_22 = arith.constant 0 : index
    %25 = vector.load %arg9[%c0_21, %c0_22] : memref<1x256xf32, #tpu.memory_space<vmem>>, vector<1x256xf32>
    %26 = vector.broadcast %25 : vector<1x256xf32> to vector<16x256xf32>
    %27 = arith.addf %24, %26 : vector<16x256xf32>
    %cst_23 = arith.constant 1.000000e-01 : f32
    %28 = vector.broadcast %cst_23 : f32 to vector<16x256xf32>
    %29 = arith.mulf %28, %27 : vector<16x256xf32>
    %30 = arith.maximumf %27, %29 : vector<16x256xf32>
    %31 = arith.truncf %30 : vector<16x256xf32> to vector<16x256xbf16>
    %c0_24 = arith.constant 0 : index
    %c0_25 = arith.constant 0 : index
    %32 = vector.load %arg10[%c0_24, %c0_25] : memref<256x128xbf16, #tpu.memory_space<vmem>>, vector<256x128xbf16>
    %cst_26 = arith.constant dense<0.000000e+00> : vector<16x128xf32>
    %33 = tpu.matmul %31, %32, %cst_26 {dimension_numbers = #tpu.dot_dimension_numbers<[1], [0], [0], [1], [0, 0, 1, 1], [], []>} : vector<16x256xbf16>, vector<256x128xbf16>, vector<16x128xf32> -> vector<16x128xf32>
    %c0_27 = arith.constant 0 : index
    %c0_28 = arith.constant 0 : index
    %34 = vector.load %arg11[%c0_27, %c0_28] : memref<1x128xf32, #tpu.memory_space<vmem>>, vector<1x128xf32>
    %35 = vector.broadcast %34 : vector<1x128xf32> to vector<16x128xf32>
    %36 = arith.addf %33, %35 : vector<16x128xf32>
    %c0_29 = arith.constant 0 : index
    %c0_30 = arith.constant 0 : index
    %37 = vector.load %arg12[%c0_29, %c0_30] : memref<16x128xf32, #tpu.memory_space<vmem>>, vector<16x128xf32>
    tpu.vector_store %arg12[%c0_29, %c0_30], %36 {strides = array<i32>} : memref<16x128xf32, #tpu.memory_space<vmem>>, vector<16x128xf32>,
    return
  }
  func.func @transform_0(%arg0: i32) -> (i32, i32) {
    %c0_i32 = arith.constant 0 : i32
    %c0_i32_0 = arith.constant 0 : i32
    return %arg0, %c0_i32 : i32, i32
  }
  func.func @transform_1(%arg0: i32) -> (i32, i32) {
    %c0_i32 = arith.constant 0 : i32
    %c0_i32_0 = arith.constant 0 : i32
    return %arg0, %c0_i32 : i32, i32
  }
  func.func @transform_2(%arg0: i32) -> (i32, i32) {
    %c0_i32 = arith.constant 0 : i32
    %c0_i32_0 = arith.constant 0 : i32
    return %arg0, %c0_i32 : i32, i32
  }
  func.func @transform_3(%arg0: i32) -> (i32, i32) {
    %c0_i32 = arith.constant 0 : i32
    %c0_i32_0 = arith.constant 0 : i32
    %c0_i32_1 = arith.constant 0 : i32
    return %c0_i32, %c0_i32_0 : i32, i32
  }
  func.func @transform_4(%arg0: i32) -> (i32, i32) {
    %c0_i32 = arith.constant 0 : i32
    %c0_i32_0 = arith.constant 0 : i32
    %c0_i32_1 = arith.constant 0 : i32
    return %c0_i32, %c0_i32_0 : i32, i32
  }
  func.func @transform_5(%arg0: i32) -> (i32, i32) {
    %c0_i32 = arith.constant 0 : i32
    %c0_i32_0 = arith.constant 0 : i32
    %c0_i32_1 = arith.constant 0 : i32
    return %c0_i32, %c0_i32_0 : i32, i32
  }
  func.func @transform_6(%arg0: i32) -> (i32, i32) {
    %c0_i32 = arith.constant 0 : i32
    %c0_i32_0 = arith.constant 0 : i32
    %c0_i32_1 = arith.constant 0 : i32
    return %c0_i32, %c0_i32_0 : i32, i32
  }
  func.func @transform_7(%arg0: i32) -> (i32, i32) {
    %c0_i32 = arith.constant 0 : i32
    %c0_i32_0 = arith.constant 0 : i32
    %c0_i32_1 = arith.constant 0 : i32
    return %c0_i32, %c0_i32_0 : i32, i32
  }
  func.func @transform_8(%arg0: i32) -> (i32, i32) {
    %c0_i32 = arith.constant 0 : i32
    %c0_i32_0 = arith.constant 0 : i32
    %c0_i32_1 = arith.constant 0 : i32
    return %c0_i32, %c0_i32_0 : i32, i32
  }
  func.func @transform_9(%arg0: i32) -> (i32, i32) {
    %c0_i32 = arith.constant 0 : i32
    %c0_i32_0 = arith.constant 0 : i32
    %c0_i32_1 = arith.constant 0 : i32
    return %c0_i32, %c0_i32_0 : i32, i32
  }
  func.func @transform_10(%arg0: i32) -> (i32, i32) {
    %c0_i32 = arith.constant 0 : i32
    %c0_i32_0 = arith.constant 0 : i32
    %c0_i32_1 = arith.constant 0 : i32
    return %c0_i32, %c0_i32_0 : i32, i32
  }
  func.func @transform_11(%arg0: i32) -> (i32, i32) {
    %c0_i32 = arith.constant 0 : i32
    %c0_i32_0 = arith.constant 0 : i32
    return %arg0, %c0_i32 : i32, i32
  }
}

module attributes {stable_mosaic.version = 11 : i64} {
  func.func @_classifier_kernel(%arg0: i32, %arg1: memref<16x128xbf16, #tpu.memory_space<vmem>>, %arg2: memref<16x128xbf16, #tpu.memory_space<vmem>>, %arg3: memref<16x128xbf16, #tpu.memory_space<vmem>>, %arg4: memref<512x1024xbf16, #tpu.memory_space<vmem>>, %arg5: memref<1x1024xf32, #tpu.memory_space<vmem>>, %arg6: memref<1024x1024xbf16, #tpu.memory_space<vmem>>, %arg7: memref<1x1024xf32, #tpu.memory_space<vmem>>, %arg8: memref<1024x256xbf16, #tpu.memory_space<vmem>>, %arg9: memref<1x256xf32, #tpu.memory_space<vmem>>, %arg10: memref<256x128xbf16, #tpu.memory_space<vmem>>, %arg11: memref<1x128xf32, #tpu.memory_space<vmem>>, %arg12: memref<16x128xf32, #tpu.memory_space<vmem>>) attributes {dimension_semantics = [#tpu.dimension_semantics<parallel>], iteration_bounds = array<i64: 1>, scalar_prefetch = 0 : i64, scratch_operands = 0 : i64, tpu.core_type = #tpu.core_type<tc>, window_params = [{transform_indices = @transform_0, window_bounds = array<i64: 16, 128>}, {transform_indices = @transform_1, window_bounds = array<i64: 16, 128>}, {transform_indices = @transform_2, window_bounds = array<i64: 16, 128>}, {pipeline_mode = #tpu.pipeline_mode<synchronous>, transform_indices = @transform_3, window_bounds = array<i64: 512, 1024>}, {pipeline_mode = #tpu.pipeline_mode<synchronous>, transform_indices = @transform_4, window_bounds = array<i64: 1, 1024>}, {pipeline_mode = #tpu.pipeline_mode<synchronous>, transform_indices = @transform_5, window_bounds = array<i64: 1024, 1024>}, {pipeline_mode = #tpu.pipeline_mode<synchronous>, transform_indices = @transform_6, window_bounds = array<i64: 1, 1024>}, {pipeline_mode = #tpu.pipeline_mode<synchronous>, transform_indices = @transform_7, window_bounds = array<i64: 1024, 256>}, {pipeline_mode = #tpu.pipeline_mode<synchronous>, transform_indices = @transform_8, window_bounds = array<i64: 1, 256>}, {pipeline_mode = #tpu.pipeline_mode<synchronous>, transform_indices = @transform_9, window_bounds = array<i64: 256, 128>}, {pipeline_mode = #tpu.pipeline_mode<synchronous>, transform_indices = @transform_10, window_bounds = array<i64: 1, 128>}, {transform_indices = @transform_11, window_bounds = array<i64: 16, 128>}]} {
    %c0 = arith.constant 0 : index
    %c0_0 = arith.constant 0 : index
    %0 = vector.load %arg1[%c0, %c0_0] : memref<16x128xbf16, #tpu.memory_space<vmem>>, vector<16x128xbf16>
    %c0_1 = arith.constant 0 : index
    %c0_2 = arith.constant 0 : index
    %1 = vector.load %arg2[%c0_1, %c0_2] : memref<16x128xbf16, #tpu.memory_space<vmem>>, vector<16x128xbf16>
    %c0_3 = arith.constant 0 : index
    %c0_4 = arith.constant 0 : index
    %2 = vector.load %arg3[%c0_3, %c0_4] : memref<16x128xbf16, #tpu.memory_space<vmem>>, vector<16x128xbf16>
    %c0_5 = arith.constant 0 : index
    %c0_6 = arith.constant 0 : index
    %3 = vector.load %arg2[%c0_5, %c0_6] : memref<16x128xbf16, #tpu.memory_space<vmem>>, vector<16x128xbf16>
    %4 = tpu.concatenate %0, %1, %2, %3 in 1 : vector<16x128xbf16>, vector<16x128xbf16>, vector<16x128xbf16>, vector<16x128xbf16> -> vector<16x512xbf16>
    %c0_7 = arith.constant 0 : index
    %c0_8 = arith.constant 0 : index
    %5 = vector.load %arg4[%c0_7, %c0_8] : memref<512x1024xbf16, #tpu.memory_space<vmem>>, vector<512x1024xbf16>
    %cst = arith.constant dense<0.000000e+00> : vector<16x1024xf32>
    %6 = tpu.matmul %4, %5, %cst {dimension_numbers = #tpu.dot_dimension_numbers<[1], [0], [0], [1], [0, 0, 1, 1], [], []>} : vector<16x512xbf16>, vector<512x1024xbf16>, vector<16x1024xf32> -> vector<16x1024xf32>
    %c0_9 = arith.constant 0 : index
    %c0_10 = arith.constant 0 : index
    %7 = vector.load %arg5[%c0_9, %c0_10] : memref<1x1024xf32, #tpu.memory_space<vmem>>, vector<1x1024xf32>
    %8 = vector.broadcast %7 : vector<1x1024xf32> to vector<16x1024xf32>
    %9 = arith.addf %6, %8 : vector<16x1024xf32>
    %cst_11 = arith.constant 1.000000e-01 : f32
    %10 = vector.broadcast %cst_11 : f32 to vector<16x1024xf32>
    %11 = arith.mulf %10, %9 : vector<16x1024xf32>
    %12 = arith.maximumf %9, %11 : vector<16x1024xf32>
    %13 = arith.truncf %12 : vector<16x1024xf32> to vector<16x1024xbf16>
    %c0_12 = arith.constant 0 : index
    %c0_13 = arith.constant 0 : index
    %14 = vector.load %arg6[%c0_12, %c0_13] : memref<1024x1024xbf16, #tpu.memory_space<vmem>>, vector<1024x1024xbf16>
    %cst_14 = arith.constant dense<0.000000e+00> : vector<16x1024xf32>
    %15 = tpu.matmul %13, %14, %cst_14 {dimension_numbers = #tpu.dot_dimension_numbers<[1], [0], [0], [1], [0, 0, 1, 1], [], []>} : vector<16x1024xbf16>, vector<1024x1024xbf16>, vector<16x1024xf32> -> vector<16x1024xf32>
    %c0_15 = arith.constant 0 : index
    %c0_16 = arith.constant 0 : index
    %16 = vector.load %arg7[%c0_15, %c0_16] : memref<1x1024xf32, #tpu.memory_space<vmem>>, vector<1x1024xf32>
    %17 = vector.broadcast %16 : vector<1x1024xf32> to vector<16x1024xf32>
    %18 = arith.addf %15, %17 : vector<16x1024xf32>
    %cst_17 = arith.constant 1.000000e-01 : f32
    %19 = vector.broadcast %cst_17 : f32 to vector<16x1024xf32>
    %20 = arith.mulf %19, %18 : vector<16x1024xf32>
    %21 = arith.maximumf %18, %20 : vector<16x1024xf32>
    %22 = arith.truncf %21 : vector<16x1024xf32> to vector<16x1024xbf16>
    %c0_18 = arith.constant 0 : index
    %c0_19 = arith.constant 0 : index
    %23 = vector.load %arg8[%c0_18, %c0_19] : memref<1024x256xbf16, #tpu.memory_space<vmem>>, vector<1024x256xbf16>
    %cst_20 = arith.constant dense<0.000000e+00> : vector<16x256xf32>
    %24 = tpu.matmul %22, %23, %cst_20 {dimension_numbers = #tpu.dot_dimension_numbers<[1], [0], [0], [1], [0, 0, 1, 1], [], []>} : vector<16x1024xbf16>, vector<1024x256xbf16>, vector<16x256xf32> -> vector<16x256xf32>
    %c0_21 = arith.constant 0 : index
    %c0_22 = arith.constant 0 : index
    %25 = vector.load %arg9[%c0_21, %c0_22] : memref<1x256xf32, #tpu.memory_space<vmem>>, vector<1x256xf32>
    %26 = vector.broadcast %25 : vector<1x256xf32> to vector<16x256xf32>
    %27 = arith.addf %24, %26 : vector<16x256xf32>
    %cst_23 = arith.constant 1.000000e-01 : f32
    %28 = vector.broadcast %cst_23 : f32 to vector<16x256xf32>
    %29 = arith.mulf %28, %27 : vector<16x256xf32>
    %30 = arith.maximumf %27, %29 : vector<16x256xf32>
    %31 = arith.truncf %30 : vector<16x256xf32> to vector<16x256xbf16>
    %c0_24 = arith.constant 0 : index
    %c0_25 = arith.constant 0 : index
    %32 = vector.load %arg10[%c0_24, %c0_25] : memref<256x128xbf16, #tpu.memory_space<vmem>>, vector<256x128xbf16>
    %cst_26 = arith.constant dense<0.000000e+00> : vector<16x128xf32>
    %33 = tpu.matmul %31, %32, %cst_26 {dimension_numbers = #tpu.dot_dimension_numbers<[1], [0], [0], [1], [0, 0, 1, 1], [], []>} : vector<16x256xbf16>, vector<256x128xbf16>, vector<16x128xf32> -> vector<16x128xf32>
    %c0_27 = arith.constant 0 : index
    %c0_28 = arith.constant 0 : index
    %34 = vector.load %arg11[%c0_27, %c0_28] : memref<1x128xf32, #tpu.memory_space<vmem>>, vector<1x128xf32>
    %35 = vector.broadcast %34 : vector<1x128xf32> to vector<16x128xf32>
    %36 = arith.addf %33, %35 : vector<16x128xf32>
    %c0_29 = arith.constant 0 : index
    %c0_30 = arith.constant 0 : index
    %37 = vector.load %arg12[%c0_29, %c0_30] : memref<16x128xf32, #tpu.memory_space<vmem>>, vector<16x128xf32>
    tpu.vector_store %arg12[%c0_29, %c0_30], %36 {strides = array<i32>} : memref<16x128xf32, #tpu.memory_space<vmem>>, vector<16x128xf32>,
    return
  }
  func.func @transform_0(%arg0: i32) -> (i32, i32) {
    %c0_i32 = arith.constant 0 : i32
    %c0_i32_0 = arith.constant 0 : i32
    return %arg0, %c0_i32 : i32, i32
  }
  func.func @transform_1(%arg0: i32) -> (i32, i32) {
    %c0_i32 = arith.constant 0 : i32
    %c0_i32_0 = arith.constant 0 : i32
    return %arg0, %c0_i32 : i32, i32
  }
  func.func @transform_2(%arg0: i32) -> (i32, i32) {
    %c0_i32 = arith.constant 0 : i32
    %c0_i32_0 = arith.constant 0 : i32
    return %arg0, %c0_i32 : i32, i32
  }
  func.func @transform_3(%arg0: i32) -> (i32, i32) {
    %c0_i32 = arith.constant 0 : i32
    %c0_i32_0 = arith.constant 0 : i32
    %c0_i32_1 = arith.constant 0 : i32
    return %c0_i32, %c0_i32_0 : i32, i32
  }
  func.func @transform_4(%arg0: i32) -> (i32, i32) {
    %c0_i32 = arith.constant 0 : i32
    %c0_i32_0 = arith.constant 0 : i32
    %c0_i32_1 = arith.constant 0 : i32
    return %c0_i32, %c0_i32_0 : i32, i32
  }
  func.func @transform_5(%arg0: i32) -> (i32, i32) {
    %c0_i32 = arith.constant 0 : i32
    %c0_i32_0 = arith.constant 0 : i32
    %c0_i32_1 = arith.constant 0 : i32
    return %c0_i32, %c0_i32_0 : i32, i32
  }
  func.func @transform_6(%arg0: i32) -> (i32, i32) {
    %c0_i32 = arith.constant 0 : i32
    %c0_i32_0 = arith.constant 0 : i32
    %c0_i32_1 = arith.constant 0 : i32
    return %c0_i32, %c0_i32_0 : i32, i32
  }
  func.func @transform_7(%arg0: i32) -> (i32, i32) {
    %c0_i32 = arith.constant 0 : i32
    %c0_i32_0 = arith.constant 0 : i32
    %c0_i32_1 = arith.constant 0 : i32
    return %c0_i32, %c0_i32_0 : i32, i32
  }
  func.func @transform_8(%arg0: i32) -> (i32, i32) {
    %c0_i32 = arith.constant 0 : i32
    %c0_i32_0 = arith.constant 0 : i32
    %c0_i32_1 = arith.constant 0 : i32
    return %c0_i32, %c0_i32_0 : i32, i32
  }
  func.func @transform_9(%arg0: i32) -> (i32, i32) {
    %c0_i32 = arith.constant 0 : i32
    %c0_i32_0 = arith.constant 0 : i32
    %c0_i32_1 = arith.constant 0 : i32
    return %c0_i32, %c0_i32_0 : i32, i32
  }
  func.func @transform_10(%arg0: i32) -> (i32, i32) {
    %c0_i32 = arith.constant 0 : i32
    %c0_i32_0 = arith.constant 0 : i32
    %c0_i32_1 = arith.constant 0 : i32
    return %c0_i32, %c0_i32_0 : i32, i32
  }
  func.func @transform_11(%arg0: i32) -> (i32, i32) {
    %c0_i32 = arith.constant 0 : i32
    %c0_i32_0 = arith.constant 0 : i32
    return %arg0, %c0_i32 : i32, i32
  }
}

</mosaic_0001>

<bundles_post_ra>
// kernel: tpu_custom_call.1
= control target key start
LH: loop header
LB: loop body
LE: loop exit
PB: predicated region body
PF: predicated region fallthrough
CT: control target
= control target key end

     0   :  { %16 = vsyncpa [#allocation3], 0  ;;  %s8970_s0 = inlined_call_operand.hbm [shape: bf16[16,128], index: 0, kind: input, shape index: {}]   ;;  %s8971_s1 = inlined_call_operand.hbm [shape: bf16[16,128], index: 1, kind: input, shape index: {}]   ;;  %s8972_s2 = inlined_call_operand.hbm [shape: bf16[16,128], index: 2, kind: input, shape index: {}]   ;;  %s8973_s3 = inlined_call_operand.hbm [shape: bf16[512,1024], index: 3, kind: input, shape index: {}]   ;;  %s8974_s4 = inlined_call_operand.hbm [shape: f32[1,1024], index: 4, kind: input, shape index: {}]   ;;  %s8975_s5 = inlined_call_operand.hbm [shape: bf16[1024,1024], index: 5, kind: input, shape index: {}]   ;;  %s8976_s6 = inlined_call_operand.hbm [shape: f32[1,1024], index: 6, kind: input, shape index: {}]   ;;  %s8977_s7 = inlined_call_operand.hbm [shape: bf16[1024,256], index: 7, kind: input, shape index: {}]   ;;  %s8978_s8 = inlined_call_operand.hbm [shape: f32[1,256], index: 8, kind: input, shape index: {}]   ;;  %s8979_s9 = inlined_call_operand.hbm [shape: bf16[256,128], index: 9, kind: input, shape index: {}]   ;;  %s8980_s10 = inlined_call_operand.hbm [shape: f32[1,128], index: 10, kind: input, shape index: {}]   ;;  %s8981_s11 = inlined_call_operand.hbm [shape: f32[16,128], index: 11, kind: output, shape index: {}]  }
   0x1   :  { %17 = vsyncpa [#allocation6], 0 }
   0x2   :  { %18 = vsyncpa [#allocation9], 0 }
   0x3   :  { %19 = vsyncpa [#allocation12], 0 }
   0x4   :  { %20 = vsyncpa [#allocation15], 0 }
   0x5   :  { %21 = vsyncpa [#allocation18], 0 }
   0x6   :  { %22 = vsyncpa [#allocation4], 0  ;;  %s8598_s17 = smov [#allocation5]   ;;  %s8599_s19 = smov [#allocation8]  }
   0x7   :  { %s40_s18 = sshll.u32 %s8598_s17, 4  ;;  %s64_s20 = sshll.u32 %s8599_s19, 4  ;;  %s41_s18 = int_to_ptr.vmem [resolvable:$true] %s40_s18  ;;  %s65_s20 = int_to_ptr.vmem [resolvable:$true] %s64_s20 }
   0x8   :  { %s8352_s21 = scalar_lea.vmem %s41_s18, 128  ;;  %p8357_p1 = scmp.lt.s32.totalorder %s41_s18, %s41_s18 }
   0x9   :  { %p8353_p0 = scmp.ne.s32.totalorder %s41_s18, %s8352_s21  ;;  %p8358_p2 = scmp.lt.s32.totalorder %s8352_s21, %s8352_s21 }
   0xb   :  { %p8359_p3 = por %p8358_p2, %p8357_p1 }
   0xd   :  { %p8360_p4 = pnand %p8359_p3, %p8353_p0 }
   0xf   :  { %8363 = shalt.err (!%p8360_p4)
}
  0x10   :  { %s8600_s22 = smov 64   ;;  %s8601_s23 = smov 4  }
  0x11   :  { %46 = dma.hbm_to_vmem [thread:$0]  %s8971_s1, 128, %s41_s18, [#allocation6], %s8600_s22, %s8600_s22, %s8601_s23  }
  0x12   :  { %s8372_s26 = scalar_lea.vmem %s65_s20, 32768  ;;  %p8377_p6 = scmp.lt.s32.totalorder %s65_s20, %s65_s20 }
  0x13   :  { %p8373_p5 = scmp.ne.s32.totalorder %s65_s20, %s8372_s26  ;;  %p8378_p7 = scmp.lt.s32.totalorder %s8372_s26, %s8372_s26 }
  0x15   :  { %p8379_p8 = por %p8378_p7, %p8377_p6 }
  0x17   :  { %p8380_p9 = pnand %p8379_p8, %p8373_p5 }
  0x19   :  { %8383 = shalt.err (!%p8380_p9)
}
  0x1a   :  { %s8602_s27 = smov 512   ;;  %s8603_s28 = smov 32  }
  0x1b   :  { %70 = dma.hbm_to_vmem [thread:$0]  %s8973_s3, 32768, %s65_s20, [#allocation9], %s8602_s27, %s8602_s27, %s8603_s28  }
  0x1c   :  { %s8604_s12 = smov [#allocation11]   ;;  %s8605_s14 = smov [#allocation14]  }
  0x1d   :  { %s86_s13 = sshll.u32 %s8604_s12, 4  ;;  %s108_s15 = sshll.u32 %s8605_s14, 4  ;;  %s87_s13 = int_to_ptr.vmem [resolvable:$true] %s86_s13  ;;  %s109_s15 = int_to_ptr.vmem [resolvable:$true] %s108_s15 }
  0x1e   :  { %s8392_s1 = scalar_lea.vmem %s87_s13, 65536  ;;  %p8397_p11 = scmp.lt.s32.totalorder %s87_s13, %s87_s13 }
  0x1f   :  { %p8393_p10 = scmp.ne.s32.totalorder %s87_s13, %s8392_s1  ;;  %p8398_p12 = scmp.lt.s32.totalorder %s8392_s1, %s8392_s1 }
  0x21   :  { %p8399_p13 = por %p8398_p12, %p8397_p11 }
  0x23   :  { %p8400_p0 = pnand %p8399_p13, %p8393_p10 }
  0x25   :  { %8403 = shalt.err (!%p8400_p0)
}
  0x26   :  { %92 = dma.hbm_to_vmem [thread:$0]  %s8975_s5, 65536, %s87_s13, [#allocation12], %s8602_s27, %s8602_s27, %s8603_s28  }
  0x27   :  { %s8412_s18 = scalar_lea.vmem %s109_s15, 16384  ;;  %p8417_p2 = scmp.lt.s32.totalorder %s109_s15, %s109_s15 }
  0x28   :  { %p8413_p1 = scmp.ne.s32.totalorder %s109_s15, %s8412_s18  ;;  %p8418_p3 = scmp.lt.s32.totalorder %s8412_s18, %s8412_s18 }
  0x2a   :  { %p8419_p4 = por %p8418_p3, %p8417_p2 }
  0x2c   :  { %p8420_p5 = pnand %p8419_p4, %p8413_p1 }
  0x2e   :  { %8423 = shalt.err (!%p8420_p5)
}
  0x2f   :  { %s8606_s3 = smov 128   ;;  %s8607_s19 = smov 8  }
  0x30   :  { %114 = dma.hbm_to_vmem [thread:$0]  %s8977_s7, 16384, %s109_s15, [#allocation15], %s8606_s3, %s8606_s3, %s8607_s19  }
  0x31   :  { %s8608_s24 = smov [#allocation17]   ;;  %s8609_s26 = smov [#allocation2]  }
  0x32   :  { %s130_s25 = sshll.u32 %s8608_s24, 4  ;;  %s28_s5 = sshll.u32 %s8609_s26, 4  ;;  %s131_s25 = int_to_ptr.vmem [resolvable:$true] %s130_s25  ;;  %s29_s5 = int_to_ptr.vmem [resolvable:$true] %s28_s5 }
  0x33   :  { %s8432_s27 = scalar_lea.vmem %s131_s25, 2048  ;;  %p8437_p7 = scmp.lt.s32.totalorder %s131_s25, %s131_s25 }
  0x34   :  { %p8433_p6 = scmp.ne.s32.totalorder %s131_s25, %s8432_s27  ;;  %p8438_p8 = scmp.lt.s32.totalorder %s8432_s27, %s8432_s27 }
  0x36   :  { %p8439_p9 = por %p8438_p8, %p8437_p7 }
  0x38   :  { %p8440_p10 = pnand %p8439_p9, %p8433_p6 }
  0x3a   :  { %8443 = shalt.err (!%p8440_p10)
}
  0x3b   :  { %136 = dma.hbm_to_vmem [thread:$0]  %s8979_s9, 2048, %s131_s25, [#allocation18], %s8600_s22, %s8600_s22, %s8601_s23  }
  0x3c   :  { %s8452_s7 = scalar_lea.vmem %s29_s5, 128  ;;  %p8457_p12 = scmp.lt.s32.totalorder %s29_s5, %s29_s5 }
  0x3d   :  { %p8453_p11 = scmp.ne.s32.totalorder %s29_s5, %s8452_s7  ;;  %p8458_p13 = scmp.lt.s32.totalorder %s8452_s7, %s8452_s7 }
  0x3f   :  { %p8459_p0 = por %p8458_p13, %p8457_p12 }
  0x41   :  { %p8460_p1 = pnand %p8459_p0, %p8453_p11 }
  0x43   :  { %8463 = shalt.err (!%p8460_p1)
}
  0x44   :  { %34 = dma.hbm_to_vmem [thread:$0]  %s8970_s0, 128, %s29_s5, [#allocation3], %s8600_s22, %s8600_s22, %s8601_s23  }
  0x45   :  { %s8610_s13 = smov [#allocation7]   ;;  %s8611_s15 = smov [#allocation10]  }
  0x46   :  { %s52_s14 = sshll.u32 %s8610_s13, 4  ;;  %s77_s1 = sshll.u32 %s8611_s15, 4  ;;  %s53_s14 = int_to_ptr.vmem [resolvable:$true] %s52_s14  ;;  %s78_s1 = int_to_ptr.vmem [resolvable:$true] %s77_s1 }
  0x47   :  { %s8472_s9 = scalar_lea.vmem %s53_s14, 128  ;;  %p8477_p3 = scmp.lt.s32.totalorder %s53_s14, %s53_s14 }
  0x48   :  { %p8473_p2 = scmp.ne.s32.totalorder %s53_s14, %s8472_s9  ;;  %p8478_p4 = scmp.lt.s32.totalorder %s8472_s9, %s8472_s9 }
  0x4a   :  { %p8479_p5 = por %p8478_p4, %p8477_p3 }
  0x4c   :  { %p8480_p6 = pnand %p8479_p5, %p8473_p2 }
  0x4e   :  { %8483 = shalt.err (!%p8480_p6)
}
  0x4f   :  { %58 = dma.hbm_to_vmem [thread:$0]  %s8972_s2, 128, %s53_s14, [#allocation6], %s8600_s22, %s8600_s22, %s8601_s23  }
  0x50   :  { %s8492_s0 = scalar_lea.vmem %s78_s1, 128  ;;  %p8497_p8 = scmp.lt.s32.totalorder %s78_s1, %s78_s1 }
  0x51   :  { %p8493_p7 = scmp.ne.s32.totalorder %s78_s1, %s8492_s0  ;;  %p8498_p9 = scmp.lt.s32.totalorder %s8492_s0, %s8492_s0 }
  0x53   :  { %p8499_p10 = por %p8498_p9, %p8497_p8 }
  0x55   :  { %p8500_p11 = pnand %p8499_p10, %p8493_p7 }
  0x57   :  { %8503 = shalt.err (!%p8500_p11)
}
  0x58   :  { %80 = dma.hbm_to_vmem [thread:$0]  %s8974_s4, 128, %s78_s1, [#allocation9]  }
  0x59   :  { %s8612_s21 = smov [#allocation13]   ;;  %s8613_s25 = smov [#allocation16]  }
  0x5a   :  { %s99_s24 = sshll.u32 %s8612_s21, 4  ;;  %s121_s26 = sshll.u32 %s8613_s25, 4  ;;  %s100_s24 = int_to_ptr.vmem [resolvable:$true] %s99_s24  ;;  %s122_s26 = int_to_ptr.vmem [resolvable:$true] %s121_s26 }
  0x5b   :  { %s8512_s5 = scalar_lea.vmem %s100_s24, 128  ;;  %p8517_p13 = scmp.lt.s32.totalorder %s100_s24, %s100_s24 }
  0x5c   :  { %p8513_p12 = scmp.ne.s32.totalorder %s100_s24, %s8512_s5  ;;  %p8518_p0 = scmp.lt.s32.totalorder %s8512_s5, %s8512_s5 }
  0x5e   :  { %p8519_p1 = por %p8518_p0, %p8517_p13 }
  0x60   :  { %p8520_p2 = pnand %p8519_p1, %p8513_p12 }
  0x62   :  { %8523 = shalt.err (!%p8520_p2)
}
  0x63   :  { %102 = dma.hbm_to_vmem [thread:$0]  %s8976_s6, 128, %s100_s24, [#allocation12]  }
  0x64   :  { %s8532_s23 = scalar_lea.vmem %s122_s26, 32  ;;  %p8537_p4 = scmp.lt.s32.totalorder %s122_s26, %s122_s26 }
  0x65   :  { %p8533_p3 = scmp.ne.s32.totalorder %s122_s26, %s8532_s23  ;;  %p8538_p5 = scmp.lt.s32.totalorder %s8532_s23, %s8532_s23 }
  0x67   :  { %p8539_p6 = por %p8538_p5, %p8537_p4 }
  0x69   :  { %p8540_p7 = pnand %p8539_p6, %p8533_p3 }
  0x6b   :  { %8543 = shalt.err (!%p8540_p7)
}
  0x6c   :  { %124 = dma.hbm_to_vmem [thread:$0]  %s8978_s8, 32, %s122_s26, [#allocation15]  }
  0x6d   :  { %s8614_s28 = smov [#allocation19]  }
  0x6e   :  { %s143_s29 = sshll.u32 %s8614_s28, 4  ;;  %s144_s29 = int_to_ptr.vmem [resolvable:$true] %s143_s29 }
  0x6f   :  { %s8552_s7 = scalar_lea.vmem %s144_s29, 16  ;;  %s8556_s30 = scalar_lea.vmem %s144_s29, 32 }
  0x70   :  { %p8553_p8 = scmp.ne.s32.totalorder %s144_s29, %s8552_s7  ;;  %p8557_p9 = scmp.lt.s32.totalorder %s144_s29, %s144_s29 }
  0x71   :  { %p8558_p10 = scmp.lt.s32.totalorder %s8556_s30, %s8552_s7 }
  0x73   :  { %p8559_p11 = por %p8558_p10, %p8557_p9 }
  0x75   :  { %p8560_p12 = pnand %p8559_p11, %p8553_p8 }
  0x77   :  { %8563 = shalt.err (!%p8560_p12)
}
  0x78   :  { %146 = dma.hbm_to_vmem [thread:$0]  %s8980_s10, 16, %s144_s29, [#allocation18]  }
  0x79   :  { %8584 = dma.done.wait [#allocation3], 128  }
  0x7a   :  { %8585 = vsyncadd [#allocation3], 4294967168 }
  0x7b   :  { %8586 = dma.done.wait [#allocation6], 256  }
  0x7c   :  { %8587 = vsyncadd [#allocation6], 4294967040 }
  0x7d   :  { %8588 = dma.done.wait [#allocation9], 32896  }
  0x7e   :  { %8589 = vsyncadd [#allocation9], 4294934400 }
  0x7f   :  { %8590 = dma.done.wait [#allocation12], 65664  }
  0x80   :  { %8591 = vsyncadd [#allocation12], 4294901632 }
  0x81   :  { %8592 = dma.done.wait [#allocation15], 16416  }
  0x82   :  { %8593 = vsyncadd [#allocation15], 4294950880 }
  0x83   :  { %8594 = dma.done.wait [#allocation18], 2064  }
  0x84   :  { %8595 = vsyncadd [#allocation18], 4294965232  ;;  %v261_v0 = vld [vmem:[#allocation8 + $0x1c0] sm:$0xff]  ;;  %v8724_v57 = vld [vmem:[#allocation5] sm:$0xff]   ;;  %s8615_s8 = smov [#allocation20]  }
  0x85   :  { %v265_v1 = vld [vmem:[#allocation8 + $0x1e0] sm:$0xff]  ;;  %1815 = vmatprep.mubr.bf16.mxu0 %v8724_v57  ;;  %1858 = vmatprep.mubr.bf16.mxu1 %v8724_v57  ;;  %s7154_s10 = sshll.u32 %s8615_s8, 4  ;;  %s7155_s10 = int_to_ptr.vmem [resolvable:$true] %s7154_s10 }
  0x86   :  { %v389_v2 = vld [vmem:[#allocation8 + $0x5c0] sm:$0xff]  ;;  %v7231_v3 = vcombine.high %v261_v0, %v265_v1  ;;  %v7230_v5 = vcombine.low %v261_v0, %v265_v1  ;;  %s8564_s13 = scalar_lea.vmem %s7155_s10, 256  ;;  %p8569_p0 = scmp.lt.s32.totalorder %s7155_s10, %s7155_s10 }
  0x87   :  { %v393_v4 = vld [vmem:[#allocation8 + $0x5e0] sm:$0xff]  ;;  %p8565_p13 = scmp.ne.s32.totalorder %s7155_s10, %s8564_s13  ;;  %p8570_p1 = scmp.lt.s32.totalorder %s8564_s13, %s8564_s13 }
  0x88   :  { %v253_v6 = vld [vmem:[#allocation8 + $0x180] sm:$0xff]  ;;  %v7359_v8 = vcombine.high %v389_v2, %v393_v4  ;;  %v7358_v9 = vcombine.low %v389_v2, %v393_v4  ;;  %1783 = vmatprep.subr.bf16.mxu0 %v7231_v3 }
  0x89   :  { %v257_v7 = vld [vmem:[#allocation8 + $0x1a0] sm:$0xff]  ;;  %1784 = vmatpush1.bf16.msra.mxu0 %v7230_v5  ;;  %p8571_p2 = por %p8570_p1, %p8569_p0 }
  0x8a   :  { %v7223_v10 = vcombine.high %v253_v6, %v257_v7  ;;  %v381_v11 = vld [vmem:[#allocation8 + $0x580] sm:$0xff]  ;;  %1826 = vmatprep.subr.bf16.mxu1 %v7359_v8  ;;  %v7222_v18 = vcombine.low %v253_v6, %v257_v7 }
  0x8b   :  { %v385_v12 = vld [vmem:[#allocation8 + $0x5a0] sm:$0xff]  ;;  %1827 = vmatpush1.bf16.msra.mxu1 %v7358_v9  ;;  %p8572_p3 = pnand %p8571_p2, %p8565_p13 }
  0x8c   :  { %v245_v13 = vld [vmem:[#allocation8 + $0x140] sm:$0xff]  ;;  %v7351_v14 = vcombine.high %v381_v11, %v385_v12  ;;  %1785 = vmatprep.subr.bf16.mxu0 %v7223_v10  ;;  %v7350_v19 = vcombine.low %v381_v11, %v385_v12 }
  0x8d   :  { %v249_v15 = vld [vmem:[#allocation8 + $0x160] sm:$0xff]  ;;  %1786 = vmatpush1.bf16.msra.mxu0 %v7222_v18 }
  0x8e   :  { %v373_v16 = vld [vmem:[#allocation8 + $0x540] sm:$0xff]  ;;  %v7215_v20 = vcombine.high %v245_v13, %v249_v15  ;;  %1828 = vmatprep.subr.bf16.mxu1 %v7351_v14  ;;  %v7214_v26 = vcombine.low %v245_v13, %v249_v15 }
  0x8f   :  { %v377_v17 = vld [vmem:[#allocation8 + $0x560] sm:$0xff]  ;;  %1829 = vmatpush1.bf16.msra.mxu1 %v7350_v19 }
  0x90   :  { %v7343_v21 = vcombine.high %v373_v16, %v377_v17  ;;  %v237_v22 = vld [vmem:[#allocation8 + $0x100] sm:$0xff]  ;;  %1787 = vmatprep.subr.bf16.mxu0 %v7215_v20  ;;  %v7342_v27 = vcombine.low %v373_v16, %v377_v17 }
  0x91   :  { %v241_v23 = vld [vmem:[#allocation8 + $0x120] sm:$0xff]  ;;  %1788 = vmatpush1.bf16.msra.mxu0 %v7214_v26 }
  0x92   :  { %v365_v24 = vld [vmem:[#allocation8 + $0x500] sm:$0xff]  ;;  %v7207_v28 = vcombine.high %v237_v22, %v241_v23  ;;  %1830 = vmatprep.subr.bf16.mxu1 %v7343_v21  ;;  %v7206_v34 = vcombine.low %v237_v22, %v241_v23 }
  0x93   :  { %v369_v25 = vld [vmem:[#allocation8 + $0x520] sm:$0xff]  ;;  %1831 = vmatpush1.bf16.msra.mxu1 %v7342_v27 }
  0x94   :  { %v7335_v29 = vcombine.high %v365_v24, %v369_v25  ;;  %v229_v30 = vld [vmem:[#allocation8 + $0xc0] sm:$0xff]  ;;  %1789 = vmatprep.subr.bf16.mxu0 %v7207_v28  ;;  %v7334_v35 = vcombine.low %v365_v24, %v369_v25 }
  0x95   :  { %v233_v31 = vld [vmem:[#allocation8 + $0xe0] sm:$0xff]  ;;  %1790 = vmatpush1.bf16.msra.mxu0 %v7206_v34 }
  0x96   :  { %v357_v32 = vld [vmem:[#allocation8 + $0x4c0] sm:$0xff]  ;;  %v7199_v36 = vcombine.high %v229_v30, %v233_v31  ;;  %1832 = vmatprep.subr.bf16.mxu1 %v7335_v29  ;;  %v7198_v42 = vcombine.low %v229_v30, %v233_v31 }
  0x97   :  { %v361_v33 = vld [vmem:[#allocation8 + $0x4e0] sm:$0xff]  ;;  %1833 = vmatpush1.bf16.msra.mxu1 %v7334_v35 }
  0x98   :  { %v7327_v37 = vcombine.high %v357_v32, %v361_v33  ;;  %v221_v38 = vld [vmem:[#allocation8 + $0x80] sm:$0xff]  ;;  %1791 = vmatprep.subr.bf16.mxu0 %v7199_v36  ;;  %v7326_v43 = vcombine.low %v357_v32, %v361_v33 }
  0x99   :  { %v225_v39 = vld [vmem:[#allocation8 + $0xa0] sm:$0xff]  ;;  %1792 = vmatpush1.bf16.msra.mxu0 %v7198_v42 }
  0x9a   :  { %v349_v40 = vld [vmem:[#allocation8 + $0x480] sm:$0xff]  ;;  %v7191_v44 = vcombine.high %v221_v38, %v225_v39  ;;  %1834 = vmatprep.subr.bf16.mxu1 %v7327_v37  ;;  %v7190_v50 = vcombine.low %v221_v38, %v225_v39 }
  0x9b   :  { %v353_v41 = vld [vmem:[#allocation8 + $0x4a0] sm:$0xff]  ;;  %1835 = vmatpush1.bf16.msra.mxu1 %v7326_v43 }
  0x9c   :  { %v7319_v45 = vcombine.high %v349_v40, %v353_v41  ;;  %v213_v46 = vld [vmem:[#allocation8 + $0x40] sm:$0xff]  ;;  %1793 = vmatprep.subr.bf16.mxu0 %v7191_v44  ;;  %v7318_v53 = vcombine.low %v349_v40, %v353_v41 }
  0x9d   :  { %v217_v47 = vld [vmem:[#allocation8 + $0x60] sm:$0xff]  ;;  %1794 = vmatpush1.bf16.msra.mxu0 %v7190_v50 }
  0x9e   :  { %v341_v48 = vld [vmem:[#allocation8 + $0x440] sm:$0xff]  ;;  %v7183_v54 = vcombine.high %v213_v46, %v217_v47  ;;  %1836 = vmatprep.subr.bf16.mxu1 %v7319_v45  ;;  %v7182_v59 = vcombine.low %v213_v46, %v217_v47 }
  0x9f   :  { %v345_v49 = vld [vmem:[#allocation8 + $0x460] sm:$0xff]  ;;  %1837 = vmatpush1.bf16.msra.mxu1 %v7318_v53 }
  0xa0   :  { %v205_v51 = vld [vmem:[#allocation8] sm:$0xff]  ;;  %v7311_v56 = vcombine.high %v341_v48, %v345_v49  ;;  %1795 = vmatprep.subr.bf16.mxu0 %v7183_v54  ;;  %v7310_v60 = vcombine.low %v341_v48, %v345_v49 }
  0xa1   :  { %v209_v52 = vld [vmem:[#allocation8 + $0x20] sm:$0xff]  ;;  %1796 = vmatpush1.bf16.msra.mxu0 %v7182_v59 }
  0xa2   :  { %v333_v55 = vld [vmem:[#allocation8 + $0x400] sm:$0xff]  ;;  %v7175_v61 = vcombine.high %v205_v51, %v209_v52  ;;  %1838 = vmatprep.subr.bf16.mxu1 %v7311_v56  ;;  %v7174_v3 = vcombine.low %v205_v51, %v209_v52 }
  0xa3   :  { %v337_v58 = vld [vmem:[#allocation8 + $0x420] sm:$0xff]  ;;  %1839 = vmatpush1.bf16.msra.mxu1 %v7310_v60 }
  0xa4   :  { %v7303_v62 = vcombine.high %v333_v55, %v337_v58  ;;  %v325_v63 = vld [vmem:[#allocation8 + $0x3c0] sm:$0xff]  ;;  %1797 = vmatprep.subr.bf16.mxu0 %v7175_v61  ;;  %v7302_v4 = vcombine.low %v333_v55, %v337_v58 }
  0xa5   :  { %v329_v0 = vld [vmem:[#allocation8 + $0x3e0] sm:$0xff]  ;;  %1798 = vmatpush1.bf16.msra.mxu0 %v7174_v3  ;;  %v394_v3 = vld [vmem:[#allocation8 + $0x5e8] sm:$0xff] }
  0xa6   :  { %v453_v1 = vld [vmem:[#allocation8 + $0x7c0] sm:$0xff]  ;;  %v7295_v5 = vcombine.high %v325_v63, %v329_v0  ;;  %1840 = vmatprep.subr.bf16.mxu1 %v7303_v62  ;;  %v7294_v11 = vcombine.low %v325_v63, %v329_v0  ;;  %v262_v0 = vld [vmem:[#allocation8 + $0x1c8] sm:$0xff] }
  0xa7   :  { %v457_v2 = vld [vmem:[#allocation8 + $0x7e0] sm:$0xff]  ;;  %1841 = vmatpush1.bf16.msra.mxu1 %v7302_v4 }
  0xa8   :  { %v7423_v6 = vcombine.high %v453_v1, %v457_v2  ;;  %v317_v7 = vld [vmem:[#allocation8 + $0x380] sm:$0xff]  ;;  %1799 = vmatprep.subr.bf16.mxu0 %v7295_v5  ;;  %v7422_v12 = vcombine.low %v453_v1, %v457_v2  ;;  %v266_v1 = vld [vmem:[#allocation8 + $0x1e8] sm:$0xff] }
  0xa9   :  { %v321_v8 = vld [vmem:[#allocation8 + $0x3a0] sm:$0xff]  ;;  %1800 = vmatpush2.bf16.msra.mxu0 %v7294_v11  ;;  %v390_v2 = vld [vmem:[#allocation8 + $0x5c8] sm:$0xff] }
  0xaa   :  { %v445_v9 = vld [vmem:[#allocation8 + $0x780] sm:$0xff]  ;;  %v7287_v13 = vcombine.high %v317_v7, %v321_v8  ;;  %1842 = vmatprep.subr.bf16.mxu1 %v7423_v6  ;;  %v7286_v19 = vcombine.low %v317_v7, %v321_v8  ;;  %v7233_v6 = vcombine.high %v262_v0, %v266_v1  ;;  %v7361_v7 = vcombine.high %v390_v2, %v394_v3  ;;  %v254_v8 = vld [vmem:[#allocation8 + $0x188] sm:$0xff] }
  0xab   :  { %v449_v10 = vld [vmem:[#allocation8 + $0x7a0] sm:$0xff]  ;;  %1843 = vmatpush2.bf16.msra.mxu1 %v7422_v12  ;;  %v382_v11 = vld [vmem:[#allocation8 + $0x588] sm:$0xff] }
  0xac   :  { %v7415_v14 = vcombine.high %v445_v9, %v449_v10  ;;  %v309_v15 = vld [vmem:[#allocation8 + $0x340] sm:$0xff]  ;;  %1801 = vmatprep.subr.bf16.mxu0 %v7287_v13  ;;  %v7414_v20 = vcombine.low %v445_v9, %v449_v10  ;;  %v258_v9 = vld [vmem:[#allocation8 + $0x1a8] sm:$0xff]  ;;  %v8730_v13 = vld [vmem:[#allocation7] sm:$0xff]  }
  0xad   :  { %v313_v16 = vld [vmem:[#allocation8 + $0x360] sm:$0xff]  ;;  %1802 = vmatpush2.bf16.msra.mxu0 %v7286_v19  ;;  %v8728_v10 = vld [vmem:[#allocation2] sm:$0xff]  }
  0xae   :  { %v437_v17 = vld [vmem:[#allocation8 + $0x740] sm:$0xff]  ;;  %v7279_v21 = vcombine.high %v309_v15, %v313_v16  ;;  %1844 = vmatprep.subr.bf16.mxu1 %v7415_v14  ;;  %v7278_v27 = vcombine.low %v309_v15, %v313_v16  ;;  %v386_v12 = vld [vmem:[#allocation8 + $0x5a8] sm:$0xff]  ;;  %v7232_v14 = vcombine.low %v262_v0, %v266_v1  ;;  %v7360_v15 = vcombine.low %v390_v2, %v394_v3 }
  0xaf   :  { %v441_v18 = vld [vmem:[#allocation8 + $0x760] sm:$0xff]  ;;  %1845 = vmatpush2.bf16.msra.mxu1 %v7414_v20  ;;  %v7225_v16 = vcombine.high %v254_v8, %v258_v9  ;;  %v250_v19 = vld [vmem:[#allocation8 + $0x168] sm:$0xff] }
  0xb0   :  { %v7407_v22 = vcombine.high %v437_v17, %v441_v18  ;;  %v301_v23 = vld [vmem:[#allocation8 + $0x300] sm:$0xff]  ;;  %1803 = vmatprep.subr.bf16.mxu0 %v7279_v21  ;;  %v7406_v28 = vcombine.low %v437_v17, %v441_v18  ;;  %v7353_v17 = vcombine.high %v382_v11, %v386_v12  ;;  %v246_v18 = vld [vmem:[#allocation8 + $0x148] sm:$0xff] }
  0xb1   :  { %v305_v24 = vld [vmem:[#allocation8 + $0x320] sm:$0xff]  ;;  %1804 = vmatpush2.bf16.msra.mxu0 %v7278_v27  ;;  %v374_v20 = vld [vmem:[#allocation8 + $0x548] sm:$0xff] }
  0xb2   :  { %v429_v25 = vld [vmem:[#allocation8 + $0x700] sm:$0xff]  ;;  %v7271_v29 = vcombine.high %v301_v23, %v305_v24  ;;  %1846 = vmatprep.subr.bf16.mxu1 %v7407_v22  ;;  %v7270_v35 = vcombine.low %v301_v23, %v305_v24  ;;  %v378_v21 = vld [vmem:[#allocation8 + $0x568] sm:$0xff]  ;;  %v7224_v22 = vcombine.low %v254_v8, %v258_v9  ;;  %v7352_v23 = vcombine.low %v382_v11, %v386_v12 }
  0xb3   :  { %v433_v26 = vld [vmem:[#allocation8 + $0x720] sm:$0xff]  ;;  %1847 = vmatpush2.bf16.msra.mxu1 %v7406_v28  ;;  %v7217_v24 = vcombine.high %v246_v18, %v250_v19  ;;  %v366_v27 = vld [vmem:[#allocation8 + $0x508] sm:$0xff]  ;;  %v7345_v28 = vcombine.high %v374_v20, %v378_v21 }
  0xb4   :  { %v7399_v30 = vcombine.high %v429_v25, %v433_v26  ;;  %v293_v31 = vld [vmem:[#allocation8 + $0x2c0] sm:$0xff]  ;;  %1805 = vmatprep.subr.bf16.mxu0 %v7271_v29  ;;  %v7398_v36 = vcombine.low %v429_v25, %v433_v26  ;;  %v238_v25 = vld [vmem:[#allocation8 + $0x108] sm:$0xff] }
  0xb5   :  { %v297_v32 = vld [vmem:[#allocation8 + $0x2e0] sm:$0xff]  ;;  %1806 = vmatpush2.bf16.msra.mxu0 %v7270_v35  ;;  %v242_v26 = vld [vmem:[#allocation8 + $0x128] sm:$0xff] }
  0xb6   :  { %v421_v33 = vld [vmem:[#allocation8 + $0x6c0] sm:$0xff]  ;;  %v7263_v37 = vcombine.high %v293_v31, %v297_v32  ;;  %1848 = vmatprep.subr.bf16.mxu1 %v7399_v30  ;;  %v7262_v43 = vcombine.low %v293_v31, %v297_v32  ;;  %v370_v29 = vld [vmem:[#allocation8 + $0x528] sm:$0xff]  ;;  %v7216_v30 = vcombine.low %v246_v18, %v250_v19  ;;  %v7344_v31 = vcombine.low %v374_v20, %v378_v21 }
  0xb7   :  { %v425_v34 = vld [vmem:[#allocation8 + $0x6e0] sm:$0xff]  ;;  %1849 = vmatpush2.bf16.msra.mxu1 %v7398_v36  ;;  %v7209_v32 = vcombine.high %v238_v25, %v242_v26  ;;  %v358_v35 = vld [vmem:[#allocation8 + $0x4c8] sm:$0xff]  ;;  %v7337_v36 = vcombine.high %v366_v27, %v370_v29 }
  0xb8   :  { %v7391_v38 = vcombine.high %v421_v33, %v425_v34  ;;  %v285_v39 = vld [vmem:[#allocation8 + $0x280] sm:$0xff]  ;;  %1807 = vmatprep.subr.bf16.mxu0 %v7263_v37  ;;  %v7390_v44 = vcombine.low %v421_v33, %v425_v34  ;;  %v230_v33 = vld [vmem:[#allocation8 + $0xc8] sm:$0xff] }
  0xb9   :  { %v289_v40 = vld [vmem:[#allocation8 + $0x2a0] sm:$0xff]  ;;  %1808 = vmatpush2.bf16.msra.mxu0 %v7262_v43  ;;  %v234_v34 = vld [vmem:[#allocation8 + $0xe8] sm:$0xff] }
  0xba   :  { %v413_v41 = vld [vmem:[#allocation8 + $0x680] sm:$0xff]  ;;  %v7255_v45 = vcombine.high %v285_v39, %v289_v40  ;;  %1850 = vmatprep.subr.bf16.mxu1 %v7391_v38  ;;  %v7254_v51 = vcombine.low %v285_v39, %v289_v40  ;;  %v362_v37 = vld [vmem:[#allocation8 + $0x4e8] sm:$0xff]  ;;  %v7208_v38 = vcombine.low %v238_v25, %v242_v26  ;;  %v7336_v39 = vcombine.low %v366_v27, %v370_v29 }
  0xbb   :  { %v417_v42 = vld [vmem:[#allocation8 + $0x6a0] sm:$0xff]  ;;  %1851 = vmatpush2.bf16.msra.mxu1 %v7390_v44  ;;  %v7201_v40 = vcombine.high %v230_v33, %v234_v34  ;;  %v350_v43 = vld [vmem:[#allocation8 + $0x488] sm:$0xff]  ;;  %v7329_v44 = vcombine.high %v358_v35, %v362_v37 }
  0xbc   :  { %v7383_v46 = vcombine.high %v413_v41, %v417_v42  ;;  %v277_v47 = vld [vmem:[#allocation8 + $0x240] sm:$0xff]  ;;  %1809 = vmatprep.subr.bf16.mxu0 %v7255_v45  ;;  %v7382_v52 = vcombine.low %v413_v41, %v417_v42  ;;  %v222_v41 = vld [vmem:[#allocation8 + $0x88] sm:$0xff] }
  0xbd   :  { %v281_v48 = vld [vmem:[#allocation8 + $0x260] sm:$0xff]  ;;  %1810 = vmatpush2.bf16.msra.mxu0 %v7254_v51  ;;  %v226_v42 = vld [vmem:[#allocation8 + $0xa8] sm:$0xff] }
  0xbe   :  { %v405_v49 = vld [vmem:[#allocation8 + $0x640] sm:$0xff]  ;;  %v7247_v53 = vcombine.high %v277_v47, %v281_v48  ;;  %1852 = vmatprep.subr.bf16.mxu1 %v7383_v46  ;;  %v7246_v60 = vcombine.low %v277_v47, %v281_v48  ;;  %v354_v45 = vld [vmem:[#allocation8 + $0x4a8] sm:$0xff]  ;;  %v7200_v46 = vcombine.low %v230_v33, %v234_v34  ;;  %v7328_v47 = vcombine.low %v358_v35, %v362_v37 }
  0xbf   :  { %v409_v50 = vld [vmem:[#allocation8 + $0x660] sm:$0xff]  ;;  %1853 = vmatpush2.bf16.msra.mxu1 %v7382_v52  ;;  %v7193_v48 = vcombine.high %v222_v41, %v226_v42  ;;  %v342_v51 = vld [vmem:[#allocation8 + $0x448] sm:$0xff]  ;;  %v7321_v52 = vcombine.high %v350_v43, %v354_v45 }
  0xc0   :  { %v7375_v54 = vcombine.high %v405_v49, %v409_v50  ;;  %v269_v55 = vld [vmem:[#allocation8 + $0x200] sm:$0xff]  ;;  %1811 = vmatprep.subr.bf16.mxu0 %v7247_v53  ;;  %v7374_v61 = vcombine.low %v405_v49, %v409_v50  ;;  %v214_v49 = vld [vmem:[#allocation8 + $0x48] sm:$0xff] }
  0xc1   :  { %v273_v56 = vld [vmem:[#allocation8 + $0x220] sm:$0xff]  ;;  %1812 = vmatpush2.bf16.msra.mxu0 %v7246_v60  ;;  %v218_v50 = vld [vmem:[#allocation8 + $0x68] sm:$0xff] }
  0xc2   :  { %v397_v58 = vld [vmem:[#allocation8 + $0x600] sm:$0xff]  ;;  %v7239_v62 = vcombine.high %v269_v55, %v273_v56  ;;  %1854 = vmatprep.subr.bf16.mxu1 %v7375_v54  ;;  %v7238_v4 = vcombine.low %v269_v55, %v273_v56  ;;  %v346_v53 = vld [vmem:[#allocation8 + $0x468] sm:$0xff]  ;;  %v7192_v54 = vcombine.low %v222_v41, %v226_v42  ;;  %v7320_v55 = vcombine.low %v350_v43, %v354_v45 }
  0xc3   :  { %v401_v59 = vld [vmem:[#allocation8 + $0x620] sm:$0xff]  ;;  %1855 = vmatpush2.bf16.msra.mxu1 %v7374_v61  ;;  %v7185_v56 = vcombine.high %v214_v49, %v218_v50  ;;  %v334_v60 = vld [vmem:[#allocation8 + $0x408] sm:$0xff]  ;;  %v7313_v61 = vcombine.high %v342_v51, %v346_v53  ;;  %v7312_v0 = vcombine.low %v342_v51, %v346_v53 }
  0xc4   :  { %v7367_v63 = vcombine.high %v397_v58, %v401_v59  ;;  %1813 = vmatprep.subr.bf16.mxu0 %v7239_v62  ;;  %v7366_v5 = vcombine.low %v397_v58, %v401_v59  ;;  %v206_v58 = vld [vmem:[#allocation8 + $0x8] sm:$0xff] }
  0xc5   :  { %1814 = vmatpush2.bf16.msra.mxu0 %v7238_v4  ;;  %v210_v59 = vld [vmem:[#allocation8 + $0x28] sm:$0xff] }
  0xc6   :  { %1856 = vmatprep.subr.bf16.mxu1 %v7367_v63  ;;  %1869 = vmatprep.subr.bf16.mxu0 %v7233_v6  ;;  %v338_v62 = vld [vmem:[#allocation8 + $0x428] sm:$0xff]  ;;  %v7184_v63 = vcombine.low %v214_v49, %v218_v50  ;;  %v7177_v1 = vcombine.high %v206_v58, %v210_v59 }
  0xc7   :  { %1857 = vmatpush2.bf16.msra.mxu1 %v7366_v5  ;;  %v326_v2 = vld [vmem:[#allocation8 + $0x3c8] sm:$0xff]  ;;  %v7305_v5 = vcombine.high %v334_v60, %v338_v62  ;;  %v7304_v8 = vcombine.low %v334_v60, %v338_v62 }
  0xc8   :  { %1912 = vmatprep.subr.bf16.mxu1 %v7361_v7  ;;  %1816 = vmatmul.mubr.bf16.vlgmr.msra.gmra.mxu0 %v8728_v10  ;;  %v330_v3 = vld [vmem:[#allocation8 + $0x3e8] sm:$0xff]  ;;  %v7176_v7 = vcombine.low %v206_v58, %v210_v59 }
  0xc9   :  { %1870 = vmatpush1.bf16.msra.mxu0 %v7232_v14  ;;  %1901 = vmatprep.mubr.bf16.mxu0 %v8724_v57  ;;  %v454_v4 = vld [vmem:[#allocation8 + $0x7c8] sm:$0xff]  ;;  %v7297_v9 = vcombine.high %v326_v2, %v330_v3 }
  0xca   :  { %1859 = vmatmul.mubr.bf16.vlgmr.msra.gmra.mxu1 %v8730_v13  ;;  %1871 = vmatprep.subr.bf16.mxu0 %v7225_v16  ;;  %v458_v6 = vld [vmem:[#allocation8 + $0x7e8] sm:$0xff] }
  0xcb   :  { %1913 = vmatpush1.bf16.msra.mxu1 %v7360_v15  ;;  %1944 = vmatprep.mubr.bf16.mxu1 %v8724_v57  ;;  %v318_v11 = vld [vmem:[#allocation8 + $0x388] sm:$0xff]  ;;  %v7425_v15 = vcombine.high %v454_v4, %v458_v6  ;;  %v7424_v18 = vcombine.low %v454_v4, %v458_v6  ;;  %v267_v6 = vld [vmem:[#allocation8 + $0x1f0] sm:$0xff] }
  0xcc   :  { %1914 = vmatprep.subr.bf16.mxu1 %v7353_v17  ;;  %v322_v12 = vld [vmem:[#allocation8 + $0x3a8] sm:$0xff]  ;;  %v7296_v17 = vcombine.low %v326_v2, %v330_v3 }
  0xcd   :  { %1872 = vmatpush1.bf16.msra.mxu0 %v7224_v22  ;;  %v446_v14 = vld [vmem:[#allocation8 + $0x788] sm:$0xff]  ;;  %v7289_v19 = vcombine.high %v318_v11, %v322_v12  ;;  %v7288_v25 = vcombine.low %v318_v11, %v322_v12 }
  0xce   :  { %1873 = vmatprep.subr.bf16.mxu0 %v7217_v24  ;;  %v450_v16 = vld [vmem:[#allocation8 + $0x7a8] sm:$0xff] }
  0xcf   :  { %1915 = vmatpush1.bf16.msra.mxu1 %v7352_v23  ;;  %v310_v20 = vld [vmem:[#allocation8 + $0x348] sm:$0xff]  ;;  %v7417_v23 = vcombine.high %v446_v14, %v450_v16  ;;  %v7416_v26 = vcombine.low %v446_v14, %v450_v16  ;;  %v259_v16 = vld [vmem:[#allocation8 + $0x1b0] sm:$0xff] }
  0xd0   :  { %1916 = vmatprep.subr.bf16.mxu1 %v7345_v28  ;;  %v314_v21 = vld [vmem:[#allocation8 + $0x368] sm:$0xff] }
  0xd1   :  { %1874 = vmatpush1.bf16.msra.mxu0 %v7216_v30  ;;  %v438_v22 = vld [vmem:[#allocation8 + $0x748] sm:$0xff]  ;;  %v7281_v27 = vcombine.high %v310_v20, %v314_v21  ;;  %v7280_v33 = vcombine.low %v310_v20, %v314_v21  ;;  %v247_v21 = vld [vmem:[#allocation8 + $0x150] sm:$0xff] }
  0xd2   :  { %1875 = vmatprep.subr.bf16.mxu0 %v7209_v32  ;;  %v442_v24 = vld [vmem:[#allocation8 + $0x768] sm:$0xff] }
  0xd3   :  { %1917 = vmatpush1.bf16.msra.mxu1 %v7344_v31  ;;  %v302_v28 = vld [vmem:[#allocation8 + $0x308] sm:$0xff]  ;;  %v7409_v31 = vcombine.high %v438_v22, %v442_v24  ;;  %v7408_v34 = vcombine.low %v438_v22, %v442_v24  ;;  %v251_v24 = vld [vmem:[#allocation8 + $0x170] sm:$0xff] }
  0xd4   :  { %1918 = vmatprep.subr.bf16.mxu1 %v7337_v36  ;;  %v306_v29 = vld [vmem:[#allocation8 + $0x328] sm:$0xff] }
  0xd5   :  { %1876 = vmatpush1.bf16.msra.mxu0 %v7208_v38  ;;  %v430_v30 = vld [vmem:[#allocation8 + $0x708] sm:$0xff]  ;;  %v7273_v35 = vcombine.high %v302_v28, %v306_v29  ;;  %v7272_v41 = vcombine.low %v302_v28, %v306_v29  ;;  %v239_v29 = vld [vmem:[#allocation8 + $0x110] sm:$0xff] }
  0xd6   :  { %1877 = vmatprep.subr.bf16.mxu0 %v7201_v40  ;;  %v434_v32 = vld [vmem:[#allocation8 + $0x728] sm:$0xff] }
  0xd7   :  { %1919 = vmatpush1.bf16.msra.mxu1 %v7336_v39  ;;  %v294_v36 = vld [vmem:[#allocation8 + $0x2c8] sm:$0xff]  ;;  %v7401_v39 = vcombine.high %v430_v30, %v434_v32  ;;  %v7400_v42 = vcombine.low %v430_v30, %v434_v32  ;;  %v243_v30 = vld [vmem:[#allocation8 + $0x130] sm:$0xff]  ;;  %v7219_v32 = vcombine.high %v247_v21, %v251_v24 }
  0xd8   :  { %1920 = vmatprep.subr.bf16.mxu1 %v7329_v44  ;;  %v298_v37 = vld [vmem:[#allocation8 + $0x2e8] sm:$0xff] }
  0xd9   :  { %1878 = vmatpush1.bf16.msra.mxu0 %v7200_v46  ;;  %v422_v38 = vld [vmem:[#allocation8 + $0x6c8] sm:$0xff]  ;;  %v7265_v43 = vcombine.high %v294_v36, %v298_v37  ;;  %v7264_v49 = vcombine.low %v294_v36, %v298_v37  ;;  %v231_v36 = vld [vmem:[#allocation8 + $0xd0] sm:$0xff] }
  0xda   :  { %1879 = vmatprep.subr.bf16.mxu0 %v7193_v48  ;;  %v426_v40 = vld [vmem:[#allocation8 + $0x6e8] sm:$0xff] }
  0xdb   :  { %1921 = vmatpush1.bf16.msra.mxu1 %v7328_v47  ;;  %v286_v44 = vld [vmem:[#allocation8 + $0x288] sm:$0xff]  ;;  %v7393_v47 = vcombine.high %v422_v38, %v426_v40  ;;  %v7392_v50 = vcombine.low %v422_v38, %v426_v40  ;;  %v7211_v38 = vcombine.high %v239_v29, %v243_v30  ;;  %v363_v40 = vld [vmem:[#allocation8 + $0x4f0] sm:$0xff] }
  0xdc   :  { %1922 = vmatprep.subr.bf16.mxu1 %v7321_v52  ;;  %v290_v45 = vld [vmem:[#allocation8 + $0x2a8] sm:$0xff] }
  0xdd   :  { %1880 = vmatpush1.bf16.msra.mxu0 %v7192_v54  ;;  %v414_v46 = vld [vmem:[#allocation8 + $0x688] sm:$0xff]  ;;  %v7257_v51 = vcombine.high %v286_v44, %v290_v45  ;;  %v7256_v58 = vcombine.low %v286_v44, %v290_v45  ;;  %v227_v44 = vld [vmem:[#allocation8 + $0xb0] sm:$0xff] }
  0xde   :  { %1881 = vmatprep.subr.bf16.mxu0 %v7185_v56  ;;  %v418_v48 = vld [vmem:[#allocation8 + $0x6a8] sm:$0xff] }
  0xdf   :  { %1923 = vmatpush1.bf16.msra.mxu1 %v7320_v55  ;;  %v278_v52 = vld [vmem:[#allocation8 + $0x248] sm:$0xff]  ;;  %v7385_v55 = vcombine.high %v414_v46, %v418_v48  ;;  %v7384_v59 = vcombine.low %v414_v46, %v418_v48  ;;  %v351_v46 = vld [vmem:[#allocation8 + $0x490] sm:$0xff] }
  0xe0   :  { %1924 = vmatprep.subr.bf16.mxu1 %v7313_v61  ;;  %v282_v53 = vld [vmem:[#allocation8 + $0x268] sm:$0xff] }
  0xe1   :  { %1882 = vmatpush1.bf16.msra.mxu0 %v7184_v63  ;;  %v406_v54 = vld [vmem:[#allocation8 + $0x648] sm:$0xff]  ;;  %v7249_v60 = vcombine.high %v278_v52, %v282_v53  ;;  %v7248_v2 = vcombine.low %v278_v52, %v282_v53  ;;  %v215_v53 = vld [vmem:[#allocation8 + $0x50] sm:$0xff] }
  0xe2   :  { %1883 = vmatprep.subr.bf16.mxu0 %v7177_v1  ;;  %v410_v56 = vld [vmem:[#allocation8 + $0x668] sm:$0xff] }
  0xe3   :  { %1925 = vmatpush1.bf16.msra.mxu1 %v7312_v0  ;;  %v270_v61 = vld [vmem:[#allocation8 + $0x208] sm:$0xff]  ;;  %v7377_v0 = vcombine.high %v406_v54, %v410_v56  ;;  %v7376_v3 = vcombine.low %v406_v54, %v410_v56  ;;  %v219_v54 = vld [vmem:[#allocation8 + $0x70] sm:$0xff] }
  0xe4   :  { %1926 = vmatprep.subr.bf16.mxu1 %v7305_v5  ;;  %v274_v62 = vld [vmem:[#allocation8 + $0x228] sm:$0xff]  ;;  %v263_v5 = vld [vmem:[#allocation8 + $0x1d0] sm:$0xff] }
  0xe5   :  { %1884 = vmatpush1.bf16.msra.mxu0 %v7176_v7  ;;  %v398_v63 = vld [vmem:[#allocation8 + $0x608] sm:$0xff]  ;;  %v7241_v4 = vcombine.high %v270_v61, %v274_v62  ;;  %v391_v7 = vld [vmem:[#allocation8 + $0x5d0] sm:$0xff]  ;;  %v7240_v11 = vcombine.low %v270_v61, %v274_v62  ;;  %v7235_v14 = vcombine.high %v263_v5, %v267_v6  ;;  %v7234_v20 = vcombine.low %v263_v5, %v267_v6 }
  0xe6   :  { %1885 = vmatprep.subr.bf16.mxu0 %v7297_v9  ;;  %v402_v1 = vld [vmem:[#allocation8 + $0x628] sm:$0xff]  ;;  %v395_v9 = vld [vmem:[#allocation8 + $0x5f0] sm:$0xff] }
  0xe7   :  { %1927 = vmatpush1.bf16.msra.mxu1 %v7304_v8  ;;  %v7369_v8 = vcombine.high %v398_v63, %v402_v1  ;;  %v7368_v12 = vcombine.low %v398_v63, %v402_v1  ;;  %v7362_v22 = vcombine.low %v391_v7, %v395_v9  ;;  %v347_v56 = vld [vmem:[#allocation8 + $0x470] sm:$0xff] }
  0xe8   :  { %1928 = vmatprep.subr.bf16.mxu1 %v7425_v15  ;;  %v255_v15 = vld [vmem:[#allocation8 + $0x190] sm:$0xff] }
  0xe9   :  { %1886 = vmatpush2.bf16.msra.mxu0 %v7296_v17  ;;  %v383_v17 = vld [vmem:[#allocation8 + $0x590] sm:$0xff]  ;;  %v7226_v28 = vcombine.low %v255_v15, %v259_v16 }
  0xea   :  { %1887 = vmatprep.subr.bf16.mxu0 %v7289_v19  ;;  %v387_v19 = vld [vmem:[#allocation8 + $0x5b0] sm:$0xff] }
  0xeb   :  { %1929 = vmatpush2.bf16.msra.mxu1 %v7424_v18  ;;  %v7363_v18 = vcombine.high %v391_v7, %v395_v9  ;;  %v207_v62 = vld [vmem:[#allocation8 + $0x10] sm:$0xff] }
  0xec   :  { %1930 = vmatprep.subr.bf16.mxu1 %v7417_v23  ;;  %v7227_v23 = vcombine.high %v255_v15, %v259_v16  ;;  %v211_v63 = vld [vmem:[#allocation8 + $0x30] sm:$0xff] }
  0xed   :  { %1888 = vmatpush2.bf16.msra.mxu0 %v7288_v25  ;;  %v375_v25 = vld [vmem:[#allocation8 + $0x550] sm:$0xff] }
  0xee   :  { %1889 = vmatprep.subr.bf16.mxu0 %v7281_v27  ;;  %v7355_v27 = vcombine.high %v383_v17, %v387_v19  ;;  %v339_v1 = vld [vmem:[#allocation8 + $0x430] sm:$0xff] }
  0xef   :  { %1931 = vmatpush2.bf16.msra.mxu1 %v7416_v26  ;;  %v379_v26 = vld [vmem:[#allocation8 + $0x570] sm:$0xff] }
  0xf0   :  { %1932 = vmatprep.subr.bf16.mxu1 %v7409_v31  ;;  %v7354_v31 = vcombine.low %v383_v17, %v387_v19  ;;  %v7346_v37 = vcombine.low %v375_v25, %v379_v26  ;;  %v327_v6 = vld [vmem:[#allocation8 + $0x3d0] sm:$0xff] }
  0xf1   :  { %1890 = vmatpush2.bf16.msra.mxu0 %v7280_v33  ;;  %v367_v33 = vld [vmem:[#allocation8 + $0x510] sm:$0xff] }
  0xf2   :  { %1891 = vmatprep.subr.bf16.mxu0 %v7273_v35  ;;  %v7347_v35 = vcombine.high %v375_v25, %v379_v26  ;;  %v331_v7 = vld [vmem:[#allocation8 + $0x3f0] sm:$0xff] }
  0xf3   :  { %1933 = vmatpush2.bf16.msra.mxu1 %v7408_v34  ;;  %v371_v34 = vld [vmem:[#allocation8 + $0x530] sm:$0xff] }
  0xf4   :  { %1934 = vmatprep.subr.bf16.mxu1 %v7401_v39  ;;  %v359_v39 = vld [vmem:[#allocation8 + $0x4d0] sm:$0xff]  ;;  %v7338_v45 = vcombine.low %v367_v33, %v371_v34 }
  0xf5   :  { %1892 = vmatpush2.bf16.msra.mxu0 %v7272_v41  ;;  %v7339_v41 = vcombine.high %v367_v33, %v371_v34  ;;  %v7331_v48 = vcombine.high %v359_v39, %v363_v40  ;;  %v459_v9 = vld [vmem:[#allocation8 + $0x7f0] sm:$0xff] }
  0xf6   :  { %1893 = vmatprep.subr.bf16.mxu0 %v7265_v43  ;;  %v223_v43 = vld [vmem:[#allocation8 + $0x90] sm:$0xff] }
  0xf7   :  { %1935 = vmatpush2.bf16.msra.mxu1 %v7400_v42  ;;  %v7210_v42 = vcombine.low %v239_v29, %v243_v30  ;;  %v319_v16 = vld [vmem:[#allocation8 + $0x390] sm:$0xff] }
  0xf8   :  { %1936 = vmatprep.subr.bf16.mxu1 %v7393_v47  ;;  %v355_v47 = vld [vmem:[#allocation8 + $0x4b0] sm:$0xff] }
  0xf9   :  { %1894 = vmatpush2.bf16.msra.mxu0 %v7264_v49  ;;  %v7323_v52 = vcombine.high %v351_v46, %v355_v47  ;;  %v323_v17 = vld [vmem:[#allocation8 + $0x3b0] sm:$0xff] }
  0xfa   :  { %1895 = vmatprep.subr.bf16.mxu0 %v7257_v51  ;;  %v7195_v51 = vcombine.high %v223_v43, %v227_v44  ;;  %v451_v19 = vld [vmem:[#allocation8 + $0x7b0] sm:$0xff] }
  0xfb   :  { %1937 = vmatpush2.bf16.msra.mxu1 %v7392_v50  ;;  %v7330_v50 = vcombine.low %v359_v39, %v363_v40  ;;  %v315_v25 = vld [vmem:[#allocation8 + $0x370] sm:$0xff] }
  0xfc   :  { %1938 = vmatprep.subr.bf16.mxu1 %v7385_v55  ;;  %v343_v55 = vld [vmem:[#allocation8 + $0x450] sm:$0xff] }
  0xfd   :  { %1896 = vmatpush2.bf16.msra.mxu0 %v7256_v58  ;;  %v7194_v58 = vcombine.low %v223_v43, %v227_v44  ;;  %v7315_v61 = vcombine.high %v343_v55, %v347_v56  ;;  %v439_v26 = vld [vmem:[#allocation8 + $0x750] sm:$0xff] }
  0xfe   :  { %1897 = vmatprep.subr.bf16.mxu0 %v7249_v60  ;;  %v7187_v60 = vcombine.high %v215_v53, %v219_v54  ;;  %v307_v33 = vld [vmem:[#allocation8 + $0x330] sm:$0xff] }
  0xff   :  { %1939 = vmatpush2.bf16.msra.mxu1 %v7384_v59  ;;  %v7322_v59 = vcombine.low %v351_v46, %v355_v47  ;;  %v431_v34 = vld [vmem:[#allocation8 + $0x710] sm:$0xff] }
 0x100   :  { %1940 = vmatprep.subr.bf16.mxu1 %v7377_v0  ;;  %v335_v0 = vld [vmem:[#allocation8 + $0x410] sm:$0xff] }
 0x101   :  { %1898 = vmatpush2.bf16.msra.mxu0 %v7248_v2  ;;  %v7186_v2 = vcombine.low %v215_v53, %v219_v54  ;;  %v7307_v5 = vcombine.high %v335_v0, %v339_v1  ;;  %v299_v39 = vld [vmem:[#allocation8 + $0x2f0] sm:$0xff] }
 0x102   :  { %1899 = vmatprep.subr.bf16.mxu0 %v7241_v4  ;;  %v7179_v4 = vcombine.high %v207_v62, %v211_v63  ;;  %v423_v40 = vld [vmem:[#allocation8 + $0x6d0] sm:$0xff] }
 0x103   :  { %1941 = vmatpush2.bf16.msra.mxu1 %v7376_v3  ;;  %v7314_v3 = vcombine.low %v343_v55, %v347_v56  ;;  %v291_v46 = vld [vmem:[#allocation8 + $0x2b0] sm:$0xff] }
 0x104   :  { %1942 = vmatprep.subr.bf16.mxu1 %v7369_v8  ;;  %v455_v8 = vld [vmem:[#allocation8 + $0x7d0] sm:$0xff] }
 0x105   :  { %1900 = vmatpush2.bf16.msra.mxu0 %v7240_v11  ;;  %v7178_v11 = vcombine.low %v207_v62, %v211_v63  ;;  %v7427_v15 = vcombine.high %v455_v8, %v459_v9  ;;  %v415_v47 = vld [vmem:[#allocation8 + $0x690] sm:$0xff] }
 0x106   :  { %1955 = vmatprep.subr.bf16.mxu0 %v7235_v14  ;;  %v7299_v14 = vcombine.high %v327_v6, %v331_v7  ;;  %v279_v53 = vld [vmem:[#allocation8 + $0x250] sm:$0xff] }
 0x107   :  { %1943 = vmatpush2.bf16.msra.mxu1 %v7368_v12  ;;  %v7306_v12 = vcombine.low %v335_v0, %v339_v1  ;;  %v283_v54 = vld [vmem:[#allocation8 + $0x270] sm:$0xff] }
 0x108   :  { %1998 = vmatprep.subr.bf16.mxu1 %v7363_v18  ;;  %1902 = vmatmul.mubr.bf16.vlgmr.msra.gmra.mxu0 %v8728_v10  ;;  %v7218_v10 = vcombine.low %v247_v21, %v251_v24  ;;  %v447_v18 = vld [vmem:[#allocation8 + $0x790] sm:$0xff]  ;;  %v7426_v21 = vcombine.low %v455_v8, %v459_v9  ;;  %v392_v8 = vld [vmem:[#allocation8 + $0x5d8] sm:$0xff] }
 0x109   :  { %1956 = vmatpush1.bf16.msra.mxu0 %v7234_v20  ;;  %1987 = vmatprep.mubr.bf16.mxu0 %v8724_v57  ;;  %v7298_v20 = vcombine.low %v327_v6, %v331_v7  ;;  %v311_v24 = vld [vmem:[#allocation8 + $0x350] sm:$0xff]  ;;  %v7418_v29 = vcombine.low %v447_v18, %v451_v19  ;;  %v264_v6 = vld [vmem:[#allocation8 + $0x1d8] sm:$0xff] }
 0x10a   :  { %1945 = vmatmul.mubr.bf16.vlgmr.msra.gmra.mxu1 %v8730_v13  ;;  %1957 = vmatprep.subr.bf16.mxu0 %v7227_v23  ;;  %v235_v13 = vld [vmem:[#allocation8 + $0xf0] sm:$0xff]  ;;  %v7419_v23 = vcombine.high %v447_v18, %v451_v19  ;;  %v7283_v30 = vcombine.high %v311_v24, %v315_v25  ;;  %v268_v7 = vld [vmem:[#allocation8 + $0x1f8] sm:$0xff] }
 0x10b   :  { %1999 = vmatpush1.bf16.msra.mxu1 %v7362_v22  ;;  %2030 = vmatprep.mubr.bf16.mxu1 %v8724_v57  ;;  %v7203_v57 = vcombine.high %v231_v36, %v235_v13  ;;  %v7202_v49 = vcombine.low %v231_v36, %v235_v13  ;;  %v7291_v22 = vcombine.high %v319_v16, %v323_v17  ;;  %v407_v55 = vld [vmem:[#allocation8 + $0x650] sm:$0xff]  ;;  %v396_v9 = vld [vmem:[#allocation8 + $0x5f8] sm:$0xff] }
 0x10c   :  { %2000 = vmatprep.subr.bf16.mxu1 %v7355_v27  ;;  %v443_v27 = vld [vmem:[#allocation8 + $0x770] sm:$0xff]  ;;  %v384_v18 = vld [vmem:[#allocation8 + $0x598] sm:$0xff] }
 0x10d   :  { %1958 = vmatpush1.bf16.msra.mxu0 %v7226_v28  ;;  %v7290_v28 = vcombine.low %v319_v16, %v323_v17  ;;  %v7410_v36 = vcombine.low %v439_v26, %v443_v27  ;;  %v411_v56 = vld [vmem:[#allocation8 + $0x670] sm:$0xff]  ;;  %v256_v16 = vld [vmem:[#allocation8 + $0x198] sm:$0xff] }
 0x10e   :  { %1959 = vmatprep.subr.bf16.mxu0 %v7219_v32  ;;  %v303_v32 = vld [vmem:[#allocation8 + $0x310] sm:$0xff]  ;;  %v260_v17 = vld [vmem:[#allocation8 + $0x1b8] sm:$0xff] }
 0x10f   :  { %2001 = vmatpush1.bf16.msra.mxu1 %v7354_v31  ;;  %v7411_v31 = vcombine.high %v439_v26, %v443_v27  ;;  %v7275_v13 = vcombine.high %v303_v32, %v307_v33  ;;  %v271_v62 = vld [vmem:[#allocation8 + $0x210] sm:$0xff]  ;;  %v388_v19 = vld [vmem:[#allocation8 + $0x5b8] sm:$0xff]  ;;  %v8740_v26 = vld [vmem:[#allocation2] sm:$0xff]  }
 0x110   :  { %2002 = vmatprep.subr.bf16.mxu1 %v7347_v35  ;;  %v435_v35 = vld [vmem:[#allocation8 + $0x730] sm:$0xff]  ;;  %v376_v27 = vld [vmem:[#allocation8 + $0x558] sm:$0xff] }
 0x111   :  { %1960 = vmatpush1.bf16.msra.mxu0 %v7218_v10  ;;  %v7282_v10 = vcombine.low %v311_v24, %v315_v25  ;;  %v7402_v43 = vcombine.low %v431_v34, %v435_v35  ;;  %v275_v63 = vld [vmem:[#allocation8 + $0x230] sm:$0xff]  ;;  %v248_v24 = vld [vmem:[#allocation8 + $0x158] sm:$0xff] }
 0x112   :  { %1961 = vmatprep.subr.bf16.mxu0 %v7211_v38  ;;  %v295_v38 = vld [vmem:[#allocation8 + $0x2d0] sm:$0xff]  ;;  %v252_v25 = vld [vmem:[#allocation8 + $0x178] sm:$0xff] }
 0x113   :  { %2003 = vmatpush1.bf16.msra.mxu1 %v7346_v37  ;;  %v7403_v37 = vcombine.high %v431_v34, %v435_v35  ;;  %v7267_v44 = vcombine.high %v295_v38, %v299_v39  ;;  %v399_v0 = vld [vmem:[#allocation8 + $0x610] sm:$0xff]  ;;  %v240_v34 = vld [vmem:[#allocation8 + $0x118] sm:$0xff] }
 0x114   :  { %2004 = vmatprep.subr.bf16.mxu1 %v7339_v41  ;;  %v427_v41 = vld [vmem:[#allocation8 + $0x6f0] sm:$0xff]  ;;  %v244_v35 = vld [vmem:[#allocation8 + $0x138] sm:$0xff] }
 0x115   :  { %1962 = vmatpush1.bf16.msra.mxu0 %v7210_v42  ;;  %v7274_v42 = vcombine.low %v303_v32, %v307_v33  ;;  %v403_v1 = vld [vmem:[#allocation8 + $0x630] sm:$0xff]  ;;  %v7221_v32 = vcombine.high %v248_v24, %v252_v25 }
 0x116   :  { %1963 = vmatprep.subr.bf16.mxu0 %v7203_v57  ;;  %v287_v57 = vld [vmem:[#allocation8 + $0x290] sm:$0xff] }
 0x117   :  { %2005 = vmatpush1.bf16.msra.mxu1 %v7338_v45  ;;  %v7395_v45 = vcombine.high %v423_v40, %v427_v41 }
 0x118   :  { %2006 = vmatprep.subr.bf16.mxu1 %v7331_v48  ;;  %v419_v48 = vld [vmem:[#allocation8 + $0x6b0] sm:$0xff] }
 0x119   :  { %1964 = vmatpush1.bf16.msra.mxu0 %v7202_v49  ;;  %v7266_v49 = vcombine.low %v295_v38, %v299_v39  ;;  %v7213_v39 = vcombine.high %v240_v34, %v244_v35 }
 0x11a   :  { %1965 = vmatprep.subr.bf16.mxu0 %v7195_v51  ;;  %v7259_v51 = vcombine.high %v287_v57, %v291_v46 }
 0x11b   :  { %2007 = vmatpush1.bf16.msra.mxu1 %v7330_v50  ;;  %v7394_v50 = vcombine.low %v423_v40, %v427_v41  ;;  %v232_v41 = vld [vmem:[#allocation8 + $0xd8] sm:$0xff] }
 0x11c   :  { %2008 = vmatprep.subr.bf16.mxu1 %v7323_v52  ;;  %v7387_v52 = vcombine.high %v415_v47, %v419_v48 }
 0x11d   :  { %1966 = vmatpush1.bf16.msra.mxu0 %v7194_v58  ;;  %v7258_v58 = vcombine.low %v287_v57, %v291_v46 }
 0x11e   :  { %1967 = vmatprep.subr.bf16.mxu0 %v7187_v60  ;;  %v7251_v60 = vcombine.high %v279_v53, %v283_v54 }
 0x11f   :  { %2009 = vmatpush1.bf16.msra.mxu1 %v7322_v59  ;;  %v7386_v59 = vcombine.low %v415_v47, %v419_v48  ;;  %v224_v48 = vld [vmem:[#allocation8 + $0x98] sm:$0xff] }
 0x120   :  { %2010 = vmatprep.subr.bf16.mxu1 %v7315_v61  ;;  %v7379_v61 = vcombine.high %v407_v55, %v411_v56 }
 0x121   :  { %1968 = vmatpush1.bf16.msra.mxu0 %v7186_v2  ;;  %v7250_v2 = vcombine.low %v279_v53, %v283_v54 }
 0x122   :  { %1969 = vmatprep.subr.bf16.mxu0 %v7179_v4  ;;  %v7243_v4 = vcombine.high %v271_v62, %v275_v63 }
 0x123   :  { %2011 = vmatpush1.bf16.msra.mxu1 %v7314_v3  ;;  %v7378_v3 = vcombine.low %v407_v55, %v411_v56  ;;  %v216_v56 = vld [vmem:[#allocation8 + $0x58] sm:$0xff] }
 0x124   :  { %2012 = vmatprep.subr.bf16.mxu1 %v7307_v5  ;;  %v7371_v5 = vcombine.high %v399_v0, %v403_v1 }
 0x125   :  { %1970 = vmatpush1.bf16.msra.mxu0 %v7178_v11  ;;  %v7242_v11 = vcombine.low %v271_v62, %v275_v63 }
 0x126   :  { %1971 = vmatprep.subr.bf16.mxu0 %v7299_v14  ;;  %v7237_v14 = vcombine.high %v264_v6, %v268_v7 }
 0x127   :  { %2013 = vmatpush1.bf16.msra.mxu1 %v7306_v12  ;;  %v7370_v12 = vcombine.low %v399_v0, %v403_v1  ;;  %v208_v1 = vld [vmem:[#allocation8 + $0x18] sm:$0xff] }
 0x128   :  { %2014 = vmatprep.subr.bf16.mxu1 %v7427_v15  ;;  %v7365_v15 = vcombine.high %v392_v8, %v396_v9 }
 0x129   :  { %1972 = vmatpush2.bf16.msra.mxu0 %v7298_v20  ;;  %v7236_v20 = vcombine.low %v264_v6, %v268_v7 }
 0x12a   :  { %1973 = vmatprep.subr.bf16.mxu0 %v7291_v22  ;;  %v7229_v22 = vcombine.high %v256_v16, %v260_v17 }
 0x12b   :  { %2015 = vmatpush2.bf16.msra.mxu1 %v7426_v21  ;;  %v7364_v21 = vcombine.low %v392_v8, %v396_v9  ;;  %v328_v9 = vld [vmem:[#allocation8 + $0x3d8] sm:$0xff] }
 0x12c   :  { %2016 = vmatprep.subr.bf16.mxu1 %v7419_v23  ;;  %v7357_v23 = vcombine.high %v384_v18, %v388_v19 }
 0x12d   :  { %1974 = vmatpush2.bf16.msra.mxu0 %v7290_v28  ;;  %v380_v28 = vld [vmem:[#allocation8 + $0x578] sm:$0xff] }
 0x12e   :  { %1975 = vmatprep.subr.bf16.mxu0 %v7283_v30  ;;  %v7228_v30 = vcombine.low %v256_v16, %v260_v17  ;;  %v7349_v33 = vcombine.high %v376_v27, %v380_v28  ;;  %v7348_v38 = vcombine.low %v376_v27, %v380_v28  ;;  %v312_v28 = vld [vmem:[#allocation8 + $0x358] sm:$0xff] }
 0x12f   :  { %2017 = vmatpush2.bf16.msra.mxu1 %v7418_v29  ;;  %v8743_v29 = vld [vmem:[#allocation7] sm:$0xff]  }
 0x130   :  { %2018 = vmatprep.subr.bf16.mxu1 %v7411_v31  ;;  %v7356_v31 = vcombine.low %v384_v18, %v388_v19  ;;  %v320_v19 = vld [vmem:[#allocation8 + $0x398] sm:$0xff] }
 0x131   :  { %1976 = vmatpush2.bf16.msra.mxu0 %v7282_v10  ;;  %v8340_v10 = vld [vmem:[#allocation5] sm:$0xff]  }
 0x132   :  { %1977 = vmatprep.subr.bf16.mxu0 %v7275_v13  ;;  %v372_v13 = vld [vmem:[#allocation8 + $0x538] sm:$0xff] }
 0x133   :  { %2019 = vmatpush2.bf16.msra.mxu1 %v7410_v36  ;;  %v368_v36 = vld [vmem:[#allocation8 + $0x518] sm:$0xff] }
 0x134   :  { %2020 = vmatprep.subr.bf16.mxu1 %v7403_v37  ;;  %v7220_v37 = vcombine.low %v248_v24, %v252_v25  ;;  %v7341_v40 = vcombine.high %v368_v36, %v372_v13  ;;  %v7340_v57 = vcombine.low %v368_v36, %v372_v13  ;;  %v304_v36 = vld [vmem:[#allocation8 + $0x318] sm:$0xff] }
 0x135   :  { %1978 = vmatpush2.bf16.msra.mxu0 %v7274_v42  ;;  %v236_v42 = vld [vmem:[#allocation8 + $0xf8] sm:$0xff] }
 0x136   :  { %1979 = vmatprep.subr.bf16.mxu0 %v7267_v44  ;;  %v364_v44 = vld [vmem:[#allocation8 + $0x4f8] sm:$0xff]  ;;  %v7205_v46 = vcombine.high %v232_v41, %v236_v42 }
 0x137   :  { %2021 = vmatpush2.bf16.msra.mxu1 %v7402_v43  ;;  %v360_v43 = vld [vmem:[#allocation8 + $0x4d8] sm:$0xff] }
 0x138   :  { %2022 = vmatprep.subr.bf16.mxu1 %v7395_v45  ;;  %v7212_v45 = vcombine.low %v240_v34, %v244_v35  ;;  %v7333_v47 = vcombine.high %v360_v43, %v364_v44  ;;  %v7332_v53 = vcombine.low %v360_v43, %v364_v44  ;;  %v308_v13 = vld [vmem:[#allocation8 + $0x338] sm:$0xff] }
 0x139   :  { %1980 = vmatpush2.bf16.msra.mxu0 %v7266_v49  ;;  %v228_v49 = vld [vmem:[#allocation8 + $0xb8] sm:$0xff] }
 0x13a   :  { %1981 = vmatprep.subr.bf16.mxu0 %v7259_v51  ;;  %v356_v51 = vld [vmem:[#allocation8 + $0x4b8] sm:$0xff]  ;;  %v7197_v54 = vcombine.high %v224_v48, %v228_v49 }
 0x13b   :  { %2023 = vmatpush2.bf16.msra.mxu1 %v7394_v50  ;;  %v352_v50 = vld [vmem:[#allocation8 + $0x498] sm:$0xff] }
 0x13c   :  { %2024 = vmatprep.subr.bf16.mxu1 %v7387_v52  ;;  %v7204_v52 = vcombine.low %v232_v41, %v236_v42  ;;  %v7325_v55 = vcombine.high %v352_v50, %v356_v51  ;;  %v7324_v62 = vcombine.low %v352_v50, %v356_v51  ;;  %v7277_v41 = vcombine.high %v304_v36, %v308_v13  ;;  %v296_v43 = vld [vmem:[#allocation8 + $0x2d8] sm:$0xff] }
 0x13d   :  { %1982 = vmatpush2.bf16.msra.mxu0 %v7258_v58  ;;  %v220_v58 = vld [vmem:[#allocation8 + $0x78] sm:$0xff] }
 0x13e   :  { %1983 = vmatprep.subr.bf16.mxu0 %v7251_v60  ;;  %v348_v60 = vld [vmem:[#allocation8 + $0x478] sm:$0xff]  ;;  %v7189_v63 = vcombine.high %v216_v56, %v220_v58 }
 0x13f   :  { %2025 = vmatpush2.bf16.msra.mxu1 %v7386_v59  ;;  %v344_v59 = vld [vmem:[#allocation8 + $0x458] sm:$0xff] }
 0x140   :  { %2026 = vmatprep.subr.bf16.mxu1 %v7379_v61  ;;  %v7196_v61 = vcombine.low %v224_v48, %v228_v49  ;;  %v7317_v0 = vcombine.high %v344_v59, %v348_v60  ;;  %v7316_v6 = vcombine.low %v344_v59, %v348_v60  ;;  %v300_v44 = vld [vmem:[#allocation8 + $0x2f8] sm:$0xff] }
 0x141   :  { %1984 = vmatpush2.bf16.msra.mxu0 %v7250_v2  ;;  %v212_v2 = vld [vmem:[#allocation8 + $0x38] sm:$0xff]  ;;  %v7269_v48 = vcombine.high %v296_v43, %v300_v44 }
 0x142   :  { %1985 = vmatprep.subr.bf16.mxu0 %v7243_v4  ;;  %v340_v4 = vld [vmem:[#allocation8 + $0x438] sm:$0xff]  ;;  %v7181_v7 = vcombine.high %v208_v1, %v212_v2 }
 0x143   :  { %2027 = vmatpush2.bf16.msra.mxu1 %v7378_v3  ;;  %v336_v3 = vld [vmem:[#allocation8 + $0x418] sm:$0xff] }
 0x144   :  { %2028 = vmatprep.subr.bf16.mxu1 %v7371_v5  ;;  %v7188_v5 = vcombine.low %v216_v56, %v220_v58  ;;  %v7309_v8 = vcombine.high %v336_v3, %v340_v4  ;;  %v7308_v16 = vcombine.low %v336_v3, %v340_v4  ;;  %v288_v50 = vld [vmem:[#allocation8 + $0x298] sm:$0xff] }
 0x145   :  { %1986 = vmatpush2.bf16.msra.mxu0 %v7242_v11  ;;  %v332_v11 = vld [vmem:[#allocation8 + $0x3f8] sm:$0xff] }
 0x146   :  { %2041 = vmatprep.subr.bf16.mxu0 %v7237_v14  ;;  %v460_v14 = vld [vmem:[#allocation8 + $0x7f8] sm:$0xff]  ;;  %v7301_v17 = vcombine.high %v328_v9, %v332_v11 }
 0x147   :  { %2029 = vmatpush2.bf16.msra.mxu1 %v7370_v12  ;;  %v456_v12 = vld [vmem:[#allocation8 + $0x7d8] sm:$0xff] }
 0x148   :  { %2084 = vmatprep.subr.bf16.mxu1 %v7365_v15  ;;  %1988 = vmatmul.mubr.bf16.vlgmr.msra.gmra.mxu0 %v8740_v26  ;;  %v7180_v15 = vcombine.low %v208_v1, %v212_v2  ;;  %v7429_v18 = vcombine.high %v456_v12, %v460_v14  ;;  %v7428_v24 = vcombine.low %v456_v12, %v460_v14  ;;  %v292_v51 = vld [vmem:[#allocation8 + $0x2b8] sm:$0xff]  ;;  %v2223_v14 = vld [vmem:[#allocation11 + $0x1c0] sm:$0xff] }
 0x149   :  { %2042 = vmatpush1.bf16.msra.mxu0 %v7236_v20  ;;  %2073 = vmatprep.mubr.bf16.mxu0 %v8340_v10  ;;  %v324_v20 = vld [vmem:[#allocation8 + $0x3b8] sm:$0xff]  ;;  %v7261_v56 = vcombine.high %v288_v50, %v292_v51 }
 0x14a   :  { %2031 = vmatmul.mubr.bf16.vlgmr.msra.gmra.mxu1 %v8743_v29  ;;  %2043 = vmatprep.subr.bf16.mxu0 %v7229_v22  ;;  %v452_v22 = vld [vmem:[#allocation8 + $0x7b8] sm:$0xff]  ;;  %v7293_v25 = vcombine.high %v320_v19, %v324_v20 }
 0x14b   :  { %2085 = vmatpush1.bf16.msra.mxu1 %v7364_v21  ;;  %2116 = vmatprep.mubr.bf16.mxu1 %v8340_v10  ;;  %v448_v21 = vld [vmem:[#allocation8 + $0x798] sm:$0xff] }
 0x14c   :  { %2086 = vmatprep.subr.bf16.mxu1 %v7357_v23  ;;  %v7300_v23 = vcombine.low %v328_v9, %v332_v11  ;;  %v7421_v27 = vcombine.high %v448_v21, %v452_v22  ;;  %v7420_v34 = vcombine.low %v448_v21, %v452_v22  ;;  %v280_v59 = vld [vmem:[#allocation8 + $0x258] sm:$0xff] }
 0x14d   :  { %2044 = vmatpush1.bf16.msra.mxu0 %v7228_v30  ;;  %v316_v30 = vld [vmem:[#allocation8 + $0x378] sm:$0xff] }
 0x14e   :  { %2045 = vmatprep.subr.bf16.mxu0 %v7221_v32  ;;  %v444_v32 = vld [vmem:[#allocation8 + $0x778] sm:$0xff]  ;;  %v7285_v35 = vcombine.high %v312_v28, %v316_v30 }
 0x14f   :  { %2087 = vmatpush1.bf16.msra.mxu1 %v7356_v31  ;;  %v440_v31 = vld [vmem:[#allocation8 + $0x758] sm:$0xff] }
 0x150   :  { %2088 = vmatprep.subr.bf16.mxu1 %v7349_v33  ;;  %v7292_v33 = vcombine.low %v320_v19, %v324_v20  ;;  %v7413_v10 = vcombine.high %v440_v31, %v444_v32  ;;  %v284_v60 = vld [vmem:[#allocation8 + $0x278] sm:$0xff] }
 0x151   :  { %2046 = vmatpush1.bf16.msra.mxu0 %v7220_v37  ;;  %v432_v37 = vld [vmem:[#allocation8 + $0x718] sm:$0xff]  ;;  %v7253_v1 = vcombine.high %v280_v59, %v284_v60 }
 0x152   :  { %2047 = vmatprep.subr.bf16.mxu0 %v7213_v39  ;;  %v7284_v39 = vcombine.low %v312_v28, %v316_v30  ;;  %v272_v3 = vld [vmem:[#allocation8 + $0x218] sm:$0xff]  ;;  %v2347_v28 = vld [vmem:[#allocation11 + $0x5a0] sm:$0xff] }
 0x153   :  { %2089 = vmatpush1.bf16.msra.mxu1 %v7348_v38  ;;  %v436_v38 = vld [vmem:[#allocation8 + $0x738] sm:$0xff] }
 0x154   :  { %2090 = vmatprep.subr.bf16.mxu1 %v7341_v40  ;;  %v7412_v40 = vcombine.low %v440_v31, %v444_v32  ;;  %v7405_v42 = vcombine.high %v432_v37, %v436_v38  ;;  %v276_v4 = vld [vmem:[#allocation8 + $0x238] sm:$0xff]  ;;  %v8751_v31 = vld [vmem:[#allocation10] sm:$0xff] }
 0x155   :  { %2048 = vmatpush1.bf16.msra.mxu0 %v7212_v45  ;;  %v424_v45 = vld [vmem:[#allocation8 + $0x6d8] sm:$0xff]  ;;  %v7245_v11 = vcombine.high %v272_v3, %v276_v4 }
 0x156   :  { %2049 = vmatprep.subr.bf16.mxu0 %v7205_v46  ;;  %v7276_v46 = vcombine.low %v304_v36, %v308_v13 }
 0x157   :  { %2091 = vmatpush1.bf16.msra.mxu1 %v7340_v57  ;;  %v428_v57 = vld [vmem:[#allocation8 + $0x6f8] sm:$0xff] }
 0x158   :  { %2092 = vmatprep.subr.bf16.mxu1 %v7333_v47  ;;  %v7404_v47 = vcombine.low %v432_v37, %v436_v38  ;;  %v7397_v49 = vcombine.high %v424_v45, %v428_v57  ;;  %v2335_v37 = vld [vmem:[#allocation11 + $0x540] sm:$0xff] }
 0x159   :  { %2050 = vmatpush1.bf16.msra.mxu0 %v7204_v52  ;;  %v416_v52 = vld [vmem:[#allocation8 + $0x698] sm:$0xff]  ;;  %v2339_v38 = vld [vmem:[#allocation11 + $0x560] sm:$0xff] }
 0x15a   :  { %2051 = vmatprep.subr.bf16.mxu0 %v7197_v54  ;;  %v7268_v54 = vcombine.low %v296_v43, %v300_v44 }
 0x15b   :  { %2093 = vmatpush1.bf16.msra.mxu1 %v7332_v53  ;;  %v420_v53 = vld [vmem:[#allocation8 + $0x6b8] sm:$0xff] }
 0x15c   :  { %2094 = vmatprep.subr.bf16.mxu1 %v7325_v55  ;;  %v7396_v55 = vcombine.low %v424_v45, %v428_v57  ;;  %v7389_v58 = vcombine.high %v416_v52, %v420_v53  ;;  %v2199_v57 = vld [vmem:[#allocation11 + $0x100] sm:$0xff] }
 0x15d   :  { %2052 = vmatpush1.bf16.msra.mxu0 %v7196_v61  ;;  %v408_v61 = vld [vmem:[#allocation8 + $0x658] sm:$0xff] }
 0x15e   :  { %2053 = vmatprep.subr.bf16.mxu0 %v7189_v63  ;;  %v7260_v63 = vcombine.low %v288_v50, %v292_v51 }
 0x15f   :  { %2095 = vmatpush1.bf16.msra.mxu1 %v7324_v62  ;;  %v412_v62 = vld [vmem:[#allocation8 + $0x678] sm:$0xff] }
 0x160   :  { %2096 = vmatprep.subr.bf16.mxu1 %v7317_v0  ;;  %v7388_v0 = vcombine.low %v416_v52, %v420_v53  ;;  %v7381_v2 = vcombine.high %v408_v61, %v412_v62  ;;  %v7380_v9 = vcombine.low %v408_v61, %v412_v62  ;;  %v2319_v61 = vld [vmem:[#allocation11 + $0x4c0] sm:$0xff] }
 0x161   :  { %2054 = vmatpush1.bf16.msra.mxu0 %v7188_v5  ;;  %v400_v5 = vld [vmem:[#allocation8 + $0x618] sm:$0xff]  ;;  %v2323_v62 = vld [vmem:[#allocation11 + $0x4e0] sm:$0xff] }
 0x162   :  { %2055 = vmatprep.subr.bf16.mxu0 %v7181_v7  ;;  %v7252_v7 = vcombine.low %v280_v59, %v284_v60 }
 0x163   :  { %2097 = vmatpush1.bf16.msra.mxu1 %v7316_v6  ;;  %v404_v6 = vld [vmem:[#allocation8 + $0x638] sm:$0xff] }
 0x164   :  { %2098 = vmatprep.subr.bf16.mxu1 %v7309_v8  ;;  %v463_v8 = vlaneseq  ;;  %v7373_v12 = vcombine.high %v400_v5, %v404_v6  ;;  %v7372_v20 = vcombine.low %v400_v5, %v404_v6  ;;  %v2183_v5 = vld [vmem:[#allocation11 + $0x80] sm:$0xff] }
 0x165   :  { %2056 = vmatpush1.bf16.msra.mxu0 %v7180_v15  ;;  %v2227_v15 = vld [vmem:[#allocation11 + $0x1e0] sm:$0xff] }
 0x166   :  { %2057 = vmatprep.subr.bf16.mxu0 %v7301_v17  ;;  %v2355_v17 = vld [vmem:[#allocation11 + $0x5e0] sm:$0xff]  ;;  %v8746_v19 = vshrl.u32 %v463_v8, 7  ;;  %v7487_v21 = vcombine.high %v2223_v14, %v2227_v15  ;;  %v7486_v30 = vcombine.low %v2223_v14, %v2227_v15 }
 0x167   :  { %2099 = vmatpush1.bf16.msra.mxu1 %v7308_v16  ;;  %v2351_v16 = vld [vmem:[#allocation11 + $0x5c0] sm:$0xff] }
 0x168   :  { %2100 = vmatprep.subr.bf16.mxu1 %v7429_v18  ;;  %v7244_v18 = vcombine.low %v272_v3, %v276_v4  ;;  %v8749_v22 = vsub.s32 1, %v8746_v19  ;;  %v2187_v6 = vld [vmem:[#allocation11 + $0xa0] sm:$0xff] }
 0x169   :  { %2058 = vmatpush2.bf16.msra.mxu0 %v7300_v23  ;;  %v2215_v23 = vld [vmem:[#allocation11 + $0x180] sm:$0xff]  ;;  %v7447_v15 = vcombine.high %v2183_v5, %v2187_v6 }
 0x16a   :  { %2059 = vmatprep.subr.bf16.mxu0 %v7293_v25  ;;  %v7615_v25 = vcombine.high %v2351_v16, %v2355_v17  ;;  %v2311_v8 = vld [vmem:[#allocation11 + $0x480] sm:$0xff] }
 0x16b   :  { %2101 = vmatpush2.bf16.msra.mxu1 %v7428_v24  ;;  %v2219_v24 = vld [vmem:[#allocation11 + $0x1a0] sm:$0xff] }
 0x16c   :  { %2102 = vmatprep.subr.bf16.mxu1 %v7421_v27  ;;  %v2343_v27 = vld [vmem:[#allocation11 + $0x580] sm:$0xff]  ;;  %v7479_v32 = vcombine.high %v2215_v23, %v2219_v24 }
 0x16d   :  { %2060 = vmatpush2.bf16.msra.mxu0 %v7292_v33  ;;  %v7614_v33 = vcombine.low %v2351_v16, %v2355_v17  ;;  %v7607_v36 = vcombine.high %v2343_v27, %v2347_v28  ;;  %v7606_v43 = vcombine.low %v2343_v27, %v2347_v28  ;;  %v7582_v16 = vcombine.low %v2319_v61, %v2323_v62 }
 0x16e   :  { %2061 = vmatprep.subr.bf16.mxu0 %v7285_v35  ;;  %v2207_v35 = vld [vmem:[#allocation11 + $0x140] sm:$0xff] }
 0x16f   :  { %2103 = vmatpush2.bf16.msra.mxu1 %v7420_v34  ;;  %v470_v34 = vrot.slane %v8751_v31, %v8749_v22 }
 0x170   :  { %2104 = vmatprep.subr.bf16.mxu1 %v7413_v10  ;;  %v2211_v10 = vld [vmem:[#allocation11 + $0x160] sm:$0xff] }
 0x171   :  { %2062 = vmatpush2.bf16.msra.mxu0 %v7284_v39 }
 0x172   :  { %2063 = vmatprep.subr.bf16.mxu0 %v7277_v41 }
 0x173   :  { %2105 = vmatpush2.bf16.msra.mxu1 %v7412_v40  ;;  %v7478_v40 = vcombine.low %v2215_v23, %v2219_v24  ;;  %v2303_v23 = vld [vmem:[#allocation11 + $0x440] sm:$0xff] }
 0x174   :  { %2106 = vmatprep.subr.bf16.mxu1 %v7405_v42  ;;  %v7471_v42 = vcombine.high %v2207_v35, %v2211_v10  ;;  %v2307_v24 = vld [vmem:[#allocation11 + $0x460] sm:$0xff] }
 0x175   :  { %2064 = vmatpush2.bf16.msra.mxu0 %v7276_v46  ;;  %v2203_v46 = vld [vmem:[#allocation11 + $0x120] sm:$0xff] }
 0x176   :  { %2065 = vmatprep.subr.bf16.mxu0 %v7269_v48  ;;  %v2327_v48 = vld [vmem:[#allocation11 + $0x500] sm:$0xff]  ;;  %v7463_v53 = vcombine.high %v2199_v57, %v2203_v46 }
 0x177   :  { %2107 = vmatpush2.bf16.msra.mxu1 %v7404_v47  ;;  %v7599_v47 = vcombine.high %v2335_v37, %v2339_v38 }
 0x178   :  { %2108 = vmatprep.subr.bf16.mxu1 %v7397_v49  ;;  %v2331_v49 = vld [vmem:[#allocation11 + $0x520] sm:$0xff] }
 0x179   :  { %2066 = vmatpush2.bf16.msra.mxu0 %v7268_v54  ;;  %v7598_v54 = vcombine.low %v2335_v37, %v2339_v38  ;;  %v7591_v59 = vcombine.high %v2327_v48, %v2331_v49  ;;  %v7590_v3 = vcombine.low %v2327_v48, %v2331_v49  ;;  %v7566_v37 = vcombine.low %v2303_v23, %v2307_v24  ;;  %v2287_v38 = vld [vmem:[#allocation11 + $0x3c0] sm:$0xff] }
 0x17a   :  { %2067 = vmatprep.subr.bf16.mxu0 %v7261_v56  ;;  %v2191_v56 = vld [vmem:[#allocation11 + $0xc0] sm:$0xff] }
 0x17b   :  { %2109 = vmatpush2.bf16.msra.mxu1 %v7396_v55  ;;  %v2407_v49 = vld [vmem:[#allocation11 + $0x780] sm:$0xff] }
 0x17c   :  { %2110 = vmatprep.subr.bf16.mxu1 %v7389_v58  ;;  %v2195_v58 = vld [vmem:[#allocation11 + $0xe0] sm:$0xff] }
 0x17d   :  { %2068 = vmatpush2.bf16.msra.mxu0 %v7260_v63  ;;  %v7454_v14 = vcombine.low %v2191_v56, %v2195_v58 }
 0x17e   :  { %2069 = vmatprep.subr.bf16.mxu0 %v7253_v1  ;;  %v7462_v1 = vcombine.low %v2199_v57, %v2203_v46  ;;  %v2279_v46 = vld [vmem:[#allocation11 + $0x380] sm:$0xff] }
 0x17f   :  { %2111 = vmatpush2.bf16.msra.mxu1 %v7388_v0 }
 0x180   :  { %2112 = vmatprep.subr.bf16.mxu1 %v7381_v2  ;;  %v7455_v2 = vcombine.high %v2191_v56, %v2195_v58  ;;  %v2399_v58 = vld [vmem:[#allocation11 + $0x740] sm:$0xff] }
 0x181   :  { %2070 = vmatpush2.bf16.msra.mxu0 %v7252_v7  ;;  %v7583_v7 = vcombine.high %v2319_v61, %v2323_v62 }
 0x182   :  { %2071 = vmatprep.subr.bf16.mxu0 %v7245_v11 }
 0x183   :  { %2113 = vmatpush2.bf16.msra.mxu1 %v7380_v9  ;;  %v2315_v9 = vld [vmem:[#allocation11 + $0x4a0] sm:$0xff] }
 0x184   :  { %2114 = vmatprep.subr.bf16.mxu1 %v7373_v12  ;;  %v7574_v28 = vcombine.low %v2311_v8, %v2315_v9 }
 0x185   :  { %2072 = vmatpush2.bf16.msra.mxu0 %v7244_v18  ;;  %v2175_v18 = vld [vmem:[#allocation11 + $0x40] sm:$0xff] }
 0x186   :  { %5281 = vmatprep.subr.bf16.mxu0 %v7487_v21  ;;  %v7575_v21 = vcombine.high %v2311_v8, %v2315_v9  ;;  %v2259_v8 = vld [vmem:[#allocation11 + $0x2e0] sm:$0xff] }
 0x187   :  { %2115 = vmatpush2.bf16.msra.mxu1 %v7372_v20  ;;  %v2179_v20 = vld [vmem:[#allocation11 + $0x60] sm:$0xff] }
 0x188   :  { %5324 = vmatprep.subr.bf16.mxu1 %v7615_v25  ;;  %v8755_v13 = vpop.f32.mrf.mxu0  ;;  %2074 = vmatmul.mubr.bf16.vlgmr.msra.gmra.mxu0 %v8740_v26  ;;  %v7446_v25 = vcombine.low %v2183_v5, %v2187_v6  ;;  %v7439_v27 = vcombine.high %v2175_v18, %v2179_v20 }
 0x189   :  { %5282 = vmatpush1.bf16.msra.mxu0 %v7486_v30  ;;  %v2167_v30 = vld [vmem:[#allocation11] sm:$0xff] }
 0x18a   :  { %v8758_v39 = vpop.f32.mrf.mxu1  ;;  %2117 = vmatmul.mubr.bf16.vlgmr.msra.gmra.mxu1 %v8743_v29  ;;  %v1819_v41 = vpop.f32.mrf.mxu0  ;;  %5283 = vmatprep.subr.bf16.mxu0 %v7479_v32  ;;  %v7470_v29 = vcombine.low %v2207_v35, %v2211_v10  ;;  %v2171_v32 = vld [vmem:[#allocation11 + $0x20] sm:$0xff]  ;;  %v7438_v10 = vcombine.low %v2175_v18, %v2179_v20 }
 0x18b   :  { %5325 = vmatpush1.bf16.msra.mxu1 %v7614_v33  ;;  %v1820_v44 = vadd.f32 %v1819_v41, %v470_v34  ;;  %v7567_v33 = vcombine.high %v2303_v23, %v2307_v24  ;;  %v2299_v35 = vld [vmem:[#allocation11 + $0x420] sm:$0xff] }
 0x18c   :  { %v1862_v45 = vpop.f32.mrf.mxu1  ;;  %5326 = vmatprep.subr.bf16.mxu1 %v7607_v36  ;;  %v8761_v26 = vpop.f32.mrf.mxu0  ;;  %v7431_v36 = vcombine.high %v2167_v30, %v2171_v32  ;;  %v2247_v20 = vld [vmem:[#allocation11 + $0x280] sm:$0xff] }
 0x18d   :  { %v1863_v50 = vadd.f32 %v1862_v45, %v1820_v44  ;;  %5284 = vmatpush1.bf16.msra.mxu0 %v7478_v40  ;;  %v2291_v40 = vld [vmem:[#allocation11 + $0x3e0] sm:$0xff]  ;;  %v7430_v44 = vcombine.low %v2167_v30, %v2171_v32 }
 0x18e   :  { %v8763_v51 = vpop.f32.mrf.mxu1  ;;  %v1823_v52 = vpop.f32.mrf.mxu0  ;;  %5285 = vmatprep.subr.bf16.mxu0 %v7471_v42  ;;  %v2415_v42 = vld [vmem:[#allocation11 + $0x7c0] sm:$0xff]  ;;  %v7551_v45 = vcombine.high %v2287_v38, %v2291_v40 }
 0x18f   :  { %5327 = vmatpush1.bf16.msra.mxu1 %v7606_v43  ;;  %v1824_v55 = vadd.f32 %v1823_v52, %v470_v34  ;;  %v2128_v63 = vmul.f32 0.1, %v1863_v50  ;;  %v2295_v34 = vld [vmem:[#allocation11 + $0x400] sm:$0xff] }
 0x190   :  { %5328 = vmatprep.subr.bf16.mxu1 %v7599_v47  ;;  %v1866_v60 = vpop.f32.mrf.mxu1  ;;  %v7559_v41 = vcombine.high %v2295_v34, %v2299_v35  ;;  %v2419_v43 = vld [vmem:[#allocation11 + $0x7e0] sm:$0xff]  ;;  %v7558_v57 = vcombine.low %v2295_v34, %v2299_v35 }
 0x191   :  { %v1867_v0 = vadd.f32 %v1866_v60, %v1824_v55  ;;  %5286 = vmatpush1.bf16.msra.mxu0 %v7470_v29  ;;  %v2144_v11 = vmax.f32 %v1863_v50, %v2128_v63  ;;  %v2283_v47 = vld [vmem:[#allocation11 + $0x3a0] sm:$0xff]  ;;  %v7679_v48 = vcombine.high %v2415_v42, %v2419_v43  ;;  %v7550_v29 = vcombine.low %v2287_v38, %v2291_v40 }
 0x192   :  { %5287 = vmatprep.subr.bf16.mxu0 %v7463_v53  ;;  %v2411_v50 = vld [vmem:[#allocation11 + $0x7a0] sm:$0xff]  ;;  %v7543_v52 = vcombine.high %v2279_v46, %v2283_v47  ;;  %v7678_v53 = vcombine.low %v2415_v42, %v2419_v43  ;;  %v7542_v60 = vcombine.low %v2279_v46, %v2283_v47 }
 0x193   :  { %5329 = vmatpush1.bf16.msra.mxu1 %v7598_v54  ;;  %v2136_v4 = vmul.f32 0.1, %v1867_v0  ;;  %v2271_v54 = vld [vmem:[#allocation11 + $0x340] sm:$0xff]  ;;  %v7671_v56 = vcombine.high %v2407_v49, %v2411_v50  ;;  %v7670_v62 = vcombine.low %v2407_v49, %v2411_v50 }
 0x194   :  { %5330 = vmatprep.subr.bf16.mxu1 %v7591_v59  ;;  %v2275_v55 = vld [vmem:[#allocation11 + $0x360] sm:$0xff] }
 0x195   :  { %v2152_v12 = vmax.f32 %v1867_v0, %v2136_v4  ;;  %5288 = vmatpush1.bf16.msra.mxu0 %v7462_v1  ;;  %v2403_v59 = vld [vmem:[#allocation11 + $0x760] sm:$0xff]  ;;  %v7535_v61 = vcombine.high %v2271_v54, %v2275_v55  ;;  %v7534_v4 = vcombine.low %v2271_v54, %v2275_v55 }
 0x196   :  { %5289 = vmatprep.subr.bf16.mxu0 %v7455_v2  ;;  %v2263_v63 = vld [vmem:[#allocation11 + $0x300] sm:$0xff]  ;;  %v7663_v1 = vcombine.high %v2399_v58, %v2403_v59  ;;  %v7662_v6 = vcombine.low %v2399_v58, %v2403_v59  ;;  %v473_v58 = vsub.s32 2, %v8746_v19 }
 0x197   :  { %5331 = vmatpush1.bf16.msra.mxu1 %v7590_v3  ;;  %v8765_v17 = vpack.c.bf16 %v2152_v12, %v2144_v11  ;;  %v2267_v0 = vld [vmem:[#allocation11 + $0x320] sm:$0xff]  ;;  %v8769_v11 = vsub.s32 0, %v8746_v19 }
 0x198   :  { %5332 = vmatprep.subr.bf16.mxu1 %v7583_v7  ;;  %v2391_v2 = vld [vmem:[#allocation11 + $0x700] sm:$0xff]  ;;  %v7527_v5 = vcombine.high %v2263_v63, %v2267_v0 }
 0x199   :  { %5290 = vmatpush1.bf16.msra.mxu0 %v7454_v14  ;;  %5313 = vmatprep.mubr.bf16.mxu0 %v8765_v17  ;;  %v2395_v3 = vld [vmem:[#allocation11 + $0x720] sm:$0xff]  ;;  %v466_v24 = vrot.slane %v8751_v31, %v8769_v11 }
 0x19a   :  { %5291 = vmatprep.subr.bf16.mxu0 %v7447_v15  ;;  %v2255_v7 = vld [vmem:[#allocation11 + $0x2c0] sm:$0xff]  ;;  %v7655_v9 = vcombine.high %v2391_v2, %v2395_v3  ;;  %v7526_v15 = vcombine.low %v2263_v63, %v2267_v0  ;;  %v7654_v18 = vcombine.low %v2391_v2, %v2395_v3 }
 0x19b   :  { %5333 = vmatpush1.bf16.msra.mxu1 %v7582_v16  ;;  %v2383_v12 = vld [vmem:[#allocation11 + $0x6c0] sm:$0xff]  ;;  %v7519_v16 = vcombine.high %v2255_v7, %v2259_v8  ;;  %v1822_v30 = vadd.f32 %v8761_v26, %v466_v24 }
 0x19c   :  { %5334 = vmatprep.subr.bf16.mxu1 %v7575_v21  ;;  %v2387_v14 = vld [vmem:[#allocation11 + $0x6e0] sm:$0xff] }
 0x19d   :  { %5292 = vmatpush1.bf16.msra.mxu0 %v7446_v25  ;;  %v2251_v21 = vld [vmem:[#allocation11 + $0x2a0] sm:$0xff]  ;;  %v7647_v23 = vcombine.high %v2383_v12, %v2387_v14 }
 0x19e   :  { %5293 = vmatprep.subr.bf16.mxu0 %v7439_v27  ;;  %v2375_v25 = vld [vmem:[#allocation11 + $0x680] sm:$0xff]  ;;  %v7511_v32 = vcombine.high %v2247_v20, %v2251_v21  ;;  %v7510_v40 = vcombine.low %v2247_v20, %v2251_v21 }
 0x19f   :  { %5335 = vmatpush1.bf16.msra.mxu1 %v7574_v28  ;;  %v2379_v27 = vld [vmem:[#allocation11 + $0x6a0] sm:$0xff]  ;;  %v7518_v28 = vcombine.low %v2255_v7, %v2259_v8 }
 0x1a0   :  { %5336 = vmatprep.subr.bf16.mxu1 %v7567_v33  ;;  %v7646_v33 = vcombine.low %v2383_v12, %v2387_v14  ;;  %v2239_v34 = vld [vmem:[#allocation11 + $0x240] sm:$0xff]  ;;  %v7638_v26 = vcombine.low %v2375_v25, %v2379_v27 }
 0x1a1   :  { %5294 = vmatpush1.bf16.msra.mxu0 %v7438_v10  ;;  %v2243_v35 = vld [vmem:[#allocation11 + $0x260] sm:$0xff]  ;;  %v7639_v10 = vcombine.high %v2375_v25, %v2379_v27 }
 0x1a2   :  { %5295 = vmatprep.subr.bf16.mxu0 %v7431_v36  ;;  %v1818_v36 = vadd.f32 %v8755_v13, %v466_v24  ;;  %v2371_v38 = vld [vmem:[#allocation11 + $0x660] sm:$0xff]  ;;  %v7503_v42 = vcombine.high %v2239_v34, %v2243_v35  ;;  %v7502_v13 = vcombine.low %v2239_v34, %v2243_v35 }
 0x1a3   :  { %5337 = vmatpush1.bf16.msra.mxu1 %v7566_v37  ;;  %v2367_v37 = vld [vmem:[#allocation11 + $0x640] sm:$0xff] }
 0x1a4   :  { %5338 = vmatprep.subr.bf16.mxu1 %v7559_v41  ;;  %v1865_v41 = vadd.f32 %v8763_v51, %v1822_v30  ;;  %v2231_v43 = vld [vmem:[#allocation11 + $0x200] sm:$0xff]  ;;  %v7630_v50 = vcombine.low %v2367_v37, %v2371_v38 }
 0x1a5   :  { %5296 = vmatpush1.bf16.msra.mxu0 %v7430_v44  ;;  %v2235_v44 = vld [vmem:[#allocation11 + $0x220] sm:$0xff] }
 0x1a6   :  { %5297 = vmatprep.subr.bf16.mxu0 %v7551_v45  ;;  %v7631_v45 = vcombine.high %v2367_v37, %v2371_v38  ;;  %v2359_v46 = vld [vmem:[#allocation11 + $0x600] sm:$0xff]  ;;  %v7495_v49 = vcombine.high %v2231_v43, %v2235_v44 }
 0x1a7   :  { %5339 = vmatpush1.bf16.msra.mxu1 %v7558_v57  ;;  %v1861_v57 = vadd.f32 %v8758_v39, %v1818_v36  ;;  %v2363_v47 = vld [vmem:[#allocation11 + $0x620] sm:$0xff]  ;;  %v7494_v39 = vcombine.low %v2231_v43, %v2235_v44 }
 0x1a8   :  { %5340 = vmatprep.subr.bf16.mxu1 %v7679_v48  ;;  %v2135_v48 = vmul.f32 0.1, %v1865_v41  ;;  %v7623_v51 = vcombine.high %v2359_v46, %v2363_v47  ;;  %v8777_v54 = vld [vmem:[#allocation11 + $0xdc0] sm:$0xff]  ;;  %v7622_v59 = vcombine.low %v2359_v46, %v2363_v47 }
 0x1a9   :  { %5298 = vmatpush2.bf16.msra.mxu0 %v7550_v29  ;;  %v2479_v29 = vld [vmem:[#allocation11 + $0x9c0] sm:$0xff] }
 0x1aa   :  { %5299 = vmatprep.subr.bf16.mxu0 %v7543_v52  ;;  %v2483_v52 = vld [vmem:[#allocation11 + $0x9e0] sm:$0xff] }
 0x1ab   :  { %5341 = vmatpush2.bf16.msra.mxu1 %v7678_v53  ;;  %v2127_v53 = vmul.f32 0.1, %v1861_v57  ;;  %v8779_v55 = vld [vmem:[#allocation11 + $0xde0] sm:$0xff]  ;;  %v7742_v2 = vcombine.low %v2479_v29, %v2483_v52 }
 0x1ac   :  { %5342 = vmatprep.subr.bf16.mxu1 %v7671_v56  ;;  %v2151_v56 = vmax.f32 %v1865_v41, %v2135_v48  ;;  %v2475_v63 = vld [vmem:[#allocation11 + $0x9a0] sm:$0xff]  ;;  %v7871_v0 = vcombine.high %v8777_v54, %v8779_v55 }
 0x1ad   :  { %5300 = vmatpush2.bf16.msra.mxu0 %v7542_v60  ;;  %v7743_v60 = vcombine.high %v2479_v29, %v2483_v52  ;;  %v2463_v7 = vld [vmem:[#allocation11 + $0x940] sm:$0xff] }
 0x1ae   :  { %5301 = vmatprep.subr.bf16.mxu0 %v7535_v61  ;;  %v477_v61 = vsub.s32 3, %v8746_v19  ;;  %v2467_v8 = vld [vmem:[#allocation11 + $0x960] sm:$0xff] }
 0x1af   :  { %5343 = vmatpush2.bf16.msra.mxu1 %v7670_v62  ;;  %v2471_v62 = vld [vmem:[#allocation11 + $0x980] sm:$0xff] }
 0x1b0   :  { %5344 = vmatprep.subr.bf16.mxu1 %v7663_v1  ;;  %v2143_v1 = vmax.f32 %v1861_v57, %v2127_v53  ;;  %v7734_v14 = vcombine.low %v2471_v62, %v2475_v63  ;;  %v2459_v24 = vld [vmem:[#allocation11 + $0x920] sm:$0xff] }
 0x1b1   :  { %5302 = vmatpush2.bf16.msra.mxu0 %v7534_v4  ;;  %v474_v4 = vrot.slane %v8751_v31, %v473_v58  ;;  %v2447_v37 = vld [vmem:[#allocation11 + $0x8c0] sm:$0xff] }
 0x1b2   :  { %5303 = vmatprep.subr.bf16.mxu0 %v7527_v5  ;;  %v8785_v3 = vpack.c.bf16 %v2151_v56, %v2143_v1  ;;  %v7735_v5 = vcombine.high %v2471_v62, %v2475_v63  ;;  %v2451_v38 = vld [vmem:[#allocation11 + $0x8e0] sm:$0xff]  ;;  %v8798_v62 = vld [vmem:[#allocation11 + $0x5c8] sm:$0xff] }
 0x1b3   :  { %5345 = vmatpush2.bf16.msra.mxu1 %v7662_v6  ;;  %v478_v6 = vrot.slane %v8751_v31, %v477_v61  ;;  %v2439_v46 = vld [vmem:[#allocation11 + $0x880] sm:$0xff]  ;;  %v8800_v63 = vld [vmem:[#allocation11 + $0x5e8] sm:$0xff] }
 0x1b4   :  { %5346 = vmatprep.subr.bf16.mxu1 %v7655_v9  ;;  %v2443_v47 = vld [vmem:[#allocation11 + $0x8a0] sm:$0xff] }
 0x1b5   :  { %5304 = vmatpush2.bf16.msra.mxu0 %v7526_v15  ;;  %v2603_v29 = vld [vmem:[#allocation11 + $0xda0] sm:$0xff]  ;;  %v7703_v53 = vcombine.high %v2439_v46, %v2443_v47 }
 0x1b6   :  { %5305 = vmatprep.subr.bf16.mxu0 %v7519_v16 }
 0x1b7   :  { %5347 = vmatpush2.bf16.msra.mxu1 %v7654_v18  ;;  %v7727_v18 = vcombine.high %v2463_v7, %v2467_v8 }
 0x1b8   :  { %5348 = vmatprep.subr.bf16.mxu1 %v7647_v23  ;;  %v2455_v23 = vld [vmem:[#allocation11 + $0x900] sm:$0xff] }
 0x1b9   :  { %5306 = vmatpush2.bf16.msra.mxu0 %v7518_v28  ;;  %v7719_v35 = vcombine.high %v2455_v23, %v2459_v24  ;;  %v7718_v43 = vcombine.low %v2455_v23, %v2459_v24 }
 0x1ba   :  { %5307 = vmatprep.subr.bf16.mxu0 %v7511_v32  ;;  %v7726_v32 = vcombine.low %v2463_v7, %v2467_v8  ;;  %v2427_v7 = vld [vmem:[#allocation11 + $0x820] sm:$0xff] }
 0x1bb   :  { %5349 = vmatpush2.bf16.msra.mxu1 %v7646_v33 }
 0x1bc   :  { %5350 = vmatprep.subr.bf16.mxu1 %v7639_v10 }
 0x1bd   :  { %5308 = vmatpush2.bf16.msra.mxu0 %v7510_v40 }
 0x1be   :  { %5309 = vmatprep.subr.bf16.mxu0 %v7503_v42 }
 0x1bf   :  { %5351 = vmatpush2.bf16.msra.mxu1 %v7638_v26 }
 0x1c0   :  { %5352 = vmatprep.subr.bf16.mxu1 %v7631_v45  ;;  %v7711_v45 = vcombine.high %v2447_v37, %v2451_v38 }
 0x1c1   :  { %5310 = vmatpush2.bf16.msra.mxu0 %v7502_v13 }
 0x1c2   :  { %5311 = vmatprep.subr.bf16.mxu0 %v7495_v49 }
 0x1c3   :  { %5353 = vmatpush2.bf16.msra.mxu1 %v7630_v50  ;;  %v7710_v50 = vcombine.low %v2447_v37, %v2451_v38  ;;  %v2527_v38 = vld [vmem:[#allocation11 + $0xb40] sm:$0xff] }
 0x1c4   :  { %5354 = vmatprep.subr.bf16.mxu1 %v7623_v51  ;;  %v2599_v51 = vld [vmem:[#allocation11 + $0xd80] sm:$0xff] }
 0x1c5   :  { %5312 = vmatpush2.bf16.msra.mxu0 %v7494_v39  ;;  %v2431_v39 = vld [vmem:[#allocation11 + $0x840] sm:$0xff]  ;;  %v7863_v1 = vcombine.high %v2599_v51, %v2603_v29  ;;  %v7862_v8 = vcombine.low %v2599_v51, %v2603_v29 }
 0x1c6   :  { %5367 = vmatprep.subr.bf16.mxu0 %v7743_v60  ;;  %v7870_v60 = vcombine.low %v8777_v54, %v8779_v55  ;;  %v2423_v55 = vld [vmem:[#allocation11 + $0x800] sm:$0xff] }
 0x1c7   :  { %5355 = vmatpush2.bf16.msra.mxu1 %v7622_v59  ;;  %v2435_v59 = vld [vmem:[#allocation11 + $0x860] sm:$0xff]  ;;  %v7686_v24 = vcombine.low %v2423_v55, %v2427_v7 }
 0x1c8   :  { %5410 = vmatprep.subr.bf16.mxu1 %v7871_v0  ;;  %v1903_v9 = vpop.f32.mrf.mxu0  ;;  %5314 = vmatmul.mubr.bf16.vlgmr.msra.gmra.mxu0 %v8785_v3  ;;  %v7695_v54 = vcombine.high %v2431_v39, %v2435_v59  ;;  %v2511_v29 = vld [vmem:[#allocation11 + $0xac0] sm:$0xff] }
 0x1c9   :  { %5368 = vmatpush1.bf16.msra.mxu0 %v7742_v2  ;;  %v1904_v15 = vadd.f32 %v1903_v9, %v474_v4  ;;  %v7702_v2 = vcombine.low %v2439_v46, %v2443_v47  ;;  %v2523_v46 = vld [vmem:[#allocation11 + $0xb20] sm:$0xff] }
 0x1ca   :  { %v1946_v12 = vpop.f32.mrf.mxu1  ;;  %v1905_v16 = vpop.f32.mrf.mxu0  ;;  %5369 = vmatprep.subr.bf16.mxu0 %v7735_v5  ;;  %v2595_v5 = vld [vmem:[#allocation11 + $0xd60] sm:$0xff] }
 0x1cb   :  { %v1906_v20 = vadd.f32 %v1905_v16, %v478_v6  ;;  %v1947_v33 = vadd.f32 %v1946_v12, %v1904_v15  ;;  %v7694_v12 = vcombine.low %v2431_v39, %v2435_v59  ;;  %v2587_v15 = vld [vmem:[#allocation11 + $0xd20] sm:$0xff]  ;;  %v7687_v16 = vcombine.high %v2423_v55, %v2427_v7 }
 0x1cc   :  { %v1948_v21 = vpop.f32.mrf.mxu1  ;;  %v1907_v25 = vpop.f32.mrf.mxu0 }
 0x1cd   :  { %v1949_v27 = vadd.f32 %v1948_v21, %v1906_v20  ;;  %v1908_v28 = vadd.f32 %v1907_v25, %v474_v4  ;;  %5370 = vmatpush1.bf16.msra.mxu0 %v7734_v14  ;;  %v2129_v44 = vmul.f32 0.1, %v1947_v33  ;;  %v2591_v4 = vld [vmem:[#allocation11 + $0xd40] sm:$0xff] }
 0x1ce   :  { %v1950_v30 = vpop.f32.mrf.mxu1  ;;  %v1909_v34 = vpop.f32.mrf.mxu0  ;;  %5371 = vmatprep.subr.bf16.mxu0 %v7727_v18  ;;  %v7855_v9 = vcombine.high %v2591_v4, %v2595_v5  ;;  %v2583_v14 = vld [vmem:[#allocation11 + $0xd00] sm:$0xff]  ;;  %v7854_v21 = vcombine.low %v2591_v4, %v2595_v5 }
 0x1cf   :  { %v1951_v10 = vadd.f32 %v1950_v30, %v1908_v28  ;;  %v1910_v36 = vadd.f32 %v1909_v34, %v478_v6  ;;  %v2130_v41 = vmul.f32 0.1, %v1949_v27  ;;  %v2145_v52 = vmax.f32 %v1947_v33, %v2129_v44  ;;  %v2543_v18 = vld [vmem:[#allocation11 + $0xbc0] sm:$0xff] }
 0x1d0   :  { %v1952_v40 = vpop.f32.mrf.mxu1  ;;  %v7616_v6 = vcombine.low %v8798_v62, %v8800_v63  ;;  %v2547_v20 = vld [vmem:[#allocation11 + $0xbe0] sm:$0xff]  ;;  %v7847_v23 = vcombine.high %v2583_v14, %v2587_v15  ;;  %v7846_v33 = vcombine.low %v2583_v14, %v2587_v15 }
 0x1d1   :  { %v2137_v42 = vmul.f32 0.1, %v1951_v10  ;;  %v1953_v26 = vadd.f32 %v1952_v40, %v1910_v36  ;;  %5372 = vmatpush1.bf16.msra.mxu0 %v7726_v32  ;;  %v2146_v48 = vmax.f32 %v1949_v27, %v2130_v41  ;;  %v2575_v25 = vld [vmem:[#allocation11 + $0xcc0] sm:$0xff]  ;;  %v7807_v28 = vcombine.high %v2543_v18, %v2547_v20 }
 0x1d2   :  { %5373 = vmatprep.subr.bf16.mxu0 %v7719_v35  ;;  %v2579_v27 = vld [vmem:[#allocation11 + $0xce0] sm:$0xff]  ;;  %v7806_v35 = vcombine.low %v2543_v18, %v2547_v20 }
 0x1d3   :  { %v2138_v57 = vmul.f32 0.1, %v1953_v26  ;;  %v2153_v13 = vmax.f32 %v1951_v10, %v2137_v42  ;;  %v2535_v30 = vld [vmem:[#allocation11 + $0xb80] sm:$0xff]  ;;  %v7839_v34 = vcombine.high %v2575_v25, %v2579_v27  ;;  %v7838_v41 = vcombine.low %v2575_v25, %v2579_v27 }
 0x1d4   :  { %v2539_v32 = vld [vmem:[#allocation11 + $0xba0] sm:$0xff] }
 0x1d5   :  { %v2154_v49 = vmax.f32 %v1953_v26, %v2138_v57  ;;  %5374 = vmatpush1.bf16.msra.mxu0 %v7718_v43  ;;  %v8802_v0 = vpack.c.bf16 %v2153_v13, %v2145_v52  ;;  %v2567_v10 = vld [vmem:[#allocation11 + $0xc80] sm:$0xff]  ;;  %v7799_v37 = vcombine.high %v2535_v30, %v2539_v32  ;;  %v7798_v26 = vcombine.low %v2535_v30, %v2539_v32 }
 0x1d6   :  { %5375 = vmatprep.subr.bf16.mxu0 %v7711_v45  ;;  %v2571_v36 = vld [vmem:[#allocation11 + $0xca0] sm:$0xff] }
 0x1d7   :  { %v8794_v56 = vpack.c.bf16 %v2154_v49, %v2146_v48  ;;  %v2531_v40 = vld [vmem:[#allocation11 + $0xb60] sm:$0xff]  ;;  %v7831_v42 = vcombine.high %v2567_v10, %v2571_v36  ;;  %v7830_v47 = vcombine.low %v2567_v10, %v2571_v36  ;;  %v8808_v10 = vld [vmem:[#allocation11 + $0x1c8] sm:$0xff] }
 0x1d8   :  { %v2559_v43 = vld [vmem:[#allocation11 + $0xc40] sm:$0xff]  ;;  %v7791_v45 = vcombine.high %v2527_v38, %v2531_v40  ;;  %v7790_v48 = vcombine.low %v2527_v38, %v2531_v40  ;;  %v8810_v36 = vld [vmem:[#allocation11 + $0x1e8] sm:$0xff] }
 0x1d9   :  { %5356 = vmatprep.mubr.bf16.mxu1 %v8794_v56  ;;  %5376 = vmatpush1.bf16.msra.mxu0 %v7710_v50  ;;  %v2563_v44 = vld [vmem:[#allocation11 + $0xc60] sm:$0xff] }
 0x1da   :  { %5357 = vmatmul.mubr.bf16.vlgmr.msra.gmra.mxu1 %v8802_v0  ;;  %5377 = vmatprep.subr.bf16.mxu0 %v7703_v53  ;;  %v2519_v57 = vld [vmem:[#allocation11 + $0xb00] sm:$0xff]  ;;  %v7823_v13 = vcombine.high %v2559_v43, %v2563_v44  ;;  %v7822_v53 = vcombine.low %v2559_v43, %v2563_v44  ;;  %v7489_v43 = vcombine.high %v8808_v10, %v8810_v36  ;;  %v485_v44 = vsub.s32 5, %v8746_v19 }
 0x1db   :  { %5411 = vmatpush1.bf16.msra.mxu1 %v7870_v60  ;;  %v2551_v49 = vld [vmem:[#allocation11 + $0xc00] sm:$0xff]  ;;  %v7783_v51 = vcombine.high %v2519_v57, %v2523_v46  ;;  %v7782_v59 = vcombine.low %v2519_v57, %v2523_v46 }
 0x1dc   :  { %5412 = vmatprep.subr.bf16.mxu1 %v7863_v1  ;;  %v2555_v50 = vld [vmem:[#allocation11 + $0xc20] sm:$0xff] }
 0x1dd   :  { %5378 = vmatpush1.bf16.msra.mxu0 %v7702_v2  ;;  %v2515_v52 = vld [vmem:[#allocation11 + $0xae0] sm:$0xff]  ;;  %v7815_v39 = vcombine.high %v2551_v49, %v2555_v50 }
 0x1de   :  { %5379 = vmatprep.subr.bf16.mxu0 %v7695_v54  ;;  %v2671_v60 = vld [vmem:[#allocation11 + $0xfc0] sm:$0xff]  ;;  %v7775_v2 = vcombine.high %v2511_v29, %v2515_v52  ;;  %v7814_v54 = vcombine.low %v2551_v49, %v2555_v50  ;;  %v7774_v7 = vcombine.low %v2511_v29, %v2515_v52 }
 0x1df   :  { %5413 = vmatpush1.bf16.msra.mxu1 %v7862_v8  ;;  %v2675_v1 = vld [vmem:[#allocation11 + $0xfe0] sm:$0xff] }
 0x1e0   :  { %5414 = vmatprep.subr.bf16.mxu1 %v7855_v9  ;;  %v2503_v4 = vld [vmem:[#allocation11 + $0xa80] sm:$0xff]  ;;  %v7935_v55 = vcombine.high %v2671_v60, %v2675_v1 }
 0x1e1   :  { %5380 = vmatpush1.bf16.msra.mxu0 %v7694_v12  ;;  %v2507_v5 = vld [vmem:[#allocation11 + $0xaa0] sm:$0xff] }
 0x1e2   :  { %5381 = vmatprep.subr.bf16.mxu0 %v7687_v16  ;;  %v2663_v8 = vld [vmem:[#allocation11 + $0xf80] sm:$0xff]  ;;  %v7767_v12 = vcombine.high %v2503_v4, %v2507_v5  ;;  %v7934_v16 = vcombine.low %v2671_v60, %v2675_v1  ;;  %v7766_v20 = vcombine.low %v2503_v4, %v2507_v5 }
 0x1e3   :  { %5415 = vmatpush1.bf16.msra.mxu1 %v7854_v21  ;;  %v2667_v9 = vld [vmem:[#allocation11 + $0xfa0] sm:$0xff] }
 0x1e4   :  { %5416 = vmatprep.subr.bf16.mxu1 %v7847_v23  ;;  %v2495_v14 = vld [vmem:[#allocation11 + $0xa40] sm:$0xff]  ;;  %v7927_v18 = vcombine.high %v2663_v8, %v2667_v9 }
 0x1e5   :  { %5382 = vmatpush1.bf16.msra.mxu0 %v7686_v24  ;;  %v2499_v15 = vld [vmem:[#allocation11 + $0xa60] sm:$0xff] }
 0x1e6   :  { %5383 = vmatprep.subr.bf16.mxu0 %v7807_v28  ;;  %v2655_v21 = vld [vmem:[#allocation11 + $0xf40] sm:$0xff]  ;;  %v7759_v24 = vcombine.high %v2495_v14, %v2499_v15  ;;  %v7926_v28 = vcombine.low %v2663_v8, %v2667_v9  ;;  %v7758_v32 = vcombine.low %v2495_v14, %v2499_v15 }
 0x1e7   :  { %5417 = vmatpush1.bf16.msra.mxu1 %v7846_v33  ;;  %v2659_v23 = vld [vmem:[#allocation11 + $0xf60] sm:$0xff] }
 0x1e8   :  { %5418 = vmatprep.subr.bf16.mxu1 %v7839_v34  ;;  %v2487_v25 = vld [vmem:[#allocation11 + $0xa00] sm:$0xff]  ;;  %v7919_v30 = vcombine.high %v2655_v21, %v2659_v23 }
 0x1e9   :  { %5384 = vmatpush2.bf16.msra.mxu0 %v7806_v35  ;;  %v2491_v27 = vld [vmem:[#allocation11 + $0xa20] sm:$0xff] }
 0x1ea   :  { %5385 = vmatprep.subr.bf16.mxu0 %v7799_v37  ;;  %v2647_v33 = vld [vmem:[#allocation11 + $0xf00] sm:$0xff]  ;;  %v7751_v35 = vcombine.high %v2487_v25, %v2491_v27  ;;  %v7918_v37 = vcombine.low %v2655_v21, %v2659_v23  ;;  %v7750_v40 = vcombine.low %v2487_v25, %v2491_v27 }
 0x1eb   :  { %5419 = vmatpush1.bf16.msra.mxu1 %v7838_v41  ;;  %v2651_v34 = vld [vmem:[#allocation11 + $0xf20] sm:$0xff] }
 0x1ec   :  { %5420 = vmatprep.subr.bf16.mxu1 %v7831_v42  ;;  %v7911_v38 = vcombine.high %v2647_v33, %v2651_v34  ;;  %v2639_v41 = vld [vmem:[#allocation11 + $0xec0] sm:$0xff] }
 0x1ed   :  { %5386 = vmatpush2.bf16.msra.mxu0 %v7798_v26  ;;  %v2643_v42 = vld [vmem:[#allocation11 + $0xee0] sm:$0xff]  ;;  %v481_v26 = vsub.s32 4, %v8746_v19 }
 0x1ee   :  { %5387 = vmatprep.subr.bf16.mxu0 %v7791_v45  ;;  %v7910_v45 = vcombine.low %v2647_v33, %v2651_v34  ;;  %v7903_v57 = vcombine.high %v2639_v41, %v2643_v42  ;;  %v2631_v46 = vld [vmem:[#allocation11 + $0xe80] sm:$0xff]  ;;  %v7902_v49 = vcombine.low %v2639_v41, %v2643_v42  ;;  %v7488_v41 = vcombine.low %v8808_v10, %v8810_v36 }
 0x1ef   :  { %5421 = vmatpush1.bf16.msra.mxu1 %v7830_v47  ;;  %v2635_v47 = vld [vmem:[#allocation11 + $0xea0] sm:$0xff] }
 0x1f0   :  { %5422 = vmatprep.subr.bf16.mxu1 %v7823_v13  ;;  %v482_v13 = vrot.slane %v8751_v31, %v481_v26  ;;  %v2623_v52 = vld [vmem:[#allocation11 + $0xe40] sm:$0xff] }
 0x1f1   :  { %5388 = vmatpush2.bf16.msra.mxu0 %v7790_v48  ;;  %v486_v48 = vrot.slane %v8751_v31, %v485_v44  ;;  %v2619_v8 = vld [vmem:[#allocation11 + $0xe20] sm:$0xff] }
 0x1f2   :  { %5389 = vmatprep.subr.bf16.mxu0 %v7783_v51  ;;  %v7895_v51 = vcombine.high %v2631_v46, %v2635_v47 }
 0x1f3   :  { %5423 = vmatpush1.bf16.msra.mxu1 %v7822_v53  ;;  %v2627_v53 = vld [vmem:[#allocation11 + $0xe60] sm:$0xff] }
 0x1f4   :  { %5424 = vmatprep.subr.bf16.mxu1 %v7815_v39  ;;  %v7887_v5 = vcombine.high %v2623_v52, %v2627_v53 }
 0x1f5   :  { %5390 = vmatpush2.bf16.msra.mxu0 %v7782_v59 }
 0x1f6   :  { %5391 = vmatprep.subr.bf16.mxu0 %v7775_v2  ;;  %v7894_v2 = vcombine.low %v2631_v46, %v2635_v47 }
 0x1f7   :  { %5425 = vmatpush1.bf16.msra.mxu1 %v7814_v54 }
 0x1f8   :  { %5426 = vmatprep.subr.bf16.mxu1 %v7935_v55 }
 0x1f9   :  { %5392 = vmatpush2.bf16.msra.mxu0 %v7774_v7  ;;  %v2615_v7 = vld [vmem:[#allocation11 + $0xe00] sm:$0xff] }
 0x1fa   :  { %5393 = vmatprep.subr.bf16.mxu0 %v7767_v12 }
 0x1fb   :  { %5427 = vmatpush2.bf16.msra.mxu1 %v7934_v16  ;;  %v7886_v16 = vcombine.low %v2623_v52, %v2627_v53  ;;  %v2184_v52 = vld [vmem:[#allocation11 + $0x88] sm:$0xff] }
 0x1fc   :  { %5428 = vmatprep.subr.bf16.mxu1 %v7927_v18  ;;  %v2188_v53 = vld [vmem:[#allocation11 + $0xa8] sm:$0xff] }
 0x1fd   :  { %5394 = vmatpush2.bf16.msra.mxu0 %v7766_v20  ;;  %v7879_v20 = vcombine.high %v2615_v7, %v2619_v8 }
 0x1fe   :  { %5395 = vmatprep.subr.bf16.mxu0 %v7759_v24 }
 0x1ff   :  { %5429 = vmatpush2.bf16.msra.mxu1 %v7926_v28  ;;  %v7878_v28 = vcombine.low %v2615_v7, %v2619_v8  ;;  %v2288_v7 = vld [vmem:[#allocation11 + $0x3c8] sm:$0xff] }
 0x200   :  { %5430 = vmatprep.subr.bf16.mxu1 %v7919_v30  ;;  %v2292_v8 = vld [vmem:[#allocation11 + $0x3e8] sm:$0xff] }
 0x201   :  { %5396 = vmatpush2.bf16.msra.mxu0 %v7758_v32  ;;  %v7617_v32 = vcombine.high %v8798_v62, %v8800_v63 }
 0x202   :  { %5397 = vmatprep.subr.bf16.mxu0 %v7751_v35  ;;  %v2216_v35 = vld [vmem:[#allocation11 + $0x188] sm:$0xff] }
 0x203   :  { %5431 = vmatpush2.bf16.msra.mxu1 %v7918_v37  ;;  %v2220_v37 = vld [vmem:[#allocation11 + $0x1a8] sm:$0xff] }
 0x204   :  { %5432 = vmatprep.subr.bf16.mxu1 %v7911_v38  ;;  %v7480_v46 = vcombine.low %v2216_v35, %v2220_v37 }
 0x205   :  { %5398 = vmatpush2.bf16.msra.mxu0 %v7750_v40 }
 0x206   :  { %5453 = vmatprep.subr.bf16.mxu0 %v7489_v43  ;;  %v7481_v43 = vcombine.high %v2216_v35, %v2220_v37  ;;  %v493_v37 = vsub.s32 7, %v8746_v19 }
 0x207   :  { %5433 = vmatpush2.bf16.msra.mxu1 %v7910_v45  ;;  %v2208_v45 = vld [vmem:[#allocation11 + $0x148] sm:$0xff] }
 0x208   :  { %v1989_v50 = vpop.f32.mrf.mxu0  ;;  %5434 = vmatprep.subr.bf16.mxu1 %v7903_v57  ;;  %v2212_v57 = vld [vmem:[#allocation11 + $0x168] sm:$0xff] }
 0x209   :  { %v1990_v39 = vadd.f32 %v1989_v50, %v482_v13  ;;  %v7473_v47 = vcombine.high %v2208_v45, %v2212_v57  ;;  %v7472_v10 = vcombine.low %v2208_v45, %v2212_v57  ;;  %v2196_v50 = vld [vmem:[#allocation11 + $0xe8] sm:$0xff]  ;;  %v8341_v45 = vld [vmem:[#allocation10] sm:$0xff] }
 0x20a   :  { %v2032_v29 = vpop.f32.mrf.mxu1  ;;  %v1991_v59 = vpop.f32.mrf.mxu0 }
 0x20b   :  { %v1992_v60 = vadd.f32 %v1991_v59, %v486_v48  ;;  %5435 = vmatpush2.bf16.msra.mxu1 %v7902_v49  ;;  %v2033_v9 = vadd.f32 %v2032_v29, %v1990_v39  ;;  %v2192_v49 = vld [vmem:[#allocation11 + $0xc8] sm:$0xff]  ;;  %v7449_v59 = vcombine.high %v2184_v52, %v2188_v53 }
 0x20c   :  { %v2034_v1 = vpop.f32.mrf.mxu1  ;;  %v1993_v4 = vpop.f32.mrf.mxu0  ;;  %5436 = vmatprep.subr.bf16.mxu1 %v7895_v51  ;;  %v7457_v29 = vcombine.high %v2192_v49, %v2196_v50  ;;  %v7456_v39 = vcombine.low %v2192_v49, %v2196_v50  ;;  %v2244_v49 = vld [vmem:[#allocation11 + $0x268] sm:$0xff] }
 0x20d   :  { %v2035_v54 = vadd.f32 %v2034_v1, %v1992_v60  ;;  %v1994_v55 = vadd.f32 %v1993_v4, %v482_v13  ;;  %v2131_v25 = vmul.f32 0.1, %v2033_v9  ;;  %v2200_v13 = vld [vmem:[#allocation11 + $0x108] sm:$0xff] }
 0x20e   :  { %v2036_v31 = vpop.f32.mrf.mxu1  ;;  %v1995_v12 = vpop.f32.mrf.mxu0  ;;  %v2176_v60 = vld [vmem:[#allocation11 + $0x48] sm:$0xff] }
 0x20f   :  { %v2037_v14 = vadd.f32 %v2036_v31, %v1994_v55  ;;  %v1996_v15 = vadd.f32 %v1995_v12, %v486_v48  ;;  %5437 = vmatpush2.bf16.msra.mxu1 %v7894_v2  ;;  %v2132_v21 = vmul.f32 0.1, %v2035_v54  ;;  %v2147_v38 = vmax.f32 %v2033_v9, %v2131_v25  ;;  %v2204_v48 = vld [vmem:[#allocation11 + $0x128] sm:$0xff] }
 0x210   :  { %v2038_v18 = vpop.f32.mrf.mxu1  ;;  %5438 = vmatprep.subr.bf16.mxu1 %v7887_v5  ;;  %v7465_v36 = vcombine.high %v2200_v13, %v2204_v48  ;;  %v7464_v51 = vcombine.low %v2200_v13, %v2204_v48  ;;  %v2180_v1 = vld [vmem:[#allocation11 + $0x68] sm:$0xff]  ;;  %v7448_v2 = vcombine.low %v2184_v52, %v2188_v53  ;;  %v7553_v12 = vcombine.high %v2288_v7, %v2292_v8 }
 0x211   :  { %v2139_v23 = vmul.f32 0.1, %v2037_v14  ;;  %v2039_v24 = vadd.f32 %v2038_v18, %v1996_v15  ;;  %v2148_v33 = vmax.f32 %v2035_v54, %v2132_v21  ;;  %v7441_v4 = vcombine.high %v2176_v60, %v2180_v1  ;;  %v2168_v5 = vld [vmem:[#allocation11 + $0x8] sm:$0xff] }
 0x212   :  { %v2172_v54 = vld [vmem:[#allocation11 + $0x28] sm:$0xff]  ;;  %v7440_v55 = vcombine.low %v2176_v60, %v2180_v1 }
 0x213   :  { %v2140_v27 = vmul.f32 0.1, %v2039_v24  ;;  %5439 = vmatpush2.bf16.msra.mxu1 %v7886_v16  ;;  %v2155_v30 = vmax.f32 %v2037_v14, %v2139_v23  ;;  %v7433_v31 = vcombine.high %v2168_v5, %v2172_v54  ;;  %v7432_v9 = vcombine.low %v2168_v5, %v2172_v54  ;;  %v2280_v14 = vld [vmem:[#allocation11 + $0x388] sm:$0xff] }
 0x214   :  { %5440 = vmatprep.subr.bf16.mxu1 %v7879_v20  ;;  %v2284_v15 = vld [vmem:[#allocation11 + $0x3a8] sm:$0xff]  ;;  %v7552_v16 = vcombine.low %v2288_v7, %v2292_v8 }
 0x215   :  { %v2156_v34 = vmax.f32 %v2039_v24, %v2140_v27  ;;  %v8828_v42 = vpack.c.bf16 %v2155_v30, %v2147_v38  ;;  %v7545_v18 = vcombine.high %v2280_v14, %v2284_v15  ;;  %v2272_v20 = vld [vmem:[#allocation11 + $0x348] sm:$0xff]  ;;  %v7544_v23 = vcombine.low %v2280_v14, %v2284_v15 }
 0x216   :  { %v2276_v21 = vld [vmem:[#allocation11 + $0x368] sm:$0xff] }
 0x217   :  { %v8824_v40 = vpack.c.bf16 %v2156_v34, %v2148_v33  ;;  %5441 = vmatpush2.bf16.msra.mxu1 %v7878_v28  ;;  %v7537_v24 = vcombine.high %v2272_v20, %v2276_v21  ;;  %v2264_v25 = vld [vmem:[#allocation11 + $0x308] sm:$0xff]  ;;  %v7536_v28 = vcombine.low %v2272_v20, %v2276_v21  ;;  %v489_v34 = vsub.s32 6, %v8746_v19 }
 0x218   :  { %5496 = vmatprep.subr.bf16.mxu1 %v7617_v32  ;;  %v2268_v27 = vld [vmem:[#allocation11 + $0x328] sm:$0xff] }
 0x219   :  { %5399 = vmatprep.mubr.bf16.mxu0 %v8824_v40  ;;  %v7529_v30 = vcombine.high %v2264_v25, %v2268_v27  ;;  %v2256_v32 = vld [vmem:[#allocation11 + $0x2c8] sm:$0xff]  ;;  %v7528_v35 = vcombine.low %v2264_v25, %v2268_v27  ;;  %v490_v57 = vrot.slane %v8341_v45, %v489_v34 }
 0x21a   :  { %5400 = vmatmul.mubr.bf16.vlgmr.msra.gmra.mxu0 %v8828_v42  ;;  %v2260_v33 = vld [vmem:[#allocation11 + $0x2e8] sm:$0xff] }
 0x21b   :  { %5454 = vmatpush1.bf16.msra.mxu0 %v7488_v41  ;;  %5485 = vmatprep.mubr.bf16.mxu0 %v8765_v17  ;;  %v7521_v38 = vcombine.high %v2256_v32, %v2260_v33  ;;  %v2248_v41 = vld [vmem:[#allocation11 + $0x288] sm:$0xff] }
 0x21c   :  { %5455 = vmatprep.subr.bf16.mxu0 %v7481_v43  ;;  %v2252_v43 = vld [vmem:[#allocation11 + $0x2a8] sm:$0xff] }
 0x21d   :  { %v7513_v48 = vcombine.high %v2248_v41, %v2252_v43  ;;  %v7512_v53 = vcombine.low %v2248_v41, %v2252_v43  ;;  %v2236_v5 = vld [vmem:[#allocation11 + $0x228] sm:$0xff] }
 0x21e   :  { %v2484_v20 = vld [vmem:[#allocation11 + $0x9e8] sm:$0xff] }
 0x21f   :  { %5456 = vmatpush1.bf16.msra.mxu0 %v7480_v46  ;;  %v7520_v46 = vcombine.low %v2256_v32, %v2260_v33  ;;  %v2344_v32 = vld [vmem:[#allocation11 + $0x588] sm:$0xff] }
 0x220   :  { %5457 = vmatprep.subr.bf16.mxu0 %v7473_v47  ;;  %v494_v47 = vrot.slane %v8341_v45, %v493_v37  ;;  %v2476_v41 = vld [vmem:[#allocation11 + $0x9a8] sm:$0xff] }
 0x223   :  { %5458 = vmatpush1.bf16.msra.mxu0 %v7472_v10 }
 0x224   :  { %5459 = vmatprep.subr.bf16.mxu0 %v7465_v36  ;;  %v2240_v36 = vld [vmem:[#allocation11 + $0x248] sm:$0xff] }
 0x225   :  { %v7504_v8 = vcombine.low %v2240_v36, %v2244_v49 }
 0x227   :  { %5460 = vmatpush1.bf16.msra.mxu0 %v7464_v51 }
 0x228   :  { %5461 = vmatprep.subr.bf16.mxu0 %v7457_v29 }
 0x22b   :  { %5462 = vmatpush1.bf16.msra.mxu0 %v7456_v39 }
 0x22c   :  { %5463 = vmatprep.subr.bf16.mxu0 %v7449_v59  ;;  %v7505_v59 = vcombine.high %v2240_v36, %v2244_v49  ;;  %v2468_v36 = vld [vmem:[#allocation11 + $0x968] sm:$0xff] }
 0x22f   :  { %5464 = vmatpush1.bf16.msra.mxu0 %v7448_v2 }
 0x230   :  { %5465 = vmatprep.subr.bf16.mxu0 %v7441_v4  ;;  %v2232_v4 = vld [vmem:[#allocation11 + $0x208] sm:$0xff] }
 0x233   :  { %5466 = vmatpush1.bf16.msra.mxu0 %v7440_v55 }
 0x234   :  { %5467 = vmatprep.subr.bf16.mxu0 %v7433_v31 }
 0x237   :  { %5468 = vmatpush1.bf16.msra.mxu0 %v7432_v9 }
 0x238   :  { %5469 = vmatprep.subr.bf16.mxu0 %v7553_v12  ;;  %v7497_v12 = vcombine.high %v2232_v4, %v2236_v5 }
 0x23b   :  { %5470 = vmatpush2.bf16.msra.mxu0 %v7552_v16 }
 0x23c   :  { %5471 = vmatprep.subr.bf16.mxu0 %v7545_v18  ;;  %v2480_v18 = vld [vmem:[#allocation11 + $0x9c8] sm:$0xff] }
 0x23d   :  { %v7745_v27 = vcombine.high %v2480_v18, %v2484_v20  ;;  %v7744_v45 = vcombine.low %v2480_v18, %v2484_v20 }
 0x23f   :  { %5472 = vmatpush2.bf16.msra.mxu0 %v7544_v23 }
 0x240   :  { %5473 = vmatprep.subr.bf16.mxu0 %v7537_v24  ;;  %v7496_v24 = vcombine.low %v2232_v4, %v2236_v5  ;;  %v2448_v4 = vld [vmem:[#allocation11 + $0x8c8] sm:$0xff] }
 0x241   :  { %v2452_v5 = vld [vmem:[#allocation11 + $0x8e8] sm:$0xff] }
 0x243   :  { %5474 = vmatpush2.bf16.msra.mxu0 %v7536_v28 }
 0x244   :  { %5475 = vmatprep.subr.bf16.mxu0 %v7529_v30 }
 0x247   :  { %5476 = vmatpush2.bf16.msra.mxu0 %v7528_v35  ;;  %v2348_v35 = vld [vmem:[#allocation11 + $0x5a8] sm:$0xff] }
 0x248   :  { %v2075_v13 = vpop.f32.mrf.mxu0  ;;  %5477 = vmatprep.subr.bf16.mxu0 %v7521_v38  ;;  %v2472_v38 = vld [vmem:[#allocation11 + $0x988] sm:$0xff]  ;;  %v7608_v49 = vcombine.low %v2344_v32, %v2348_v35 }
 0x249   :  { %v2076_v50 = vadd.f32 %v2075_v13, %v490_v57  ;;  %v7737_v13 = vcombine.high %v2472_v38, %v2476_v41 }
 0x24a   :  { %v2118_v10 = vpop.f32.mrf.mxu1  ;;  %v2077_v51 = vpop.f32.mrf.mxu0 }
 0x24b   :  { %v2078_v29 = vadd.f32 %v2077_v51, %v494_v47  ;;  %5478 = vmatpush2.bf16.msra.mxu0 %v7520_v46  ;;  %v2119_v54 = vadd.f32 %v2118_v10, %v2076_v50  ;;  %v2336_v46 = vld [vmem:[#allocation11 + $0x548] sm:$0xff]  ;;  %v7736_v50 = vcombine.low %v2472_v38, %v2476_v41 }
 0x24c   :  { %v2120_v52 = vpop.f32.mrf.mxu1  ;;  %v2079_v39 = vpop.f32.mrf.mxu0  ;;  %5479 = vmatprep.subr.bf16.mxu0 %v7513_v48  ;;  %v2340_v48 = vld [vmem:[#allocation11 + $0x568] sm:$0xff] }
 0x24d   :  { %v2121_v60 = vadd.f32 %v2120_v52, %v2078_v29  ;;  %v2080_v1 = vadd.f32 %v2079_v39, %v490_v57  ;;  %v2133_v21 = vmul.f32 0.1, %v2119_v54  ;;  %v2464_v10 = vld [vmem:[#allocation11 + $0x948] sm:$0xff]  ;;  %v7601_v51 = vcombine.high %v2336_v46, %v2340_v48 }
 0x24e   :  { %v2122_v2 = vpop.f32.mrf.mxu1  ;;  %v2081_v55 = vpop.f32.mrf.mxu0  ;;  %v7729_v29 = vcombine.high %v2464_v10, %v2468_v36  ;;  %v2328_v52 = vld [vmem:[#allocation11 + $0x508] sm:$0xff]  ;;  %v7728_v62 = vcombine.low %v2464_v10, %v2468_v36 }
 0x24f   :  { %v2123_v31 = vadd.f32 %v2122_v2, %v2080_v1  ;;  %v2082_v7 = vadd.f32 %v2081_v55, %v494_v47  ;;  %5480 = vmatpush2.bf16.msra.mxu0 %v7512_v53  ;;  %v2134_v14 = vmul.f32 0.1, %v2121_v60  ;;  %v2149_v33 = vmax.f32 %v2119_v54, %v2133_v21  ;;  %v2332_v53 = vld [vmem:[#allocation11 + $0x528] sm:$0xff] }
 0x250   :  { %v2124_v9 = vpop.f32.mrf.mxu1  ;;  %5481 = vmatprep.subr.bf16.mxu0 %v7505_v59  ;;  %v7609_v47 = vcombine.high %v2344_v32, %v2348_v35  ;;  %v2456_v39 = vld [vmem:[#allocation11 + $0x908] sm:$0xff]  ;;  %v7593_v63 = vcombine.high %v2328_v52, %v2332_v53  ;;  %v7592_v54 = vcombine.low %v2328_v52, %v2332_v53 }
 0x251   :  { %v2141_v15 = vmul.f32 0.1, %v2123_v31  ;;  %v2125_v16 = vadd.f32 %v2124_v9, %v2082_v7  ;;  %v2150_v28 = vmax.f32 %v2121_v60, %v2134_v14  ;;  %v2460_v59 = vld [vmem:[#allocation11 + $0x928] sm:$0xff]  ;;  %v7600_v60 = vcombine.low %v2336_v46, %v2340_v48 }
 0x252   :  { %v2320_v1 = vld [vmem:[#allocation11 + $0x4c8] sm:$0xff]  ;;  %v7720_v55 = vcombine.low %v2456_v39, %v2460_v59  ;;  %v7713_v7 = vcombine.high %v2448_v4, %v2452_v5 }
 0x253   :  { %v2142_v23 = vmul.f32 0.1, %v2125_v16  ;;  %5482 = vmatpush2.bf16.msra.mxu0 %v7504_v8  ;;  %v2157_v25 = vmax.f32 %v2123_v31, %v2141_v15  ;;  %v2324_v2 = vld [vmem:[#allocation11 + $0x4e8] sm:$0xff] }
 0x254   :  { %5483 = vmatprep.subr.bf16.mxu0 %v7497_v12  ;;  %v7585_v31 = vcombine.high %v2320_v1, %v2324_v2  ;;  %v2312_v8 = vld [vmem:[#allocation11 + $0x488] sm:$0xff]  ;;  %v7584_v15 = vcombine.low %v2320_v1, %v2324_v2 }
 0x255   :  { %v2158_v30 = vmax.f32 %v2125_v16, %v2142_v23  ;;  %v8841_v57 = vpack.c.bf16 %v2157_v25, %v2149_v33  ;;  %v2316_v9 = vld [vmem:[#allocation11 + $0x4a8] sm:$0xff]  ;;  %v7712_v16 = vcombine.low %v2448_v4, %v2452_v5 }
 0x256   :  { %v2440_v12 = vld [vmem:[#allocation11 + $0x888] sm:$0xff]  ;;  %v7577_v18 = vcombine.high %v2312_v8, %v2316_v9 }
 0x257   :  { %v8839_v43 = vpack.c.bf16 %v2158_v30, %v2150_v28  ;;  %5484 = vmatpush2.bf16.msra.mxu0 %v7496_v24  ;;  %v2444_v14 = vld [vmem:[#allocation11 + $0x8a8] sm:$0xff] }
 0x258   :  { %5539 = vmatprep.subr.bf16.mxu0 %v7745_v27  ;;  %v7705_v20 = vcombine.high %v2440_v12, %v2444_v14  ;;  %v2304_v21 = vld [vmem:[#allocation11 + $0x448] sm:$0xff]  ;;  %v7576_v27 = vcombine.low %v2312_v8, %v2316_v9  ;;  %v7704_v28 = vcombine.low %v2440_v12, %v2444_v14 }
 0x259   :  { %5442 = vmatprep.mubr.bf16.mxu1 %v8839_v43  ;;  %v2308_v23 = vld [vmem:[#allocation11 + $0x468] sm:$0xff] }
 0x25a   :  { %5486 = vmatmul.mubr.bf16.vlgmr.msra.gmra.mxu0 %v8785_v3  ;;  %5443 = vmatmul.mubr.bf16.vlgmr.msra.gmra.mxu1 %v8841_v57  ;;  %v2432_v24 = vld [vmem:[#allocation11 + $0x848] sm:$0xff]  ;;  %v7569_v30 = vcombine.high %v2304_v21, %v2308_v23 }
 0x25b   :  { %5497 = vmatpush1.bf16.msra.mxu1 %v7616_v6  ;;  %5540 = vmatpush1.bf16.msra.mxu0 %v7744_v45  ;;  %v7721_v6 = vcombine.high %v2456_v39, %v2460_v59  ;;  %v2436_v25 = vld [vmem:[#allocation11 + $0x868] sm:$0xff]  ;;  %v7568_v45 = vcombine.low %v2304_v21, %v2308_v23 }
 0x25c   :  { %5571 = vmatprep.mubr.bf16.mxu0 %v8824_v40  ;;  %5528 = vmatprep.mubr.bf16.mxu1 %v8794_v56  ;;  %v7697_v32 = vcombine.high %v2432_v24, %v2436_v25  ;;  %v2296_v33 = vld [vmem:[#allocation11 + $0x408] sm:$0xff]  ;;  %v7696_v46 = vcombine.low %v2432_v24, %v2436_v25 }
 0x25d   :  { %5498 = vmatprep.subr.bf16.mxu1 %v7609_v47  ;;  %5541 = vmatprep.subr.bf16.mxu0 %v7737_v13  ;;  %v2300_v35 = vld [vmem:[#allocation11 + $0x428] sm:$0xff] }
 0x25e   :  { %v2424_v38 = vld [vmem:[#allocation11 + $0x808] sm:$0xff]  ;;  %v7561_v47 = vcombine.high %v2296_v33, %v2300_v35 }
 0x25f   :  { %5499 = vmatpush1.bf16.msra.mxu1 %v7608_v49  ;;  %5542 = vmatpush1.bf16.msra.mxu0 %v7736_v50  ;;  %v2428_v41 = vld [vmem:[#allocation11 + $0x828] sm:$0xff]  ;;  %v7560_v50 = vcombine.low %v2296_v33, %v2300_v35 }
 0x260   :  { %5500 = vmatprep.subr.bf16.mxu1 %v7601_v51  ;;  %5543 = vmatprep.subr.bf16.mxu0 %v7729_v29  ;;  %v7689_v13 = vcombine.high %v2424_v38, %v2428_v41  ;;  %v2416_v48 = vld [vmem:[#allocation11 + $0x7c8] sm:$0xff]  ;;  %v7688_v51 = vcombine.low %v2424_v38, %v2428_v41 }
 0x261   :  { %v2420_v10 = vld [vmem:[#allocation11 + $0x7e8] sm:$0xff] }
 0x262   :  { %v2544_v36 = vld [vmem:[#allocation11 + $0xbc8] sm:$0xff]  ;;  %v7681_v29 = vcombine.high %v2416_v48, %v2420_v10 }
 0x263   :  { %5501 = vmatpush1.bf16.msra.mxu1 %v7600_v60  ;;  %5544 = vmatpush1.bf16.msra.mxu0 %v7728_v62  ;;  %v2548_v49 = vld [vmem:[#allocation11 + $0xbe8] sm:$0xff]  ;;  %v7680_v62 = vcombine.low %v2416_v48, %v2420_v10 }
 0x264   :  { %5502 = vmatprep.subr.bf16.mxu1 %v7593_v63  ;;  %5545 = vmatprep.subr.bf16.mxu0 %v7721_v6  ;;  %v7809_v52 = vcombine.high %v2544_v36, %v2548_v49  ;;  %v2408_v53 = vld [vmem:[#allocation11 + $0x788] sm:$0xff]  ;;  %v7808_v63 = vcombine.low %v2544_v36, %v2548_v49 }
 0x265   :  { %v2412_v39 = vld [vmem:[#allocation11 + $0x7a8] sm:$0xff] }
 0x266   :  { %v2536_v59 = vld [vmem:[#allocation11 + $0xb88] sm:$0xff]  ;;  %v7673_v6 = vcombine.high %v2408_v53, %v2412_v39 }
 0x267   :  { %5503 = vmatpush1.bf16.msra.mxu1 %v7592_v54  ;;  %5546 = vmatpush1.bf16.msra.mxu0 %v7720_v55  ;;  %v2540_v60 = vld [vmem:[#allocation11 + $0xba8] sm:$0xff]  ;;  %v7672_v55 = vcombine.low %v2408_v53, %v2412_v39 }
 0x268   :  { %5504 = vmatprep.subr.bf16.mxu1 %v7585_v31  ;;  %5547 = vmatprep.subr.bf16.mxu0 %v7713_v7  ;;  %v7801_v1 = vcombine.high %v2536_v59, %v2540_v60  ;;  %v2400_v2 = vld [vmem:[#allocation11 + $0x748] sm:$0xff]  ;;  %v7800_v31 = vcombine.low %v2536_v59, %v2540_v60 }
 0x269   :  { %v2404_v4 = vld [vmem:[#allocation11 + $0x768] sm:$0xff] }
 0x26a   :  { %v2528_v5 = vld [vmem:[#allocation11 + $0xb48] sm:$0xff]  ;;  %v7665_v7 = vcombine.high %v2400_v2, %v2404_v4 }
 0x26b   :  { %5505 = vmatpush1.bf16.msra.mxu1 %v7584_v15  ;;  %5548 = vmatpush1.bf16.msra.mxu0 %v7712_v16  ;;  %v2532_v54 = vld [vmem:[#allocation11 + $0xb68] sm:$0xff]  ;;  %v7664_v16 = vcombine.low %v2400_v2, %v2404_v4 }
 0x26c   :  { %5506 = vmatprep.subr.bf16.mxu1 %v7577_v18  ;;  %5549 = vmatprep.subr.bf16.mxu0 %v7705_v20  ;;  %v7793_v8 = vcombine.high %v2528_v5, %v2532_v54  ;;  %v2392_v9 = vld [vmem:[#allocation11 + $0x708] sm:$0xff]  ;;  %v7792_v18 = vcombine.low %v2528_v5, %v2532_v54  ;;  %v2225_v54 = vld [vmem:[#allocation11 + $0x1d0] sm:$0xff] }
 0x26d   :  { %v2396_v12 = vld [vmem:[#allocation11 + $0x728] sm:$0xff] }
 0x26e   :  { %v2520_v14 = vld [vmem:[#allocation11 + $0xb08] sm:$0xff]  ;;  %v7657_v20 = vcombine.high %v2392_v9, %v2396_v12 }
 0x26f   :  { %5507 = vmatpush1.bf16.msra.mxu1 %v7576_v27  ;;  %5550 = vmatpush1.bf16.msra.mxu0 %v7704_v28  ;;  %v2524_v15 = vld [vmem:[#allocation11 + $0xb28] sm:$0xff]  ;;  %v7656_v28 = vcombine.low %v2392_v9, %v2396_v12 }
 0x270   :  { %5508 = vmatprep.subr.bf16.mxu1 %v7569_v30  ;;  %5551 = vmatprep.subr.bf16.mxu0 %v7697_v32  ;;  %v7785_v21 = vcombine.high %v2520_v14, %v2524_v15  ;;  %v2384_v23 = vld [vmem:[#allocation11 + $0x6c8] sm:$0xff]  ;;  %v7784_v30 = vcombine.low %v2520_v14, %v2524_v15 }
 0x271   :  { %v2388_v24 = vld [vmem:[#allocation11 + $0x6e8] sm:$0xff] }
 0x272   :  { %v2512_v25 = vld [vmem:[#allocation11 + $0xac8] sm:$0xff]  ;;  %v7649_v32 = vcombine.high %v2384_v23, %v2388_v24 }
 0x273   :  { %5509 = vmatpush1.bf16.msra.mxu1 %v7568_v45  ;;  %5552 = vmatpush1.bf16.msra.mxu0 %v7696_v46  ;;  %v2516_v27 = vld [vmem:[#allocation11 + $0xae8] sm:$0xff]  ;;  %v7648_v46 = vcombine.low %v2384_v23, %v2388_v24  ;;  %v2221_v23 = vld [vmem:[#allocation11 + $0x1b0] sm:$0xff] }
 0x274   :  { %5510 = vmatprep.subr.bf16.mxu1 %v7561_v47  ;;  %5553 = vmatprep.subr.bf16.mxu0 %v7689_v13  ;;  %v7777_v33 = vcombine.high %v2512_v25, %v2516_v27  ;;  %v2376_v35 = vld [vmem:[#allocation11 + $0x688] sm:$0xff]  ;;  %v7776_v47 = vcombine.low %v2512_v25, %v2516_v27 }
 0x275   :  { %v2380_v38 = vld [vmem:[#allocation11 + $0x6a8] sm:$0xff] }
 0x276   :  { %v2504_v41 = vld [vmem:[#allocation11 + $0xa88] sm:$0xff]  ;;  %v7641_v13 = vcombine.high %v2376_v35, %v2380_v38 }
 0x277   :  { %5511 = vmatpush1.bf16.msra.mxu1 %v7560_v50  ;;  %5554 = vmatpush1.bf16.msra.mxu0 %v7688_v51  ;;  %v2508_v45 = vld [vmem:[#allocation11 + $0xaa8] sm:$0xff]  ;;  %v7640_v51 = vcombine.low %v2376_v35, %v2380_v38 }
 0x278   :  { %5512 = vmatprep.subr.bf16.mxu1 %v7681_v29  ;;  %5555 = vmatprep.subr.bf16.mxu0 %v7809_v52  ;;  %v7769_v48 = vcombine.high %v2504_v41, %v2508_v45  ;;  %v2368_v10 = vld [vmem:[#allocation11 + $0x648] sm:$0xff]  ;;  %v7768_v29 = vcombine.low %v2504_v41, %v2508_v45  ;;  %v2209_v41 = vld [vmem:[#allocation11 + $0x150] sm:$0xff] }
 0x279   :  { %v2372_v36 = vld [vmem:[#allocation11 + $0x668] sm:$0xff]  ;;  %v2213_v45 = vld [vmem:[#allocation11 + $0x170] sm:$0xff] }
 0x27a   :  { %v2496_v49 = vld [vmem:[#allocation11 + $0xa48] sm:$0xff]  ;;  %v7633_v52 = vcombine.high %v2368_v10, %v2372_v36 }
 0x27b   :  { %5513 = vmatpush2.bf16.msra.mxu1 %v7680_v62  ;;  %5556 = vmatpush2.bf16.msra.mxu0 %v7808_v63  ;;  %v2500_v50 = vld [vmem:[#allocation11 + $0xa68] sm:$0xff]  ;;  %v7632_v63 = vcombine.low %v2368_v10, %v2372_v36 }
 0x27c   :  { %5514 = vmatprep.subr.bf16.mxu1 %v7673_v6  ;;  %5557 = vmatprep.subr.bf16.mxu0 %v7801_v1  ;;  %v7761_v53 = vcombine.high %v2496_v49, %v2500_v50  ;;  %v2360_v39 = vld [vmem:[#allocation11 + $0x608] sm:$0xff]  ;;  %v7760_v6 = vcombine.low %v2496_v49, %v2500_v50  ;;  %v7475_v49 = vcombine.high %v2209_v41, %v2213_v45 }
 0x27d   :  { %v2364_v59 = vld [vmem:[#allocation11 + $0x628] sm:$0xff] }
 0x27e   :  { %v2488_v60 = vld [vmem:[#allocation11 + $0xa08] sm:$0xff]  ;;  %v7625_v1 = vcombine.high %v2360_v39, %v2364_v59 }
 0x27f   :  { %5515 = vmatpush2.bf16.msra.mxu1 %v7672_v55  ;;  %5558 = vmatpush2.bf16.msra.mxu0 %v7800_v31  ;;  %v2492_v62 = vld [vmem:[#allocation11 + $0xa28] sm:$0xff]  ;;  %v2229_v55 = vld [vmem:[#allocation11 + $0x1f0] sm:$0xff]  ;;  %v2679_v31 = vld [vmem:[#allocation13] sm:$0xff] }
 0x280   :  { %5516 = vmatprep.subr.bf16.mxu1 %v7665_v7  ;;  %5559 = vmatprep.subr.bf16.mxu0 %v7793_v8  ;;  %v7753_v2 = vcombine.high %v2488_v60, %v2492_v62  ;;  %v2608_v4 = vld [vmem:[#allocation11 + $0xdc8] sm:$0xff]  ;;  %v7624_v8 = vcombine.low %v2360_v39, %v2364_v59  ;;  %v7752_v9 = vcombine.low %v2488_v60, %v2492_v62 }
 0x281   :  { %v2612_v5 = vld [vmem:[#allocation11 + $0xde8] sm:$0xff]  ;;  %v7491_v14 = vcombine.high %v2225_v54, %v2229_v55  ;;  %v2684_v15 = vrot.slane %v2679_v31, %v8769_v11  ;;  %v7490_v25 = vcombine.low %v2225_v54, %v2229_v55  ;;  %v7474_v60 = vcombine.low %v2209_v41, %v2213_v45  ;;  %v2173_v41 = vld [vmem:[#allocation11 + $0x30] sm:$0xff] }
 0x282   :  { %v7873_v12 = vcombine.high %v2608_v4, %v2612_v5  ;;  %v7872_v24 = vcombine.low %v2608_v4, %v2612_v5  ;;  %v2584_v50 = vld [vmem:[#allocation11 + $0xd08] sm:$0xff]  ;;  %v2197_v4 = vld [vmem:[#allocation11 + $0xf0] sm:$0xff] }
 0x283   :  { %5517 = vmatpush2.bf16.msra.mxu1 %v7664_v16  ;;  %5560 = vmatpush2.bf16.msra.mxu0 %v7792_v18  ;;  %v2600_v16 = vld [vmem:[#allocation11 + $0xd88] sm:$0xff] }
 0x284   :  { %5518 = vmatprep.subr.bf16.mxu1 %v7657_v20  ;;  %5561 = vmatprep.subr.bf16.mxu0 %v7785_v21  ;;  %v2604_v20 = vld [vmem:[#allocation11 + $0xda8] sm:$0xff]  ;;  %v2217_v21 = vld [vmem:[#allocation11 + $0x190] sm:$0xff] }
 0x287   :  { %5519 = vmatpush2.bf16.msra.mxu1 %v7656_v28  ;;  %5562 = vmatpush2.bf16.msra.mxu0 %v7784_v30  ;;  %v7865_v28 = vcombine.high %v2600_v16, %v2604_v20  ;;  %v7483_v30 = vcombine.high %v2217_v21, %v2221_v23 }
 0x288   :  { %5520 = vmatprep.subr.bf16.mxu1 %v7649_v32  ;;  %5563 = vmatprep.subr.bf16.mxu0 %v7777_v33  ;;  %v5315_v7 = vpop.f32.mrf.mxu0  ;;  %v2592_v32 = vld [vmem:[#allocation11 + $0xd48] sm:$0xff] }
 0x289   :  { %v5316_v27 = vadd.f32 %v5315_v7, %v2684_v15  ;;  %v2596_v33 = vld [vmem:[#allocation11 + $0xd68] sm:$0xff] }
 0x28a   :  { %v8852_v18 = vpop.f32.mrf.mxu0  ;;  %v7857_v10 = vcombine.high %v2592_v32, %v2596_v33  ;;  %v7856_v59 = vcombine.low %v2592_v32, %v2596_v33  ;;  %v2568_v7 = vld [vmem:[#allocation11 + $0xc88] sm:$0xff] }
 0x28b   :  { %5521 = vmatpush2.bf16.msra.mxu1 %v7648_v46  ;;  %5564 = vmatpush2.bf16.msra.mxu0 %v7776_v47  ;;  %v7864_v47 = vcombine.low %v2600_v16, %v2604_v20  ;;  %v2552_v33 = vld [vmem:[#allocation11 + $0xc08] sm:$0xff] }
 0x28c   :  { %5522 = vmatprep.subr.bf16.mxu1 %v7641_v13  ;;  %5565 = vmatprep.subr.bf16.mxu0 %v7769_v48  ;;  %v5319_v35 = vpop.f32.mrf.mxu0  ;;  %v7482_v48 = vcombine.low %v2217_v21, %v2221_v23  ;;  %v2560_v21 = vld [vmem:[#allocation11 + $0xc48] sm:$0xff] }
 0x28d   :  { %v5320_v36 = vadd.f32 %v5319_v35, %v2684_v15  ;;  %v2564_v23 = vld [vmem:[#allocation11 + $0xc68] sm:$0xff] }
 0x28e   :  { %v2556_v35 = vld [vmem:[#allocation11 + $0xc28] sm:$0xff]  ;;  %v7824_v45 = vcombine.low %v2560_v21, %v2564_v23 }
 0x28f   :  { %5523 = vmatpush2.bf16.msra.mxu1 %v7640_v51  ;;  %5566 = vmatpush2.bf16.msra.mxu0 %v7768_v29  ;;  %v2588_v51 = vld [vmem:[#allocation11 + $0xd28] sm:$0xff] }
 0x290   :  { %5524 = vmatprep.subr.bf16.mxu1 %v7633_v52  ;;  %5567 = vmatprep.subr.bf16.mxu0 %v7761_v53  ;;  %v2201_v52 = vld [vmem:[#allocation11 + $0x110] sm:$0xff]  ;;  %v7849_v62 = vcombine.high %v2584_v50, %v2588_v51  ;;  %v7848_v5 = vcombine.low %v2584_v50, %v2588_v51 }
 0x291   :  { %v2205_v53 = vld [vmem:[#allocation11 + $0x130] sm:$0xff] }
 0x292   :  { %v7466_v54 = vcombine.low %v2201_v52, %v2205_v53  ;;  %v2289_v50 = vld [vmem:[#allocation11 + $0x3d0] sm:$0xff] }
 0x293   :  { %5525 = vmatpush2.bf16.msra.mxu1 %v7632_v63  ;;  %5568 = vmatpush2.bf16.msra.mxu0 %v7760_v6  ;;  %v7467_v63 = vcombine.high %v2201_v52, %v2205_v53  ;;  %v2576_v6 = vld [vmem:[#allocation11 + $0xcc8] sm:$0xff]  ;;  %v2293_v51 = vld [vmem:[#allocation11 + $0x3f0] sm:$0xff] }
 0x294   :  { %5526 = vmatprep.subr.bf16.mxu1 %v7625_v1  ;;  %5569 = vmatprep.subr.bf16.mxu0 %v7753_v2  ;;  %v2580_v1 = vld [vmem:[#allocation11 + $0xce8] sm:$0xff]  ;;  %v2193_v2 = vld [vmem:[#allocation11 + $0xd0] sm:$0xff] }
 0x295   :  { %v7841_v55 = vcombine.high %v2576_v6, %v2580_v1  ;;  %v7459_v31 = vcombine.high %v2193_v2, %v2197_v4  ;;  %v7458_v15 = vcombine.low %v2193_v2, %v2197_v4  ;;  %v7554_v2 = vcombine.low %v2289_v50, %v2293_v51 }
 0x297   :  { %5527 = vmatpush2.bf16.msra.mxu1 %v7624_v8  ;;  %5570 = vmatpush2.bf16.msra.mxu0 %v7752_v9  ;;  %v2572_v8 = vld [vmem:[#allocation11 + $0xca8] sm:$0xff]  ;;  %v2185_v9 = vld [vmem:[#allocation11 + $0x90] sm:$0xff] }
 0x298   :  { %5582 = vmatprep.subr.bf16.mxu1 %v7873_v12  ;;  %5625 = vmatprep.subr.bf16.mxu0 %v7491_v14  ;;  %v2189_v12 = vld [vmem:[#allocation11 + $0xb0] sm:$0xff]  ;;  %v7840_v14 = vcombine.low %v2576_v6, %v2580_v1  ;;  %v7833_v16 = vcombine.high %v2568_v7, %v2572_v8 }
 0x299   :  { %v7451_v20 = vcombine.high %v2185_v9, %v2189_v12  ;;  %v2285_v6 = vld [vmem:[#allocation11 + $0x3b0] sm:$0xff] }
 0x29a   :  { %5529 = vmatmul.mubr.bf16.vlgmr.msra.gmra.mxu1 %v8802_v0  ;;  %5572 = vmatmul.mubr.bf16.vlgmr.msra.gmra.mxu0 %v8828_v42  ;;  %v5358_v38 = vpop.f32.mrf.mxu1 }
 0x29b   :  { %v8856_v46 = vadd.f32 %v5358_v38, %v5316_v27  ;;  %5583 = vmatpush1.bf16.msra.mxu1 %v7872_v24  ;;  %5614 = vmatprep.mubr.bf16.mxu1 %v8839_v43  ;;  %v2177_v24 = vld [vmem:[#allocation11 + $0x50] sm:$0xff]  ;;  %v7832_v27 = vcombine.low %v2568_v7, %v2572_v8 }
 0x29c   :  { %5626 = vmatpush1.bf16.msra.mxu0 %v7490_v25  ;;  %5657 = vmatprep.mubr.bf16.mxu0 %v8765_v17  ;;  %v8860_v13 = vpop.f32.mrf.mxu1  ;;  %v2181_v25 = vld [vmem:[#allocation11 + $0x70] sm:$0xff] }
 0x29d   :  { %5584 = vmatprep.subr.bf16.mxu1 %v7865_v28  ;;  %5627 = vmatprep.subr.bf16.mxu0 %v7483_v30  ;;  %v7450_v28 = vcombine.low %v2185_v9, %v2189_v12  ;;  %v7825_v30 = vcombine.high %v2560_v21, %v2564_v23  ;;  %v7443_v32 = vcombine.high %v2177_v24, %v2181_v25  ;;  %v2169_v38 = vld [vmem:[#allocation11 + $0x10] sm:$0xff] }
 0x29e   :  { %v5362_v29 = vpop.f32.mrf.mxu1  ;;  %v7434_v52 = vcombine.low %v2169_v38, %v2173_v41  ;;  %v2277_v7 = vld [vmem:[#allocation11 + $0x370] sm:$0xff] }
 0x29f   :  { %v8862_v39 = vadd.f32 %v5362_v29, %v5320_v36  ;;  %5585 = vmatpush1.bf16.msra.mxu1 %v7864_v47  ;;  %v7442_v47 = vcombine.low %v2177_v24, %v2181_v25  ;;  %v2672_v36 = vld [vmem:[#allocation11 + $0xfc8] sm:$0xff]  ;;  %v7816_v29 = vcombine.low %v2552_v33, %v2556_v35  ;;  %v2269_v21 = vld [vmem:[#allocation11 + $0x330] sm:$0xff] }
 0x2a0   :  { %5628 = vmatpush1.bf16.msra.mxu0 %v7482_v48  ;;  %5586 = vmatprep.subr.bf16.mxu1 %v7857_v10  ;;  %v7817_v48 = vcombine.high %v2552_v33, %v2556_v35  ;;  %v7435_v10 = vcombine.high %v2169_v38, %v2173_v41  ;;  %v2261_v33 = vld [vmem:[#allocation11 + $0x2f0] sm:$0xff] }
 0x2a1   :  { %5629 = vmatprep.subr.bf16.mxu0 %v7475_v49  ;;  %v2676_v49 = vld [vmem:[#allocation11 + $0xfe8] sm:$0xff] }
 0x2a2   :  { %v7937_v53 = vcombine.high %v2672_v36, %v2676_v49  ;;  %v7936_v1 = vcombine.low %v2672_v36, %v2676_v49  ;;  %v2253_v36 = vld [vmem:[#allocation11 + $0x2b0] sm:$0xff] }
 0x2a3   :  { %5587 = vmatpush1.bf16.msra.mxu1 %v7856_v59  ;;  %v7555_v59 = vcombine.high %v2289_v50, %v2293_v51 }
 0x2a4   :  { %5630 = vmatpush1.bf16.msra.mxu0 %v7474_v60  ;;  %5588 = vmatprep.subr.bf16.mxu1 %v7849_v62  ;;  %v2664_v60 = vld [vmem:[#allocation11 + $0xf88] sm:$0xff] }
 0x2a5   :  { %5631 = vmatprep.subr.bf16.mxu0 %v7467_v63  ;;  %v2668_v62 = vld [vmem:[#allocation11 + $0xfa8] sm:$0xff]  ;;  %v2281_v63 = vld [vmem:[#allocation11 + $0x390] sm:$0xff] }
 0x2a6   :  { %v7929_v4 = vcombine.high %v2664_v60, %v2668_v62  ;;  %v7928_v8 = vcombine.low %v2664_v60, %v2668_v62  ;;  %v7546_v9 = vcombine.low %v2281_v63, %v2285_v6  ;;  %v2245_v60 = vld [vmem:[#allocation11 + $0x270] sm:$0xff] }
 0x2a7   :  { %5589 = vmatpush1.bf16.msra.mxu1 %v7848_v5  ;;  %v7547_v5 = vcombine.high %v2281_v63, %v2285_v6 }
 0x2a8   :  { %5632 = vmatpush1.bf16.msra.mxu0 %v7466_v54  ;;  %5590 = vmatprep.subr.bf16.mxu1 %v7841_v55  ;;  %v2656_v54 = vld [vmem:[#allocation11 + $0xf48] sm:$0xff] }
 0x2a9   :  { %5633 = vmatprep.subr.bf16.mxu0 %v7459_v31  ;;  %v2660_v55 = vld [vmem:[#allocation11 + $0xf68] sm:$0xff]  ;;  %v2273_v31 = vld [vmem:[#allocation11 + $0x350] sm:$0xff] }
 0x2aa   :  { %v7921_v12 = vcombine.high %v2656_v54, %v2660_v55  ;;  %v7920_v23 = vcombine.low %v2656_v54, %v2660_v55  ;;  %v7538_v24 = vcombine.low %v2273_v31, %v2277_v7  ;;  %v2237_v54 = vld [vmem:[#allocation11 + $0x230] sm:$0xff] }
 0x2ab   :  { %5591 = vmatpush1.bf16.msra.mxu1 %v7840_v14  ;;  %v7539_v14 = vcombine.high %v2273_v31, %v2277_v7 }
 0x2ac   :  { %5634 = vmatpush1.bf16.msra.mxu0 %v7458_v15  ;;  %5592 = vmatprep.subr.bf16.mxu1 %v7833_v16  ;;  %v2648_v15 = vld [vmem:[#allocation11 + $0xf08] sm:$0xff] }
 0x2ad   :  { %5635 = vmatprep.subr.bf16.mxu0 %v7451_v20  ;;  %v2652_v16 = vld [vmem:[#allocation11 + $0xf28] sm:$0xff]  ;;  %v2265_v20 = vld [vmem:[#allocation11 + $0x310] sm:$0xff] }
 0x2ae   :  { %v7913_v25 = vcombine.high %v2648_v15, %v2652_v16  ;;  %v7912_v35 = vcombine.low %v2648_v15, %v2652_v16  ;;  %v7530_v38 = vcombine.low %v2265_v20, %v2269_v21  ;;  %v2485_v15 = vld [vmem:[#allocation11 + $0x9f0] sm:$0xff] }
 0x2af   :  { %5593 = vmatpush1.bf16.msra.mxu1 %v7832_v27  ;;  %v7531_v27 = vcombine.high %v2265_v20, %v2269_v21 }
 0x2b0   :  { %5636 = vmatpush1.bf16.msra.mxu0 %v7450_v28  ;;  %5594 = vmatprep.subr.bf16.mxu1 %v7825_v30  ;;  %v2640_v28 = vld [vmem:[#allocation11 + $0xec8] sm:$0xff] }
 0x2b1   :  { %5637 = vmatprep.subr.bf16.mxu0 %v7443_v32  ;;  %v2644_v30 = vld [vmem:[#allocation11 + $0xee8] sm:$0xff]  ;;  %v2257_v32 = vld [vmem:[#allocation11 + $0x2d0] sm:$0xff] }
 0x2b2   :  { %v7905_v41 = vcombine.high %v2640_v28, %v2644_v30  ;;  %v7904_v49 = vcombine.low %v2640_v28, %v2644_v30  ;;  %v7522_v50 = vcombine.low %v2257_v32, %v2261_v33  ;;  %v2473_v28 = vld [vmem:[#allocation11 + $0x990] sm:$0xff] }
 0x2b3   :  { %5595 = vmatpush1.bf16.msra.mxu1 %v7824_v45  ;;  %v7523_v45 = vcombine.high %v2257_v32, %v2261_v33  ;;  %v2477_v30 = vld [vmem:[#allocation11 + $0x9b0] sm:$0xff]  ;;  %v8864_v32 = vpop.f32.mrf.mxu0 }
 0x2b4   :  { %5638 = vmatpush1.bf16.msra.mxu0 %v7442_v47  ;;  %5596 = vmatprep.subr.bf16.mxu1 %v7817_v48  ;;  %v2632_v47 = vld [vmem:[#allocation11 + $0xe88] sm:$0xff] }
 0x2b5   :  { %5639 = vmatprep.subr.bf16.mxu0 %v7435_v10  ;;  %v2636_v48 = vld [vmem:[#allocation11 + $0xea8] sm:$0xff]  ;;  %v2249_v10 = vld [vmem:[#allocation11 + $0x290] sm:$0xff] }
 0x2b6   :  { %v7897_v51 = vcombine.high %v2632_v47, %v2636_v48  ;;  %v7896_v62 = vcombine.low %v2632_v47, %v2636_v48  ;;  %v7514_v63 = vcombine.low %v2249_v10, %v2253_v36  ;;  %v7739_v47 = vcombine.high %v2473_v28, %v2477_v30  ;;  %v2465_v48 = vld [vmem:[#allocation11 + $0x950] sm:$0xff] }
 0x2b7   :  { %5597 = vmatpush1.bf16.msra.mxu1 %v7816_v29  ;;  %v7515_v29 = vcombine.high %v2249_v10, %v2253_v36  ;;  %v2469_v10 = vld [vmem:[#allocation11 + $0x970] sm:$0xff] }
 0x2b8   :  { %5640 = vmatpush1.bf16.msra.mxu0 %v7434_v52  ;;  %5598 = vmatprep.subr.bf16.mxu1 %v7937_v53  ;;  %v2624_v52 = vld [vmem:[#allocation11 + $0xe48] sm:$0xff] }
 0x2b9   :  { %5641 = vmatprep.subr.bf16.mxu0 %v7555_v59  ;;  %v2628_v53 = vld [vmem:[#allocation11 + $0xe68] sm:$0xff]  ;;  %v2241_v59 = vld [vmem:[#allocation11 + $0x250] sm:$0xff] }
 0x2ba   :  { %v7889_v6 = vcombine.high %v2624_v52, %v2628_v53  ;;  %v7888_v55 = vcombine.low %v2624_v52, %v2628_v53  ;;  %v7506_v31 = vcombine.low %v2241_v59, %v2245_v60  ;;  %v7731_v52 = vcombine.high %v2465_v48, %v2469_v10  ;;  %v2329_v53 = vld [vmem:[#allocation11 + $0x510] sm:$0xff] }
 0x2bb   :  { %5599 = vmatpush2.bf16.msra.mxu1 %v7936_v1  ;;  %v7507_v1 = vcombine.high %v2241_v59, %v2245_v60  ;;  %v2333_v59 = vld [vmem:[#allocation11 + $0x530] sm:$0xff] }
 0x2bc   :  { %5642 = vmatpush2.bf16.msra.mxu0 %v7554_v2  ;;  %5600 = vmatprep.subr.bf16.mxu1 %v7929_v4  ;;  %v2616_v2 = vld [vmem:[#allocation11 + $0xe08] sm:$0xff] }
 0x2bd   :  { %5643 = vmatprep.subr.bf16.mxu0 %v7547_v5  ;;  %v2620_v4 = vld [vmem:[#allocation11 + $0xe28] sm:$0xff]  ;;  %v2233_v5 = vld [vmem:[#allocation11 + $0x210] sm:$0xff] }
 0x2be   :  { %v7881_v7 = vcombine.high %v2616_v2, %v2620_v4  ;;  %v7880_v16 = vcombine.low %v2616_v2, %v2620_v4  ;;  %v7498_v20 = vcombine.low %v2233_v5, %v2237_v54  ;;  %v7595_v2 = vcombine.high %v2329_v53, %v2333_v59 }
 0x2bf   :  { %5601 = vmatpush2.bf16.msra.mxu1 %v7928_v8  ;;  %v7499_v8 = vcombine.high %v2233_v5, %v2237_v54  ;;  %v2321_v5 = vld [vmem:[#allocation11 + $0x4d0] sm:$0xff] }
 0x2c0   :  { %5644 = vmatpush2.bf16.msra.mxu0 %v7546_v9  ;;  %5602 = vmatprep.subr.bf16.mxu1 %v7921_v12  ;;  %v2353_v9 = vld [vmem:[#allocation11 + $0x5d0] sm:$0xff] }
 0x2c1   :  { %5645 = vmatprep.subr.bf16.mxu0 %v7539_v14  ;;  %v2357_v12 = vld [vmem:[#allocation11 + $0x5f0] sm:$0xff] }
 0x2c2   :  { %v2481_v14 = vld [vmem:[#allocation11 + $0x9d0] sm:$0xff]  ;;  %v7619_v21 = vcombine.high %v2353_v9, %v2357_v12 }
 0x2c3   :  { %5603 = vmatpush2.bf16.msra.mxu1 %v7920_v23  ;;  %v7747_v23 = vcombine.high %v2481_v14, %v2485_v15  ;;  %v7746_v33 = vcombine.low %v2481_v14, %v2485_v15  ;;  %v2325_v54 = vld [vmem:[#allocation11 + $0x4f0] sm:$0xff] }
 0x2c4   :  { %5646 = vmatpush2.bf16.msra.mxu0 %v7538_v24  ;;  %5604 = vmatprep.subr.bf16.mxu1 %v7913_v25  ;;  %v2345_v24 = vld [vmem:[#allocation11 + $0x590] sm:$0xff] }
 0x2c5   :  { %5647 = vmatprep.subr.bf16.mxu0 %v7531_v27  ;;  %v2349_v25 = vld [vmem:[#allocation11 + $0x5b0] sm:$0xff]  ;;  %v7618_v27 = vcombine.low %v2353_v9, %v2357_v12  ;;  %v7587_v9 = vcombine.high %v2321_v5, %v2325_v54 }
 0x2c6   :  { %v2313_v12 = vld [vmem:[#allocation11 + $0x490] sm:$0xff] }
 0x2c7   :  { %5605 = vmatpush2.bf16.msra.mxu1 %v7912_v35  ;;  %v7611_v35 = vcombine.high %v2345_v24, %v2349_v25  ;;  %v2317_v14 = vld [vmem:[#allocation11 + $0x4b0] sm:$0xff] }
 0x2c8   :  { %5648 = vmatpush2.bf16.msra.mxu0 %v7530_v38  ;;  %5606 = vmatprep.subr.bf16.mxu1 %v7905_v41  ;;  %v2337_v38 = vld [vmem:[#allocation11 + $0x550] sm:$0xff] }
 0x2c9   :  { %5649 = vmatprep.subr.bf16.mxu0 %v7523_v45  ;;  %v2341_v41 = vld [vmem:[#allocation11 + $0x570] sm:$0xff] }
 0x2ca   :  { %v2441_v15 = vld [vmem:[#allocation11 + $0x890] sm:$0xff] }
 0x2cb   :  { %5607 = vmatpush2.bf16.msra.mxu1 %v7904_v49  ;;  %v7610_v49 = vcombine.low %v2345_v24, %v2349_v25  ;;  %v2305_v25 = vld [vmem:[#allocation11 + $0x450] sm:$0xff] }
 0x2cc   :  { %5650 = vmatpush2.bf16.msra.mxu0 %v7522_v50  ;;  %5608 = vmatprep.subr.bf16.mxu1 %v7897_v51  ;;  %v7738_v51 = vcombine.low %v2473_v28, %v2477_v30  ;;  %v2433_v28 = vld [vmem:[#allocation11 + $0x850] sm:$0xff] }
 0x2cd   :  { %5651 = vmatprep.subr.bf16.mxu0 %v7515_v29  ;;  %v7603_v29 = vcombine.high %v2337_v38, %v2341_v41  ;;  %v2437_v30 = vld [vmem:[#allocation11 + $0x870] sm:$0xff] }
 0x2cf   :  { %5609 = vmatpush2.bf16.msra.mxu1 %v7896_v62  ;;  %v2457_v62 = vld [vmem:[#allocation11 + $0x910] sm:$0xff] }
 0x2d0   :  { %5652 = vmatpush2.bf16.msra.mxu0 %v7514_v63  ;;  %5610 = vmatprep.subr.bf16.mxu1 %v7889_v6  ;;  %v7602_v6 = vcombine.low %v2337_v38, %v2341_v41  ;;  %v7699_v41 = vcombine.high %v2433_v28, %v2437_v30 }
 0x2d1   :  { %5653 = vmatprep.subr.bf16.mxu0 %v7507_v1  ;;  %v7730_v1 = vcombine.low %v2465_v48, %v2469_v10  ;;  %v2425_v48 = vld [vmem:[#allocation11 + $0x810] sm:$0xff] }
 0x2d2   :  { %v2429_v10 = vld [vmem:[#allocation11 + $0x830] sm:$0xff] }
 0x2d3   :  { %5611 = vmatpush2.bf16.msra.mxu1 %v7888_v55  ;;  %v2449_v55 = vld [vmem:[#allocation11 + $0x8d0] sm:$0xff] }
 0x2d4   :  { %5654 = vmatpush2.bf16.msra.mxu0 %v7506_v31  ;;  %5612 = vmatprep.subr.bf16.mxu1 %v7881_v7  ;;  %v2453_v31 = vld [vmem:[#allocation11 + $0x8f0] sm:$0xff]  ;;  %v7594_v7 = vcombine.low %v2329_v53, %v2333_v59 }
 0x2d5   :  { %5655 = vmatprep.subr.bf16.mxu0 %v7499_v8  ;;  %v2417_v53 = vld [vmem:[#allocation11 + $0x7d0] sm:$0xff] }
 0x2d6   :  { %v2421_v59 = vld [vmem:[#allocation11 + $0x7f0] sm:$0xff] }
 0x2d7   :  { %5613 = vmatpush2.bf16.msra.mxu1 %v7880_v16  ;;  %v2445_v16 = vld [vmem:[#allocation11 + $0x8b0] sm:$0xff] }
 0x2d8   :  { %5656 = vmatpush2.bf16.msra.mxu0 %v7498_v20  ;;  %5668 = vmatprep.subr.bf16.mxu1 %v7619_v21  ;;  %v7586_v20 = vcombine.low %v2321_v5, %v2325_v54  ;;  %v7714_v21 = vcombine.low %v2449_v55, %v2453_v31  ;;  %v7707_v24 = vcombine.high %v2441_v15, %v2445_v16  ;;  %v2413_v5 = vld [vmem:[#allocation11 + $0x7b0] sm:$0xff] }
 0x2d9   :  { %5711 = vmatprep.subr.bf16.mxu0 %v7747_v23  ;;  %v7579_v23 = vcombine.high %v2313_v12, %v2317_v14  ;;  %v2537_v54 = vld [vmem:[#allocation11 + $0xb90] sm:$0xff] }
 0x2da   :  { %5615 = vmatmul.mubr.bf16.vlgmr.msra.gmra.mxu1 %v8841_v57  ;;  %v5401_v45 = vpop.f32.mrf.mxu0 }
 0x2db   :  { %5658 = vmatmul.mubr.bf16.vlgmr.msra.gmra.mxu0 %v8785_v3  ;;  %v8869_v36 = vadd.f32 %v5401_v45, %v8856_v46  ;;  %5669 = vmatpush1.bf16.msra.mxu1 %v7618_v27  ;;  %v2461_v46 = vld [vmem:[#allocation11 + $0x930] sm:$0xff] }
 0x2dc   :  { %5700 = vmatprep.mubr.bf16.mxu1 %v8794_v56  ;;  %5712 = vmatpush1.bf16.msra.mxu0 %v7746_v33  ;;  %v8872_v50 = vpop.f32.mrf.mxu0  ;;  %v7723_v4 = vcombine.high %v2457_v62, %v2461_v46  ;;  %v7722_v8 = vcombine.low %v2457_v62, %v2461_v46  ;;  %v2309_v27 = vld [vmem:[#allocation11 + $0x470] sm:$0xff]  ;;  %v7578_v33 = vcombine.low %v2313_v12, %v2317_v14 }
 0x2dd   :  { %5743 = vmatprep.mubr.bf16.mxu0 %v8824_v40  ;;  %5670 = vmatprep.subr.bf16.mxu1 %v7611_v35  ;;  %v7706_v35 = vcombine.low %v2441_v15, %v2445_v16  ;;  %v7571_v38 = vcombine.high %v2305_v25, %v2309_v27  ;;  %v2297_v45 = vld [vmem:[#allocation11 + $0x410] sm:$0xff] }
 0x2de   :  { %5713 = vmatprep.subr.bf16.mxu0 %v7739_v47  ;;  %v5405_v60 = vpop.f32.mrf.mxu0  ;;  %v2301_v47 = vld [vmem:[#allocation11 + $0x430] sm:$0xff] }
 0x2df   :  { %v8876_v63 = vadd.f32 %v5405_v60, %v8862_v39  ;;  %5671 = vmatpush1.bf16.msra.mxu1 %v7610_v49  ;;  %v7715_v39 = vcombine.high %v2449_v55, %v2453_v31  ;;  %v7570_v49 = vcombine.low %v2305_v25, %v2309_v27  ;;  %v2545_v60 = vld [vmem:[#allocation11 + $0xbd0] sm:$0xff]  ;;  %v7562_v46 = vcombine.low %v2297_v45, %v2301_v47 }
 0x2e0   :  { %5714 = vmatpush1.bf16.msra.mxu0 %v7738_v51  ;;  %5672 = vmatprep.subr.bf16.mxu1 %v7603_v29  ;;  %v7698_v51 = vcombine.low %v2433_v28, %v2437_v30  ;;  %v7563_v29 = vcombine.high %v2297_v45, %v2301_v47  ;;  %v2549_v62 = vld [vmem:[#allocation11 + $0xbf0] sm:$0xff]  ;;  %v7682_v31 = vcombine.low %v2417_v53, %v2421_v59 }
 0x2e1   :  { %5715 = vmatprep.subr.bf16.mxu0 %v7731_v52  ;;  %v7691_v52 = vcombine.high %v2425_v48, %v2429_v10  ;;  %v2541_v55 = vld [vmem:[#allocation11 + $0xbb0] sm:$0xff] }
 0x2e2   :  { %v2405_v12 = vld [vmem:[#allocation11 + $0x770] sm:$0xff] }
 0x2e3   :  { %5673 = vmatpush1.bf16.msra.mxu1 %v7602_v6  ;;  %v7690_v6 = vcombine.low %v2425_v48, %v2429_v10  ;;  %v2529_v14 = vld [vmem:[#allocation11 + $0xb50] sm:$0xff] }
 0x2e4   :  { %5716 = vmatpush1.bf16.msra.mxu0 %v7730_v1  ;;  %5674 = vmatprep.subr.bf16.mxu1 %v7595_v2  ;;  %v7683_v1 = vcombine.high %v2417_v53, %v2421_v59  ;;  %v7811_v2 = vcombine.high %v2545_v60, %v2549_v62  ;;  %v2533_v15 = vld [vmem:[#allocation11 + $0xb70] sm:$0xff] }
 0x2e5   :  { %5717 = vmatprep.subr.bf16.mxu0 %v7723_v4  ;;  %v2409_v4 = vld [vmem:[#allocation11 + $0x790] sm:$0xff] }
 0x2e6   :  { %v7674_v16 = vcombine.low %v2409_v4, %v2413_v5  ;;  %v2397_v25 = vld [vmem:[#allocation11 + $0x730] sm:$0xff] }
 0x2e7   :  { %5675 = vmatpush1.bf16.msra.mxu1 %v7594_v7  ;;  %v7810_v7 = vcombine.low %v2545_v60, %v2549_v62  ;;  %v2521_v27 = vld [vmem:[#allocation11 + $0xb10] sm:$0xff] }
 0x2e8   :  { %5718 = vmatpush1.bf16.msra.mxu0 %v7722_v8  ;;  %5676 = vmatprep.subr.bf16.mxu1 %v7587_v9  ;;  %v7675_v8 = vcombine.high %v2409_v4, %v2413_v5  ;;  %v7803_v9 = vcombine.high %v2537_v54, %v2541_v55  ;;  %v2525_v28 = vld [vmem:[#allocation11 + $0xb30] sm:$0xff] }
 0x2e9   :  { %5719 = vmatprep.subr.bf16.mxu0 %v7715_v39  ;;  %v2401_v39 = vld [vmem:[#allocation11 + $0x750] sm:$0xff] }
 0x2ea   :  { %v7666_v30 = vcombine.low %v2401_v39, %v2405_v12  ;;  %v2389_v45 = vld [vmem:[#allocation11 + $0x6f0] sm:$0xff] }
 0x2eb   :  { %5677 = vmatpush1.bf16.msra.mxu1 %v7586_v20  ;;  %v7802_v20 = vcombine.low %v2537_v54, %v2541_v55  ;;  %v2513_v47 = vld [vmem:[#allocation11 + $0xad0] sm:$0xff] }
 0x2ec   :  { %5720 = vmatpush1.bf16.msra.mxu0 %v7714_v21  ;;  %5678 = vmatprep.subr.bf16.mxu1 %v7579_v23  ;;  %v7667_v21 = vcombine.high %v2401_v39, %v2405_v12  ;;  %v7795_v23 = vcombine.high %v2529_v14, %v2533_v15  ;;  %v2517_v48 = vld [vmem:[#allocation11 + $0xaf0] sm:$0xff] }
 0x2ed   :  { %5721 = vmatprep.subr.bf16.mxu0 %v7707_v24  ;;  %v2393_v24 = vld [vmem:[#allocation11 + $0x710] sm:$0xff] }
 0x2ee   :  { %v7658_v10 = vcombine.low %v2393_v24, %v2397_v25  ;;  %v2381_v53 = vld [vmem:[#allocation11 + $0x6b0] sm:$0xff] }
 0x2ef   :  { %5679 = vmatpush1.bf16.msra.mxu1 %v7578_v33  ;;  %v7794_v33 = vcombine.low %v2529_v14, %v2533_v15  ;;  %v2505_v59 = vld [vmem:[#allocation11 + $0xa90] sm:$0xff] }
 0x2f0   :  { %5722 = vmatpush1.bf16.msra.mxu0 %v7706_v35  ;;  %5680 = vmatprep.subr.bf16.mxu1 %v7571_v38  ;;  %v7659_v35 = vcombine.high %v2393_v24, %v2397_v25  ;;  %v7787_v38 = vcombine.high %v2521_v27, %v2525_v28  ;;  %v2509_v60 = vld [vmem:[#allocation11 + $0xab0] sm:$0xff]  ;;  %v2226_v25 = vld [vmem:[#allocation11 + $0x1d8] sm:$0xff] }
 0x2f1   :  { %5723 = vmatprep.subr.bf16.mxu0 %v7699_v41  ;;  %v2385_v41 = vld [vmem:[#allocation11 + $0x6d0] sm:$0xff] }
 0x2f2   :  { %v7650_v62 = vcombine.low %v2385_v41, %v2389_v45  ;;  %v2373_v4 = vld [vmem:[#allocation11 + $0x670] sm:$0xff] }
 0x2f3   :  { %5681 = vmatpush1.bf16.msra.mxu1 %v7570_v49  ;;  %v7786_v49 = vcombine.low %v2521_v27, %v2525_v28  ;;  %v2497_v5 = vld [vmem:[#allocation11 + $0xa50] sm:$0xff]  ;;  %v2230_v27 = vld [vmem:[#allocation11 + $0x1f8] sm:$0xff] }
 0x2f4   :  { %5724 = vmatpush1.bf16.msra.mxu0 %v7698_v51  ;;  %5682 = vmatprep.subr.bf16.mxu1 %v7563_v29  ;;  %v7651_v51 = vcombine.high %v2385_v41, %v2389_v45  ;;  %v7779_v29 = vcombine.high %v2513_v47, %v2517_v48  ;;  %v2501_v54 = vld [vmem:[#allocation11 + $0xa70] sm:$0xff] }
 0x2f5   :  { %5725 = vmatprep.subr.bf16.mxu0 %v7691_v52  ;;  %v2377_v52 = vld [vmem:[#allocation11 + $0x690] sm:$0xff] }
 0x2f6   :  { %v7642_v55 = vcombine.low %v2377_v52, %v2381_v53  ;;  %v2365_v39 = vld [vmem:[#allocation11 + $0x630] sm:$0xff] }
 0x2f7   :  { %5683 = vmatpush1.bf16.msra.mxu1 %v7562_v46  ;;  %v7778_v46 = vcombine.low %v2513_v47, %v2517_v48  ;;  %v2489_v12 = vld [vmem:[#allocation11 + $0xa10] sm:$0xff]  ;;  %v2218_v47 = vld [vmem:[#allocation11 + $0x198] sm:$0xff] }
 0x2f8   :  { %5726 = vmatpush1.bf16.msra.mxu0 %v7690_v6  ;;  %5684 = vmatprep.subr.bf16.mxu1 %v7683_v1  ;;  %v7643_v6 = vcombine.high %v2377_v52, %v2381_v53  ;;  %v7771_v1 = vcombine.high %v2505_v59, %v2509_v60  ;;  %v2493_v14 = vld [vmem:[#allocation11 + $0xa30] sm:$0xff]  ;;  %v2222_v48 = vld [vmem:[#allocation11 + $0x1b8] sm:$0xff] }
 0x2f9   :  { %5727 = vmatprep.subr.bf16.mxu0 %v7811_v2  ;;  %v2369_v2 = vld [vmem:[#allocation11 + $0x650] sm:$0xff] }
 0x2fa   :  { %v7634_v15 = vcombine.low %v2369_v2, %v2373_v4  ;;  %v2613_v24 = vld [vmem:[#allocation11 + $0xdf0] sm:$0xff] }
 0x2fb   :  { %5685 = vmatpush2.bf16.msra.mxu1 %v7682_v31  ;;  %v7770_v31 = vcombine.low %v2505_v59, %v2509_v60  ;;  %v2605_v41 = vld [vmem:[#allocation11 + $0xdb0] sm:$0xff]  ;;  %v7485_v59 = vcombine.high %v2218_v47, %v2222_v48  ;;  %v2210_v60 = vld [vmem:[#allocation11 + $0x158] sm:$0xff] }
 0x2fc   :  { %5728 = vmatpush2.bf16.msra.mxu0 %v7810_v7  ;;  %5686 = vmatprep.subr.bf16.mxu1 %v7675_v8  ;;  %v7635_v7 = vcombine.high %v2369_v2, %v2373_v4  ;;  %v7763_v8 = vcombine.high %v2497_v5, %v2501_v54  ;;  %v2597_v52 = vld [vmem:[#allocation11 + $0xd70] sm:$0xff]  ;;  %v7484_v2 = vcombine.low %v2218_v47, %v2222_v48 }
 0x2fd   :  { %5729 = vmatprep.subr.bf16.mxu0 %v7803_v9  ;;  %v2361_v9 = vld [vmem:[#allocation11 + $0x610] sm:$0xff] }
 0x2fe   :  { %v7626_v28 = vcombine.low %v2361_v9, %v2365_v39 }
 0x2ff   :  { %5687 = vmatpush2.bf16.msra.mxu1 %v7674_v16  ;;  %v7762_v16 = vcombine.low %v2497_v5, %v2501_v54  ;;  %v2585_v54 = vld [vmem:[#allocation11 + $0xd10] sm:$0xff] }
 0x300   :  { %5730 = vmatpush2.bf16.msra.mxu0 %v7802_v20  ;;  %5688 = vmatprep.subr.bf16.mxu1 %v7667_v21  ;;  %v7627_v20 = vcombine.high %v2361_v9, %v2365_v39  ;;  %v7755_v21 = vcombine.high %v2489_v12, %v2493_v14 }
 0x301   :  { %5731 = vmatprep.subr.bf16.mxu0 %v7795_v23  ;;  %v2609_v23 = vld [vmem:[#allocation11 + $0xdd0] sm:$0xff] }
 0x302   :  { %v7874_v45 = vcombine.low %v2609_v23, %v2613_v24 }
 0x303   :  { %5689 = vmatpush2.bf16.msra.mxu1 %v7666_v30  ;;  %v7754_v30 = vcombine.low %v2489_v12, %v2493_v14 }
 0x304   :  { %5732 = vmatpush2.bf16.msra.mxu0 %v7794_v33  ;;  %5690 = vmatprep.subr.bf16.mxu1 %v7659_v35  ;;  %v7875_v33 = vcombine.high %v2609_v23, %v2613_v24  ;;  %v7493_v35 = vcombine.high %v2226_v25, %v2230_v27  ;;  %v2198_v23 = vld [vmem:[#allocation11 + $0xf8] sm:$0xff] }
 0x305   :  { %5733 = vmatprep.subr.bf16.mxu0 %v7787_v38  ;;  %v2601_v38 = vld [vmem:[#allocation11 + $0xd90] sm:$0xff] }
 0x307   :  { %5691 = vmatpush2.bf16.msra.mxu1 %v7658_v10  ;;  %v8878_v10 = vpop.f32.mrf.mxu1 }
 0x308   :  { %5734 = vmatpush2.bf16.msra.mxu0 %v7786_v49  ;;  %5692 = vmatprep.subr.bf16.mxu1 %v7651_v51  ;;  %v7492_v49 = vcombine.low %v2226_v25, %v2230_v27  ;;  %v7867_v51 = vcombine.high %v2601_v38, %v2605_v41 }
 0x309   :  { %5735 = vmatprep.subr.bf16.mxu0 %v7779_v29  ;;  %v2593_v29 = vld [vmem:[#allocation11 + $0xd50] sm:$0xff] }
 0x30a   :  { %v7859_v4 = vcombine.high %v2593_v29, %v2597_v52  ;;  %v7858_v39 = vcombine.low %v2593_v29, %v2597_v52  ;;  %v2561_v29 = vld [vmem:[#allocation11 + $0xc50] sm:$0xff] }
 0x30b   :  { %5693 = vmatpush2.bf16.msra.mxu1 %v7650_v62  ;;  %v2214_v62 = vld [vmem:[#allocation11 + $0x178] sm:$0xff]  ;;  %v2565_v52 = vld [vmem:[#allocation11 + $0xc70] sm:$0xff] }
 0x30c   :  { %5736 = vmatpush2.bf16.msra.mxu0 %v7778_v46  ;;  %5694 = vmatprep.subr.bf16.mxu1 %v7643_v6  ;;  %v7866_v6 = vcombine.low %v2601_v38, %v2605_v41  ;;  %v7477_v5 = vcombine.high %v2210_v60, %v2214_v62  ;;  %v7476_v12 = vcombine.low %v2210_v60, %v2214_v62  ;;  %v2573_v38 = vld [vmem:[#allocation11 + $0xcb0] sm:$0xff]  ;;  %v2186_v41 = vld [vmem:[#allocation11 + $0x98] sm:$0xff] }
 0x30d   :  { %5737 = vmatprep.subr.bf16.mxu0 %v7771_v1 }
 0x30f   :  { %5695 = vmatpush2.bf16.msra.mxu1 %v7642_v55  ;;  %v2589_v55 = vld [vmem:[#allocation11 + $0xd30] sm:$0xff] }
 0x310   :  { %5738 = vmatpush2.bf16.msra.mxu0 %v7770_v31  ;;  %5696 = vmatprep.subr.bf16.mxu1 %v7635_v7  ;;  %v2202_v7 = vld [vmem:[#allocation11 + $0x118] sm:$0xff]  ;;  %v7851_v14 = vcombine.high %v2585_v54, %v2589_v55  ;;  %v7850_v27 = vcombine.low %v2585_v54, %v2589_v55  ;;  %v7826_v55 = vcombine.low %v2561_v29, %v2565_v52 }
 0x311   :  { %5739 = vmatprep.subr.bf16.mxu0 %v7763_v8  ;;  %v2206_v8 = vld [vmem:[#allocation11 + $0x138] sm:$0xff] }
 0x312   :  { %v2174_v54 = vld [vmem:[#allocation11 + $0x38] sm:$0xff] }
 0x313   :  { %5697 = vmatpush2.bf16.msra.mxu1 %v7634_v15 }
 0x314   :  { %5740 = vmatpush2.bf16.msra.mxu0 %v7762_v16  ;;  %5698 = vmatprep.subr.bf16.mxu1 %v7627_v20  ;;  %v2577_v16 = vld [vmem:[#allocation11 + $0xcd0] sm:$0xff] }
 0x315   :  { %5741 = vmatprep.subr.bf16.mxu0 %v7755_v21  ;;  %v2581_v20 = vld [vmem:[#allocation11 + $0xcf0] sm:$0xff]  ;;  %v2194_v21 = vld [vmem:[#allocation11 + $0xd8] sm:$0xff] }
 0x316   :  { %v7842_v47 = vcombine.low %v2577_v16, %v2581_v20  ;;  %v7460_v48 = vcombine.low %v2194_v21, %v2198_v23 }
 0x317   :  { %5699 = vmatpush2.bf16.msra.mxu1 %v7626_v28  ;;  %v7843_v28 = vcombine.high %v2577_v16, %v2581_v20  ;;  %v2665_v20 = vld [vmem:[#allocation11 + $0xf90] sm:$0xff] }
 0x318   :  { %5742 = vmatpush2.bf16.msra.mxu0 %v7754_v30  ;;  %5754 = vmatprep.subr.bf16.mxu1 %v7875_v33  ;;  %v7461_v33 = vcombine.high %v2194_v21, %v2198_v23  ;;  %v2669_v21 = vld [vmem:[#allocation11 + $0xfb0] sm:$0xff]  ;;  %v2282_v23 = vld [vmem:[#allocation11 + $0x398] sm:$0xff] }
 0x319   :  { %5797 = vmatprep.subr.bf16.mxu0 %v7493_v35  ;;  %v2569_v35 = vld [vmem:[#allocation11 + $0xc90] sm:$0xff] }
 0x31a   :  { %5701 = vmatmul.mubr.bf16.vlgmr.msra.gmra.mxu1 %v8802_v0  ;;  %v5444_v53 = vpop.f32.mrf.mxu1  ;;  %v7834_v60 = vcombine.low %v2569_v35, %v2573_v38 }
 0x31b   :  { %5744 = vmatmul.mubr.bf16.vlgmr.msra.gmra.mxu0 %v8828_v42  ;;  %v5445_v46 = vadd.f32 %v5444_v53, %v8869_v36  ;;  %5755 = vmatpush1.bf16.msra.mxu1 %v7874_v45  ;;  %v2190_v45 = vld [vmem:[#allocation11 + $0xb8] sm:$0xff] }
 0x31c   :  { %5786 = vmatprep.mubr.bf16.mxu1 %v8839_v43  ;;  %5798 = vmatpush1.bf16.msra.mxu0 %v7492_v49  ;;  %v8884_v1 = vpop.f32.mrf.mxu1  ;;  %v7835_v49 = vcombine.high %v2569_v35, %v2573_v38  ;;  %v2178_v53 = vld [vmem:[#allocation11 + $0x58] sm:$0xff]  ;;  %v7452_v62 = vcombine.low %v2186_v41, %v2190_v45  ;;  %v2661_v35 = vld [vmem:[#allocation11 + $0xf70] sm:$0xff] }
 0x31d   :  { %5829 = vmatprep.mubr.bf16.mxu0 %v8765_v17  ;;  %5756 = vmatprep.subr.bf16.mxu1 %v7867_v51  ;;  %v5969_v36 = vmul.f32 0.1, %v5445_v46  ;;  %v7469_v17 = vcombine.high %v2202_v7, %v2206_v8  ;;  %v7453_v51 = vcombine.high %v2186_v41, %v2190_v45  ;;  %v2274_v38 = vld [vmem:[#allocation11 + $0x358] sm:$0xff]  ;;  %v7930_v45 = vcombine.low %v2665_v20, %v2669_v21 }
 0x31e   :  { %5799 = vmatprep.subr.bf16.mxu0 %v7485_v59  ;;  %v5448_v31 = vpop.f32.mrf.mxu1  ;;  %v2182_v59 = vld [vmem:[#allocation11 + $0x78] sm:$0xff] }
 0x31f   :  { %v5449_v9 = vadd.f32 %v5448_v31, %v8876_v63  ;;  %5757 = vmatpush1.bf16.msra.mxu1 %v7866_v6  ;;  %v5985_v24 = vmax.f32 %v5445_v46, %v5969_v36  ;;  %v7468_v63 = vcombine.low %v2202_v7, %v2206_v8  ;;  %v7827_v46 = vcombine.high %v2561_v29, %v2565_v52  ;;  %v2673_v36 = vld [vmem:[#allocation11 + $0xfd0] sm:$0xff]  ;;  %v2278_v41 = vld [vmem:[#allocation11 + $0x378] sm:$0xff] }
 0x320   :  { %5800 = vmatpush1.bf16.msra.mxu0 %v7484_v2  ;;  %5758 = vmatprep.subr.bf16.mxu1 %v7859_v4  ;;  %v7445_v6 = vcombine.high %v2178_v53, %v2182_v59  ;;  %v2553_v2 = vld [vmem:[#allocation11 + $0xc10] sm:$0xff]  ;;  %v7444_v31 = vcombine.low %v2178_v53, %v2182_v59  ;;  %v2266_v52 = vld [vmem:[#allocation11 + $0x318] sm:$0xff] }
 0x321   :  { %v5977_v15 = vmul.f32 0.1, %v5449_v9  ;;  %5801 = vmatprep.subr.bf16.mxu0 %v7477_v5  ;;  %v2557_v4 = vld [vmem:[#allocation11 + $0xc30] sm:$0xff]  ;;  %v2170_v5 = vld [vmem:[#allocation11 + $0x18] sm:$0xff] }
 0x322   :  { %v7819_v7 = vcombine.high %v2553_v2, %v2557_v4  ;;  %v7437_v8 = vcombine.high %v2170_v5, %v2174_v54  ;;  %v2653_v29 = vld [vmem:[#allocation11 + $0xf30] sm:$0xff]  ;;  %v2270_v53 = vld [vmem:[#allocation11 + $0x338] sm:$0xff] }
 0x323   :  { %v5993_v25 = vmax.f32 %v5449_v9, %v5977_v15  ;;  %5759 = vmatpush1.bf16.msra.mxu1 %v7858_v39  ;;  %v2677_v9 = vld [vmem:[#allocation11 + $0xff0] sm:$0xff]  ;;  %v2290_v39 = vld [vmem:[#allocation11 + $0x3d8] sm:$0xff]  ;;  %v7436_v15 = vcombine.low %v2170_v5, %v2174_v54 }
 0x324   :  { %5802 = vmatpush1.bf16.msra.mxu0 %v7476_v12  ;;  %5760 = vmatprep.subr.bf16.mxu1 %v7851_v14  ;;  %v2294_v12 = vld [vmem:[#allocation11 + $0x3f8] sm:$0xff]  ;;  %v7818_v14 = vcombine.low %v2553_v2, %v2557_v4  ;;  %v2645_v2 = vld [vmem:[#allocation11 + $0xef0] sm:$0xff] }
 0x325   :  { %v8888_v30 = vpack.c.bf16 %v5993_v25, %v5985_v24  ;;  %5803 = vmatprep.subr.bf16.mxu0 %v7469_v17  ;;  %v7939_v17 = vcombine.high %v2673_v36, %v2677_v9  ;;  %v7557_v16 = vcombine.high %v2290_v39, %v2294_v12  ;;  %v2286_v24 = vld [vmem:[#allocation11 + $0x3b8] sm:$0xff]  ;;  %v7938_v25 = vcombine.low %v2673_v36, %v2677_v9  ;;  %v2637_v36 = vld [vmem:[#allocation11 + $0xeb0] sm:$0xff] }
 0x326   :  { %v2258_v4 = vld [vmem:[#allocation11 + $0x2d8] sm:$0xff] }
 0x327   :  { %5761 = vmatpush1.bf16.msra.mxu1 %v7850_v27  ;;  %v7556_v27 = vcombine.low %v2290_v39, %v2294_v12  ;;  %v2262_v5 = vld [vmem:[#allocation11 + $0x2f8] sm:$0xff] }
 0x328   :  { %5804 = vmatpush1.bf16.msra.mxu0 %v7468_v63  ;;  %5762 = vmatprep.subr.bf16.mxu1 %v7843_v28  ;;  %v7931_v63 = vcombine.high %v2665_v20, %v2669_v21  ;;  %v7549_v28 = vcombine.high %v2282_v23, %v2286_v24  ;;  %v2250_v9 = vld [vmem:[#allocation11 + $0x298] sm:$0xff]  ;;  %v2629_v20 = vld [vmem:[#allocation11 + $0xe70] sm:$0xff]  ;;  %v8890_v21 = vpop.f32.mrf.mxu0 }
 0x329   :  { %5805 = vmatprep.subr.bf16.mxu0 %v7461_v33  ;;  %v2657_v33 = vld [vmem:[#allocation11 + $0xf50] sm:$0xff]  ;;  %v2254_v39 = vld [vmem:[#allocation11 + $0x2b8] sm:$0xff] }
 0x32a   :  { %v7922_v59 = vcombine.low %v2657_v33, %v2661_v35 }
 0x32b   :  { %5763 = vmatpush1.bf16.msra.mxu1 %v7842_v47  ;;  %v7548_v47 = vcombine.low %v2282_v23, %v2286_v24  ;;  %v2242_v23 = vld [vmem:[#allocation11 + $0x258] sm:$0xff] }
 0x32c   :  { %5806 = vmatpush1.bf16.msra.mxu0 %v7460_v48  ;;  %5764 = vmatprep.subr.bf16.mxu1 %v7835_v49  ;;  %v7923_v48 = vcombine.high %v2657_v33, %v2661_v35  ;;  %v7541_v49 = vcombine.high %v2274_v38, %v2278_v41  ;;  %v2246_v24 = vld [vmem:[#allocation11 + $0x278] sm:$0xff]  ;;  %v2617_v35 = vld [vmem:[#allocation11 + $0xe10] sm:$0xff] }
 0x32d   :  { %5807 = vmatprep.subr.bf16.mxu0 %v7453_v51  ;;  %v2649_v51 = vld [vmem:[#allocation11 + $0xf10] sm:$0xff]  ;;  %v7509_v33 = vcombine.high %v2242_v23, %v2246_v24 }
 0x32e   :  { %v7914_v54 = vcombine.low %v2649_v51, %v2653_v29 }
 0x32f   :  { %5765 = vmatpush1.bf16.msra.mxu1 %v7834_v60  ;;  %v7540_v60 = vcombine.low %v2274_v38, %v2278_v41  ;;  %v2621_v38 = vld [vmem:[#allocation11 + $0xe30] sm:$0xff]  ;;  %v2234_v41 = vld [vmem:[#allocation11 + $0x218] sm:$0xff] }
 0x330   :  { %5808 = vmatpush1.bf16.msra.mxu0 %v7452_v62  ;;  %5766 = vmatprep.subr.bf16.mxu1 %v7827_v46  ;;  %v7915_v62 = vcombine.high %v2649_v51, %v2653_v29  ;;  %v7533_v46 = vcombine.high %v2266_v52, %v2270_v53  ;;  %v7883_v51 = vcombine.high %v2617_v35, %v2621_v38 }
 0x331   :  { %5809 = vmatprep.subr.bf16.mxu0 %v7445_v6  ;;  %v2641_v6 = vld [vmem:[#allocation11 + $0xed0] sm:$0xff] }
 0x332   :  { %v7906_v12 = vcombine.low %v2641_v6, %v2645_v2 }
 0x333   :  { %5767 = vmatpush1.bf16.msra.mxu1 %v7826_v55  ;;  %v7532_v55 = vcombine.low %v2266_v52, %v2270_v53  ;;  %v2354_v52 = vld [vmem:[#allocation11 + $0x5d8] sm:$0xff] }
 0x334   :  { %5810 = vmatpush1.bf16.msra.mxu0 %v7444_v31  ;;  %5768 = vmatprep.subr.bf16.mxu1 %v7819_v7  ;;  %v7907_v31 = vcombine.high %v2641_v6, %v2645_v2  ;;  %v7525_v7 = vcombine.high %v2258_v4, %v2262_v5  ;;  %v2358_v53 = vld [vmem:[#allocation11 + $0x5f8] sm:$0xff] }
 0x335   :  { %5811 = vmatprep.subr.bf16.mxu0 %v7437_v8  ;;  %v2633_v8 = vld [vmem:[#allocation11 + $0xe90] sm:$0xff]  ;;  %v7621_v2 = vcombine.high %v2354_v52, %v2358_v53 }
 0x337   :  { %5769 = vmatpush1.bf16.msra.mxu1 %v7818_v14  ;;  %v7524_v14 = vcombine.low %v2258_v4, %v2262_v5  ;;  %v8894_v4 = vld [vmem:[#allocation13] sm:$0xff] }
 0x338   :  { %5812 = vmatpush1.bf16.msra.mxu0 %v7436_v15  ;;  %5770 = vmatprep.subr.bf16.mxu1 %v7939_v17  ;;  %v7899_v15 = vcombine.high %v2633_v8, %v2637_v36  ;;  %v7517_v17 = vcombine.high %v2250_v9, %v2254_v39  ;;  %v2692_v5 = vrot.slane %v8894_v4, %v473_v58  ;;  %v2342_v58 = vld [vmem:[#allocation11 + $0x578] sm:$0xff] }
 0x339   :  { %5813 = vmatprep.subr.bf16.mxu0 %v7557_v16  ;;  %v2625_v16 = vld [vmem:[#allocation11 + $0xe50] sm:$0xff] }
 0x33b   :  { %5771 = vmatpush2.bf16.msra.mxu1 %v7938_v25  ;;  %v7898_v25 = vcombine.low %v2633_v8, %v2637_v36  ;;  %v2474_v8 = vld [vmem:[#allocation11 + $0x998] sm:$0xff] }
 0x33c   :  { %5814 = vmatpush2.bf16.msra.mxu0 %v7556_v27  ;;  %5772 = vmatprep.subr.bf16.mxu1 %v7931_v63  ;;  %v5487_v27 = vpop.f32.mrf.mxu0  ;;  %v7516_v63 = vcombine.low %v2250_v9, %v2254_v39  ;;  %v2478_v36 = vld [vmem:[#allocation11 + $0x9b8] sm:$0xff]  ;;  %v8901_v39 = vpop.f32.mrf.mxu1 }
 0x33d   :  { %5815 = vmatprep.subr.bf16.mxu0 %v7549_v28  ;;  %v7891_v28 = vcombine.high %v2625_v16, %v2629_v20 }
 0x33f   :  { %5773 = vmatpush2.bf16.msra.mxu1 %v7930_v45  ;;  %v2238_v45 = vld [vmem:[#allocation11 + $0x238] sm:$0xff] }
 0x340   :  { %5816 = vmatpush2.bf16.msra.mxu0 %v7548_v47  ;;  %5774 = vmatprep.subr.bf16.mxu1 %v7923_v48  ;;  %v7890_v47 = vcombine.low %v2625_v16, %v2629_v20  ;;  %v8892_v48 = vpop.f32.mrf.mxu0  ;;  %v7501_v29 = vcombine.high %v2234_v41, %v2238_v45  ;;  %v7500_v6 = vcombine.low %v2234_v41, %v2238_v45 }
 0x341   :  { %5817 = vmatprep.subr.bf16.mxu0 %v7541_v49  ;;  %v7508_v49 = vcombine.low %v2242_v23, %v2246_v24  ;;  %v7741_v23 = vcombine.high %v2474_v8, %v2478_v36  ;;  %v2466_v24 = vld [vmem:[#allocation11 + $0x958] sm:$0xff] }
 0x343   :  { %5775 = vmatpush2.bf16.msra.mxu1 %v7922_v59  ;;  %v2482_v59 = vld [vmem:[#allocation11 + $0x9d8] sm:$0xff] }
 0x344   :  { %5818 = vmatpush2.bf16.msra.mxu0 %v7540_v60  ;;  %5776 = vmatprep.subr.bf16.mxu1 %v7915_v62  ;;  %v2486_v60 = vld [vmem:[#allocation11 + $0x9f8] sm:$0xff]  ;;  %v7882_v62 = vcombine.low %v2617_v35, %v2621_v38  ;;  %v7740_v35 = vcombine.low %v2474_v8, %v2478_v36 }
 0x345   :  { %5819 = vmatprep.subr.bf16.mxu0 %v7533_v46  ;;  %v5491_v46 = vpop.f32.mrf.mxu0  ;;  %v2314_v36 = vld [vmem:[#allocation11 + $0x498] sm:$0xff] }
 0x346   :  { %v5492_v41 = vadd.f32 %v5491_v46, %v2692_v5 }
 0x347   :  { %5777 = vmatpush2.bf16.msra.mxu1 %v7914_v54  ;;  %v7749_v54 = vcombine.high %v2482_v59, %v2486_v60  ;;  %v8899_v9 = vpop.f32.mrf.mxu0 }
 0x348   :  { %5820 = vmatpush2.bf16.msra.mxu0 %v7532_v55  ;;  %5778 = vmatprep.subr.bf16.mxu1 %v7907_v31  ;;  %v2346_v55 = vld [vmem:[#allocation11 + $0x598] sm:$0xff] }
 0x349   :  { %5821 = vmatprep.subr.bf16.mxu0 %v7525_v7  ;;  %v2350_v31 = vld [vmem:[#allocation11 + $0x5b8] sm:$0xff]  ;;  %v7620_v7 = vcombine.low %v2354_v52, %v2358_v53 }
 0x34b   :  { %5779 = vmatpush2.bf16.msra.mxu1 %v7906_v12  ;;  %v7748_v12 = vcombine.low %v2482_v59, %v2486_v60 }
 0x34c   :  { %5822 = vmatpush2.bf16.msra.mxu0 %v7524_v14  ;;  %5780 = vmatprep.subr.bf16.mxu1 %v7899_v15  ;;  %v5488_v14 = vadd.f32 %v5487_v27, %v2692_v5  ;;  %v7613_v15 = vcombine.high %v2346_v55, %v2350_v31  ;;  %v2450_v5 = vld [vmem:[#allocation11 + $0x8d8] sm:$0xff] }
 0x34d   :  { %5823 = vmatprep.subr.bf16.mxu0 %v7517_v17  ;;  %v2338_v17 = vld [vmem:[#allocation11 + $0x558] sm:$0xff] }
 0x34e   :  { %v7605_v38 = vcombine.high %v2338_v17, %v2342_v58  ;;  %v7604_v53 = vcombine.low %v2338_v17, %v2342_v58 }
 0x34f   :  { %5781 = vmatpush2.bf16.msra.mxu1 %v7898_v25  ;;  %v2470_v25 = vld [vmem:[#allocation11 + $0x978] sm:$0xff] }
 0x350   :  { %5824 = vmatpush2.bf16.msra.mxu0 %v7516_v63  ;;  %5782 = vmatprep.subr.bf16.mxu1 %v7891_v28  ;;  %v7612_v28 = vcombine.low %v2346_v55, %v2350_v31  ;;  %v7732_v60 = vcombine.low %v2466_v24, %v2470_v25 }
 0x351   :  { %5825 = vmatprep.subr.bf16.mxu0 %v7509_v33 }
 0x353   :  { %5783 = vmatpush2.bf16.msra.mxu1 %v7890_v47  ;;  %v7733_v47 = vcombine.high %v2466_v24, %v2470_v25  ;;  %v2310_v24 = vld [vmem:[#allocation11 + $0x478] sm:$0xff] }
 0x354   :  { %5826 = vmatpush2.bf16.msra.mxu0 %v7508_v49  ;;  %5784 = vmatprep.subr.bf16.mxu1 %v7883_v51  ;;  %v2330_v49 = vld [vmem:[#allocation11 + $0x518] sm:$0xff] }
 0x355   :  { %5827 = vmatprep.subr.bf16.mxu0 %v7501_v29  ;;  %v2458_v29 = vld [vmem:[#allocation11 + $0x918] sm:$0xff] }
 0x356   :  { %v2434_v25 = vld [vmem:[#allocation11 + $0x858] sm:$0xff] }
 0x357   :  { %5785 = vmatpush2.bf16.msra.mxu1 %v7882_v62 }
 0x358   :  { %5828 = vmatpush2.bf16.msra.mxu0 %v7500_v6  ;;  %5840 = vmatprep.subr.bf16.mxu1 %v7621_v2  ;;  %v2322_v6 = vld [vmem:[#allocation11 + $0x4d8] sm:$0xff] }
 0x359   :  { %5883 = vmatprep.subr.bf16.mxu0 %v7749_v54  ;;  %v2326_v2 = vld [vmem:[#allocation11 + $0x4f8] sm:$0xff] }
 0x35a   :  { %v5530_v16 = vpop.f32.mrf.mxu1  ;;  %v5573_v20 = vpop.f32.mrf.mxu0  ;;  %5787 = vmatmul.mubr.bf16.vlgmr.msra.gmra.mxu1 %v8841_v57  ;;  %v2454_v54 = vld [vmem:[#allocation11 + $0x8f8] sm:$0xff]  ;;  %v7588_v17 = vcombine.low %v2322_v6, %v2326_v2 }
 0x35b   :  { %v5531_v63 = vadd.f32 %v5530_v16, %v5488_v14  ;;  %5830 = vmatmul.mubr.bf16.vlgmr.msra.gmra.mxu0 %v8785_v3  ;;  %5841 = vmatpush1.bf16.msra.mxu1 %v7620_v7  ;;  %v2334_v3 = vld [vmem:[#allocation11 + $0x538] sm:$0xff]  ;;  %v7589_v7 = vcombine.high %v2322_v6, %v2326_v2  ;;  %v7717_v8 = vcombine.high %v2450_v5, %v2454_v54 }
 0x35c   :  { %5872 = vmatprep.mubr.bf16.mxu1 %v8794_v56  ;;  %5884 = vmatpush1.bf16.msra.mxu0 %v7748_v12  ;;  %v8906_v27 = vpop.f32.mrf.mxu1  ;;  %v8908_v33 = vpop.f32.mrf.mxu0  ;;  %v2462_v56 = vld [vmem:[#allocation11 + $0x938] sm:$0xff]  ;;  %v7597_v62 = vcombine.high %v2330_v49, %v2334_v3  ;;  %v7596_v55 = vcombine.low %v2330_v49, %v2334_v3  ;;  %v7716_v58 = vcombine.low %v2450_v5, %v2454_v54 }
 0x35d   :  { %v8910_v45 = vadd.f32 %v5573_v20, %v5531_v63  ;;  %5915 = vmatprep.mubr.bf16.mxu0 %v8824_v40  ;;  %5842 = vmatprep.subr.bf16.mxu1 %v7613_v15  ;;  %v7725_v40 = vcombine.high %v2458_v29, %v2462_v56  ;;  %v7724_v31 = vcombine.low %v2458_v29, %v2462_v56  ;;  %v2318_v12 = vld [vmem:[#allocation11 + $0x4b8] sm:$0xff] }
 0x35e   :  { %v5534_v51 = vpop.f32.mrf.mxu1  ;;  %5885 = vmatprep.subr.bf16.mxu0 %v7741_v23  ;;  %v5577_v59 = vpop.f32.mrf.mxu0  ;;  %v2442_v14 = vld [vmem:[#allocation11 + $0x898] sm:$0xff]  ;;  %v7581_v16 = vcombine.high %v2314_v36, %v2318_v12 }
 0x35f   :  { %v5535_v52 = vadd.f32 %v5534_v51, %v5492_v41  ;;  %5843 = vmatpush1.bf16.msra.mxu1 %v7612_v28  ;;  %v2446_v15 = vld [vmem:[#allocation11 + $0x8b8] sm:$0xff]  ;;  %v7580_v28 = vcombine.low %v2314_v36, %v2318_v12 }
 0x360   :  { %5886 = vmatpush1.bf16.msra.mxu0 %v7740_v35  ;;  %5844 = vmatprep.subr.bf16.mxu1 %v7605_v38  ;;  %v7709_v20 = vcombine.high %v2442_v14, %v2446_v15  ;;  %v2306_v23 = vld [vmem:[#allocation11 + $0x458] sm:$0xff]  ;;  %v7708_v35 = vcombine.low %v2442_v14, %v2446_v15 }
 0x361   :  { %v8913_v46 = vadd.f32 %v5577_v59, %v5535_v52  ;;  %5887 = vmatprep.subr.bf16.mxu0 %v7733_v47  ;;  %v2438_v63 = vld [vmem:[#allocation11 + $0x878] sm:$0xff]  ;;  %v7573_v38 = vcombine.high %v2306_v23, %v2310_v24  ;;  %v7572_v29 = vcombine.low %v2306_v23, %v2310_v24 }
 0x362   :  { %v7701_v41 = vcombine.high %v2434_v25, %v2438_v63  ;;  %v2298_v47 = vld [vmem:[#allocation11 + $0x418] sm:$0xff]  ;;  %v7700_v56 = vcombine.low %v2434_v25, %v2438_v63 }
 0x363   :  { %5845 = vmatpush1.bf16.msra.mxu1 %v7604_v53  ;;  %v2302_v49 = vld [vmem:[#allocation11 + $0x438] sm:$0xff] }
 0x364   :  { %5888 = vmatpush1.bf16.msra.mxu0 %v7732_v60  ;;  %5846 = vmatprep.subr.bf16.mxu1 %v7597_v62  ;;  %v2426_v3 = vld [vmem:[#allocation11 + $0x818] sm:$0xff]  ;;  %v7565_v52 = vcombine.high %v2298_v47, %v2302_v49  ;;  %v7564_v6 = vcombine.low %v2298_v47, %v2302_v49 }
 0x365   :  { %5889 = vmatprep.subr.bf16.mxu0 %v7725_v40  ;;  %v2430_v51 = vld [vmem:[#allocation11 + $0x838] sm:$0xff] }
 0x366   :  { %v7693_v53 = vcombine.high %v2426_v3, %v2430_v51  ;;  %v2418_v59 = vld [vmem:[#allocation11 + $0x7d8] sm:$0xff]  ;;  %v7692_v2 = vcombine.low %v2426_v3, %v2430_v51 }
 0x367   :  { %5847 = vmatpush1.bf16.msra.mxu1 %v7596_v55  ;;  %v2422_v60 = vld [vmem:[#allocation11 + $0x7f8] sm:$0xff] }
 0x368   :  { %5890 = vmatpush1.bf16.msra.mxu0 %v7724_v31  ;;  %5848 = vmatprep.subr.bf16.mxu1 %v7589_v7  ;;  %v2546_v62 = vld [vmem:[#allocation11 + $0xbd8] sm:$0xff]  ;;  %v7685_v5 = vcombine.high %v2418_v59, %v2422_v60  ;;  %v7684_v36 = vcombine.low %v2418_v59, %v2422_v60 }
 0x369   :  { %5891 = vmatprep.subr.bf16.mxu0 %v7717_v8  ;;  %v2550_v40 = vld [vmem:[#allocation11 + $0xbf8] sm:$0xff] }
 0x36a   :  { %v7813_v54 = vcombine.high %v2546_v62, %v2550_v40  ;;  %v2410_v55 = vld [vmem:[#allocation11 + $0x798] sm:$0xff]  ;;  %v7812_v12 = vcombine.low %v2546_v62, %v2550_v40 }
 0x36b   :  { %5849 = vmatpush1.bf16.msra.mxu1 %v7588_v17  ;;  %v2414_v31 = vld [vmem:[#allocation11 + $0x7b8] sm:$0xff] }
 0x36c   :  { %5892 = vmatpush1.bf16.msra.mxu0 %v7716_v58  ;;  %5850 = vmatprep.subr.bf16.mxu1 %v7581_v16  ;;  %v2538_v7 = vld [vmem:[#allocation11 + $0xb98] sm:$0xff]  ;;  %v7677_v14 = vcombine.high %v2410_v55, %v2414_v31  ;;  %v7676_v23 = vcombine.low %v2410_v55, %v2414_v31  ;;  %v2688_v55 = vrot.slane %v8894_v4, %v8749_v22 }
 0x36d   :  { %5893 = vmatprep.subr.bf16.mxu0 %v7709_v20  ;;  %v2542_v8 = vld [vmem:[#allocation11 + $0xbb8] sm:$0xff] }
 0x36e   :  { %v7805_v15 = vcombine.high %v2538_v7, %v2542_v8  ;;  %v2402_v17 = vld [vmem:[#allocation11 + $0x758] sm:$0xff]  ;;  %v7804_v24 = vcombine.low %v2538_v7, %v2542_v8 }
 0x36f   :  { %5851 = vmatpush1.bf16.msra.mxu1 %v7580_v28  ;;  %v2406_v58 = vld [vmem:[#allocation11 + $0x778] sm:$0xff] }
 0x370   :  { %5894 = vmatpush1.bf16.msra.mxu0 %v7708_v35  ;;  %5852 = vmatprep.subr.bf16.mxu1 %v7573_v38  ;;  %v2530_v16 = vld [vmem:[#allocation11 + $0xb58] sm:$0xff]  ;;  %v7669_v25 = vcombine.high %v2402_v17, %v2406_v58  ;;  %v7668_v47 = vcombine.low %v2402_v17, %v2406_v58 }
 0x371   :  { %5895 = vmatprep.subr.bf16.mxu0 %v7701_v41  ;;  %v2534_v20 = vld [vmem:[#allocation11 + $0xb78] sm:$0xff] }
 0x372   :  { %v7797_v63 = vcombine.high %v2530_v16, %v2534_v20  ;;  %v2394_v28 = vld [vmem:[#allocation11 + $0x718] sm:$0xff]  ;;  %v7796_v49 = vcombine.low %v2530_v16, %v2534_v20  ;;  %v5318_v16 = vadd.f32 %v8852_v18, %v2688_v55 }
 0x373   :  { %5853 = vmatpush1.bf16.msra.mxu1 %v7572_v29  ;;  %v2398_v35 = vld [vmem:[#allocation11 + $0x738] sm:$0xff] }
 0x374   :  { %5896 = vmatpush1.bf16.msra.mxu0 %v7700_v56  ;;  %5854 = vmatprep.subr.bf16.mxu1 %v7565_v52  ;;  %v2522_v38 = vld [vmem:[#allocation11 + $0xb18] sm:$0xff]  ;;  %v7661_v3 = vcombine.high %v2394_v28, %v2398_v35  ;;  %v7660_v59 = vcombine.low %v2394_v28, %v2398_v35 }
 0x375   :  { %5897 = vmatprep.subr.bf16.mxu0 %v7693_v53  ;;  %v2526_v41 = vld [vmem:[#allocation11 + $0xb38] sm:$0xff] }
 0x376   :  { %v7789_v51 = vcombine.high %v2522_v38, %v2526_v41  ;;  %v2386_v29 = vld [vmem:[#allocation11 + $0x6d8] sm:$0xff]  ;;  %v7788_v60 = vcombine.low %v2522_v38, %v2526_v41 }
 0x377   :  { %5855 = vmatpush1.bf16.msra.mxu1 %v7564_v6  ;;  %v2390_v56 = vld [vmem:[#allocation11 + $0x6f8] sm:$0xff] }
 0x378   :  { %5898 = vmatpush1.bf16.msra.mxu0 %v7692_v2  ;;  %5856 = vmatprep.subr.bf16.mxu1 %v7685_v5  ;;  %v2514_v52 = vld [vmem:[#allocation11 + $0xad8] sm:$0xff]  ;;  %v7653_v62 = vcombine.high %v2386_v29, %v2390_v56  ;;  %v7652_v31 = vcombine.low %v2386_v29, %v2390_v56 }
 0x379   :  { %5899 = vmatprep.subr.bf16.mxu0 %v7813_v54  ;;  %v2518_v53 = vld [vmem:[#allocation11 + $0xaf8] sm:$0xff] }
 0x37a   :  { %v7781_v40 = vcombine.high %v2514_v52, %v2518_v53  ;;  %v2378_v6 = vld [vmem:[#allocation11 + $0x698] sm:$0xff]  ;;  %v7780_v7 = vcombine.low %v2514_v52, %v2518_v53 }
 0x37b   :  { %5857 = vmatpush2.bf16.msra.mxu1 %v7684_v36  ;;  %v2382_v2 = vld [vmem:[#allocation11 + $0x6b8] sm:$0xff]  ;;  %v5322_v36 = vadd.f32 %v8864_v32, %v2688_v55 }
 0x37c   :  { %5900 = vmatpush2.bf16.msra.mxu0 %v7812_v12  ;;  %5858 = vmatprep.subr.bf16.mxu1 %v7677_v14  ;;  %v2506_v5 = vld [vmem:[#allocation11 + $0xa98] sm:$0xff]  ;;  %v7645_v8 = vcombine.high %v2378_v6, %v2382_v2 }
 0x37d   :  { %5901 = vmatprep.subr.bf16.mxu0 %v7805_v15  ;;  %v2510_v54 = vld [vmem:[#allocation11 + $0xab8] sm:$0xff]  ;;  %v5365_v20 = vadd.f32 %v8878_v10, %v5322_v36  ;;  %v8135_v36 = vld [vmem:[#allocation14 + $0x64] ss:$8 sps:$4 sm:$0xff]  }
 0x37e   :  { %v7773_v12 = vcombine.high %v2506_v5, %v2510_v54  ;;  %v2370_v14 = vld [vmem:[#allocation11 + $0x658] sm:$0xff] }
 0x37f   :  { %5859 = vmatpush2.bf16.msra.mxu1 %v7676_v23  ;;  %v2374_v15 = vld [vmem:[#allocation11 + $0x678] sm:$0xff]  ;;  %v7644_v23 = vcombine.low %v2378_v6, %v2382_v2  ;;  %v5408_v32 = vadd.f32 %v8890_v21, %v5365_v20 }
 0x380   :  { %5902 = vmatpush2.bf16.msra.mxu0 %v7804_v24  ;;  %5860 = vmatprep.subr.bf16.mxu1 %v7669_v25  ;;  %v2498_v17 = vld [vmem:[#allocation11 + $0xa58] sm:$0xff]  ;;  %v7772_v24 = vcombine.low %v2506_v5, %v2510_v54  ;;  %v7637_v25 = vcombine.high %v2370_v14, %v2374_v15 }
 0x381   :  { %5903 = vmatprep.subr.bf16.mxu0 %v7797_v63  ;;  %v2502_v58 = vld [vmem:[#allocation11 + $0xa78] sm:$0xff]  ;;  %v5361_v63 = vadd.f32 %v8860_v13, %v5318_v16  ;;  %v5451_v10 = vadd.f32 %v8901_v39, %v5408_v32 }
 0x382   :  { %v7765_v28 = vcombine.high %v2498_v17, %v2502_v58  ;;  %v2362_v35 = vld [vmem:[#allocation11 + $0x618] sm:$0xff] }
 0x383   :  { %5861 = vmatpush2.bf16.msra.mxu1 %v7668_v47  ;;  %v2366_v38 = vld [vmem:[#allocation11 + $0x638] sm:$0xff]  ;;  %v5404_v18 = vadd.f32 %v8872_v50, %v5361_v63  ;;  %v5978_v52 = vmul.f32 0.1, %v5451_v10 }
 0x384   :  { %5904 = vmatpush2.bf16.msra.mxu0 %v7796_v49  ;;  %5862 = vmatprep.subr.bf16.mxu1 %v7661_v3  ;;  %v2490_v41 = vld [vmem:[#allocation11 + $0xa18] sm:$0xff]  ;;  %v7636_v49 = vcombine.low %v2370_v14, %v2374_v15  ;;  %v7764_v3 = vcombine.low %v2498_v17, %v2502_v58  ;;  %v7628_v53 = vcombine.low %v2362_v35, %v2366_v38  ;;  %v8133_v58 = vld [vmem:[#allocation14 + $0x60] ss:$8 sps:$4 sm:$0xff]  }
 0x385   :  { %5905 = vmatprep.subr.bf16.mxu0 %v7789_v51  ;;  %v2494_v47 = vld [vmem:[#allocation11 + $0xa38] sm:$0xff]  ;;  %v7629_v51 = vcombine.high %v2362_v35, %v2366_v38  ;;  %v5447_v13 = vadd.f32 %v8884_v1, %v5404_v18  ;;  %v5994_v6 = vmax.f32 %v5451_v10, %v5978_v52  ;;  %v8925_v1 = vpop.f32.mrf.mxu1  ;;  %v8139_v10 = vld [vmem:[#allocation14 + $0x40] ss:$8 sps:$4 sm:$0xff]   ;;  %v8147_v52 = vld [vmem:[#allocation14 + $0x24] ss:$8 sps:$4 sm:$0xff]  }
 0x386   :  { %v7757_v21 = vcombine.high %v2490_v41, %v2494_v47  ;;  %v2610_v29 = vld [vmem:[#allocation11 + $0xdd8] sm:$0xff]  ;;  %v7756_v50 = vcombine.low %v2490_v41, %v2494_v47 }
 0x387   :  { %5863 = vmatpush2.bf16.msra.mxu1 %v7660_v59  ;;  %v2614_v56 = vld [vmem:[#allocation11 + $0xdf8] sm:$0xff]  ;;  %v5970_v39 = vmul.f32 0.1, %v5447_v13 }
 0x388   :  { %5906 = vmatpush2.bf16.msra.mxu0 %v7788_v60  ;;  %5864 = vmatprep.subr.bf16.mxu1 %v7653_v62  ;;  %v7877_v59 = vcombine.high %v2610_v29, %v2614_v56  ;;  %v8132_v60 = vld [vmem:[#allocation14 + $0x74] ss:$8 sps:$4 sm:$0xff]   ;;  %v7876_v2 = vcombine.low %v2610_v29, %v2614_v56  ;;  %v8130_v5 = vld [vmem:[#allocation14 + $0x70] ss:$8 sps:$4 sm:$0xff]  }
 0x389   :  { %5907 = vmatprep.subr.bf16.mxu0 %v7781_v40  ;;  %v2602_v62 = vld [vmem:[#allocation11 + $0xd98] sm:$0xff]  ;;  %v5986_v54 = vmax.f32 %v5447_v13, %v5970_v39  ;;  %v8145_v39 = vld [vmem:[#allocation14 + $0x20] ss:$8 sps:$4 sm:$0xff]  }
 0x38a   :  { %v2606_v40 = vld [vmem:[#allocation11 + $0xdb8] sm:$0xff] }
 0x38b   :  { %5865 = vmatpush2.bf16.msra.mxu1 %v7652_v31  ;;  %v7869_v55 = vcombine.high %v2602_v62, %v2606_v40  ;;  %v2594_v31 = vld [vmem:[#allocation11 + $0xd58] sm:$0xff]  ;;  %v6002_v14 = vpack.c.bf16 %v5994_v6, %v5986_v54  ;;  %v7868_v15 = vcombine.low %v2602_v62, %v2606_v40 }
 0x38c   :  { %5908 = vmatpush2.bf16.msra.mxu0 %v7780_v7  ;;  %5866 = vmatprep.subr.bf16.mxu1 %v7645_v8  ;;  %v2598_v7 = vld [vmem:[#allocation11 + $0xd78] sm:$0xff] }
 0x38d   :  { %5909 = vmatprep.subr.bf16.mxu0 %v7773_v12  ;;  %v7861_v16 = vcombine.high %v2594_v31, %v2598_v7  ;;  %v8138_v20 = vld [vmem:[#allocation14 + $0x54] ss:$8 sps:$4 sm:$0xff]   ;;  %v8142_v29 = vld [vmem:[#allocation14 + $0x30] ss:$8 sps:$4 sm:$0xff]  }
 0x38e   :  { %v2578_v35 = vld [vmem:[#allocation11 + $0xcd8] sm:$0xff] }
 0x38f   :  { %5867 = vmatpush2.bf16.msra.mxu1 %v7644_v23  ;;  %v2586_v23 = vld [vmem:[#allocation11 + $0xd18] sm:$0xff] }
 0x390   :  { %5910 = vmatpush2.bf16.msra.mxu0 %v7772_v24  ;;  %5868 = vmatprep.subr.bf16.mxu1 %v7637_v25  ;;  %v7860_v25 = vcombine.low %v2594_v31, %v2598_v7  ;;  %v2582_v38 = vld [vmem:[#allocation11 + $0xcf8] sm:$0xff] }
 0x391   :  { %5911 = vmatprep.subr.bf16.mxu0 %v7765_v28  ;;  %v8141_v28 = vld [vmem:[#allocation14 + $0x44] ss:$8 sps:$4 sm:$0xff]   ;;  %v2574_v13 = vld [vmem:[#allocation11 + $0xcb8] sm:$0xff] }
 0x392   :  { %v8150_v62 = vld [vmem:[#allocation14 + $0x14] ss:$8 sps:$4 sm:$0xff]  }
 0x393   :  { %5869 = vmatpush2.bf16.msra.mxu1 %v7636_v49  ;;  %v7845_v49 = vcombine.high %v2578_v35, %v2582_v38  ;;  %v2554_v40 = vld [vmem:[#allocation11 + $0xc18] sm:$0xff] }
 0x394   :  { %5912 = vmatpush2.bf16.msra.mxu0 %v7764_v3  ;;  %5870 = vmatprep.subr.bf16.mxu1 %v7629_v51  ;;  %v8144_v3 = vld [vmem:[#allocation14 + $0x34] ss:$8 sps:$4 sm:$0xff]  }
 0x395   :  { %5913 = vmatprep.subr.bf16.mxu0 %v7757_v21  ;;  %v2570_v51 = vld [vmem:[#allocation11 + $0xc98] sm:$0xff]  ;;  %v7844_v21 = vcombine.low %v2578_v35, %v2582_v38 }
 0x396   :  { %v7837_v56 = vcombine.high %v2570_v51, %v2574_v13  ;;  %v2558_v6 = vld [vmem:[#allocation11 + $0xc38] sm:$0xff] }
 0x397   :  { %5871 = vmatpush2.bf16.msra.mxu1 %v7628_v53  ;;  %v2562_v53 = vld [vmem:[#allocation11 + $0xc58] sm:$0xff]  ;;  %v7821_v54 = vcombine.high %v2554_v40, %v2558_v6 }
 0x398   :  { %5914 = vmatpush2.bf16.msra.mxu0 %v7756_v50  ;;  %5926 = vmatprep.subr.bf16.mxu1 %v7877_v59  ;;  %v2566_v50 = vld [vmem:[#allocation11 + $0xc78] sm:$0xff]  ;;  %v7836_v59 = vcombine.low %v2570_v51, %v2574_v13  ;;  %v8163_v51 = vld [vmem:[#allocation14 + $0xc0] ss:$8 sps:$4 sm:$0xff]  }
 0x399   :  { %6789 = vmatprep.subr.bf16.mxu0 %v8132_v60  ;;  %v7829_v60 = vcombine.high %v2562_v53, %v2566_v50  ;;  %v2674_v31 = vld [vmem:[#allocation11 + $0xfd8] sm:$0xff] }
 0x39a   :  { %v5616_v8 = vpop.f32.mrf.mxu1  ;;  %5873 = vmatmul.mubr.bf16.vlgmr.msra.gmra.mxu1 %v8802_v0  ;;  %v2590_v0 = vld [vmem:[#allocation11 + $0xd38] sm:$0xff] }
 0x39b   :  { %v5617_v12 = vadd.f32 %v5616_v8, %v8910_v45  ;;  %5916 = vmatmul.mubr.bf16.vlgmr.msra.gmra.mxu0 %v8828_v42  ;;  %5927 = vmatpush1.bf16.msra.mxu1 %v7876_v2  ;;  %v7853_v63 = vcombine.high %v2586_v23, %v2590_v0  ;;  %v7852_v18 = vcombine.low %v2586_v23, %v2590_v0  ;;  %v2678_v7 = vld [vmem:[#allocation11 + $0xff8] sm:$0xff]  ;;  %v8159_v0 = vld [vmem:[#allocation14 + $0xe4] ss:$8 sps:$4 sm:$0xff]  }
 0x39c   :  { %5958 = vmatprep.mubr.bf16.mxu1 %v8839_v43  ;;  %6790 = vmatpush1.bf16.msra.mxu0 %v8130_v5  ;;  %v8931_v17 = vpop.f32.mrf.mxu1  ;;  %v8136_v43 = vld [vmem:[#allocation14 + $0x50] ss:$8 sps:$4 sm:$0xff]   ;;  %v7828_v2 = vcombine.low %v2562_v53, %v2566_v50  ;;  %v7820_v8 = vcombine.low %v2554_v40, %v2558_v6  ;;  %v5579_v6 = vpop.f32.mrf.mxu0 }
 0x39d   :  { %6821 = vmatprep.mubr.bf16.mxu0 %v6002_v14  ;;  %5928 = vmatprep.subr.bf16.mxu1 %v7869_v55  ;;  %v5971_v45 = vmul.f32 0.1, %v5617_v12  ;;  %v8148_v5 = vld [vmem:[#allocation14 + $0x10] ss:$8 sps:$4 sm:$0xff]   ;;  %v8153_v55 = vld [vmem:[#allocation14 + $0x4] ss:$8 sps:$4 sm:$0xff]  }
 0x39e   :  { %v5620_v24 = vpop.f32.mrf.mxu1  ;;  %6791 = vmatprep.subr.bf16.mxu0 %v8135_v36  ;;  %v8151_v36 = vld [vmem:[#allocation14] ss:$8 sps:$4 sm:$0xff]   ;;  %v8156_v14 = vld [vmem:[#allocation14 + $0xf4] ss:$8 sps:$4 sm:$0xff]   ;;  %v8160_v38 = vld [vmem:[#allocation14 + $0xd0] ss:$8 sps:$4 sm:$0xff]  }
 0x39f   :  { %v5621_v42 = vadd.f32 %v5620_v24, %v8913_v46  ;;  %5929 = vmatpush1.bf16.msra.mxu1 %v7868_v15  ;;  %v5987_v41 = vmax.f32 %v5617_v12, %v5971_v45  ;;  %v7941_v12 = vcombine.high %v2674_v31, %v2678_v7  ;;  %v2666_v15 = vld [vmem:[#allocation11 + $0xf98] sm:$0xff] }
 0x3a0   :  { %6792 = vmatpush1.bf16.msra.mxu0 %v8133_v58  ;;  %5930 = vmatprep.subr.bf16.mxu1 %v7861_v16  ;;  %v2670_v58 = vld [vmem:[#allocation11 + $0xfb8] sm:$0xff]  ;;  %v7940_v16 = vcombine.low %v2674_v31, %v2678_v7 }
 0x3a1   :  { %v5979_v32 = vmul.f32 0.1, %v5621_v42  ;;  %6793 = vmatprep.subr.bf16.mxu0 %v8138_v20  ;;  %v8154_v20 = vld [vmem:[#allocation14 + $0xf0] ss:$8 sps:$4 sm:$0xff]   ;;  %v7933_v23 = vcombine.high %v2666_v15, %v2670_v58 }
 0x3a2   :  { %v2658_v24 = vld [vmem:[#allocation11 + $0xf58] sm:$0xff] }
 0x3a3   :  { %v5995_v47 = vmax.f32 %v5621_v42, %v5979_v32  ;;  %5931 = vmatpush1.bf16.msra.mxu1 %v7860_v25  ;;  %v2662_v45 = vld [vmem:[#allocation11 + $0xf78] sm:$0xff]  ;;  %v7932_v42 = vcombine.low %v2666_v15, %v2670_v58  ;;  %v8157_v25 = vld [vmem:[#allocation14 + $0xe0] ss:$8 sps:$4 sm:$0xff]   ;;  %v8177_v15 = vld [vmem:[#allocation14 + $0x84] ss:$8 sps:$4 sm:$0xff]  }
 0x3a4   :  { %6794 = vmatpush1.bf16.msra.mxu0 %v8136_v43  ;;  %5932 = vmatprep.subr.bf16.mxu1 %v7853_v63  ;;  %v7925_v43 = vcombine.high %v2658_v24, %v2662_v45  ;;  %v8162_v63 = vld [vmem:[#allocation14 + $0xd4] ss:$8 sps:$4 sm:$0xff]   ;;  %v7924_v35 = vcombine.low %v2658_v24, %v2662_v45  ;;  %v8178_v45 = vld [vmem:[#allocation14 + $0x170] ss:$8 sps:$4 sm:$0xff]  }
 0x3a5   :  { %v8934_v46 = vpack.c.bf16 %v5995_v47, %v5987_v41  ;;  %6795 = vmatprep.subr.bf16.mxu0 %v8141_v28  ;;  %v2650_v32 = vld [vmem:[#allocation11 + $0xf18] sm:$0xff]  ;;  %v8165_v47 = vld [vmem:[#allocation14 + $0xc4] ss:$8 sps:$4 sm:$0xff]  }
 0x3a6   :  { %v2654_v28 = vld [vmem:[#allocation11 + $0xf38] sm:$0xff] }
 0x3a7   :  { %5933 = vmatpush1.bf16.msra.mxu1 %v7852_v18  ;;  %v7917_v41 = vcombine.high %v2650_v32, %v2654_v28  ;;  %v2642_v18 = vld [vmem:[#allocation11 + $0xed8] sm:$0xff] }
 0x3a8   :  { %6796 = vmatpush1.bf16.msra.mxu0 %v8139_v10  ;;  %5934 = vmatprep.subr.bf16.mxu1 %v7845_v49  ;;  %v2646_v10 = vld [vmem:[#allocation11 + $0xef8] sm:$0xff]  ;;  %v7916_v49 = vcombine.low %v2650_v32, %v2654_v28  ;;  %v8181_v32 = vld [vmem:[#allocation14 + $0x160] ss:$8 sps:$4 sm:$0xff]  }
 0x3a9   :  { %6797 = vmatprep.subr.bf16.mxu0 %v8144_v3  ;;  %v2696_v3 = vrot.slane %v8894_v4, %v477_v61  ;;  %v7909_v13 = vcombine.high %v2642_v18, %v2646_v10  ;;  %v7908_v53 = vcombine.low %v2642_v18, %v2646_v10  ;;  %v8171_v4 = vld [vmem:[#allocation14 + $0xa4] ss:$8 sps:$4 sm:$0xff]   ;;  %v2622_v31 = vld [vmem:[#allocation11 + $0xe38] sm:$0xff]  ;;  %v8187_v10 = vld [vmem:[#allocation14 + $0x140] ss:$8 sps:$4 sm:$0xff]  }
 0x3aa   :  { %v8186_v28 = vld [vmem:[#allocation14 + $0x154] ss:$8 sps:$4 sm:$0xff]   ;;  %v8205_v18 = vld [vmem:[#allocation14 + $0x250] ss:$8 sps:$4 sm:$0xff]  }
 0x3ab   :  { %5935 = vmatpush1.bf16.msra.mxu1 %v7844_v21  ;;  %v8168_v21 = vld [vmem:[#allocation14 + $0xb4] ss:$8 sps:$4 sm:$0xff]   ;;  %v5490_v50 = vadd.f32 %v8892_v48, %v2696_v3  ;;  %v8169_v48 = vld [vmem:[#allocation14 + $0xa0] ss:$8 sps:$4 sm:$0xff]  }
 0x3ac   :  { %6798 = vmatpush1.bf16.msra.mxu0 %v8142_v29  ;;  %5936 = vmatprep.subr.bf16.mxu1 %v7837_v56  ;;  %v2634_v29 = vld [vmem:[#allocation11 + $0xe98] sm:$0xff] }
 0x3ad   :  { %6799 = vmatprep.subr.bf16.mxu0 %v8147_v52  ;;  %v2638_v56 = vld [vmem:[#allocation11 + $0xeb8] sm:$0xff]  ;;  %v5494_v52 = vadd.f32 %v8899_v9, %v2696_v3  ;;  %v5533_v40 = vadd.f32 %v8906_v27, %v5490_v50 }
 0x3ae   :  { %v7901_v61 = vcombine.high %v2634_v29, %v2638_v56  ;;  %v7900_v9 = vcombine.low %v2634_v29, %v2638_v56  ;;  %v8219_v3 = vld [vmem:[#allocation14 + $0x234] ss:$8 sps:$4 sm:$0xff]   ;;  %v8225_v29 = vld [vmem:[#allocation14 + $0x224] ss:$8 sps:$4 sm:$0xff]   ;;  %v8196_v56 = vld [vmem:[#allocation14 + $0x120] ss:$8 sps:$4 sm:$0xff]  }
 0x3af   :  { %5937 = vmatpush1.bf16.msra.mxu1 %v7836_v59  ;;  %v5537_v59 = vadd.f32 %v8925_v1, %v5494_v52  ;;  %v8174_v1 = vld [vmem:[#allocation14 + $0x94] ss:$8 sps:$4 sm:$0xff]   ;;  %v5576_v7 = vadd.f32 %v8908_v33, %v5533_v40  ;;  %v8235_v40 = vld [vmem:[#allocation14 + $0x200] ss:$8 sps:$4 sm:$0xff]  }
 0x3b0   :  { %6800 = vmatpush1.bf16.msra.mxu0 %v8145_v39  ;;  %5938 = vmatprep.subr.bf16.mxu1 %v7829_v60  ;;  %v8166_v39 = vld [vmem:[#allocation14 + $0xb0] ss:$8 sps:$4 sm:$0xff]   ;;  %v8195_v33 = vld [vmem:[#allocation14 + $0x274] ss:$8 sps:$4 sm:$0xff]  }
 0x3b1   :  { %6801 = vmatprep.subr.bf16.mxu0 %v8150_v62  ;;  %v2626_v60 = vld [vmem:[#allocation11 + $0xe58] sm:$0xff]  ;;  %v5619_v27 = vadd.f32 %v8931_v17, %v5576_v7 }
 0x3b2   :  { %v2630_v62 = vld [vmem:[#allocation11 + $0xe78] sm:$0xff] }
 0x3b3   :  { %5939 = vmatpush1.bf16.msra.mxu1 %v7828_v2  ;;  %v5622_v2 = vpop.f32.mrf.mxu1  ;;  %v8204_v52 = vld [vmem:[#allocation14 + $0x114] ss:$8 sps:$4 sm:$0xff]   ;;  %v8226_v7 = vld [vmem:[#allocation14 + $0x1d0] ss:$8 sps:$4 sm:$0xff]  }
 0x3b4   :  { %6802 = vmatpush1.bf16.msra.mxu0 %v8148_v5  ;;  %5940 = vmatprep.subr.bf16.mxu1 %v7821_v54  ;;  %v5580_v5 = vadd.f32 %v5579_v6, %v5537_v59  ;;  %v7893_v54 = vcombine.high %v2626_v60, %v2630_v62  ;;  %v8231_v50 = vld [vmem:[#allocation14 + $0x214] ss:$8 sps:$4 sm:$0xff]   ;;  %v8202_v59 = vld [vmem:[#allocation14 + $0x110] ss:$8 sps:$4 sm:$0xff]  }
 0x3b5   :  { %6803 = vmatprep.subr.bf16.mxu0 %v8153_v55  ;;  %v2618_v55 = vld [vmem:[#allocation11 + $0xe18] sm:$0xff] }
 0x3b6   :  { %v8243_v6 = vld [vmem:[#allocation14 + $0x2f4] ss:$8 sps:$4 sm:$0xff]  }
 0x3b7   :  { %5941 = vmatpush1.bf16.msra.mxu1 %v7820_v8  ;;  %v5623_v8 = vadd.f32 %v5622_v2, %v5580_v5  ;;  %v8214_v2 = vld [vmem:[#allocation14 + $0x1f0] ss:$8 sps:$4 sm:$0xff]  }
 0x3b8   :  { %6804 = vmatpush1.bf16.msra.mxu0 %v8151_v36  ;;  %5942 = vmatprep.subr.bf16.mxu1 %v7941_v12  ;;  %v7892_v36 = vcombine.low %v2626_v60, %v2630_v62  ;;  %v8172_v12 = vld [vmem:[#allocation14 + $0x90] ss:$8 sps:$4 sm:$0xff]   ;;  %v8208_v60 = vld [vmem:[#allocation14 + $0x100] ss:$8 sps:$4 sm:$0xff]   ;;  %v8216_v62 = vld [vmem:[#allocation14 + $0x1f4] ss:$8 sps:$4 sm:$0xff]  }
 0x3b9   :  { %6805 = vmatprep.subr.bf16.mxu0 %v8156_v14  ;;  %v7885_v14 = vcombine.high %v2618_v55, %v2622_v31  ;;  %v5980_v58 = vmul.f32 0.1, %v5623_v8  ;;  %v8241_v5 = vld [vmem:[#allocation14 + $0x2f0] ss:$8 sps:$4 sm:$0xff]  }
 0x3bb   :  { %5943 = vmatpush2.bf16.msra.mxu1 %v7940_v16  ;;  %v7884_v16 = vcombine.low %v2618_v55, %v2622_v31  ;;  %v5996_v24 = vmax.f32 %v5623_v8, %v5980_v58  ;;  %v8247_v55 = vld [vmem:[#allocation14 + $0x2e0] ss:$8 sps:$4 sm:$0xff]   ;;  %v8255_v31 = vld [vmem:[#allocation14 + $0x2d4] ss:$8 sps:$4 sm:$0xff]   ;;  %v8234_v8 = vld [vmem:[#allocation14 + $0x1c4] ss:$8 sps:$4 sm:$0xff]  }
 0x3bc   :  { %6806 = vmatpush2.bf16.msra.mxu0 %v8154_v20  ;;  %5944 = vmatprep.subr.bf16.mxu1 %v7933_v23  ;;  %v5972_v20 = vmul.f32 0.1, %v5619_v27  ;;  %v8175_v23 = vld [vmem:[#allocation14 + $0x80] ss:$8 sps:$4 sm:$0xff]  }
 0x3bd   :  { %6807 = vmatprep.subr.bf16.mxu0 %v8159_v0  ;;  %v8180_v0 = vld [vmem:[#allocation14 + $0x174] ss:$8 sps:$4 sm:$0xff]   ;;  %v8259_v58 = vld [vmem:[#allocation14 + $0x2c0] ss:$8 sps:$4 sm:$0xff]  }
 0x3be   :  { %v5988_v17 = vmax.f32 %v5619_v27, %v5972_v20  ;;  %v8261_v27 = vld [vmem:[#allocation14 + $0x2c4] ss:$8 sps:$4 sm:$0xff]   ;;  %v8238_v20 = vld [vmem:[#allocation14 + $0x1b0] ss:$8 sps:$4 sm:$0xff]  }
 0x3bf   :  { %5945 = vmatpush2.bf16.msra.mxu1 %v7932_v42  ;;  %v8183_v42 = vld [vmem:[#allocation14 + $0x164] ss:$8 sps:$4 sm:$0xff]  }
 0x3c0   :  { %6808 = vmatpush2.bf16.msra.mxu0 %v8157_v25  ;;  %5946 = vmatprep.subr.bf16.mxu1 %v7925_v43  ;;  %v8193_v25 = vld [vmem:[#allocation14 + $0x270] ss:$8 sps:$4 sm:$0xff]   ;;  %v6004_v43 = vpack.c.bf16 %v5996_v24, %v5988_v17  ;;  %v8267_v24 = vld [vmem:[#allocation14 + $0x2a4] ss:$8 sps:$4 sm:$0xff]  }
 0x3c1   :  { %6809 = vmatprep.subr.bf16.mxu0 %v8162_v63  ;;  %v8201_v63 = vld [vmem:[#allocation14 + $0x264] ss:$8 sps:$4 sm:$0xff]  }
 0x3c3   :  { %5947 = vmatpush2.bf16.msra.mxu1 %v7924_v35  ;;  %v8199_v35 = vld [vmem:[#allocation14 + $0x260] ss:$8 sps:$4 sm:$0xff]  }
 0x3c4   :  { %6810 = vmatpush2.bf16.msra.mxu0 %v8160_v38  ;;  %5948 = vmatprep.subr.bf16.mxu1 %v7917_v41  ;;  %v8207_v38 = vld [vmem:[#allocation14 + $0x254] ss:$8 sps:$4 sm:$0xff]   ;;  %v8184_v41 = vld [vmem:[#allocation14 + $0x150] ss:$8 sps:$4 sm:$0xff]  }
 0x3c5   :  { %6811 = vmatprep.subr.bf16.mxu0 %v8165_v47  ;;  %v8189_v47 = vld [vmem:[#allocation14 + $0x144] ss:$8 sps:$4 sm:$0xff]  }
 0x3c7   :  { %5949 = vmatpush2.bf16.msra.mxu1 %v7916_v49  ;;  %v8211_v49 = vld [vmem:[#allocation14 + $0x240] ss:$8 sps:$4 sm:$0xff]  }
 0x3c8   :  { %6812 = vmatpush2.bf16.msra.mxu0 %v8163_v51  ;;  %5950 = vmatprep.subr.bf16.mxu1 %v7909_v13  ;;  %v8190_v51 = vld [vmem:[#allocation14 + $0x130] ss:$8 sps:$4 sm:$0xff]   ;;  %v8198_v13 = vld [vmem:[#allocation14 + $0x124] ss:$8 sps:$4 sm:$0xff]  }
 0x3c9   :  { %6813 = vmatprep.subr.bf16.mxu0 %v8168_v21  ;;  %v8217_v21 = vld [vmem:[#allocation14 + $0x230] ss:$8 sps:$4 sm:$0xff]  }
 0x3cb   :  { %5951 = vmatpush2.bf16.msra.mxu1 %v7908_v53  ;;  %v8223_v53 = vld [vmem:[#allocation14 + $0x220] ss:$8 sps:$4 sm:$0xff]  }
 0x3cc   :  { %6814 = vmatpush2.bf16.msra.mxu0 %v8166_v39  ;;  %5952 = vmatprep.subr.bf16.mxu1 %v7901_v61  ;;  %v8210_v39 = vld [vmem:[#allocation14 + $0x104] ss:$8 sps:$4 sm:$0xff]   ;;  %v8229_v61 = vld [vmem:[#allocation14 + $0x210] ss:$8 sps:$4 sm:$0xff]  }
 0x3cd   :  { %6815 = vmatprep.subr.bf16.mxu0 %v8171_v4  ;;  %v8237_v4 = vld [vmem:[#allocation14 + $0x204] ss:$8 sps:$4 sm:$0xff]  }
 0x3cf   :  { %5953 = vmatpush2.bf16.msra.mxu1 %v7900_v9  ;;  %v8222_v9 = vld [vmem:[#allocation14 + $0x1e4] ss:$8 sps:$4 sm:$0xff]  }
 0x3d0   :  { %6816 = vmatpush2.bf16.msra.mxu0 %v8169_v48  ;;  %5954 = vmatprep.subr.bf16.mxu1 %v7893_v54  ;;  %v8249_v48 = vld [vmem:[#allocation14 + $0x2e4] ss:$8 sps:$4 sm:$0xff]   ;;  %v8220_v54 = vld [vmem:[#allocation14 + $0x1e0] ss:$8 sps:$4 sm:$0xff]  }
 0x3d1   :  { %6817 = vmatprep.subr.bf16.mxu0 %v8174_v1  ;;  %v8228_v1 = vld [vmem:[#allocation14 + $0x1d4] ss:$8 sps:$4 sm:$0xff]  }
 0x3d3   :  { %5955 = vmatpush2.bf16.msra.mxu1 %v7892_v36  ;;  %v8253_v36 = vld [vmem:[#allocation14 + $0x2d0] ss:$8 sps:$4 sm:$0xff]  }
 0x3d4   :  { %6818 = vmatpush2.bf16.msra.mxu0 %v8172_v12  ;;  %5956 = vmatprep.subr.bf16.mxu1 %v7885_v14  ;;  %v8232_v12 = vld [vmem:[#allocation14 + $0x1c0] ss:$8 sps:$4 sm:$0xff]   ;;  %v5659_v14 = vpop.f32.mrf.mxu0 }
 0x3d5   :  { %6819 = vmatprep.subr.bf16.mxu0 %v8177_v15  ;;  %v8240_v15 = vld [vmem:[#allocation14 + $0x1b4] ss:$8 sps:$4 sm:$0xff]  }
 0x3d7   :  { %5957 = vmatpush2.bf16.msra.mxu1 %v7884_v16  ;;  %v8264_v16 = vld [vmem:[#allocation14 + $0x2b4] ss:$8 sps:$4 sm:$0xff]  }
 0x3d8   :  { %6820 = vmatpush2.bf16.msra.mxu0 %v8175_v23  ;;  %6832 = vmatprep.subr.bf16.mxu1 %v8180_v0  ;;  %v5661_v23 = vpop.f32.mrf.mxu0  ;;  %v8246_v0 = vld [vmem:[#allocation14 + $0x1a4] ss:$8 sps:$4 sm:$0xff]  }
 0x3d9   :  { %6875 = vmatprep.subr.bf16.mxu0 %v8195_v33  ;;  %v8262_v33 = vld [vmem:[#allocation14 + $0x2b0] ss:$8 sps:$4 sm:$0xff]  }
 0x3da   :  { %5959 = vmatmul.mubr.bf16.vlgmr.msra.gmra.mxu1 %v8841_v57  ;;  %v8213_v57 = vld [vmem:[#allocation14 + $0x244] ss:$8 sps:$4 sm:$0xff]   ;;  %v5663_v17 = vpop.f32.mrf.mxu0 }
 0x3db   :  { %6822 = vmatmul.mubr.bf16.vlgmr.msra.gmra.mxu0 %v8888_v30  ;;  %6833 = vmatpush1.bf16.msra.mxu1 %v8178_v45  ;;  %v8192_v30 = vld [vmem:[#allocation14 + $0x134] ss:$8 sps:$4 sm:$0xff]   ;;  %v8244_v45 = vld [vmem:[#allocation14 + $0x1a0] ss:$8 sps:$4 sm:$0xff]  }
 0x3dc   :  { %6864 = vmatprep.mubr.bf16.mxu1 %v6004_v43  ;;  %6834 = vmatprep.subr.bf16.mxu1 %v8183_v42  ;;  %v5702_v42 = vpop.f32.mrf.mxu1  ;;  %v8265_v43 = vld [vmem:[#allocation14 + $0x2a0] ss:$8 sps:$4 sm:$0xff]  }
 0x3dd   :  { %6876 = vmatpush1.bf16.msra.mxu0 %v8193_v25  ;;  %v8252_v25 = vld [vmem:[#allocation14 + $0x194] ss:$8 sps:$4 sm:$0xff]  }
 0x3de   :  { %6877 = vmatprep.subr.bf16.mxu0 %v8201_v63  ;;  %v8270_v63 = vld [vmem:[#allocation14 + $0x294] ss:$8 sps:$4 sm:$0xff]  }
 0x3df   :  { %6835 = vmatpush1.bf16.msra.mxu1 %v8181_v32  ;;  %v8250_v32 = vld [vmem:[#allocation14 + $0x190] ss:$8 sps:$4 sm:$0xff]  }
 0x3e0   :  { %6836 = vmatprep.subr.bf16.mxu1 %v8186_v28  ;;  %v5665_v28 = vpop.f32.mrf.mxu0 }
 0x3e1   :  { %6878 = vmatpush1.bf16.msra.mxu0 %v8199_v35  ;;  %v5704_v35 = vpop.f32.mrf.mxu1 }
 0x3e2   :  { %6879 = vmatprep.subr.bf16.mxu0 %v8207_v38  ;;  %v8258_v38 = vld [vmem:[#allocation14 + $0x184] ss:$8 sps:$4 sm:$0xff]  }
 0x3e3   :  { %6837 = vmatpush1.bf16.msra.mxu1 %v8184_v41  ;;  %v8947_v41 = vld [vmem:[#allocation13] sm:$0xff] }
 0x3e4   :  { %6838 = vmatprep.subr.bf16.mxu1 %v8189_v47  ;;  %v2704_v47 = vrot.slane %v8947_v41, %v485_v44 }
 0x3e5   :  { %6880 = vmatpush1.bf16.msra.mxu0 %v8205_v18  ;;  %v8268_v18 = vld [vmem:[#allocation14 + $0x290] ss:$8 sps:$4 sm:$0xff]  }
 0x3e6   :  { %6881 = vmatprep.subr.bf16.mxu0 %v8213_v57  ;;  %v2700_v57 = vrot.slane %v8947_v41, %v481_v26 }
 0x3e7   :  { %6839 = vmatpush1.bf16.msra.mxu1 %v8187_v10  ;;  %v5745_v10 = vpop.f32.mrf.mxu0 }
 0x3e8   :  { %6840 = vmatprep.subr.bf16.mxu1 %v8192_v30  ;;  %v8273_v30 = vld [vmem:[#allocation14 + $0x284] ss:$8 sps:$4 sm:$0xff]   ;;  %v5664_v44 = vadd.f32 %v5663_v17, %v2700_v57 }
 0x3e9   :  { %6882 = vmatpush1.bf16.msra.mxu0 %v8211_v49  ;;  %v8256_v49 = vld [vmem:[#allocation14 + $0x180] ss:$8 sps:$4 sm:$0xff]  }
 0x3ea   :  { %6883 = vmatprep.subr.bf16.mxu0 %v8219_v3  ;;  %v5706_v3 = vpop.f32.mrf.mxu1 }
 0x3eb   :  { %6841 = vmatpush1.bf16.msra.mxu1 %v8190_v51  ;;  %v8276_v51 = vld [vmem:[#allocation14 + $0x374] ss:$8 sps:$4 sm:$0xff]  }
 0x3ec   :  { %6842 = vmatprep.subr.bf16.mxu1 %v8198_v13  ;;  %v5662_v13 = vadd.f32 %v5661_v23, %v2704_v47  ;;  %v5708_v26 = vpop.f32.mrf.mxu1 }
 0x3ed   :  { %6884 = vmatpush1.bf16.msra.mxu0 %v8217_v21  ;;  %v8271_v21 = vld [vmem:[#allocation14 + $0x280] ss:$8 sps:$4 sm:$0xff]  }
 0x3ee   :  { %6885 = vmatprep.subr.bf16.mxu0 %v8225_v29  ;;  %v5660_v29 = vadd.f32 %v5659_v14, %v2700_v57  ;;  %v8303_v57 = vld [vmem:[#allocation14 + $0x3e4] ss:$8 sps:$4 sm:$0xff]  }
 0x3ef   :  { %6843 = vmatpush1.bf16.msra.mxu1 %v8196_v56  ;;  %v5747_v56 = vpop.f32.mrf.mxu0 }
 0x3f0   :  { %6844 = vmatprep.subr.bf16.mxu1 %v8204_v52  ;;  %v5705_v52 = vadd.f32 %v5704_v35, %v5662_v13  ;;  %v8297_v35 = vld [vmem:[#allocation14 + $0x304] ss:$8 sps:$4 sm:$0xff]   ;;  %v8312_v13 = vld [vmem:[#allocation14 + $0x3b4] ss:$8 sps:$4 sm:$0xff]  }
 0x3f1   :  { %6886 = vmatpush1.bf16.msra.mxu0 %v8223_v53  ;;  %v8274_v53 = vld [vmem:[#allocation14 + $0x370] ss:$8 sps:$4 sm:$0xff]  }
 0x3f2   :  { %6887 = vmatprep.subr.bf16.mxu0 %v8231_v50  ;;  %v5703_v50 = vadd.f32 %v5702_v42, %v5660_v29  ;;  %v8286_v42 = vld [vmem:[#allocation14 + $0x330] ss:$8 sps:$4 sm:$0xff]   ;;  %v8315_v29 = vld [vmem:[#allocation14 + $0x3a4] ss:$8 sps:$4 sm:$0xff]  }
 0x3f3   :  { %6845 = vmatpush1.bf16.msra.mxu1 %v8202_v59  ;;  %v8279_v59 = vld [vmem:[#allocation14 + $0x364] ss:$8 sps:$4 sm:$0xff]  }
 0x3f4   :  { %6846 = vmatprep.subr.bf16.mxu1 %v8210_v39  ;;  %v5666_v39 = vadd.f32 %v5665_v28, %v2704_v47  ;;  %v8292_v28 = vld [vmem:[#allocation14 + $0x310] ss:$8 sps:$4 sm:$0xff]   ;;  %v8300_v47 = vld [vmem:[#allocation14 + $0x3f4] ss:$8 sps:$4 sm:$0xff]  }
 0x3f5   :  { %6888 = vmatpush1.bf16.msra.mxu0 %v8229_v61  ;;  %v5707_v61 = vadd.f32 %v5706_v3, %v5664_v44  ;;  %v8309_v3 = vld [vmem:[#allocation14 + $0x3c4] ss:$8 sps:$4 sm:$0xff]   ;;  %v8318_v44 = vld [vmem:[#allocation14 + $0x394] ss:$8 sps:$4 sm:$0xff]  }
 0x3f6   :  { %6889 = vmatprep.subr.bf16.mxu0 %v8237_v4  ;;  %v5749_v4 = vpop.f32.mrf.mxu0 }
 0x3f7   :  { %6847 = vmatpush1.bf16.msra.mxu1 %v8208_v60 }
 0x3f8   :  { %6848 = vmatprep.subr.bf16.mxu1 %v8216_v62  ;;  %v5748_v62 = vadd.f32 %v5747_v56, %v5705_v52  ;;  %v8313_v56 = vld [vmem:[#allocation14 + $0x3a0] ss:$8 sps:$4 sm:$0xff]   ;;  %v8316_v52 = vld [vmem:[#allocation14 + $0x390] ss:$8 sps:$4 sm:$0xff]  }
 0x3f9   :  { %6890 = vmatpush1.bf16.msra.mxu0 %v8235_v40  ;;  %v5709_v40 = vadd.f32 %v5708_v26, %v5666_v39  ;;  %v8322_v26 = vld [vmem:[#allocation17 + $0x78] sm:$0xff]   ;;  %v8324_v39 = vld [vmem:[#allocation17 + $0x70] sm:$0xff]  }
 0x3fa   :  { %6891 = vmatprep.subr.bf16.mxu0 %v8243_v6  ;;  %v8277_v6 = vld [vmem:[#allocation14 + $0x360] ss:$8 sps:$4 sm:$0xff]  }
 0x3fb   :  { %6849 = vmatpush2.bf16.msra.mxu1 %v8214_v2  ;;  %v5746_v2 = vadd.f32 %v5745_v10, %v5703_v50  ;;  %v8301_v10 = vld [vmem:[#allocation14 + $0x3e0] ss:$8 sps:$4 sm:$0xff]  }
 0x3fc   :  { %6850 = vmatprep.subr.bf16.mxu1 %v8222_v9  ;;  %v8319_v50 = vld [vmem:[#allocation14 + $0x380] ss:$8 sps:$4 sm:$0xff]  }
 0x3fd   :  { %6892 = vmatpush2.bf16.msra.mxu0 %v8241_v5  ;;  %v8282_v5 = vld [vmem:[#allocation14 + $0x354] ss:$8 sps:$4 sm:$0xff]  }
 0x3fe   :  { %6893 = vmatprep.subr.bf16.mxu0 %v8249_v48  ;;  %v5750_v48 = vadd.f32 %v5749_v4, %v5707_v61  ;;  %v8325_v61 = vld [vmem:[#allocation17 + $0x30] sm:$0xff]   ;;  %v8326_v4 = vld [vmem:[#allocation17 + $0x68] sm:$0xff]  }
 0x3ff   :  { %6851 = vmatpush2.bf16.msra.mxu1 %v8220_v54 }
 0x400   :  { %6852 = vmatprep.subr.bf16.mxu1 %v8228_v1  ;;  %v5751_v1 = vpop.f32.mrf.mxu0 }
 0x401   :  { %6894 = vmatpush2.bf16.msra.mxu0 %v8247_v55 }
 0x402   :  { %6895 = vmatprep.subr.bf16.mxu0 %v8255_v31 }
 0x403   :  { %6853 = vmatpush2.bf16.msra.mxu1 %v8226_v7  ;;  %v5752_v7 = vadd.f32 %v5751_v1, %v5709_v40  ;;  %v8329_v40 = vld [vmem:[#allocation17 + $0x20] sm:$0xff]   ;;  %v2712_v1 = vrot.slane %v8947_v41, %v493_v37 }
 0x404   :  { %6854 = vmatprep.subr.bf16.mxu1 %v8234_v8 }
 0x405   :  { %6896 = vmatpush2.bf16.msra.mxu0 %v8253_v36  ;;  %v8280_v36 = vld [vmem:[#allocation14 + $0x350] ss:$8 sps:$4 sm:$0xff]  }
 0x406   :  { %6897 = vmatprep.subr.bf16.mxu0 %v8261_v27 }
 0x407   :  { %6855 = vmatpush2.bf16.msra.mxu1 %v8232_v12 }
 0x408   :  { %6856 = vmatprep.subr.bf16.mxu1 %v8240_v15 }
 0x409   :  { %6898 = vmatpush2.bf16.msra.mxu0 %v8259_v58 }
 0x40a   :  { %6899 = vmatprep.subr.bf16.mxu0 %v8264_v16 }
 0x40b   :  { %6857 = vmatpush2.bf16.msra.mxu1 %v8238_v20  ;;  %v8283_v20 = vld [vmem:[#allocation14 + $0x340] ss:$8 sps:$4 sm:$0xff]  }
 0x40c   :  { %6858 = vmatprep.subr.bf16.mxu1 %v8246_v0  ;;  %v8288_v0 = vld [vmem:[#allocation14 + $0x334] ss:$8 sps:$4 sm:$0xff]  }
 0x40d   :  { %6900 = vmatpush2.bf16.msra.mxu0 %v8262_v33 }
 0x40e   :  { %6901 = vmatprep.subr.bf16.mxu0 %v8267_v24 }
 0x40f   :  { %6859 = vmatpush2.bf16.msra.mxu1 %v8244_v45 }
 0x410   :  { %6860 = vmatprep.subr.bf16.mxu1 %v8252_v25 }
 0x411   :  { %6902 = vmatpush2.bf16.msra.mxu0 %v8265_v43  ;;  %v8291_v43 = vld [vmem:[#allocation14 + $0x324] ss:$8 sps:$4 sm:$0xff]  }
 0x412   :  { %6903 = vmatprep.subr.bf16.mxu0 %v8270_v63  ;;  %v8289_v63 = vld [vmem:[#allocation14 + $0x320] ss:$8 sps:$4 sm:$0xff]  }
 0x413   :  { %6861 = vmatpush2.bf16.msra.mxu1 %v8250_v32  ;;  %v8294_v32 = vld [vmem:[#allocation14 + $0x314] ss:$8 sps:$4 sm:$0xff]  }
 0x414   :  { %6862 = vmatprep.subr.bf16.mxu1 %v8258_v38  ;;  %v8295_v38 = vld [vmem:[#allocation14 + $0x300] ss:$8 sps:$4 sm:$0xff]  }
 0x415   :  { %6904 = vmatpush2.bf16.msra.mxu0 %v8268_v18  ;;  %v8298_v18 = vld [vmem:[#allocation14 + $0x3f0] ss:$8 sps:$4 sm:$0xff]  }
 0x416   :  { %6905 = vmatprep.subr.bf16.mxu0 %v8273_v30  ;;  %v8306_v30 = vld [vmem:[#allocation14 + $0x3d4] ss:$8 sps:$4 sm:$0xff]  }
 0x417   :  { %6863 = vmatpush2.bf16.msra.mxu1 %v8256_v49  ;;  %v8304_v49 = vld [vmem:[#allocation14 + $0x3d0] ss:$8 sps:$4 sm:$0xff]  }
 0x418   :  { %6918 = vmatprep.subr.bf16.mxu1 %v8276_v51  ;;  %v8307_v51 = vld [vmem:[#allocation14 + $0x3c0] ss:$8 sps:$4 sm:$0xff]  }
 0x419   :  { %6906 = vmatpush2.bf16.msra.mxu0 %v8271_v21  ;;  %v8310_v21 = vld [vmem:[#allocation14 + $0x3b0] ss:$8 sps:$4 sm:$0xff]  }
 0x41a   :  { %v5788_v60 = vpop.f32.mrf.mxu1  ;;  %6865 = vmatmul.mubr.bf16.vlgmr.msra.gmra.mxu1 %v8934_v46  ;;  %v8285_v46 = vld [vmem:[#allocation14 + $0x344] ss:$8 sps:$4 sm:$0xff]   ;;  %8087 = vmatprep.subr.bf16.mxu0 %v8322_v26 }
 0x41b   :  { %6919 = vmatpush1.bf16.msra.mxu1 %v8274_v53  ;;  %v5789_v55 = vadd.f32 %v5788_v60, %v5746_v2  ;;  %v8321_v53 = vld [vmem:[#allocation14 + $0x384] ss:$8 sps:$4 sm:$0xff]  }
 0x41c   :  { %v5790_v9 = vpop.f32.mrf.mxu1  ;;  %6920 = vmatprep.subr.bf16.mxu1 %v8279_v59  ;;  %v8323_v59 = vld [vmem:[#allocation17 + $0x38] sm:$0xff]   ;;  %v8327_v60 = vld [vmem:[#allocation17 + $0x28] sm:$0xff]  }
 0x41d   :  { %v5791_v54 = vadd.f32 %v5790_v9, %v5748_v62  ;;  %v5973_v58 = vmul.f32 0.1, %v5789_v55  ;;  %v8328_v62 = vld [vmem:[#allocation17 + $0x60] sm:$0xff]  }
 0x41e   :  { %v5792_v31 = vpop.f32.mrf.mxu1 }
 0x41f   :  { %v5793_v8 = vadd.f32 %v5792_v31, %v5750_v48  ;;  %6921 = vmatpush1.bf16.msra.mxu1 %v8277_v6  ;;  %v5974_v12 = vmul.f32 0.1, %v5791_v54  ;;  %v5989_v45 = vmax.f32 %v5789_v55, %v5973_v58  ;;  %v5831_v6 = vpop.f32.mrf.mxu0  ;;  %v2708_v55 = vrot.slane %v8947_v41, %v489_v34 }
 0x420   :  { %v5794_v27 = vpop.f32.mrf.mxu1  ;;  %6922 = vmatprep.subr.bf16.mxu1 %v8282_v5 }
 0x421   :  { %v5981_v14 = vmul.f32 0.1, %v5793_v8  ;;  %v5795_v15 = vadd.f32 %v5794_v27, %v5752_v7  ;;  %v5990_v33 = vmax.f32 %v5791_v54, %v5974_v12  ;;  %v5833_v2 = vpop.f32.mrf.mxu0 }
 0x423   :  { %v5982_v16 = vmul.f32 0.1, %v5795_v15  ;;  %6923 = vmatpush1.bf16.msra.mxu1 %v8280_v36  ;;  %v5997_v23 = vmax.f32 %v5793_v8, %v5981_v14  ;;  %v5835_v9 = vpop.f32.mrf.mxu0  ;;  %v5834_v8 = vadd.f32 %v5833_v2, %v2712_v1  ;;  %v5832_v36 = vadd.f32 %v5831_v6, %v2708_v55 }
 0x424   :  { %6924 = vmatprep.subr.bf16.mxu1 %v8285_v46  ;;  %v5836_v46 = vadd.f32 %v5835_v9, %v2708_v55 }
 0x425   :  { %v5998_v24 = vmax.f32 %v5795_v15, %v5982_v16  ;;  %v6005_v25 = vpack.c.bf16 %v5997_v23, %v5989_v45  ;;  %v5837_v48 = vpop.f32.mrf.mxu0 }
 0x426   :  { %v5838_v58 = vadd.f32 %v5837_v48, %v2712_v1 }
 0x427   :  { %v6006_v17 = vpack.c.bf16 %v5998_v24, %v5990_v33  ;;  %6925 = vmatpush1.bf16.msra.mxu1 %v8283_v20 }
 0x428   :  { %6926 = vmatprep.subr.bf16.mxu1 %v8288_v0 }
 0x429   :  { %6907 = vmatprep.mubr.bf16.mxu0 %v6006_v17 }
 0x42a   :  { %6908 = vmatmul.mubr.bf16.vlgmr.msra.gmra.mxu0 %v6005_v25 }
 0x42b   :  { %6927 = vmatpush1.bf16.msra.mxu1 %v8286_v42  ;;  %8088 = vmatpush3.bf16.msra.mxu0 %v8323_v59 }
 0x42c   :  { %6928 = vmatprep.subr.bf16.mxu1 %v8291_v43  ;;  %8089 = vmatprep.subr.bf16.mxu0 %v8324_v39 }
 0x42f   :  { %6929 = vmatpush1.bf16.msra.mxu1 %v8289_v63  ;;  %8090 = vmatpush3.bf16.msra.mxu0 %v8325_v61 }
 0x430   :  { %6930 = vmatprep.subr.bf16.mxu1 %v8294_v32  ;;  %8091 = vmatprep.subr.bf16.mxu0 %v8326_v4 }
 0x433   :  { %6931 = vmatpush1.bf16.msra.mxu1 %v8292_v28  ;;  %8092 = vmatpush3.bf16.msra.mxu0 %v8327_v60  ;;  %v6137_v60 = vld [vmem:[#allocation16] sm:$0x3] }
 0x434   :  { %6932 = vmatprep.subr.bf16.mxu1 %v8297_v35  ;;  %8093 = vmatprep.subr.bf16.mxu0 %v8328_v62  ;;  %v6146_v62 = vrot.slane %v6137_v60, %v8749_v22 }
 0x437   :  { %6933 = vmatpush1.bf16.msra.mxu1 %v8295_v38  ;;  %8094 = vmatpush3.bf16.msra.mxu0 %v8329_v40  ;;  %v6142_v40 = vrot.slane %v6137_v60, %v8769_v11 }
 0x438   :  { %6934 = vmatprep.subr.bf16.mxu1 %v8300_v47 }
 0x43b   :  { %6935 = vmatpush2.bf16.msra.mxu1 %v8298_v18 }
 0x43c   :  { %6936 = vmatprep.subr.bf16.mxu1 %v8303_v57 }
 0x43f   :  { %6937 = vmatpush2.bf16.msra.mxu1 %v8301_v10 }
 0x440   :  { %6938 = vmatprep.subr.bf16.mxu1 %v8306_v30 }
 0x443   :  { %6939 = vmatpush2.bf16.msra.mxu1 %v8304_v49 }
 0x444   :  { %6940 = vmatprep.subr.bf16.mxu1 %v8309_v3  ;;  %v8330_v3 = vld [vmem:[#allocation17 + $0x58] sm:$0xff]  }
 0x445   :  { %8095 = vmatprep.subr.bf16.mxu0 %v8330_v3 }
 0x447   :  { %6941 = vmatpush2.bf16.msra.mxu1 %v8307_v51  ;;  %v8331_v51 = vld [vmem:[#allocation17 + $0x18] sm:$0xff]  }
 0x448   :  { %6942 = vmatprep.subr.bf16.mxu1 %v8312_v13  ;;  %8096 = vmatpush3.bf16.msra.mxu0 %v8331_v51  ;;  %v8332_v13 = vld [vmem:[#allocation17 + $0x50] sm:$0xff]  }
 0x449   :  { %8097 = vmatprep.subr.bf16.mxu0 %v8332_v13 }
 0x44b   :  { %6943 = vmatpush2.bf16.msra.mxu1 %v8310_v21  ;;  %v8333_v21 = vld [vmem:[#allocation17 + $0x10] sm:$0xff]  }
 0x44c   :  { %6944 = vmatprep.subr.bf16.mxu1 %v8315_v29  ;;  %8098 = vmatpush3.bf16.msra.mxu0 %v8333_v21  ;;  %v8334_v29 = vld [vmem:[#allocation17 + $0x48] sm:$0xff]  }
 0x44d   :  { %8099 = vmatprep.subr.bf16.mxu0 %v8334_v29 }
 0x44f   :  { %6945 = vmatpush2.bf16.msra.mxu1 %v8313_v56  ;;  %v8335_v56 = vld [vmem:[#allocation17 + $0x8] sm:$0xff]  }
 0x450   :  { %6946 = vmatprep.subr.bf16.mxu1 %v8318_v44  ;;  %8100 = vmatpush3.bf16.msra.mxu0 %v8335_v56  ;;  %v8336_v44 = vld [vmem:[#allocation17 + $0x40] sm:$0xff]  }
 0x451   :  { %8101 = vmatprep.subr.bf16.mxu0 %v8336_v44 }
 0x453   :  { %6947 = vmatpush2.bf16.msra.mxu1 %v8316_v52  ;;  %v8337_v52 = vld [vmem:[#allocation17] sm:$0xff]  }
 0x454   :  { %6948 = vmatprep.subr.bf16.mxu1 %v8321_v53  ;;  %8102 = vmatpush3.bf16.msra.mxu0 %v8337_v52 }
 0x457   :  { %6949 = vmatpush2.bf16.msra.mxu1 %v8319_v50 }
 0x45a   :  { %v5874_v5 = vpop.f32.mrf.mxu1 }
 0x45b   :  { %v5917_v31 = vpop.f32.mrf.mxu0  ;;  %v5875_v14 = vadd.f32 %v5874_v5, %v5832_v36 }
 0x45c   :  { %v5876_v54 = vpop.f32.mrf.mxu1 }
 0x45d   :  { %v5919_v27 = vpop.f32.mrf.mxu0  ;;  %v5877_v12 = vadd.f32 %v5876_v54, %v5834_v8  ;;  %v5918_v37 = vadd.f32 %v5917_v31, %v5875_v14 }
 0x45e   :  { %v5878_v7 = vpop.f32.mrf.mxu1 }
 0x45f   :  { %v5879_v16 = vadd.f32 %v5878_v7, %v5836_v46  ;;  %v5921_v20 = vpop.f32.mrf.mxu0  ;;  %v5920_v0 = vadd.f32 %v5919_v27, %v5877_v12 }
 0x460   :  { %v5880_v15 = vpop.f32.mrf.mxu1 }
 0x461   :  { %v5881_v33 = vadd.f32 %v5880_v15, %v5838_v58  ;;  %v5922_v19 = vadd.f32 %v5921_v20, %v5879_v16  ;;  %v5923_v34 = vpop.f32.mrf.mxu0 }
 0x463   :  { %v5924_v42 = vadd.f32 %v5923_v34, %v5881_v33 }
 0x49a   :  { %v5960_v23 = vpop.f32.mrf.mxu1 }
 0x49b   :  { %v5961_v41 = vadd.f32 %v5960_v23, %v5918_v37  ;;  %v6823_v53 = vpop.f32.mrf.mxu0 }
 0x49c   :  { %v5962_v24 = vpop.f32.mrf.mxu1  ;;  %v6824_v5 = vadd.f32 %v6823_v53, %v6142_v40 }
 0x49d   :  { %v5963_v45 = vadd.f32 %v5962_v24, %v5920_v0  ;;  %v5975_v35 = vmul.f32 0.1, %v5961_v41  ;;  %v6825_v50 = vpop.f32.mrf.mxu0 }
 0x49e   :  { %v5964_v17 = vpop.f32.mrf.mxu1  ;;  %v6826_v9 = vadd.f32 %v6825_v50, %v6146_v62 }
 0x49f   :  { %v5965_v25 = vadd.f32 %v5964_v17, %v5922_v19  ;;  %v5976_v63 = vmul.f32 0.1, %v5963_v45  ;;  %v5991_v10 = vmax.f32 %v5961_v41, %v5975_v35  ;;  %v6827_v26 = vpop.f32.mrf.mxu0 }
 0x4a0   :  { %v5966_v43 = vpop.f32.mrf.mxu1  ;;  %v6828_v1 = vadd.f32 %v6827_v26, %v6142_v40 }
 0x4a1   :  { %v5983_v32 = vmul.f32 0.1, %v5965_v25  ;;  %v5967_v28 = vadd.f32 %v5966_v43, %v5924_v42  ;;  %v5992_v18 = vmax.f32 %v5963_v45, %v5976_v63  ;;  %v6829_v39 = vpop.f32.mrf.mxu0 }
 0x4a2   :  { %v6830_v8 = vadd.f32 %v6829_v39, %v6146_v62 }
 0x4a3   :  { %v5984_v38 = vmul.f32 0.1, %v5967_v28  ;;  %v5999_v47 = vmax.f32 %v5965_v25, %v5983_v32  ;;  %v8070_v32 = vld [vmem:[#allocation19] ss:$0 sm:$0xff] }
 0x4a5   :  { %v6000_v57 = vmax.f32 %v5967_v28, %v5984_v38  ;;  %v6007_v49 = vpack.c.bf16 %v5999_v47, %v5991_v10 }
 0x4a7   :  { %v6008_v30 = vpack.c.bf16 %v6000_v57, %v5992_v18 }
 0x4a9   :  { %6950 = vmatprep.mubr.bf16.mxu1 %v6008_v30 }
 0x4aa   :  { %6951 = vmatmul.mubr.bf16.vlgmr.msra.gmra.mxu1 %v6007_v49 }
 0x4da   :  { %v6866_v59 = vpop.f32.mrf.mxu1 }
 0x4db   :  { %v6867_v31 = vadd.f32 %v6866_v59, %v6824_v5 }
 0x4dc   :  { %v6868_v61 = vpop.f32.mrf.mxu1 }
 0x4dd   :  { %v6869_v55 = vadd.f32 %v6868_v61, %v6826_v9 }
 0x4de   :  { %v6870_v6 = vpop.f32.mrf.mxu1 }
 0x4df   :  { %v6871_v36 = vadd.f32 %v6870_v6, %v6828_v1 }
 0x4e0   :  { %v6872_v48 = vpop.f32.mrf.mxu1 }
 0x4e1   :  { %v6873_v15 = vadd.f32 %v6872_v48, %v6830_v8 }
 0x4ea   :  { %v6909_v4 = vpop.f32.mrf.mxu0 }
 0x4eb   :  { %v6910_v46 = vadd.f32 %v6909_v4, %v6867_v31 }
 0x4ec   :  { %v6911_v2 = vpop.f32.mrf.mxu0 }
 0x4ed   :  { %v6912_v27 = vadd.f32 %v6911_v2, %v6869_v55 }
 0x4ee   :  { %v6913_v54 = vpop.f32.mrf.mxu0 }
 0x4ef   :  { %v6914_v22 = vadd.f32 %v6913_v54, %v6871_v36 }
 0x4f0   :  { %v6915_v12 = vpop.f32.mrf.mxu0 }
 0x4f1   :  { %v6916_v20 = vadd.f32 %v6915_v12, %v6873_v15 }
 0x56a   :  { %v6952_v7 = vpop.f32.mrf.mxu1 }
 0x56b   :  { %v6953_v11 = vadd.f32 %v6952_v7, %v6910_v46 }
 0x56c   :  { %v6954_v14 = vpop.f32.mrf.mxu1 }
 0x56d   :  { %v6955_v58 = vadd.f32 %v6954_v14, %v6912_v27  ;;  %v6961_v19 = vmul.f32 0.1, %v6953_v11 }
 0x56e   :  { %v6956_v16 = vpop.f32.mrf.mxu1 }
 0x56f   :  { %v6957_v23 = vadd.f32 %v6956_v16, %v6914_v22  ;;  %v6962_v33 = vmul.f32 0.1, %v6955_v58  ;;  %v6965_v42 = vmax.f32 %v6953_v11, %v6961_v19 }
 0x570   :  { %v6958_v0 = vpop.f32.mrf.mxu1 }
 0x571   :  { %v6963_v37 = vmul.f32 0.1, %v6957_v23  ;;  %v6959_v24 = vadd.f32 %v6958_v0, %v6916_v20  ;;  %v6966_v41 = vmax.f32 %v6955_v58, %v6962_v33 }
 0x573   :  { %v6964_v45 = vmul.f32 0.1, %v6959_v24  ;;  %v6967_v34 = vmax.f32 %v6957_v23, %v6963_v37 }
 0x575   :  { %v6968_v17 = vmax.f32 %v6959_v24, %v6964_v45  ;;  %v6969_v43 = vpack.c.bf16 %v6967_v34, %v6965_v42 }
 0x577   :  { %v6970_v25 = vpack.c.bf16 %v6968_v17, %v6966_v41 }
 0x579   :  { %7138 = vmatprep.mubr.bf16.mxu0 %v6970_v25 }
 0x57a   :  { %7139 = vmatmul.mubr.bf16.vlgmr.msra.gmra.mxu0 %v6969_v43 }
 0x63a   :  { %v8103_v63 = vpop.f32.mrf.mxu0 }
 0x63c   :  { %v8104_v28 = vpop.f32.mrf.mxu0 }
 0x63d   :  { %v8105_v35 = vadd.f32 %v8104_v28, %v8103_v63 }
 0x63e   :  { %v8106_v38 = vpop.f32.mrf.mxu0 }
 0x63f   :  { %v7141_v47 = vadd.f32 %v8105_v35, %v8070_v32 }
 0x640   :  { %v8107_v18 = vpop.f32.mrf.mxu0 }
 0x641   :  { %7147 = vst [vmem:[#allocation20] sm:$0xff] %v7141_v47  ;;  %v8108_v57 = vadd.f32 %v8107_v18, %v8106_v38 }
 0x643   :  { %v7144_v10 = vadd.f32 %v8108_v57, %v8070_v32 }
 0x645   :  { %7148 = vst [vmem:[#allocation20 + $0x8] sm:$0xff] %v7144_v10 }
 0x646   :  { %8575 = shalt.err (!%p8572_p3)
}
 0x647   :  { %7160 = dma.vmem_to_hbm [thread:$0]  %s7155_s10, 256, %s8981_s11, [#allocation4], %s8606_s3, %s8606_s3, %s8607_s19  }
 0x648   :  { %8596 = dma.done.wait [#allocation4], 256  }
 0x649   :  { %8597 = vsyncadd [#allocation4], 4294967040 }
 0x64a   :  { %7164 = vsyncpa [#allocation3], 1 }
 0x64b   :  { %7165 = vsyncpa [#allocation6], 1 }
 0x64c   :  { %7166 = vsyncpa [#allocation9], 1 }
 0x64d   :  { %7167 = vsyncpa [#allocation12], 1 }
 0x64e   :  { %7168 = vsyncpa [#allocation15], 1 }
 0x64f   :  { %7169 = vsyncpa [#allocation18], 1 }
 0x650   :  { %7170 = vsyncpa [#allocation4], 1 }

// kernel: tpu_custom_call.1
= control target key start
LH: loop header
LB: loop body
LE: loop exit
PB: predicated region body
PF: predicated region fallthrough
CT: control target
= control target key end

     0   :  { %16 = vsyncpa [#allocation3], 0  ;;  %s8970_s0 = inlined_call_operand.hbm [shape: bf16[16,128], index: 0, kind: input, shape index: {}]   ;;  %s8971_s1 = inlined_call_operand.hbm [shape: bf16[16,128], index: 1, kind: input, shape index: {}]   ;;  %s8972_s2 = inlined_call_operand.hbm [shape: bf16[16,128], index: 2, kind: input, shape index: {}]   ;;  %s8973_s3 = inlined_call_operand.hbm [shape: bf16[512,1024], index: 3, kind: input, shape index: {}]   ;;  %s8974_s4 = inlined_call_operand.hbm [shape: f32[1,1024], index: 4, kind: input, shape index: {}]   ;;  %s8975_s5 = inlined_call_operand.hbm [shape: bf16[1024,1024], index: 5, kind: input, shape index: {}]   ;;  %s8976_s6 = inlined_call_operand.hbm [shape: f32[1,1024], index: 6, kind: input, shape index: {}]   ;;  %s8977_s7 = inlined_call_operand.hbm [shape: bf16[1024,256], index: 7, kind: input, shape index: {}]   ;;  %s8978_s8 = inlined_call_operand.hbm [shape: f32[1,256], index: 8, kind: input, shape index: {}]   ;;  %s8979_s9 = inlined_call_operand.hbm [shape: bf16[256,128], index: 9, kind: input, shape index: {}]   ;;  %s8980_s10 = inlined_call_operand.hbm [shape: f32[1,128], index: 10, kind: input, shape index: {}]   ;;  %s8981_s11 = inlined_call_operand.hbm [shape: f32[16,128], index: 11, kind: output, shape index: {}]  }
   0x1   :  { %17 = vsyncpa [#allocation6], 0 }
   0x2   :  { %18 = vsyncpa [#allocation9], 0 }
   0x3   :  { %19 = vsyncpa [#allocation12], 0 }
   0x4   :  { %20 = vsyncpa [#allocation15], 0 }
   0x5   :  { %21 = vsyncpa [#allocation18], 0 }
   0x6   :  { %22 = vsyncpa [#allocation4], 0  ;;  %s8598_s17 = smov [#allocation5]   ;;  %s8599_s19 = smov [#allocation8]  }
   0x7   :  { %s40_s18 = sshll.u32 %s8598_s17, 4  ;;  %s64_s20 = sshll.u32 %s8599_s19, 4  ;;  %s41_s18 = int_to_ptr.vmem [resolvable:$true] %s40_s18  ;;  %s65_s20 = int_to_ptr.vmem [resolvable:$true] %s64_s20 }
   0x8   :  { %s8352_s21 = scalar_lea.vmem %s41_s18, 128  ;;  %p8357_p1 = scmp.lt.s32.totalorder %s41_s18, %s41_s18 }
   0x9   :  { %p8353_p0 = scmp.ne.s32.totalorder %s41_s18, %s8352_s21  ;;  %p8358_p2 = scmp.lt.s32.totalorder %s8352_s21, %s8352_s21 }
   0xb   :  { %p8359_p3 = por %p8358_p2, %p8357_p1 }
   0xd   :  { %p8360_p4 = pnand %p8359_p3, %p8353_p0 }
   0xf   :  { %8363 = shalt.err (!%p8360_p4)
}
  0x10   :  { %s8600_s22 = smov 64   ;;  %s8601_s23 = smov 4  }
  0x11   :  { %46 = dma.hbm_to_vmem [thread:$0]  %s8971_s1, 128, %s41_s18, [#allocation6], %s8600_s22, %s8600_s22, %s8601_s23  }
  0x12   :  { %s8372_s26 = scalar_lea.vmem %s65_s20, 32768  ;;  %p8377_p6 = scmp.lt.s32.totalorder %s65_s20, %s65_s20 }
  0x13   :  { %p8373_p5 = scmp.ne.s32.totalorder %s65_s20, %s8372_s26  ;;  %p8378_p7 = scmp.lt.s32.totalorder %s8372_s26, %s8372_s26 }
  0x15   :  { %p8379_p8 = por %p8378_p7, %p8377_p6 }
  0x17   :  { %p8380_p9 = pnand %p8379_p8, %p8373_p5 }
  0x19   :  { %8383 = shalt.err (!%p8380_p9)
}
  0x1a   :  { %s8602_s27 = smov 512   ;;  %s8603_s28 = smov 32  }
  0x1b   :  { %70 = dma.hbm_to_vmem [thread:$0]  %s8973_s3, 32768, %s65_s20, [#allocation9], %s8602_s27, %s8602_s27, %s8603_s28  }
  0x1c   :  { %s8604_s12 = smov [#allocation11]   ;;  %s8605_s14 = smov [#allocation14]  }
  0x1d   :  { %s86_s13 = sshll.u32 %s8604_s12, 4  ;;  %s108_s15 = sshll.u32 %s8605_s14, 4  ;;  %s87_s13 = int_to_ptr.vmem [resolvable:$true] %s86_s13  ;;  %s109_s15 = int_to_ptr.vmem [resolvable:$true] %s108_s15 }
  0x1e   :  { %s8392_s1 = scalar_lea.vmem %s87_s13, 65536  ;;  %p8397_p11 = scmp.lt.s32.totalorder %s87_s13, %s87_s13 }
  0x1f   :  { %p8393_p10 = scmp.ne.s32.totalorder %s87_s13, %s8392_s1  ;;  %p8398_p12 = scmp.lt.s32.totalorder %s8392_s1, %s8392_s1 }
  0x21   :  { %p8399_p13 = por %p8398_p12, %p8397_p11 }
  0x23   :  { %p8400_p0 = pnand %p8399_p13, %p8393_p10 }
  0x25   :  { %8403 = shalt.err (!%p8400_p0)
}
  0x26   :  { %92 = dma.hbm_to_vmem [thread:$0]  %s8975_s5, 65536, %s87_s13, [#allocation12], %s8602_s27, %s8602_s27, %s8603_s28  }
  0x27   :  { %s8412_s18 = scalar_lea.vmem %s109_s15, 16384  ;;  %p8417_p2 = scmp.lt.s32.totalorder %s109_s15, %s109_s15 }
  0x28   :  { %p8413_p1 = scmp.ne.s32.totalorder %s109_s15, %s8412_s18  ;;  %p8418_p3 = scmp.lt.s32.totalorder %s8412_s18, %s8412_s18 }
  0x2a   :  { %p8419_p4 = por %p8418_p3, %p8417_p2 }
  0x2c   :  { %p8420_p5 = pnand %p8419_p4, %p8413_p1 }
  0x2e   :  { %8423 = shalt.err (!%p8420_p5)
}
  0x2f   :  { %s8606_s3 = smov 128   ;;  %s8607_s19 = smov 8  }
  0x30   :  { %114 = dma.hbm_to_vmem [thread:$0]  %s8977_s7, 16384, %s109_s15, [#allocation15], %s8606_s3, %s8606_s3, %s8607_s19  }
  0x31   :  { %s8608_s24 = smov [#allocation17]   ;;  %s8609_s26 = smov [#allocation2]  }
  0x32   :  { %s130_s25 = sshll.u32 %s8608_s24, 4  ;;  %s28_s5 = sshll.u32 %s8609_s26, 4  ;;  %s131_s25 = int_to_ptr.vmem [resolvable:$true] %s130_s25  ;;  %s29_s5 = int_to_ptr.vmem [resolvable:$true] %s28_s5 }
  0x33   :  { %s8432_s27 = scalar_lea.vmem %s131_s25, 2048  ;;  %p8437_p7 = scmp.lt.s32.totalorder %s131_s25, %s131_s25 }
  0x34   :  { %p8433_p6 = scmp.ne.s32.totalorder %s131_s25, %s8432_s27  ;;  %p8438_p8 = scmp.lt.s32.totalorder %s8432_s27, %s8432_s27 }
  0x36   :  { %p8439_p9 = por %p8438_p8, %p8437_p7 }
  0x38   :  { %p8440_p10 = pnand %p8439_p9, %p8433_p6 }
  0x3a   :  { %8443 = shalt.err (!%p8440_p10)
}
  0x3b   :  { %136 = dma.hbm_to_vmem [thread:$0]  %s8979_s9, 2048, %s131_s25, [#allocation18], %s8600_s22, %s8600_s22, %s8601_s23  }
  0x3c   :  { %s8452_s7 = scalar_lea.vmem %s29_s5, 128  ;;  %p8457_p12 = scmp.lt.s32.totalorder %s29_s5, %s29_s5 }
  0x3d   :  { %p8453_p11 = scmp.ne.s32.totalorder %s29_s5, %s8452_s7  ;;  %p8458_p13 = scmp.lt.s32.totalorder %s8452_s7, %s8452_s7 }
  0x3f   :  { %p8459_p0 = por %p8458_p13, %p8457_p12 }
  0x41   :  { %p8460_p1 = pnand %p8459_p0, %p8453_p11 }
  0x43   :  { %8463 = shalt.err (!%p8460_p1)
}
  0x44   :  { %34 = dma.hbm_to_vmem [thread:$0]  %s8970_s0, 128, %s29_s5, [#allocation3], %s8600_s22, %s8600_s22, %s8601_s23  }
  0x45   :  { %s8610_s13 = smov [#allocation7]   ;;  %s8611_s15 = smov [#allocation10]  }
  0x46   :  { %s52_s14 = sshll.u32 %s8610_s13, 4  ;;  %s77_s1 = sshll.u32 %s8611_s15, 4  ;;  %s53_s14 = int_to_ptr.vmem [resolvable:$true] %s52_s14  ;;  %s78_s1 = int_to_ptr.vmem [resolvable:$true] %s77_s1 }
  0x47   :  { %s8472_s9 = scalar_lea.vmem %s53_s14, 128  ;;  %p8477_p3 = scmp.lt.s32.totalorder %s53_s14, %s53_s14 }
  0x48   :  { %p8473_p2 = scmp.ne.s32.totalorder %s53_s14, %s8472_s9  ;;  %p8478_p4 = scmp.lt.s32.totalorder %s8472_s9, %s8472_s9 }
  0x4a   :  { %p8479_p5 = por %p8478_p4, %p8477_p3 }
  0x4c   :  { %p8480_p6 = pnand %p8479_p5, %p8473_p2 }
  0x4e   :  { %8483 = shalt.err (!%p8480_p6)
}
  0x4f   :  { %58 = dma.hbm_to_vmem [thread:$0]  %s8972_s2, 128, %s53_s14, [#allocation6], %s8600_s22, %s8600_s22, %s8601_s23  }
  0x50   :  { %s8492_s0 = scalar_lea.vmem %s78_s1, 128  ;;  %p8497_p8 = scmp.lt.s32.totalorder %s78_s1, %s78_s1 }
  0x51   :  { %p8493_p7 = scmp.ne.s32.totalorder %s78_s1, %s8492_s0  ;;  %p8498_p9 = scmp.lt.s32.totalorder %s8492_s0, %s8492_s0 }
  0x53   :  { %p8499_p10 = por %p8498_p9, %p8497_p8 }
  0x55   :  { %p8500_p11 = pnand %p8499_p10, %p8493_p7 }
  0x57   :  { %8503 = shalt.err (!%p8500_p11)
}
  0x58   :  { %80 = dma.hbm_to_vmem [thread:$0]  %s8974_s4, 128, %s78_s1, [#allocation9]  }
  0x59   :  { %s8612_s21 = smov [#allocation13]   ;;  %s8613_s25 = smov [#allocation16]  }
  0x5a   :  { %s99_s24 = sshll.u32 %s8612_s21, 4  ;;  %s121_s26 = sshll.u32 %s8613_s25, 4  ;;  %s100_s24 = int_to_ptr.vmem [resolvable:$true] %s99_s24  ;;  %s122_s26 = int_to_ptr.vmem [resolvable:$true] %s121_s26 }
  0x5b   :  { %s8512_s5 = scalar_lea.vmem %s100_s24, 128  ;;  %p8517_p13 = scmp.lt.s32.totalorder %s100_s24, %s100_s24 }
  0x5c   :  { %p8513_p12 = scmp.ne.s32.totalorder %s100_s24, %s8512_s5  ;;  %p8518_p0 = scmp.lt.s32.totalorder %s8512_s5, %s8512_s5 }
  0x5e   :  { %p8519_p1 = por %p8518_p0, %p8517_p13 }
  0x60   :  { %p8520_p2 = pnand %p8519_p1, %p8513_p12 }
  0x62   :  { %8523 = shalt.err (!%p8520_p2)
}
  0x63   :  { %102 = dma.hbm_to_vmem [thread:$0]  %s8976_s6, 128, %s100_s24, [#allocation12]  }
  0x64   :  { %s8532_s23 = scalar_lea.vmem %s122_s26, 32  ;;  %p8537_p4 = scmp.lt.s32.totalorder %s122_s26, %s122_s26 }
  0x65   :  { %p8533_p3 = scmp.ne.s32.totalorder %s122_s26, %s8532_s23  ;;  %p8538_p5 = scmp.lt.s32.totalorder %s8532_s23, %s8532_s23 }
  0x67   :  { %p8539_p6 = por %p8538_p5, %p8537_p4 }
  0x69   :  { %p8540_p7 = pnand %p8539_p6, %p8533_p3 }
  0x6b   :  { %8543 = shalt.err (!%p8540_p7)
}
  0x6c   :  { %124 = dma.hbm_to_vmem [thread:$0]  %s8978_s8, 32, %s122_s26, [#allocation15]  }
  0x6d   :  { %s8614_s28 = smov [#allocation19]  }
  0x6e   :  { %s143_s29 = sshll.u32 %s8614_s28, 4  ;;  %s144_s29 = int_to_ptr.vmem [resolvable:$true] %s143_s29 }
  0x6f   :  { %s8552_s7 = scalar_lea.vmem %s144_s29, 16  ;;  %s8556_s30 = scalar_lea.vmem %s144_s29, 32 }
  0x70   :  { %p8553_p8 = scmp.ne.s32.totalorder %s144_s29, %s8552_s7  ;;  %p8557_p9 = scmp.lt.s32.totalorder %s144_s29, %s144_s29 }
  0x71   :  { %p8558_p10 = scmp.lt.s32.totalorder %s8556_s30, %s8552_s7 }
  0x73   :  { %p8559_p11 = por %p8558_p10, %p8557_p9 }
  0x75   :  { %p8560_p12 = pnand %p8559_p11, %p8553_p8 }
  0x77   :  { %8563 = shalt.err (!%p8560_p12)
}
  0x78   :  { %146 = dma.hbm_to_vmem [thread:$0]  %s8980_s10, 16, %s144_s29, [#allocation18]  }
  0x79   :  { %8584 = dma.done.wait [#allocation3], 128  }
  0x7a   :  { %8585 = vsyncadd [#allocation3], 4294967168 }
  0x7b   :  { %8586 = dma.done.wait [#allocation6], 256  }
  0x7c   :  { %8587 = vsyncadd [#allocation6], 4294967040 }
  0x7d   :  { %8588 = dma.done.wait [#allocation9], 32896  }
  0x7e   :  { %8589 = vsyncadd [#allocation9], 4294934400 }
  0x7f   :  { %8590 = dma.done.wait [#allocation12], 65664  }
  0x80   :  { %8591 = vsyncadd [#allocation12], 4294901632 }
  0x81   :  { %8592 = dma.done.wait [#allocation15], 16416  }
  0x82   :  { %8593 = vsyncadd [#allocation15], 4294950880 }
  0x83   :  { %8594 = dma.done.wait [#allocation18], 2064  }
  0x84   :  { %8595 = vsyncadd [#allocation18], 4294965232  ;;  %v261_v0 = vld [vmem:[#allocation8 + $0x1c0] sm:$0xff]  ;;  %v8724_v57 = vld [vmem:[#allocation5] sm:$0xff]   ;;  %s8615_s8 = smov [#allocation20]  }
  0x85   :  { %v265_v1 = vld [vmem:[#allocation8 + $0x1e0] sm:$0xff]  ;;  %1815 = vmatprep.mubr.bf16.mxu0 %v8724_v57  ;;  %1858 = vmatprep.mubr.bf16.mxu1 %v8724_v57  ;;  %s7154_s10 = sshll.u32 %s8615_s8, 4  ;;  %s7155_s10 = int_to_ptr.vmem [resolvable:$true] %s7154_s10 }
  0x86   :  { %v389_v2 = vld [vmem:[#allocation8 + $0x5c0] sm:$0xff]  ;;  %v7231_v3 = vcombine.high %v261_v0, %v265_v1  ;;  %v7230_v5 = vcombine.low %v261_v0, %v265_v1  ;;  %s8564_s13 = scalar_lea.vmem %s7155_s10, 256  ;;  %p8569_p0 = scmp.lt.s32.totalorder %s7155_s10, %s7155_s10 }
  0x87   :  { %v393_v4 = vld [vmem:[#allocation8 + $0x5e0] sm:$0xff]  ;;  %p8565_p13 = scmp.ne.s32.totalorder %s7155_s10, %s8564_s13  ;;  %p8570_p1 = scmp.lt.s32.totalorder %s8564_s13, %s8564_s13 }
  0x88   :  { %v253_v6 = vld [vmem:[#allocation8 + $0x180] sm:$0xff]  ;;  %v7359_v8 = vcombine.high %v389_v2, %v393_v4  ;;  %v7358_v9 = vcombine.low %v389_v2, %v393_v4  ;;  %1783 = vmatprep.subr.bf16.mxu0 %v7231_v3 }
  0x89   :  { %v257_v7 = vld [vmem:[#allocation8 + $0x1a0] sm:$0xff]  ;;  %1784 = vmatpush1.bf16.msra.mxu0 %v7230_v5  ;;  %p8571_p2 = por %p8570_p1, %p8569_p0 }
  0x8a   :  { %v7223_v10 = vcombine.high %v253_v6, %v257_v7  ;;  %v381_v11 = vld [vmem:[#allocation8 + $0x580] sm:$0xff]  ;;  %1826 = vmatprep.subr.bf16.mxu1 %v7359_v8  ;;  %v7222_v18 = vcombine.low %v253_v6, %v257_v7 }
  0x8b   :  { %v385_v12 = vld [vmem:[#allocation8 + $0x5a0] sm:$0xff]  ;;  %1827 = vmatpush1.bf16.msra.mxu1 %v7358_v9  ;;  %p8572_p3 = pnand %p8571_p2, %p8565_p13 }
  0x8c   :  { %v245_v13 = vld [vmem:[#allocation8 + $0x140] sm:$0xff]  ;;  %v7351_v14 = vcombine.high %v381_v11, %v385_v12  ;;  %1785 = vmatprep.subr.bf16.mxu0 %v7223_v10  ;;  %v7350_v19 = vcombine.low %v381_v11, %v385_v12 }
  0x8d   :  { %v249_v15 = vld [vmem:[#allocation8 + $0x160] sm:$0xff]  ;;  %1786 = vmatpush1.bf16.msra.mxu0 %v7222_v18 }
  0x8e   :  { %v373_v16 = vld [vmem:[#allocation8 + $0x540] sm:$0xff]  ;;  %v7215_v20 = vcombine.high %v245_v13, %v249_v15  ;;  %1828 = vmatprep.subr.bf16.mxu1 %v7351_v14  ;;  %v7214_v26 = vcombine.low %v245_v13, %v249_v15 }
  0x8f   :  { %v377_v17 = vld [vmem:[#allocation8 + $0x560] sm:$0xff]  ;;  %1829 = vmatpush1.bf16.msra.mxu1 %v7350_v19 }
  0x90   :  { %v7343_v21 = vcombine.high %v373_v16, %v377_v17  ;;  %v237_v22 = vld [vmem:[#allocation8 + $0x100] sm:$0xff]  ;;  %1787 = vmatprep.subr.bf16.mxu0 %v7215_v20  ;;  %v7342_v27 = vcombine.low %v373_v16, %v377_v17 }
  0x91   :  { %v241_v23 = vld [vmem:[#allocation8 + $0x120] sm:$0xff]  ;;  %1788 = vmatpush1.bf16.msra.mxu0 %v7214_v26 }
  0x92   :  { %v365_v24 = vld [vmem:[#allocation8 + $0x500] sm:$0xff]  ;;  %v7207_v28 = vcombine.high %v237_v22, %v241_v23  ;;  %1830 = vmatprep.subr.bf16.mxu1 %v7343_v21  ;;  %v7206_v34 = vcombine.low %v237_v22, %v241_v23 }
  0x93   :  { %v369_v25 = vld [vmem:[#allocation8 + $0x520] sm:$0xff]  ;;  %1831 = vmatpush1.bf16.msra.mxu1 %v7342_v27 }
  0x94   :  { %v7335_v29 = vcombine.high %v365_v24, %v369_v25  ;;  %v229_v30 = vld [vmem:[#allocation8 + $0xc0] sm:$0xff]  ;;  %1789 = vmatprep.subr.bf16.mxu0 %v7207_v28  ;;  %v7334_v35 = vcombine.low %v365_v24, %v369_v25 }
  0x95   :  { %v233_v31 = vld [vmem:[#allocation8 + $0xe0] sm:$0xff]  ;;  %1790 = vmatpush1.bf16.msra.mxu0 %v7206_v34 }
  0x96   :  { %v357_v32 = vld [vmem:[#allocation8 + $0x4c0] sm:$0xff]  ;;  %v7199_v36 = vcombine.high %v229_v30, %v233_v31  ;;  %1832 = vmatprep.subr.bf16.mxu1 %v7335_v29  ;;  %v7198_v42 = vcombine.low %v229_v30, %v233_v31 }
  0x97   :  { %v361_v33 = vld [vmem:[#allocation8 + $0x4e0] sm:$0xff]  ;;  %1833 = vmatpush1.bf16.msra.mxu1 %v7334_v35 }
  0x98   :  { %v7327_v37 = vcombine.high %v357_v32, %v361_v33  ;;  %v221_v38 = vld [vmem:[#allocation8 + $0x80] sm:$0xff]  ;;  %1791 = vmatprep.subr.bf16.mxu0 %v7199_v36  ;;  %v7326_v43 = vcombine.low %v357_v32, %v361_v33 }
  0x99   :  { %v225_v39 = vld [vmem:[#allocation8 + $0xa0] sm:$0xff]  ;;  %1792 = vmatpush1.bf16.msra.mxu0 %v7198_v42 }
  0x9a   :  { %v349_v40 = vld [vmem:[#allocation8 + $0x480] sm:$0xff]  ;;  %v7191_v44 = vcombine.high %v221_v38, %v225_v39  ;;  %1834 = vmatprep.subr.bf16.mxu1 %v7327_v37  ;;  %v7190_v50 = vcombine.low %v221_v38, %v225_v39 }
  0x9b   :  { %v353_v41 = vld [vmem:[#allocation8 + $0x4a0] sm:$0xff]  ;;  %1835 = vmatpush1.bf16.msra.mxu1 %v7326_v43 }
  0x9c   :  { %v7319_v45 = vcombine.high %v349_v40, %v353_v41  ;;  %v213_v46 = vld [vmem:[#allocation8 + $0x40] sm:$0xff]  ;;  %1793 = vmatprep.subr.bf16.mxu0 %v7191_v44  ;;  %v7318_v53 = vcombine.low %v349_v40, %v353_v41 }
  0x9d   :  { %v217_v47 = vld [vmem:[#allocation8 + $0x60] sm:$0xff]  ;;  %1794 = vmatpush1.bf16.msra.mxu0 %v7190_v50 }
  0x9e   :  { %v341_v48 = vld [vmem:[#allocation8 + $0x440] sm:$0xff]  ;;  %v7183_v54 = vcombine.high %v213_v46, %v217_v47  ;;  %1836 = vmatprep.subr.bf16.mxu1 %v7319_v45  ;;  %v7182_v59 = vcombine.low %v213_v46, %v217_v47 }
  0x9f   :  { %v345_v49 = vld [vmem:[#allocation8 + $0x460] sm:$0xff]  ;;  %1837 = vmatpush1.bf16.msra.mxu1 %v7318_v53 }
  0xa0   :  { %v205_v51 = vld [vmem:[#allocation8] sm:$0xff]  ;;  %v7311_v56 = vcombine.high %v341_v48, %v345_v49  ;;  %1795 = vmatprep.subr.bf16.mxu0 %v7183_v54  ;;  %v7310_v60 = vcombine.low %v341_v48, %v345_v49 }
  0xa1   :  { %v209_v52 = vld [vmem:[#allocation8 + $0x20] sm:$0xff]  ;;  %1796 = vmatpush1.bf16.msra.mxu0 %v7182_v59 }
  0xa2   :  { %v333_v55 = vld [vmem:[#allocation8 + $0x400] sm:$0xff]  ;;  %v7175_v61 = vcombine.high %v205_v51, %v209_v52  ;;  %1838 = vmatprep.subr.bf16.mxu1 %v7311_v56  ;;  %v7174_v3 = vcombine.low %v205_v51, %v209_v52 }
  0xa3   :  { %v337_v58 = vld [vmem:[#allocation8 + $0x420] sm:$0xff]  ;;  %1839 = vmatpush1.bf16.msra.mxu1 %v7310_v60 }
  0xa4   :  { %v7303_v62 = vcombine.high %v333_v55, %v337_v58  ;;  %v325_v63 = vld [vmem:[#allocation8 + $0x3c0] sm:$0xff]  ;;  %1797 = vmatprep.subr.bf16.mxu0 %v7175_v61  ;;  %v7302_v4 = vcombine.low %v333_v55, %v337_v58 }
  0xa5   :  { %v329_v0 = vld [vmem:[#allocation8 + $0x3e0] sm:$0xff]  ;;  %1798 = vmatpush1.bf16.msra.mxu0 %v7174_v3  ;;  %v394_v3 = vld [vmem:[#allocation8 + $0x5e8] sm:$0xff] }
  0xa6   :  { %v453_v1 = vld [vmem:[#allocation8 + $0x7c0] sm:$0xff]  ;;  %v7295_v5 = vcombine.high %v325_v63, %v329_v0  ;;  %1840 = vmatprep.subr.bf16.mxu1 %v7303_v62  ;;  %v7294_v11 = vcombine.low %v325_v63, %v329_v0  ;;  %v262_v0 = vld [vmem:[#allocation8 + $0x1c8] sm:$0xff] }
  0xa7   :  { %v457_v2 = vld [vmem:[#allocation8 + $0x7e0] sm:$0xff]  ;;  %1841 = vmatpush1.bf16.msra.mxu1 %v7302_v4 }
  0xa8   :  { %v7423_v6 = vcombine.high %v453_v1, %v457_v2  ;;  %v317_v7 = vld [vmem:[#allocation8 + $0x380] sm:$0xff]  ;;  %1799 = vmatprep.subr.bf16.mxu0 %v7295_v5  ;;  %v7422_v12 = vcombine.low %v453_v1, %v457_v2  ;;  %v266_v1 = vld [vmem:[#allocation8 + $0x1e8] sm:$0xff] }
  0xa9   :  { %v321_v8 = vld [vmem:[#allocation8 + $0x3a0] sm:$0xff]  ;;  %1800 = vmatpush2.bf16.msra.mxu0 %v7294_v11  ;;  %v390_v2 = vld [vmem:[#allocation8 + $0x5c8] sm:$0xff] }
  0xaa   :  { %v445_v9 = vld [vmem:[#allocation8 + $0x780] sm:$0xff]  ;;  %v7287_v13 = vcombine.high %v317_v7, %v321_v8  ;;  %1842 = vmatprep.subr.bf16.mxu1 %v7423_v6  ;;  %v7286_v19 = vcombine.low %v317_v7, %v321_v8  ;;  %v7233_v6 = vcombine.high %v262_v0, %v266_v1  ;;  %v7361_v7 = vcombine.high %v390_v2, %v394_v3  ;;  %v254_v8 = vld [vmem:[#allocation8 + $0x188] sm:$0xff] }
  0xab   :  { %v449_v10 = vld [vmem:[#allocation8 + $0x7a0] sm:$0xff]  ;;  %1843 = vmatpush2.bf16.msra.mxu1 %v7422_v12  ;;  %v382_v11 = vld [vmem:[#allocation8 + $0x588] sm:$0xff] }
  0xac   :  { %v7415_v14 = vcombine.high %v445_v9, %v449_v10  ;;  %v309_v15 = vld [vmem:[#allocation8 + $0x340] sm:$0xff]  ;;  %1801 = vmatprep.subr.bf16.mxu0 %v7287_v13  ;;  %v7414_v20 = vcombine.low %v445_v9, %v449_v10  ;;  %v258_v9 = vld [vmem:[#allocation8 + $0x1a8] sm:$0xff]  ;;  %v8730_v13 = vld [vmem:[#allocation7] sm:$0xff]  }
  0xad   :  { %v313_v16 = vld [vmem:[#allocation8 + $0x360] sm:$0xff]  ;;  %1802 = vmatpush2.bf16.msra.mxu0 %v7286_v19  ;;  %v8728_v10 = vld [vmem:[#allocation2] sm:$0xff]  }
  0xae   :  { %v437_v17 = vld [vmem:[#allocation8 + $0x740] sm:$0xff]  ;;  %v7279_v21 = vcombine.high %v309_v15, %v313_v16  ;;  %1844 = vmatprep.subr.bf16.mxu1 %v7415_v14  ;;  %v7278_v27 = vcombine.low %v309_v15, %v313_v16  ;;  %v386_v12 = vld [vmem:[#allocation8 + $0x5a8] sm:$0xff]  ;;  %v7232_v14 = vcombine.low %v262_v0, %v266_v1  ;;  %v7360_v15 = vcombine.low %v390_v2, %v394_v3 }
  0xaf   :  { %v441_v18 = vld [vmem:[#allocation8 + $0x760] sm:$0xff]  ;;  %1845 = vmatpush2.bf16.msra.mxu1 %v7414_v20  ;;  %v7225_v16 = vcombine.high %v254_v8, %v258_v9  ;;  %v250_v19 = vld [vmem:[#allocation8 + $0x168] sm:$0xff] }
  0xb0   :  { %v7407_v22 = vcombine.high %v437_v17, %v441_v18  ;;  %v301_v23 = vld [vmem:[#allocation8 + $0x300] sm:$0xff]  ;;  %1803 = vmatprep.subr.bf16.mxu0 %v7279_v21  ;;  %v7406_v28 = vcombine.low %v437_v17, %v441_v18  ;;  %v7353_v17 = vcombine.high %v382_v11, %v386_v12  ;;  %v246_v18 = vld [vmem:[#allocation8 + $0x148] sm:$0xff] }
  0xb1   :  { %v305_v24 = vld [vmem:[#allocation8 + $0x320] sm:$0xff]  ;;  %1804 = vmatpush2.bf16.msra.mxu0 %v7278_v27  ;;  %v374_v20 = vld [vmem:[#allocation8 + $0x548] sm:$0xff] }
  0xb2   :  { %v429_v25 = vld [vmem:[#allocation8 + $0x700] sm:$0xff]  ;;  %v7271_v29 = vcombine.high %v301_v23, %v305_v24  ;;  %1846 = vmatprep.subr.bf16.mxu1 %v7407_v22  ;;  %v7270_v35 = vcombine.low %v301_v23, %v305_v24  ;;  %v378_v21 = vld [vmem:[#allocation8 + $0x568] sm:$0xff]  ;;  %v7224_v22 = vcombine.low %v254_v8, %v258_v9  ;;  %v7352_v23 = vcombine.low %v382_v11, %v386_v12 }
  0xb3   :  { %v433_v26 = vld [vmem:[#allocation8 + $0x720] sm:$0xff]  ;;  %1847 = vmatpush2.bf16.msra.mxu1 %v7406_v28  ;;  %v7217_v24 = vcombine.high %v246_v18, %v250_v19  ;;  %v366_v27 = vld [vmem:[#allocation8 + $0x508] sm:$0xff]  ;;  %v7345_v28 = vcombine.high %v374_v20, %v378_v21 }
  0xb4   :  { %v7399_v30 = vcombine.high %v429_v25, %v433_v26  ;;  %v293_v31 = vld [vmem:[#allocation8 + $0x2c0] sm:$0xff]  ;;  %1805 = vmatprep.subr.bf16.mxu0 %v7271_v29  ;;  %v7398_v36 = vcombine.low %v429_v25, %v433_v26  ;;  %v238_v25 = vld [vmem:[#allocation8 + $0x108] sm:$0xff] }
  0xb5   :  { %v297_v32 = vld [vmem:[#allocation8 + $0x2e0] sm:$0xff]  ;;  %1806 = vmatpush2.bf16.msra.mxu0 %v7270_v35  ;;  %v242_v26 = vld [vmem:[#allocation8 + $0x128] sm:$0xff] }
  0xb6   :  { %v421_v33 = vld [vmem:[#allocation8 + $0x6c0] sm:$0xff]  ;;  %v7263_v37 = vcombine.high %v293_v31, %v297_v32  ;;  %1848 = vmatprep.subr.bf16.mxu1 %v7399_v30  ;;  %v7262_v43 = vcombine.low %v293_v31, %v297_v32  ;;  %v370_v29 = vld [vmem:[#allocation8 + $0x528] sm:$0xff]  ;;  %v7216_v30 = vcombine.low %v246_v18, %v250_v19  ;;  %v7344_v31 = vcombine.low %v374_v20, %v378_v21 }
  0xb7   :  { %v425_v34 = vld [vmem:[#allocation8 + $0x6e0] sm:$0xff]  ;;  %1849 = vmatpush2.bf16.msra.mxu1 %v7398_v36  ;;  %v7209_v32 = vcombine.high %v238_v25, %v242_v26  ;;  %v358_v35 = vld [vmem:[#allocation8 + $0x4c8] sm:$0xff]  ;;  %v7337_v36 = vcombine.high %v366_v27, %v370_v29 }
  0xb8   :  { %v7391_v38 = vcombine.high %v421_v33, %v425_v34  ;;  %v285_v39 = vld [vmem:[#allocation8 + $0x280] sm:$0xff]  ;;  %1807 = vmatprep.subr.bf16.mxu0 %v7263_v37  ;;  %v7390_v44 = vcombine.low %v421_v33, %v425_v34  ;;  %v230_v33 = vld [vmem:[#allocation8 + $0xc8] sm:$0xff] }
  0xb9   :  { %v289_v40 = vld [vmem:[#allocation8 + $0x2a0] sm:$0xff]  ;;  %1808 = vmatpush2.bf16.msra.mxu0 %v7262_v43  ;;  %v234_v34 = vld [vmem:[#allocation8 + $0xe8] sm:$0xff] }
  0xba   :  { %v413_v41 = vld [vmem:[#allocation8 + $0x680] sm:$0xff]  ;;  %v7255_v45 = vcombine.high %v285_v39, %v289_v40  ;;  %1850 = vmatprep.subr.bf16.mxu1 %v7391_v38  ;;  %v7254_v51 = vcombine.low %v285_v39, %v289_v40  ;;  %v362_v37 = vld [vmem:[#allocation8 + $0x4e8] sm:$0xff]  ;;  %v7208_v38 = vcombine.low %v238_v25, %v242_v26  ;;  %v7336_v39 = vcombine.low %v366_v27, %v370_v29 }
  0xbb   :  { %v417_v42 = vld [vmem:[#allocation8 + $0x6a0] sm:$0xff]  ;;  %1851 = vmatpush2.bf16.msra.mxu1 %v7390_v44  ;;  %v7201_v40 = vcombine.high %v230_v33, %v234_v34  ;;  %v350_v43 = vld [vmem:[#allocation8 + $0x488] sm:$0xff]  ;;  %v7329_v44 = vcombine.high %v358_v35, %v362_v37 }
  0xbc   :  { %v7383_v46 = vcombine.high %v413_v41, %v417_v42  ;;  %v277_v47 = vld [vmem:[#allocation8 + $0x240] sm:$0xff]  ;;  %1809 = vmatprep.subr.bf16.mxu0 %v7255_v45  ;;  %v7382_v52 = vcombine.low %v413_v41, %v417_v42  ;;  %v222_v41 = vld [vmem:[#allocation8 + $0x88] sm:$0xff] }
  0xbd   :  { %v281_v48 = vld [vmem:[#allocation8 + $0x260] sm:$0xff]  ;;  %1810 = vmatpush2.bf16.msra.mxu0 %v7254_v51  ;;  %v226_v42 = vld [vmem:[#allocation8 + $0xa8] sm:$0xff] }
  0xbe   :  { %v405_v49 = vld [vmem:[#allocation8 + $0x640] sm:$0xff]  ;;  %v7247_v53 = vcombine.high %v277_v47, %v281_v48  ;;  %1852 = vmatprep.subr.bf16.mxu1 %v7383_v46  ;;  %v7246_v60 = vcombine.low %v277_v47, %v281_v48  ;;  %v354_v45 = vld [vmem:[#allocation8 + $0x4a8] sm:$0xff]  ;;  %v7200_v46 = vcombine.low %v230_v33, %v234_v34  ;;  %v7328_v47 = vcombine.low %v358_v35, %v362_v37 }
  0xbf   :  { %v409_v50 = vld [vmem:[#allocation8 + $0x660] sm:$0xff]  ;;  %1853 = vmatpush2.bf16.msra.mxu1 %v7382_v52  ;;  %v7193_v48 = vcombine.high %v222_v41, %v226_v42  ;;  %v342_v51 = vld [vmem:[#allocation8 + $0x448] sm:$0xff]  ;;  %v7321_v52 = vcombine.high %v350_v43, %v354_v45 }
  0xc0   :  { %v7375_v54 = vcombine.high %v405_v49, %v409_v50  ;;  %v269_v55 = vld [vmem:[#allocation8 + $0x200] sm:$0xff]  ;;  %1811 = vmatprep.subr.bf16.mxu0 %v7247_v53  ;;  %v7374_v61 = vcombine.low %v405_v49, %v409_v50  ;;  %v214_v49 = vld [vmem:[#allocation8 + $0x48] sm:$0xff] }
  0xc1   :  { %v273_v56 = vld [vmem:[#allocation8 + $0x220] sm:$0xff]  ;;  %1812 = vmatpush2.bf16.msra.mxu0 %v7246_v60  ;;  %v218_v50 = vld [vmem:[#allocation8 + $0x68] sm:$0xff] }
  0xc2   :  { %v397_v58 = vld [vmem:[#allocation8 + $0x600] sm:$0xff]  ;;  %v7239_v62 = vcombine.high %v269_v55, %v273_v56  ;;  %1854 = vmatprep.subr.bf16.mxu1 %v7375_v54  ;;  %v7238_v4 = vcombine.low %v269_v55, %v273_v56  ;;  %v346_v53 = vld [vmem:[#allocation8 + $0x468] sm:$0xff]  ;;  %v7192_v54 = vcombine.low %v222_v41, %v226_v42  ;;  %v7320_v55 = vcombine.low %v350_v43, %v354_v45 }
  0xc3   :  { %v401_v59 = vld [vmem:[#allocation8 + $0x620] sm:$0xff]  ;;  %1855 = vmatpush2.bf16.msra.mxu1 %v7374_v61  ;;  %v7185_v56 = vcombine.high %v214_v49, %v218_v50  ;;  %v334_v60 = vld [vmem:[#allocation8 + $0x408] sm:$0xff]  ;;  %v7313_v61 = vcombine.high %v342_v51, %v346_v53  ;;  %v7312_v0 = vcombine.low %v342_v51, %v346_v53 }
  0xc4   :  { %v7367_v63 = vcombine.high %v397_v58, %v401_v59  ;;  %1813 = vmatprep.subr.bf16.mxu0 %v7239_v62  ;;  %v7366_v5 = vcombine.low %v397_v58, %v401_v59  ;;  %v206_v58 = vld [vmem:[#allocation8 + $0x8] sm:$0xff] }
  0xc5   :  { %1814 = vmatpush2.bf16.msra.mxu0 %v7238_v4  ;;  %v210_v59 = vld [vmem:[#allocation8 + $0x28] sm:$0xff] }
  0xc6   :  { %1856 = vmatprep.subr.bf16.mxu1 %v7367_v63  ;;  %1869 = vmatprep.subr.bf16.mxu0 %v7233_v6  ;;  %v338_v62 = vld [vmem:[#allocation8 + $0x428] sm:$0xff]  ;;  %v7184_v63 = vcombine.low %v214_v49, %v218_v50  ;;  %v7177_v1 = vcombine.high %v206_v58, %v210_v59 }
  0xc7   :  { %1857 = vmatpush2.bf16.msra.mxu1 %v7366_v5  ;;  %v326_v2 = vld [vmem:[#allocation8 + $0x3c8] sm:$0xff]  ;;  %v7305_v5 = vcombine.high %v334_v60, %v338_v62  ;;  %v7304_v8 = vcombine.low %v334_v60, %v338_v62 }
  0xc8   :  { %1912 = vmatprep.subr.bf16.mxu1 %v7361_v7  ;;  %1816 = vmatmul.mubr.bf16.vlgmr.msra.gmra.mxu0 %v8728_v10  ;;  %v330_v3 = vld [vmem:[#allocation8 + $0x3e8] sm:$0xff]  ;;  %v7176_v7 = vcombine.low %v206_v58, %v210_v59 }
  0xc9   :  { %1870 = vmatpush1.bf16.msra.mxu0 %v7232_v14  ;;  %1901 = vmatprep.mubr.bf16.mxu0 %v8724_v57  ;;  %v454_v4 = vld [vmem:[#allocation8 + $0x7c8] sm:$0xff]  ;;  %v7297_v9 = vcombine.high %v326_v2, %v330_v3 }
  0xca   :  { %1859 = vmatmul.mubr.bf16.vlgmr.msra.gmra.mxu1 %v8730_v13  ;;  %1871 = vmatprep.subr.bf16.mxu0 %v7225_v16  ;;  %v458_v6 = vld [vmem:[#allocation8 + $0x7e8] sm:$0xff] }
  0xcb   :  { %1913 = vmatpush1.bf16.msra.mxu1 %v7360_v15  ;;  %1944 = vmatprep.mubr.bf16.mxu1 %v8724_v57  ;;  %v318_v11 = vld [vmem:[#allocation8 + $0x388] sm:$0xff]  ;;  %v7425_v15 = vcombine.high %v454_v4, %v458_v6  ;;  %v7424_v18 = vcombine.low %v454_v4, %v458_v6  ;;  %v267_v6 = vld [vmem:[#allocation8 + $0x1f0] sm:$0xff] }
  0xcc   :  { %1914 = vmatprep.subr.bf16.mxu1 %v7353_v17  ;;  %v322_v12 = vld [vmem:[#allocation8 + $0x3a8] sm:$0xff]  ;;  %v7296_v17 = vcombine.low %v326_v2, %v330_v3 }
  0xcd   :  { %1872 = vmatpush1.bf16.msra.mxu0 %v7224_v22  ;;  %v446_v14 = vld [vmem:[#allocation8 + $0x788] sm:$0xff]  ;;  %v7289_v19 = vcombine.high %v318_v11, %v322_v12  ;;  %v7288_v25 = vcombine.low %v318_v11, %v322_v12 }
  0xce   :  { %1873 = vmatprep.subr.bf16.mxu0 %v7217_v24  ;;  %v450_v16 = vld [vmem:[#allocation8 + $0x7a8] sm:$0xff] }
  0xcf   :  { %1915 = vmatpush1.bf16.msra.mxu1 %v7352_v23  ;;  %v310_v20 = vld [vmem:[#allocation8 + $0x348] sm:$0xff]  ;;  %v7417_v23 = vcombine.high %v446_v14, %v450_v16  ;;  %v7416_v26 = vcombine.low %v446_v14, %v450_v16  ;;  %v259_v16 = vld [vmem:[#allocation8 + $0x1b0] sm:$0xff] }
  0xd0   :  { %1916 = vmatprep.subr.bf16.mxu1 %v7345_v28  ;;  %v314_v21 = vld [vmem:[#allocation8 + $0x368] sm:$0xff] }
  0xd1   :  { %1874 = vmatpush1.bf16.msra.mxu0 %v7216_v30  ;;  %v438_v22 = vld [vmem:[#allocation8 + $0x748] sm:$0xff]  ;;  %v7281_v27 = vcombine.high %v310_v20, %v314_v21  ;;  %v7280_v33 = vcombine.low %v310_v20, %v314_v21  ;;  %v247_v21 = vld [vmem:[#allocation8 + $0x150] sm:$0xff] }
  0xd2   :  { %1875 = vmatprep.subr.bf16.mxu0 %v7209_v32  ;;  %v442_v24 = vld [vmem:[#allocation8 + $0x768] sm:$0xff] }
  0xd3   :  { %1917 = vmatpush1.bf16.msra.mxu1 %v7344_v31  ;;  %v302_v28 = vld [vmem:[#allocation8 + $0x308] sm:$0xff]  ;;  %v7409_v31 = vcombine.high %v438_v22, %v442_v24  ;;  %v7408_v34 = vcombine.low %v438_v22, %v442_v24  ;;  %v251_v24 = vld [vmem:[#allocation8 + $0x170] sm:$0xff] }
  0xd4   :  { %1918 = vmatprep.subr.bf16.mxu1 %v7337_v36  ;;  %v306_v29 = vld [vmem:[#allocation8 + $0x328] sm:$0xff] }
  0xd5   :  { %1876 = vmatpush1.bf16.msra.mxu0 %v7208_v38  ;;  %v430_v30 = vld [vmem:[#allocation8 + $0x708] sm:$0xff]  ;;  %v7273_v35 = vcombine.high %v302_v28, %v306_v29  ;;  %v7272_v41 = vcombine.low %v302_v28, %v306_v29  ;;  %v239_v29 = vld [vmem:[#allocation8 + $0x110] sm:$0xff] }
  0xd6   :  { %1877 = vmatprep.subr.bf16.mxu0 %v7201_v40  ;;  %v434_v32 = vld [vmem:[#allocation8 + $0x728] sm:$0xff] }
  0xd7   :  { %1919 = vmatpush1.bf16.msra.mxu1 %v7336_v39  ;;  %v294_v36 = vld [vmem:[#allocation8 + $0x2c8] sm:$0xff]  ;;  %v7401_v39 = vcombine.high %v430_v30, %v434_v32  ;;  %v7400_v42 = vcombine.low %v430_v30, %v434_v32  ;;  %v243_v30 = vld [vmem:[#allocation8 + $0x130] sm:$0xff]  ;;  %v7219_v32 = vcombine.high %v247_v21, %v251_v24 }
  0xd8   :  { %1920 = vmatprep.subr.bf16.mxu1 %v7329_v44  ;;  %v298_v37 = vld [vmem:[#allocation8 + $0x2e8] sm:$0xff] }
  0xd9   :  { %1878 = vmatpush1.bf16.msra.mxu0 %v7200_v46  ;;  %v422_v38 = vld [vmem:[#allocation8 + $0x6c8] sm:$0xff]  ;;  %v7265_v43 = vcombine.high %v294_v36, %v298_v37  ;;  %v7264_v49 = vcombine.low %v294_v36, %v298_v37  ;;  %v231_v36 = vld [vmem:[#allocation8 + $0xd0] sm:$0xff] }
  0xda   :  { %1879 = vmatprep.subr.bf16.mxu0 %v7193_v48  ;;  %v426_v40 = vld [vmem:[#allocation8 + $0x6e8] sm:$0xff] }
  0xdb   :  { %1921 = vmatpush1.bf16.msra.mxu1 %v7328_v47  ;;  %v286_v44 = vld [vmem:[#allocation8 + $0x288] sm:$0xff]  ;;  %v7393_v47 = vcombine.high %v422_v38, %v426_v40  ;;  %v7392_v50 = vcombine.low %v422_v38, %v426_v40  ;;  %v7211_v38 = vcombine.high %v239_v29, %v243_v30  ;;  %v363_v40 = vld [vmem:[#allocation8 + $0x4f0] sm:$0xff] }
  0xdc   :  { %1922 = vmatprep.subr.bf16.mxu1 %v7321_v52  ;;  %v290_v45 = vld [vmem:[#allocation8 + $0x2a8] sm:$0xff] }
  0xdd   :  { %1880 = vmatpush1.bf16.msra.mxu0 %v7192_v54  ;;  %v414_v46 = vld [vmem:[#allocation8 + $0x688] sm:$0xff]  ;;  %v7257_v51 = vcombine.high %v286_v44, %v290_v45  ;;  %v7256_v58 = vcombine.low %v286_v44, %v290_v45  ;;  %v227_v44 = vld [vmem:[#allocation8 + $0xb0] sm:$0xff] }
  0xde   :  { %1881 = vmatprep.subr.bf16.mxu0 %v7185_v56  ;;  %v418_v48 = vld [vmem:[#allocation8 + $0x6a8] sm:$0xff] }
  0xdf   :  { %1923 = vmatpush1.bf16.msra.mxu1 %v7320_v55  ;;  %v278_v52 = vld [vmem:[#allocation8 + $0x248] sm:$0xff]  ;;  %v7385_v55 = vcombine.high %v414_v46, %v418_v48  ;;  %v7384_v59 = vcombine.low %v414_v46, %v418_v48  ;;  %v351_v46 = vld [vmem:[#allocation8 + $0x490] sm:$0xff] }
  0xe0   :  { %1924 = vmatprep.subr.bf16.mxu1 %v7313_v61  ;;  %v282_v53 = vld [vmem:[#allocation8 + $0x268] sm:$0xff] }
  0xe1   :  { %1882 = vmatpush1.bf16.msra.mxu0 %v7184_v63  ;;  %v406_v54 = vld [vmem:[#allocation8 + $0x648] sm:$0xff]  ;;  %v7249_v60 = vcombine.high %v278_v52, %v282_v53  ;;  %v7248_v2 = vcombine.low %v278_v52, %v282_v53  ;;  %v215_v53 = vld [vmem:[#allocation8 + $0x50] sm:$0xff] }
  0xe2   :  { %1883 = vmatprep.subr.bf16.mxu0 %v7177_v1  ;;  %v410_v56 = vld [vmem:[#allocation8 + $0x668] sm:$0xff] }
  0xe3   :  { %1925 = vmatpush1.bf16.msra.mxu1 %v7312_v0  ;;  %v270_v61 = vld [vmem:[#allocation8 + $0x208] sm:$0xff]  ;;  %v7377_v0 = vcombine.high %v406_v54, %v410_v56  ;;  %v7376_v3 = vcombine.low %v406_v54, %v410_v56  ;;  %v219_v54 = vld [vmem:[#allocation8 + $0x70] sm:$0xff] }
  0xe4   :  { %1926 = vmatprep.subr.bf16.mxu1 %v7305_v5  ;;  %v274_v62 = vld [vmem:[#allocation8 + $0x228] sm:$0xff]  ;;  %v263_v5 = vld [vmem:[#allocation8 + $0x1d0] sm:$0xff] }
  0xe5   :  { %1884 = vmatpush1.bf16.msra.mxu0 %v7176_v7  ;;  %v398_v63 = vld [vmem:[#allocation8 + $0x608] sm:$0xff]  ;;  %v7241_v4 = vcombine.high %v270_v61, %v274_v62  ;;  %v391_v7 = vld [vmem:[#allocation8 + $0x5d0] sm:$0xff]  ;;  %v7240_v11 = vcombine.low %v270_v61, %v274_v62  ;;  %v7235_v14 = vcombine.high %v263_v5, %v267_v6  ;;  %v7234_v20 = vcombine.low %v263_v5, %v267_v6 }
  0xe6   :  { %1885 = vmatprep.subr.bf16.mxu0 %v7297_v9  ;;  %v402_v1 = vld [vmem:[#allocation8 + $0x628] sm:$0xff]  ;;  %v395_v9 = vld [vmem:[#allocation8 + $0x5f0] sm:$0xff] }
  0xe7   :  { %1927 = vmatpush1.bf16.msra.mxu1 %v7304_v8  ;;  %v7369_v8 = vcombine.high %v398_v63, %v402_v1  ;;  %v7368_v12 = vcombine.low %v398_v63, %v402_v1  ;;  %v7362_v22 = vcombine.low %v391_v7, %v395_v9  ;;  %v347_v56 = vld [vmem:[#allocation8 + $0x470] sm:$0xff] }
  0xe8   :  { %1928 = vmatprep.subr.bf16.mxu1 %v7425_v15  ;;  %v255_v15 = vld [vmem:[#allocation8 + $0x190] sm:$0xff] }
  0xe9   :  { %1886 = vmatpush2.bf16.msra.mxu0 %v7296_v17  ;;  %v383_v17 = vld [vmem:[#allocation8 + $0x590] sm:$0xff]  ;;  %v7226_v28 = vcombine.low %v255_v15, %v259_v16 }
  0xea   :  { %1887 = vmatprep.subr.bf16.mxu0 %v7289_v19  ;;  %v387_v19 = vld [vmem:[#allocation8 + $0x5b0] sm:$0xff] }
  0xeb   :  { %1929 = vmatpush2.bf16.msra.mxu1 %v7424_v18  ;;  %v7363_v18 = vcombine.high %v391_v7, %v395_v9  ;;  %v207_v62 = vld [vmem:[#allocation8 + $0x10] sm:$0xff] }
  0xec   :  { %1930 = vmatprep.subr.bf16.mxu1 %v7417_v23  ;;  %v7227_v23 = vcombine.high %v255_v15, %v259_v16  ;;  %v211_v63 = vld [vmem:[#allocation8 + $0x30] sm:$0xff] }
  0xed   :  { %1888 = vmatpush2.bf16.msra.mxu0 %v7288_v25  ;;  %v375_v25 = vld [vmem:[#allocation8 + $0x550] sm:$0xff] }
  0xee   :  { %1889 = vmatprep.subr.bf16.mxu0 %v7281_v27  ;;  %v7355_v27 = vcombine.high %v383_v17, %v387_v19  ;;  %v339_v1 = vld [vmem:[#allocation8 + $0x430] sm:$0xff] }
  0xef   :  { %1931 = vmatpush2.bf16.msra.mxu1 %v7416_v26  ;;  %v379_v26 = vld [vmem:[#allocation8 + $0x570] sm:$0xff] }
  0xf0   :  { %1932 = vmatprep.subr.bf16.mxu1 %v7409_v31  ;;  %v7354_v31 = vcombine.low %v383_v17, %v387_v19  ;;  %v7346_v37 = vcombine.low %v375_v25, %v379_v26  ;;  %v327_v6 = vld [vmem:[#allocation8 + $0x3d0] sm:$0xff] }
  0xf1   :  { %1890 = vmatpush2.bf16.msra.mxu0 %v7280_v33  ;;  %v367_v33 = vld [vmem:[#allocation8 + $0x510] sm:$0xff] }
  0xf2   :  { %1891 = vmatprep.subr.bf16.mxu0 %v7273_v35  ;;  %v7347_v35 = vcombine.high %v375_v25, %v379_v26  ;;  %v331_v7 = vld [vmem:[#allocation8 + $0x3f0] sm:$0xff] }
  0xf3   :  { %1933 = vmatpush2.bf16.msra.mxu1 %v7408_v34  ;;  %v371_v34 = vld [vmem:[#allocation8 + $0x530] sm:$0xff] }
  0xf4   :  { %1934 = vmatprep.subr.bf16.mxu1 %v7401_v39  ;;  %v359_v39 = vld [vmem:[#allocation8 + $0x4d0] sm:$0xff]  ;;  %v7338_v45 = vcombine.low %v367_v33, %v371_v34 }
  0xf5   :  { %1892 = vmatpush2.bf16.msra.mxu0 %v7272_v41  ;;  %v7339_v41 = vcombine.high %v367_v33, %v371_v34  ;;  %v7331_v48 = vcombine.high %v359_v39, %v363_v40  ;;  %v459_v9 = vld [vmem:[#allocation8 + $0x7f0] sm:$0xff] }
  0xf6   :  { %1893 = vmatprep.subr.bf16.mxu0 %v7265_v43  ;;  %v223_v43 = vld [vmem:[#allocation8 + $0x90] sm:$0xff] }
  0xf7   :  { %1935 = vmatpush2.bf16.msra.mxu1 %v7400_v42  ;;  %v7210_v42 = vcombine.low %v239_v29, %v243_v30  ;;  %v319_v16 = vld [vmem:[#allocation8 + $0x390] sm:$0xff] }
  0xf8   :  { %1936 = vmatprep.subr.bf16.mxu1 %v7393_v47  ;;  %v355_v47 = vld [vmem:[#allocation8 + $0x4b0] sm:$0xff] }
  0xf9   :  { %1894 = vmatpush2.bf16.msra.mxu0 %v7264_v49  ;;  %v7323_v52 = vcombine.high %v351_v46, %v355_v47  ;;  %v323_v17 = vld [vmem:[#allocation8 + $0x3b0] sm:$0xff] }
  0xfa   :  { %1895 = vmatprep.subr.bf16.mxu0 %v7257_v51  ;;  %v7195_v51 = vcombine.high %v223_v43, %v227_v44  ;;  %v451_v19 = vld [vmem:[#allocation8 + $0x7b0] sm:$0xff] }
  0xfb   :  { %1937 = vmatpush2.bf16.msra.mxu1 %v7392_v50  ;;  %v7330_v50 = vcombine.low %v359_v39, %v363_v40  ;;  %v315_v25 = vld [vmem:[#allocation8 + $0x370] sm:$0xff] }
  0xfc   :  { %1938 = vmatprep.subr.bf16.mxu1 %v7385_v55  ;;  %v343_v55 = vld [vmem:[#allocation8 + $0x450] sm:$0xff] }
  0xfd   :  { %1896 = vmatpush2.bf16.msra.mxu0 %v7256_v58  ;;  %v7194_v58 = vcombine.low %v223_v43, %v227_v44  ;;  %v7315_v61 = vcombine.high %v343_v55, %v347_v56  ;;  %v439_v26 = vld [vmem:[#allocation8 + $0x750] sm:$0xff] }
  0xfe   :  { %1897 = vmatprep.subr.bf16.mxu0 %v7249_v60  ;;  %v7187_v60 = vcombine.high %v215_v53, %v219_v54  ;;  %v307_v33 = vld [vmem:[#allocation8 + $0x330] sm:$0xff] }
  0xff   :  { %1939 = vmatpush2.bf16.msra.mxu1 %v7384_v59  ;;  %v7322_v59 = vcombine.low %v351_v46, %v355_v47  ;;  %v431_v34 = vld [vmem:[#allocation8 + $0x710] sm:$0xff] }
 0x100   :  { %1940 = vmatprep.subr.bf16.mxu1 %v7377_v0  ;;  %v335_v0 = vld [vmem:[#allocation8 + $0x410] sm:$0xff] }
 0x101   :  { %1898 = vmatpush2.bf16.msra.mxu0 %v7248_v2  ;;  %v7186_v2 = vcombine.low %v215_v53, %v219_v54  ;;  %v7307_v5 = vcombine.high %v335_v0, %v339_v1  ;;  %v299_v39 = vld [vmem:[#allocation8 + $0x2f0] sm:$0xff] }
 0x102   :  { %1899 = vmatprep.subr.bf16.mxu0 %v7241_v4  ;;  %v7179_v4 = vcombine.high %v207_v62, %v211_v63  ;;  %v423_v40 = vld [vmem:[#allocation8 + $0x6d0] sm:$0xff] }
 0x103   :  { %1941 = vmatpush2.bf16.msra.mxu1 %v7376_v3  ;;  %v7314_v3 = vcombine.low %v343_v55, %v347_v56  ;;  %v291_v46 = vld [vmem:[#allocation8 + $0x2b0] sm:$0xff] }
 0x104   :  { %1942 = vmatprep.subr.bf16.mxu1 %v7369_v8  ;;  %v455_v8 = vld [vmem:[#allocation8 + $0x7d0] sm:$0xff] }
 0x105   :  { %1900 = vmatpush2.bf16.msra.mxu0 %v7240_v11  ;;  %v7178_v11 = vcombine.low %v207_v62, %v211_v63  ;;  %v7427_v15 = vcombine.high %v455_v8, %v459_v9  ;;  %v415_v47 = vld [vmem:[#allocation8 + $0x690] sm:$0xff] }
 0x106   :  { %1955 = vmatprep.subr.bf16.mxu0 %v7235_v14  ;;  %v7299_v14 = vcombine.high %v327_v6, %v331_v7  ;;  %v279_v53 = vld [vmem:[#allocation8 + $0x250] sm:$0xff] }
 0x107   :  { %1943 = vmatpush2.bf16.msra.mxu1 %v7368_v12  ;;  %v7306_v12 = vcombine.low %v335_v0, %v339_v1  ;;  %v283_v54 = vld [vmem:[#allocation8 + $0x270] sm:$0xff] }
 0x108   :  { %1998 = vmatprep.subr.bf16.mxu1 %v7363_v18  ;;  %1902 = vmatmul.mubr.bf16.vlgmr.msra.gmra.mxu0 %v8728_v10  ;;  %v7218_v10 = vcombine.low %v247_v21, %v251_v24  ;;  %v447_v18 = vld [vmem:[#allocation8 + $0x790] sm:$0xff]  ;;  %v7426_v21 = vcombine.low %v455_v8, %v459_v9  ;;  %v392_v8 = vld [vmem:[#allocation8 + $0x5d8] sm:$0xff] }
 0x109   :  { %1956 = vmatpush1.bf16.msra.mxu0 %v7234_v20  ;;  %1987 = vmatprep.mubr.bf16.mxu0 %v8724_v57  ;;  %v7298_v20 = vcombine.low %v327_v6, %v331_v7  ;;  %v311_v24 = vld [vmem:[#allocation8 + $0x350] sm:$0xff]  ;;  %v7418_v29 = vcombine.low %v447_v18, %v451_v19  ;;  %v264_v6 = vld [vmem:[#allocation8 + $0x1d8] sm:$0xff] }
 0x10a   :  { %1945 = vmatmul.mubr.bf16.vlgmr.msra.gmra.mxu1 %v8730_v13  ;;  %1957 = vmatprep.subr.bf16.mxu0 %v7227_v23  ;;  %v235_v13 = vld [vmem:[#allocation8 + $0xf0] sm:$0xff]  ;;  %v7419_v23 = vcombine.high %v447_v18, %v451_v19  ;;  %v7283_v30 = vcombine.high %v311_v24, %v315_v25  ;;  %v268_v7 = vld [vmem:[#allocation8 + $0x1f8] sm:$0xff] }
 0x10b   :  { %1999 = vmatpush1.bf16.msra.mxu1 %v7362_v22  ;;  %2030 = vmatprep.mubr.bf16.mxu1 %v8724_v57  ;;  %v7203_v57 = vcombine.high %v231_v36, %v235_v13  ;;  %v7202_v49 = vcombine.low %v231_v36, %v235_v13  ;;  %v7291_v22 = vcombine.high %v319_v16, %v323_v17  ;;  %v407_v55 = vld [vmem:[#allocation8 + $0x650] sm:$0xff]  ;;  %v396_v9 = vld [vmem:[#allocation8 + $0x5f8] sm:$0xff] }
 0x10c   :  { %2000 = vmatprep.subr.bf16.mxu1 %v7355_v27  ;;  %v443_v27 = vld [vmem:[#allocation8 + $0x770] sm:$0xff]  ;;  %v384_v18 = vld [vmem:[#allocation8 + $0x598] sm:$0xff] }
 0x10d   :  { %1958 = vmatpush1.bf16.msra.mxu0 %v7226_v28  ;;  %v7290_v28 = vcombine.low %v319_v16, %v323_v17  ;;  %v7410_v36 = vcombine.low %v439_v26, %v443_v27  ;;  %v411_v56 = vld [vmem:[#allocation8 + $0x670] sm:$0xff]  ;;  %v256_v16 = vld [vmem:[#allocation8 + $0x198] sm:$0xff] }
 0x10e   :  { %1959 = vmatprep.subr.bf16.mxu0 %v7219_v32  ;;  %v303_v32 = vld [vmem:[#allocation8 + $0x310] sm:$0xff]  ;;  %v260_v17 = vld [vmem:[#allocation8 + $0x1b8] sm:$0xff] }
 0x10f   :  { %2001 = vmatpush1.bf16.msra.mxu1 %v7354_v31  ;;  %v7411_v31 = vcombine.high %v439_v26, %v443_v27  ;;  %v7275_v13 = vcombine.high %v303_v32, %v307_v33  ;;  %v271_v62 = vld [vmem:[#allocation8 + $0x210] sm:$0xff]  ;;  %v388_v19 = vld [vmem:[#allocation8 + $0x5b8] sm:$0xff]  ;;  %v8740_v26 = vld [vmem:[#allocation2] sm:$0xff]  }
 0x110   :  { %2002 = vmatprep.subr.bf16.mxu1 %v7347_v35  ;;  %v435_v35 = vld [vmem:[#allocation8 + $0x730] sm:$0xff]  ;;  %v376_v27 = vld [vmem:[#allocation8 + $0x558] sm:$0xff] }
 0x111   :  { %1960 = vmatpush1.bf16.msra.mxu0 %v7218_v10  ;;  %v7282_v10 = vcombine.low %v311_v24, %v315_v25  ;;  %v7402_v43 = vcombine.low %v431_v34, %v435_v35  ;;  %v275_v63 = vld [vmem:[#allocation8 + $0x230] sm:$0xff]  ;;  %v248_v24 = vld [vmem:[#allocation8 + $0x158] sm:$0xff] }
 0x112   :  { %1961 = vmatprep.subr.bf16.mxu0 %v7211_v38  ;;  %v295_v38 = vld [vmem:[#allocation8 + $0x2d0] sm:$0xff]  ;;  %v252_v25 = vld [vmem:[#allocation8 + $0x178] sm:$0xff] }
 0x113   :  { %2003 = vmatpush1.bf16.msra.mxu1 %v7346_v37  ;;  %v7403_v37 = vcombine.high %v431_v34, %v435_v35  ;;  %v7267_v44 = vcombine.high %v295_v38, %v299_v39  ;;  %v399_v0 = vld [vmem:[#allocation8 + $0x610] sm:$0xff]  ;;  %v240_v34 = vld [vmem:[#allocation8 + $0x118] sm:$0xff] }
 0x114   :  { %2004 = vmatprep.subr.bf16.mxu1 %v7339_v41  ;;  %v427_v41 = vld [vmem:[#allocation8 + $0x6f0] sm:$0xff]  ;;  %v244_v35 = vld [vmem:[#allocation8 + $0x138] sm:$0xff] }
 0x115   :  { %1962 = vmatpush1.bf16.msra.mxu0 %v7210_v42  ;;  %v7274_v42 = vcombine.low %v303_v32, %v307_v33  ;;  %v403_v1 = vld [vmem:[#allocation8 + $0x630] sm:$0xff]  ;;  %v7221_v32 = vcombine.high %v248_v24, %v252_v25 }
 0x116   :  { %1963 = vmatprep.subr.bf16.mxu0 %v7203_v57  ;;  %v287_v57 = vld [vmem:[#allocation8 + $0x290] sm:$0xff] }
 0x117   :  { %2005 = vmatpush1.bf16.msra.mxu1 %v7338_v45  ;;  %v7395_v45 = vcombine.high %v423_v40, %v427_v41 }
 0x118   :  { %2006 = vmatprep.subr.bf16.mxu1 %v7331_v48  ;;  %v419_v48 = vld [vmem:[#allocation8 + $0x6b0] sm:$0xff] }
 0x119   :  { %1964 = vmatpush1.bf16.msra.mxu0 %v7202_v49  ;;  %v7266_v49 = vcombine.low %v295_v38, %v299_v39  ;;  %v7213_v39 = vcombine.high %v240_v34, %v244_v35 }
 0x11a   :  { %1965 = vmatprep.subr.bf16.mxu0 %v7195_v51  ;;  %v7259_v51 = vcombine.high %v287_v57, %v291_v46 }
 0x11b   :  { %2007 = vmatpush1.bf16.msra.mxu1 %v7330_v50  ;;  %v7394_v50 = vcombine.low %v423_v40, %v427_v41  ;;  %v232_v41 = vld [vmem:[#allocation8 + $0xd8] sm:$0xff] }
 0x11c   :  { %2008 = vmatprep.subr.bf16.mxu1 %v7323_v52  ;;  %v7387_v52 = vcombine.high %v415_v47, %v419_v48 }
 0x11d   :  { %1966 = vmatpush1.bf16.msra.mxu0 %v7194_v58  ;;  %v7258_v58 = vcombine.low %v287_v57, %v291_v46 }
 0x11e   :  { %1967 = vmatprep.subr.bf16.mxu0 %v7187_v60  ;;  %v7251_v60 = vcombine.high %v279_v53, %v283_v54 }
 0x11f   :  { %2009 = vmatpush1.bf16.msra.mxu1 %v7322_v59  ;;  %v7386_v59 = vcombine.low %v415_v47, %v419_v48  ;;  %v224_v48 = vld [vmem:[#allocation8 + $0x98] sm:$0xff] }
 0x120   :  { %2010 = vmatprep.subr.bf16.mxu1 %v7315_v61  ;;  %v7379_v61 = vcombine.high %v407_v55, %v411_v56 }
 0x121   :  { %1968 = vmatpush1.bf16.msra.mxu0 %v7186_v2  ;;  %v7250_v2 = vcombine.low %v279_v53, %v283_v54 }
 0x122   :  { %1969 = vmatprep.subr.bf16.mxu0 %v7179_v4  ;;  %v7243_v4 = vcombine.high %v271_v62, %v275_v63 }
 0x123   :  { %2011 = vmatpush1.bf16.msra.mxu1 %v7314_v3  ;;  %v7378_v3 = vcombine.low %v407_v55, %v411_v56  ;;  %v216_v56 = vld [vmem:[#allocation8 + $0x58] sm:$0xff] }
 0x124   :  { %2012 = vmatprep.subr.bf16.mxu1 %v7307_v5  ;;  %v7371_v5 = vcombine.high %v399_v0, %v403_v1 }
 0x125   :  { %1970 = vmatpush1.bf16.msra.mxu0 %v7178_v11  ;;  %v7242_v11 = vcombine.low %v271_v62, %v275_v63 }
 0x126   :  { %1971 = vmatprep.subr.bf16.mxu0 %v7299_v14  ;;  %v7237_v14 = vcombine.high %v264_v6, %v268_v7 }
 0x127   :  { %2013 = vmatpush1.bf16.msra.mxu1 %v7306_v12  ;;  %v7370_v12 = vcombine.low %v399_v0, %v403_v1  ;;  %v208_v1 = vld [vmem:[#allocation8 + $0x18] sm:$0xff] }
 0x128   :  { %2014 = vmatprep.subr.bf16.mxu1 %v7427_v15  ;;  %v7365_v15 = vcombine.high %v392_v8, %v396_v9 }
 0x129   :  { %1972 = vmatpush2.bf16.msra.mxu0 %v7298_v20  ;;  %v7236_v20 = vcombine.low %v264_v6, %v268_v7 }
 0x12a   :  { %1973 = vmatprep.subr.bf16.mxu0 %v7291_v22  ;;  %v7229_v22 = vcombine.high %v256_v16, %v260_v17 }
 0x12b   :  { %2015 = vmatpush2.bf16.msra.mxu1 %v7426_v21  ;;  %v7364_v21 = vcombine.low %v392_v8, %v396_v9  ;;  %v328_v9 = vld [vmem:[#allocation8 + $0x3d8] sm:$0xff] }
 0x12c   :  { %2016 = vmatprep.subr.bf16.mxu1 %v7419_v23  ;;  %v7357_v23 = vcombine.high %v384_v18, %v388_v19 }
 0x12d   :  { %1974 = vmatpush2.bf16.msra.mxu0 %v7290_v28  ;;  %v380_v28 = vld [vmem:[#allocation8 + $0x578] sm:$0xff] }
 0x12e   :  { %1975 = vmatprep.subr.bf16.mxu0 %v7283_v30  ;;  %v7228_v30 = vcombine.low %v256_v16, %v260_v17  ;;  %v7349_v33 = vcombine.high %v376_v27, %v380_v28  ;;  %v7348_v38 = vcombine.low %v376_v27, %v380_v28  ;;  %v312_v28 = vld [vmem:[#allocation8 + $0x358] sm:$0xff] }
 0x12f   :  { %2017 = vmatpush2.bf16.msra.mxu1 %v7418_v29  ;;  %v8743_v29 = vld [vmem:[#allocation7] sm:$0xff]  }
 0x130   :  { %2018 = vmatprep.subr.bf16.mxu1 %v7411_v31  ;;  %v7356_v31 = vcombine.low %v384_v18, %v388_v19  ;;  %v320_v19 = vld [vmem:[#allocation8 + $0x398] sm:$0xff] }
 0x131   :  { %1976 = vmatpush2.bf16.msra.mxu0 %v7282_v10  ;;  %v8340_v10 = vld [vmem:[#allocation5] sm:$0xff]  }
 0x132   :  { %1977 = vmatprep.subr.bf16.mxu0 %v7275_v13  ;;  %v372_v13 = vld [vmem:[#allocation8 + $0x538] sm:$0xff] }
 0x133   :  { %2019 = vmatpush2.bf16.msra.mxu1 %v7410_v36  ;;  %v368_v36 = vld [vmem:[#allocation8 + $0x518] sm:$0xff] }
 0x134   :  { %2020 = vmatprep.subr.bf16.mxu1 %v7403_v37  ;;  %v7220_v37 = vcombine.low %v248_v24, %v252_v25  ;;  %v7341_v40 = vcombine.high %v368_v36, %v372_v13  ;;  %v7340_v57 = vcombine.low %v368_v36, %v372_v13  ;;  %v304_v36 = vld [vmem:[#allocation8 + $0x318] sm:$0xff] }
 0x135   :  { %1978 = vmatpush2.bf16.msra.mxu0 %v7274_v42  ;;  %v236_v42 = vld [vmem:[#allocation8 + $0xf8] sm:$0xff] }
 0x136   :  { %1979 = vmatprep.subr.bf16.mxu0 %v7267_v44  ;;  %v364_v44 = vld [vmem:[#allocation8 + $0x4f8] sm:$0xff]  ;;  %v7205_v46 = vcombine.high %v232_v41, %v236_v42 }
 0x137   :  { %2021 = vmatpush2.bf16.msra.mxu1 %v7402_v43  ;;  %v360_v43 = vld [vmem:[#allocation8 + $0x4d8] sm:$0xff] }
 0x138   :  { %2022 = vmatprep.subr.bf16.mxu1 %v7395_v45  ;;  %v7212_v45 = vcombine.low %v240_v34, %v244_v35  ;;  %v7333_v47 = vcombine.high %v360_v43, %v364_v44  ;;  %v7332_v53 = vcombine.low %v360_v43, %v364_v44  ;;  %v308_v13 = vld [vmem:[#allocation8 + $0x338] sm:$0xff] }
 0x139   :  { %1980 = vmatpush2.bf16.msra.mxu0 %v7266_v49  ;;  %v228_v49 = vld [vmem:[#allocation8 + $0xb8] sm:$0xff] }
 0x13a   :  { %1981 = vmatprep.subr.bf16.mxu0 %v7259_v51  ;;  %v356_v51 = vld [vmem:[#allocation8 + $0x4b8] sm:$0xff]  ;;  %v7197_v54 = vcombine.high %v224_v48, %v228_v49 }
 0x13b   :  { %2023 = vmatpush2.bf16.msra.mxu1 %v7394_v50  ;;  %v352_v50 = vld [vmem:[#allocation8 + $0x498] sm:$0xff] }
 0x13c   :  { %2024 = vmatprep.subr.bf16.mxu1 %v7387_v52  ;;  %v7204_v52 = vcombine.low %v232_v41, %v236_v42  ;;  %v7325_v55 = vcombine.high %v352_v50, %v356_v51  ;;  %v7324_v62 = vcombine.low %v352_v50, %v356_v51  ;;  %v7277_v41 = vcombine.high %v304_v36, %v308_v13  ;;  %v296_v43 = vld [vmem:[#allocation8 + $0x2d8] sm:$0xff] }
 0x13d   :  { %1982 = vmatpush2.bf16.msra.mxu0 %v7258_v58  ;;  %v220_v58 = vld [vmem:[#allocation8 + $0x78] sm:$0xff] }
 0x13e   :  { %1983 = vmatprep.subr.bf16.mxu0 %v7251_v60  ;;  %v348_v60 = vld [vmem:[#allocation8 + $0x478] sm:$0xff]  ;;  %v7189_v63 = vcombine.high %v216_v56, %v220_v58 }
 0x13f   :  { %2025 = vmatpush2.bf16.msra.mxu1 %v7386_v59  ;;  %v344_v59 = vld [vmem:[#allocation8 + $0x458] sm:$0xff] }
 0x140   :  { %2026 = vmatprep.subr.bf16.mxu1 %v7379_v61  ;;  %v7196_v61 = vcombine.low %v224_v48, %v228_v49  ;;  %v7317_v0 = vcombine.high %v344_v59, %v348_v60  ;;  %v7316_v6 = vcombine.low %v344_v59, %v348_v60  ;;  %v300_v44 = vld [vmem:[#allocation8 + $0x2f8] sm:$0xff] }
 0x141   :  { %1984 = vmatpush2.bf16.msra.mxu0 %v7250_v2  ;;  %v212_v2 = vld [vmem:[#allocation8 + $0x38] sm:$0xff]  ;;  %v7269_v48 = vcombine.high %v296_v43, %v300_v44 }
 0x142   :  { %1985 = vmatprep.subr.bf16.mxu0 %v7243_v4  ;;  %v340_v4 = vld [vmem:[#allocation8 + $0x438] sm:$0xff]  ;;  %v7181_v7 = vcombine.high %v208_v1, %v212_v2 }
 0x143   :  { %2027 = vmatpush2.bf16.msra.mxu1 %v7378_v3  ;;  %v336_v3 = vld [vmem:[#allocation8 + $0x418] sm:$0xff] }
 0x144   :  { %2028 = vmatprep.subr.bf16.mxu1 %v7371_v5  ;;  %v7188_v5 = vcombine.low %v216_v56, %v220_v58  ;;  %v7309_v8 = vcombine.high %v336_v3, %v340_v4  ;;  %v7308_v16 = vcombine.low %v336_v3, %v340_v4  ;;  %v288_v50 = vld [vmem:[#allocation8 + $0x298] sm:$0xff] }
 0x145   :  { %1986 = vmatpush2.bf16.msra.mxu0 %v7242_v11  ;;  %v332_v11 = vld [vmem:[#allocation8 + $0x3f8] sm:$0xff] }
 0x146   :  { %2041 = vmatprep.subr.bf16.mxu0 %v7237_v14  ;;  %v460_v14 = vld [vmem:[#allocation8 + $0x7f8] sm:$0xff]  ;;  %v7301_v17 = vcombine.high %v328_v9, %v332_v11 }
 0x147   :  { %2029 = vmatpush2.bf16.msra.mxu1 %v7370_v12  ;;  %v456_v12 = vld [vmem:[#allocation8 + $0x7d8] sm:$0xff] }
 0x148   :  { %2084 = vmatprep.subr.bf16.mxu1 %v7365_v15  ;;  %1988 = vmatmul.mubr.bf16.vlgmr.msra.gmra.mxu0 %v8740_v26  ;;  %v7180_v15 = vcombine.low %v208_v1, %v212_v2  ;;  %v7429_v18 = vcombine.high %v456_v12, %v460_v14  ;;  %v7428_v24 = vcombine.low %v456_v12, %v460_v14  ;;  %v292_v51 = vld [vmem:[#allocation8 + $0x2b8] sm:$0xff]  ;;  %v2223_v14 = vld [vmem:[#allocation11 + $0x1c0] sm:$0xff] }
 0x149   :  { %2042 = vmatpush1.bf16.msra.mxu0 %v7236_v20  ;;  %2073 = vmatprep.mubr.bf16.mxu0 %v8340_v10  ;;  %v324_v20 = vld [vmem:[#allocation8 + $0x3b8] sm:$0xff]  ;;  %v7261_v56 = vcombine.high %v288_v50, %v292_v51 }
 0x14a   :  { %2031 = vmatmul.mubr.bf16.vlgmr.msra.gmra.mxu1 %v8743_v29  ;;  %2043 = vmatprep.subr.bf16.mxu0 %v7229_v22  ;;  %v452_v22 = vld [vmem:[#allocation8 + $0x7b8] sm:$0xff]  ;;  %v7293_v25 = vcombine.high %v320_v19, %v324_v20 }
 0x14b   :  { %2085 = vmatpush1.bf16.msra.mxu1 %v7364_v21  ;;  %2116 = vmatprep.mubr.bf16.mxu1 %v8340_v10  ;;  %v448_v21 = vld [vmem:[#allocation8 + $0x798] sm:$0xff] }
 0x14c   :  { %2086 = vmatprep.subr.bf16.mxu1 %v7357_v23  ;;  %v7300_v23 = vcombine.low %v328_v9, %v332_v11  ;;  %v7421_v27 = vcombine.high %v448_v21, %v452_v22  ;;  %v7420_v34 = vcombine.low %v448_v21, %v452_v22  ;;  %v280_v59 = vld [vmem:[#allocation8 + $0x258] sm:$0xff] }
 0x14d   :  { %2044 = vmatpush1.bf16.msra.mxu0 %v7228_v30  ;;  %v316_v30 = vld [vmem:[#allocation8 + $0x378] sm:$0xff] }
 0x14e   :  { %2045 = vmatprep.subr.bf16.mxu0 %v7221_v32  ;;  %v444_v32 = vld [vmem:[#allocation8 + $0x778] sm:$0xff]  ;;  %v7285_v35 = vcombine.high %v312_v28, %v316_v30 }
 0x14f   :  { %2087 = vmatpush1.bf16.msra.mxu1 %v7356_v31  ;;  %v440_v31 = vld [vmem:[#allocation8 + $0x758] sm:$0xff] }
 0x150   :  { %2088 = vmatprep.subr.bf16.mxu1 %v7349_v33  ;;  %v7292_v33 = vcombine.low %v320_v19, %v324_v20  ;;  %v7413_v10 = vcombine.high %v440_v31, %v444_v32  ;;  %v284_v60 = vld [vmem:[#allocation8 + $0x278] sm:$0xff] }
 0x151   :  { %2046 = vmatpush1.bf16.msra.mxu0 %v7220_v37  ;;  %v432_v37 = vld [vmem:[#allocation8 + $0x718] sm:$0xff]  ;;  %v7253_v1 = vcombine.high %v280_v59, %v284_v60 }
 0x152   :  { %2047 = vmatprep.subr.bf16.mxu0 %v7213_v39  ;;  %v7284_v39 = vcombine.low %v312_v28, %v316_v30  ;;  %v272_v3 = vld [vmem:[#allocation8 + $0x218] sm:$0xff]  ;;  %v2347_v28 = vld [vmem:[#allocation11 + $0x5a0] sm:$0xff] }
 0x153   :  { %2089 = vmatpush1.bf16.msra.mxu1 %v7348_v38  ;;  %v436_v38 = vld [vmem:[#allocation8 + $0x738] sm:$0xff] }
 0x154   :  { %2090 = vmatprep.subr.bf16.mxu1 %v7341_v40  ;;  %v7412_v40 = vcombine.low %v440_v31, %v444_v32  ;;  %v7405_v42 = vcombine.high %v432_v37, %v436_v38  ;;  %v276_v4 = vld [vmem:[#allocation8 + $0x238] sm:$0xff]  ;;  %v8751_v31 = vld [vmem:[#allocation10] sm:$0xff] }
 0x155   :  { %2048 = vmatpush1.bf16.msra.mxu0 %v7212_v45  ;;  %v424_v45 = vld [vmem:[#allocation8 + $0x6d8] sm:$0xff]  ;;  %v7245_v11 = vcombine.high %v272_v3, %v276_v4 }
 0x156   :  { %2049 = vmatprep.subr.bf16.mxu0 %v7205_v46  ;;  %v7276_v46 = vcombine.low %v304_v36, %v308_v13 }
 0x157   :  { %2091 = vmatpush1.bf16.msra.mxu1 %v7340_v57  ;;  %v428_v57 = vld [vmem:[#allocation8 + $0x6f8] sm:$0xff] }
 0x158   :  { %2092 = vmatprep.subr.bf16.mxu1 %v7333_v47  ;;  %v7404_v47 = vcombine.low %v432_v37, %v436_v38  ;;  %v7397_v49 = vcombine.high %v424_v45, %v428_v57  ;;  %v2335_v37 = vld [vmem:[#allocation11 + $0x540] sm:$0xff] }
 0x159   :  { %2050 = vmatpush1.bf16.msra.mxu0 %v7204_v52  ;;  %v416_v52 = vld [vmem:[#allocation8 + $0x698] sm:$0xff]  ;;  %v2339_v38 = vld [vmem:[#allocation11 + $0x560] sm:$0xff] }
 0x15a   :  { %2051 = vmatprep.subr.bf16.mxu0 %v7197_v54  ;;  %v7268_v54 = vcombine.low %v296_v43, %v300_v44 }
 0x15b   :  { %2093 = vmatpush1.bf16.msra.mxu1 %v7332_v53  ;;  %v420_v53 = vld [vmem:[#allocation8 + $0x6b8] sm:$0xff] }
 0x15c   :  { %2094 = vmatprep.subr.bf16.mxu1 %v7325_v55  ;;  %v7396_v55 = vcombine.low %v424_v45, %v428_v57  ;;  %v7389_v58 = vcombine.high %v416_v52, %v420_v53  ;;  %v2199_v57 = vld [vmem:[#allocation11 + $0x100] sm:$0xff] }
 0x15d   :  { %2052 = vmatpush1.bf16.msra.mxu0 %v7196_v61  ;;  %v408_v61 = vld [vmem:[#allocation8 + $0x658] sm:$0xff] }
 0x15e   :  { %2053 = vmatprep.subr.bf16.mxu0 %v7189_v63  ;;  %v7260_v63 = vcombine.low %v288_v50, %v292_v51 }
 0x15f   :  { %2095 = vmatpush1.bf16.msra.mxu1 %v7324_v62  ;;  %v412_v62 = vld [vmem:[#allocation8 + $0x678] sm:$0xff] }
 0x160   :  { %2096 = vmatprep.subr.bf16.mxu1 %v7317_v0  ;;  %v7388_v0 = vcombine.low %v416_v52, %v420_v53  ;;  %v7381_v2 = vcombine.high %v408_v61, %v412_v62  ;;  %v7380_v9 = vcombine.low %v408_v61, %v412_v62  ;;  %v2319_v61 = vld [vmem:[#allocation11 + $0x4c0] sm:$0xff] }
 0x161   :  { %2054 = vmatpush1.bf16.msra.mxu0 %v7188_v5  ;;  %v400_v5 = vld [vmem:[#allocation8 + $0x618] sm:$0xff]  ;;  %v2323_v62 = vld [vmem:[#allocation11 + $0x4e0] sm:$0xff] }
 0x162   :  { %2055 = vmatprep.subr.bf16.mxu0 %v7181_v7  ;;  %v7252_v7 = vcombine.low %v280_v59, %v284_v60 }
 0x163   :  { %2097 = vmatpush1.bf16.msra.mxu1 %v7316_v6  ;;  %v404_v6 = vld [vmem:[#allocation8 + $0x638] sm:$0xff] }
 0x164   :  { %2098 = vmatprep.subr.bf16.mxu1 %v7309_v8  ;;  %v463_v8 = vlaneseq  ;;  %v7373_v12 = vcombine.high %v400_v5, %v404_v6  ;;  %v7372_v20 = vcombine.low %v400_v5, %v404_v6  ;;  %v2183_v5 = vld [vmem:[#allocation11 + $0x80] sm:$0xff] }
 0x165   :  { %2056 = vmatpush1.bf16.msra.mxu0 %v7180_v15  ;;  %v2227_v15 = vld [vmem:[#allocation11 + $0x1e0] sm:$0xff] }
 0x166   :  { %2057 = vmatprep.subr.bf16.mxu0 %v7301_v17  ;;  %v2355_v17 = vld [vmem:[#allocation11 + $0x5e0] sm:$0xff]  ;;  %v8746_v19 = vshrl.u32 %v463_v8, 7  ;;  %v7487_v21 = vcombine.high %v2223_v14, %v2227_v15  ;;  %v7486_v30 = vcombine.low %v2223_v14, %v2227_v15 }
 0x167   :  { %2099 = vmatpush1.bf16.msra.mxu1 %v7308_v16  ;;  %v2351_v16 = vld [vmem:[#allocation11 + $0x5c0] sm:$0xff] }
 0x168   :  { %2100 = vmatprep.subr.bf16.mxu1 %v7429_v18  ;;  %v7244_v18 = vcombine.low %v272_v3, %v276_v4  ;;  %v8749_v22 = vsub.s32 1, %v8746_v19  ;;  %v2187_v6 = vld [vmem:[#allocation11 + $0xa0] sm:$0xff] }
 0x169   :  { %2058 = vmatpush2.bf16.msra.mxu0 %v7300_v23  ;;  %v2215_v23 = vld [vmem:[#allocation11 + $0x180] sm:$0xff]  ;;  %v7447_v15 = vcombine.high %v2183_v5, %v2187_v6 }
 0x16a   :  { %2059 = vmatprep.subr.bf16.mxu0 %v7293_v25  ;;  %v7615_v25 = vcombine.high %v2351_v16, %v2355_v17  ;;  %v2311_v8 = vld [vmem:[#allocation11 + $0x480] sm:$0xff] }
 0x16b   :  { %2101 = vmatpush2.bf16.msra.mxu1 %v7428_v24  ;;  %v2219_v24 = vld [vmem:[#allocation11 + $0x1a0] sm:$0xff] }
 0x16c   :  { %2102 = vmatprep.subr.bf16.mxu1 %v7421_v27  ;;  %v2343_v27 = vld [vmem:[#allocation11 + $0x580] sm:$0xff]  ;;  %v7479_v32 = vcombine.high %v2215_v23, %v2219_v24 }
 0x16d   :  { %2060 = vmatpush2.bf16.msra.mxu0 %v7292_v33  ;;  %v7614_v33 = vcombine.low %v2351_v16, %v2355_v17  ;;  %v7607_v36 = vcombine.high %v2343_v27, %v2347_v28  ;;  %v7606_v43 = vcombine.low %v2343_v27, %v2347_v28  ;;  %v7582_v16 = vcombine.low %v2319_v61, %v2323_v62 }
 0x16e   :  { %2061 = vmatprep.subr.bf16.mxu0 %v7285_v35  ;;  %v2207_v35 = vld [vmem:[#allocation11 + $0x140] sm:$0xff] }
 0x16f   :  { %2103 = vmatpush2.bf16.msra.mxu1 %v7420_v34  ;;  %v470_v34 = vrot.slane %v8751_v31, %v8749_v22 }
 0x170   :  { %2104 = vmatprep.subr.bf16.mxu1 %v7413_v10  ;;  %v2211_v10 = vld [vmem:[#allocation11 + $0x160] sm:$0xff] }
 0x171   :  { %2062 = vmatpush2.bf16.msra.mxu0 %v7284_v39 }
 0x172   :  { %2063 = vmatprep.subr.bf16.mxu0 %v7277_v41 }
 0x173   :  { %2105 = vmatpush2.bf16.msra.mxu1 %v7412_v40  ;;  %v7478_v40 = vcombine.low %v2215_v23, %v2219_v24  ;;  %v2303_v23 = vld [vmem:[#allocation11 + $0x440] sm:$0xff] }
 0x174   :  { %2106 = vmatprep.subr.bf16.mxu1 %v7405_v42  ;;  %v7471_v42 = vcombine.high %v2207_v35, %v2211_v10  ;;  %v2307_v24 = vld [vmem:[#allocation11 + $0x460] sm:$0xff] }
 0x175   :  { %2064 = vmatpush2.bf16.msra.mxu0 %v7276_v46  ;;  %v2203_v46 = vld [vmem:[#allocation11 + $0x120] sm:$0xff] }
 0x176   :  { %2065 = vmatprep.subr.bf16.mxu0 %v7269_v48  ;;  %v2327_v48 = vld [vmem:[#allocation11 + $0x500] sm:$0xff]  ;;  %v7463_v53 = vcombine.high %v2199_v57, %v2203_v46 }
 0x177   :  { %2107 = vmatpush2.bf16.msra.mxu1 %v7404_v47  ;;  %v7599_v47 = vcombine.high %v2335_v37, %v2339_v38 }
 0x178   :  { %2108 = vmatprep.subr.bf16.mxu1 %v7397_v49  ;;  %v2331_v49 = vld [vmem:[#allocation11 + $0x520] sm:$0xff] }
 0x179   :  { %2066 = vmatpush2.bf16.msra.mxu0 %v7268_v54  ;;  %v7598_v54 = vcombine.low %v2335_v37, %v2339_v38  ;;  %v7591_v59 = vcombine.high %v2327_v48, %v2331_v49  ;;  %v7590_v3 = vcombine.low %v2327_v48, %v2331_v49  ;;  %v7566_v37 = vcombine.low %v2303_v23, %v2307_v24  ;;  %v2287_v38 = vld [vmem:[#allocation11 + $0x3c0] sm:$0xff] }
 0x17a   :  { %2067 = vmatprep.subr.bf16.mxu0 %v7261_v56  ;;  %v2191_v56 = vld [vmem:[#allocation11 + $0xc0] sm:$0xff] }
 0x17b   :  { %2109 = vmatpush2.bf16.msra.mxu1 %v7396_v55  ;;  %v2407_v49 = vld [vmem:[#allocation11 + $0x780] sm:$0xff] }
 0x17c   :  { %2110 = vmatprep.subr.bf16.mxu1 %v7389_v58  ;;  %v2195_v58 = vld [vmem:[#allocation11 + $0xe0] sm:$0xff] }
 0x17d   :  { %2068 = vmatpush2.bf16.msra.mxu0 %v7260_v63  ;;  %v7454_v14 = vcombine.low %v2191_v56, %v2195_v58 }
 0x17e   :  { %2069 = vmatprep.subr.bf16.mxu0 %v7253_v1  ;;  %v7462_v1 = vcombine.low %v2199_v57, %v2203_v46  ;;  %v2279_v46 = vld [vmem:[#allocation11 + $0x380] sm:$0xff] }
 0x17f   :  { %2111 = vmatpush2.bf16.msra.mxu1 %v7388_v0 }
 0x180   :  { %2112 = vmatprep.subr.bf16.mxu1 %v7381_v2  ;;  %v7455_v2 = vcombine.high %v2191_v56, %v2195_v58  ;;  %v2399_v58 = vld [vmem:[#allocation11 + $0x740] sm:$0xff] }
 0x181   :  { %2070 = vmatpush2.bf16.msra.mxu0 %v7252_v7  ;;  %v7583_v7 = vcombine.high %v2319_v61, %v2323_v62 }
 0x182   :  { %2071 = vmatprep.subr.bf16.mxu0 %v7245_v11 }
 0x183   :  { %2113 = vmatpush2.bf16.msra.mxu1 %v7380_v9  ;;  %v2315_v9 = vld [vmem:[#allocation11 + $0x4a0] sm:$0xff] }
 0x184   :  { %2114 = vmatprep.subr.bf16.mxu1 %v7373_v12  ;;  %v7574_v28 = vcombine.low %v2311_v8, %v2315_v9 }
 0x185   :  { %2072 = vmatpush2.bf16.msra.mxu0 %v7244_v18  ;;  %v2175_v18 = vld [vmem:[#allocation11 + $0x40] sm:$0xff] }
 0x186   :  { %5281 = vmatprep.subr.bf16.mxu0 %v7487_v21  ;;  %v7575_v21 = vcombine.high %v2311_v8, %v2315_v9  ;;  %v2259_v8 = vld [vmem:[#allocation11 + $0x2e0] sm:$0xff] }
 0x187   :  { %2115 = vmatpush2.bf16.msra.mxu1 %v7372_v20  ;;  %v2179_v20 = vld [vmem:[#allocation11 + $0x60] sm:$0xff] }
 0x188   :  { %5324 = vmatprep.subr.bf16.mxu1 %v7615_v25  ;;  %v8755_v13 = vpop.f32.mrf.mxu0  ;;  %2074 = vmatmul.mubr.bf16.vlgmr.msra.gmra.mxu0 %v8740_v26  ;;  %v7446_v25 = vcombine.low %v2183_v5, %v2187_v6  ;;  %v7439_v27 = vcombine.high %v2175_v18, %v2179_v20 }
 0x189   :  { %5282 = vmatpush1.bf16.msra.mxu0 %v7486_v30  ;;  %v2167_v30 = vld [vmem:[#allocation11] sm:$0xff] }
 0x18a   :  { %v8758_v39 = vpop.f32.mrf.mxu1  ;;  %2117 = vmatmul.mubr.bf16.vlgmr.msra.gmra.mxu1 %v8743_v29  ;;  %v1819_v41 = vpop.f32.mrf.mxu0  ;;  %5283 = vmatprep.subr.bf16.mxu0 %v7479_v32  ;;  %v7470_v29 = vcombine.low %v2207_v35, %v2211_v10  ;;  %v2171_v32 = vld [vmem:[#allocation11 + $0x20] sm:$0xff]  ;;  %v7438_v10 = vcombine.low %v2175_v18, %v2179_v20 }
 0x18b   :  { %5325 = vmatpush1.bf16.msra.mxu1 %v7614_v33  ;;  %v1820_v44 = vadd.f32 %v1819_v41, %v470_v34  ;;  %v7567_v33 = vcombine.high %v2303_v23, %v2307_v24  ;;  %v2299_v35 = vld [vmem:[#allocation11 + $0x420] sm:$0xff] }
 0x18c   :  { %v1862_v45 = vpop.f32.mrf.mxu1  ;;  %5326 = vmatprep.subr.bf16.mxu1 %v7607_v36  ;;  %v8761_v26 = vpop.f32.mrf.mxu0  ;;  %v7431_v36 = vcombine.high %v2167_v30, %v2171_v32  ;;  %v2247_v20 = vld [vmem:[#allocation11 + $0x280] sm:$0xff] }
 0x18d   :  { %v1863_v50 = vadd.f32 %v1862_v45, %v1820_v44  ;;  %5284 = vmatpush1.bf16.msra.mxu0 %v7478_v40  ;;  %v2291_v40 = vld [vmem:[#allocation11 + $0x3e0] sm:$0xff]  ;;  %v7430_v44 = vcombine.low %v2167_v30, %v2171_v32 }
 0x18e   :  { %v8763_v51 = vpop.f32.mrf.mxu1  ;;  %v1823_v52 = vpop.f32.mrf.mxu0  ;;  %5285 = vmatprep.subr.bf16.mxu0 %v7471_v42  ;;  %v2415_v42 = vld [vmem:[#allocation11 + $0x7c0] sm:$0xff]  ;;  %v7551_v45 = vcombine.high %v2287_v38, %v2291_v40 }
 0x18f   :  { %5327 = vmatpush1.bf16.msra.mxu1 %v7606_v43  ;;  %v1824_v55 = vadd.f32 %v1823_v52, %v470_v34  ;;  %v2128_v63 = vmul.f32 0.1, %v1863_v50  ;;  %v2295_v34 = vld [vmem:[#allocation11 + $0x400] sm:$0xff] }
 0x190   :  { %5328 = vmatprep.subr.bf16.mxu1 %v7599_v47  ;;  %v1866_v60 = vpop.f32.mrf.mxu1  ;;  %v7559_v41 = vcombine.high %v2295_v34, %v2299_v35  ;;  %v2419_v43 = vld [vmem:[#allocation11 + $0x7e0] sm:$0xff]  ;;  %v7558_v57 = vcombine.low %v2295_v34, %v2299_v35 }
 0x191   :  { %v1867_v0 = vadd.f32 %v1866_v60, %v1824_v55  ;;  %5286 = vmatpush1.bf16.msra.mxu0 %v7470_v29  ;;  %v2144_v11 = vmax.f32 %v1863_v50, %v2128_v63  ;;  %v2283_v47 = vld [vmem:[#allocation11 + $0x3a0] sm:$0xff]  ;;  %v7679_v48 = vcombine.high %v2415_v42, %v2419_v43  ;;  %v7550_v29 = vcombine.low %v2287_v38, %v2291_v40 }
 0x192   :  { %5287 = vmatprep.subr.bf16.mxu0 %v7463_v53  ;;  %v2411_v50 = vld [vmem:[#allocation11 + $0x7a0] sm:$0xff]  ;;  %v7543_v52 = vcombine.high %v2279_v46, %v2283_v47  ;;  %v7678_v53 = vcombine.low %v2415_v42, %v2419_v43  ;;  %v7542_v60 = vcombine.low %v2279_v46, %v2283_v47 }
 0x193   :  { %5329 = vmatpush1.bf16.msra.mxu1 %v7598_v54  ;;  %v2136_v4 = vmul.f32 0.1, %v1867_v0  ;;  %v2271_v54 = vld [vmem:[#allocation11 + $0x340] sm:$0xff]  ;;  %v7671_v56 = vcombine.high %v2407_v49, %v2411_v50  ;;  %v7670_v62 = vcombine.low %v2407_v49, %v2411_v50 }
 0x194   :  { %5330 = vmatprep.subr.bf16.mxu1 %v7591_v59  ;;  %v2275_v55 = vld [vmem:[#allocation11 + $0x360] sm:$0xff] }
 0x195   :  { %v2152_v12 = vmax.f32 %v1867_v0, %v2136_v4  ;;  %5288 = vmatpush1.bf16.msra.mxu0 %v7462_v1  ;;  %v2403_v59 = vld [vmem:[#allocation11 + $0x760] sm:$0xff]  ;;  %v7535_v61 = vcombine.high %v2271_v54, %v2275_v55  ;;  %v7534_v4 = vcombine.low %v2271_v54, %v2275_v55 }
 0x196   :  { %5289 = vmatprep.subr.bf16.mxu0 %v7455_v2  ;;  %v2263_v63 = vld [vmem:[#allocation11 + $0x300] sm:$0xff]  ;;  %v7663_v1 = vcombine.high %v2399_v58, %v2403_v59  ;;  %v7662_v6 = vcombine.low %v2399_v58, %v2403_v59  ;;  %v473_v58 = vsub.s32 2, %v8746_v19 }
 0x197   :  { %5331 = vmatpush1.bf16.msra.mxu1 %v7590_v3  ;;  %v8765_v17 = vpack.c.bf16 %v2152_v12, %v2144_v11  ;;  %v2267_v0 = vld [vmem:[#allocation11 + $0x320] sm:$0xff]  ;;  %v8769_v11 = vsub.s32 0, %v8746_v19 }
 0x198   :  { %5332 = vmatprep.subr.bf16.mxu1 %v7583_v7  ;;  %v2391_v2 = vld [vmem:[#allocation11 + $0x700] sm:$0xff]  ;;  %v7527_v5 = vcombine.high %v2263_v63, %v2267_v0 }
 0x199   :  { %5290 = vmatpush1.bf16.msra.mxu0 %v7454_v14  ;;  %5313 = vmatprep.mubr.bf16.mxu0 %v8765_v17  ;;  %v2395_v3 = vld [vmem:[#allocation11 + $0x720] sm:$0xff]  ;;  %v466_v24 = vrot.slane %v8751_v31, %v8769_v11 }
 0x19a   :  { %5291 = vmatprep.subr.bf16.mxu0 %v7447_v15  ;;  %v2255_v7 = vld [vmem:[#allocation11 + $0x2c0] sm:$0xff]  ;;  %v7655_v9 = vcombine.high %v2391_v2, %v2395_v3  ;;  %v7526_v15 = vcombine.low %v2263_v63, %v2267_v0  ;;  %v7654_v18 = vcombine.low %v2391_v2, %v2395_v3 }
 0x19b   :  { %5333 = vmatpush1.bf16.msra.mxu1 %v7582_v16  ;;  %v2383_v12 = vld [vmem:[#allocation11 + $0x6c0] sm:$0xff]  ;;  %v7519_v16 = vcombine.high %v2255_v7, %v2259_v8  ;;  %v1822_v30 = vadd.f32 %v8761_v26, %v466_v24 }
 0x19c   :  { %5334 = vmatprep.subr.bf16.mxu1 %v7575_v21  ;;  %v2387_v14 = vld [vmem:[#allocation11 + $0x6e0] sm:$0xff] }
 0x19d   :  { %5292 = vmatpush1.bf16.msra.mxu0 %v7446_v25  ;;  %v2251_v21 = vld [vmem:[#allocation11 + $0x2a0] sm:$0xff]  ;;  %v7647_v23 = vcombine.high %v2383_v12, %v2387_v14 }
 0x19e   :  { %5293 = vmatprep.subr.bf16.mxu0 %v7439_v27  ;;  %v2375_v25 = vld [vmem:[#allocation11 + $0x680] sm:$0xff]  ;;  %v7511_v32 = vcombine.high %v2247_v20, %v2251_v21  ;;  %v7510_v40 = vcombine.low %v2247_v20, %v2251_v21 }
 0x19f   :  { %5335 = vmatpush1.bf16.msra.mxu1 %v7574_v28  ;;  %v2379_v27 = vld [vmem:[#allocation11 + $0x6a0] sm:$0xff]  ;;  %v7518_v28 = vcombine.low %v2255_v7, %v2259_v8 }
 0x1a0   :  { %5336 = vmatprep.subr.bf16.mxu1 %v7567_v33  ;;  %v7646_v33 = vcombine.low %v2383_v12, %v2387_v14  ;;  %v2239_v34 = vld [vmem:[#allocation11 + $0x240] sm:$0xff]  ;;  %v7638_v26 = vcombine.low %v2375_v25, %v2379_v27 }
 0x1a1   :  { %5294 = vmatpush1.bf16.msra.mxu0 %v7438_v10  ;;  %v2243_v35 = vld [vmem:[#allocation11 + $0x260] sm:$0xff]  ;;  %v7639_v10 = vcombine.high %v2375_v25, %v2379_v27 }
 0x1a2   :  { %5295 = vmatprep.subr.bf16.mxu0 %v7431_v36  ;;  %v1818_v36 = vadd.f32 %v8755_v13, %v466_v24  ;;  %v2371_v38 = vld [vmem:[#allocation11 + $0x660] sm:$0xff]  ;;  %v7503_v42 = vcombine.high %v2239_v34, %v2243_v35  ;;  %v7502_v13 = vcombine.low %v2239_v34, %v2243_v35 }
 0x1a3   :  { %5337 = vmatpush1.bf16.msra.mxu1 %v7566_v37  ;;  %v2367_v37 = vld [vmem:[#allocation11 + $0x640] sm:$0xff] }
 0x1a4   :  { %5338 = vmatprep.subr.bf16.mxu1 %v7559_v41  ;;  %v1865_v41 = vadd.f32 %v8763_v51, %v1822_v30  ;;  %v2231_v43 = vld [vmem:[#allocation11 + $0x200] sm:$0xff]  ;;  %v7630_v50 = vcombine.low %v2367_v37, %v2371_v38 }
 0x1a5   :  { %5296 = vmatpush1.bf16.msra.mxu0 %v7430_v44  ;;  %v2235_v44 = vld [vmem:[#allocation11 + $0x220] sm:$0xff] }
 0x1a6   :  { %5297 = vmatprep.subr.bf16.mxu0 %v7551_v45  ;;  %v7631_v45 = vcombine.high %v2367_v37, %v2371_v38  ;;  %v2359_v46 = vld [vmem:[#allocation11 + $0x600] sm:$0xff]  ;;  %v7495_v49 = vcombine.high %v2231_v43, %v2235_v44 }
 0x1a7   :  { %5339 = vmatpush1.bf16.msra.mxu1 %v7558_v57  ;;  %v1861_v57 = vadd.f32 %v8758_v39, %v1818_v36  ;;  %v2363_v47 = vld [vmem:[#allocation11 + $0x620] sm:$0xff]  ;;  %v7494_v39 = vcombine.low %v2231_v43, %v2235_v44 }
 0x1a8   :  { %5340 = vmatprep.subr.bf16.mxu1 %v7679_v48  ;;  %v2135_v48 = vmul.f32 0.1, %v1865_v41  ;;  %v7623_v51 = vcombine.high %v2359_v46, %v2363_v47  ;;  %v8777_v54 = vld [vmem:[#allocation11 + $0xdc0] sm:$0xff]  ;;  %v7622_v59 = vcombine.low %v2359_v46, %v2363_v47 }
 0x1a9   :  { %5298 = vmatpush2.bf16.msra.mxu0 %v7550_v29  ;;  %v2479_v29 = vld [vmem:[#allocation11 + $0x9c0] sm:$0xff] }
 0x1aa   :  { %5299 = vmatprep.subr.bf16.mxu0 %v7543_v52  ;;  %v2483_v52 = vld [vmem:[#allocation11 + $0x9e0] sm:$0xff] }
 0x1ab   :  { %5341 = vmatpush2.bf16.msra.mxu1 %v7678_v53  ;;  %v2127_v53 = vmul.f32 0.1, %v1861_v57  ;;  %v8779_v55 = vld [vmem:[#allocation11 + $0xde0] sm:$0xff]  ;;  %v7742_v2 = vcombine.low %v2479_v29, %v2483_v52 }
 0x1ac   :  { %5342 = vmatprep.subr.bf16.mxu1 %v7671_v56  ;;  %v2151_v56 = vmax.f32 %v1865_v41, %v2135_v48  ;;  %v2475_v63 = vld [vmem:[#allocation11 + $0x9a0] sm:$0xff]  ;;  %v7871_v0 = vcombine.high %v8777_v54, %v8779_v55 }
 0x1ad   :  { %5300 = vmatpush2.bf16.msra.mxu0 %v7542_v60  ;;  %v7743_v60 = vcombine.high %v2479_v29, %v2483_v52  ;;  %v2463_v7 = vld [vmem:[#allocation11 + $0x940] sm:$0xff] }
 0x1ae   :  { %5301 = vmatprep.subr.bf16.mxu0 %v7535_v61  ;;  %v477_v61 = vsub.s32 3, %v8746_v19  ;;  %v2467_v8 = vld [vmem:[#allocation11 + $0x960] sm:$0xff] }
 0x1af   :  { %5343 = vmatpush2.bf16.msra.mxu1 %v7670_v62  ;;  %v2471_v62 = vld [vmem:[#allocation11 + $0x980] sm:$0xff] }
 0x1b0   :  { %5344 = vmatprep.subr.bf16.mxu1 %v7663_v1  ;;  %v2143_v1 = vmax.f32 %v1861_v57, %v2127_v53  ;;  %v7734_v14 = vcombine.low %v2471_v62, %v2475_v63  ;;  %v2459_v24 = vld [vmem:[#allocation11 + $0x920] sm:$0xff] }
 0x1b1   :  { %5302 = vmatpush2.bf16.msra.mxu0 %v7534_v4  ;;  %v474_v4 = vrot.slane %v8751_v31, %v473_v58  ;;  %v2447_v37 = vld [vmem:[#allocation11 + $0x8c0] sm:$0xff] }
 0x1b2   :  { %5303 = vmatprep.subr.bf16.mxu0 %v7527_v5  ;;  %v8785_v3 = vpack.c.bf16 %v2151_v56, %v2143_v1  ;;  %v7735_v5 = vcombine.high %v2471_v62, %v2475_v63  ;;  %v2451_v38 = vld [vmem:[#allocation11 + $0x8e0] sm:$0xff]  ;;  %v8798_v62 = vld [vmem:[#allocation11 + $0x5c8] sm:$0xff] }
 0x1b3   :  { %5345 = vmatpush2.bf16.msra.mxu1 %v7662_v6  ;;  %v478_v6 = vrot.slane %v8751_v31, %v477_v61  ;;  %v2439_v46 = vld [vmem:[#allocation11 + $0x880] sm:$0xff]  ;;  %v8800_v63 = vld [vmem:[#allocation11 + $0x5e8] sm:$0xff] }
 0x1b4   :  { %5346 = vmatprep.subr.bf16.mxu1 %v7655_v9  ;;  %v2443_v47 = vld [vmem:[#allocation11 + $0x8a0] sm:$0xff] }
 0x1b5   :  { %5304 = vmatpush2.bf16.msra.mxu0 %v7526_v15  ;;  %v2603_v29 = vld [vmem:[#allocation11 + $0xda0] sm:$0xff]  ;;  %v7703_v53 = vcombine.high %v2439_v46, %v2443_v47 }
 0x1b6   :  { %5305 = vmatprep.subr.bf16.mxu0 %v7519_v16 }
 0x1b7   :  { %5347 = vmatpush2.bf16.msra.mxu1 %v7654_v18  ;;  %v7727_v18 = vcombine.high %v2463_v7, %v2467_v8 }
 0x1b8   :  { %5348 = vmatprep.subr.bf16.mxu1 %v7647_v23  ;;  %v2455_v23 = vld [vmem:[#allocation11 + $0x900] sm:$0xff] }
 0x1b9   :  { %5306 = vmatpush2.bf16.msra.mxu0 %v7518_v28  ;;  %v7719_v35 = vcombine.high %v2455_v23, %v2459_v24  ;;  %v7718_v43 = vcombine.low %v2455_v23, %v2459_v24 }
 0x1ba   :  { %5307 = vmatprep.subr.bf16.mxu0 %v7511_v32  ;;  %v7726_v32 = vcombine.low %v2463_v7, %v2467_v8  ;;  %v2427_v7 = vld [vmem:[#allocation11 + $0x820] sm:$0xff] }
 0x1bb   :  { %5349 = vmatpush2.bf16.msra.mxu1 %v7646_v33 }
 0x1bc   :  { %5350 = vmatprep.subr.bf16.mxu1 %v7639_v10 }
 0x1bd   :  { %5308 = vmatpush2.bf16.msra.mxu0 %v7510_v40 }
 0x1be   :  { %5309 = vmatprep.subr.bf16.mxu0 %v7503_v42 }
 0x1bf   :  { %5351 = vmatpush2.bf16.msra.mxu1 %v7638_v26 }
 0x1c0   :  { %5352 = vmatprep.subr.bf16.mxu1 %v7631_v45  ;;  %v7711_v45 = vcombine.high %v2447_v37, %v2451_v38 }
 0x1c1   :  { %5310 = vmatpush2.bf16.msra.mxu0 %v7502_v13 }
 0x1c2   :  { %5311 = vmatprep.subr.bf16.mxu0 %v7495_v49 }
 0x1c3   :  { %5353 = vmatpush2.bf16.msra.mxu1 %v7630_v50  ;;  %v7710_v50 = vcombine.low %v2447_v37, %v2451_v38  ;;  %v2527_v38 = vld [vmem:[#allocation11 + $0xb40] sm:$0xff] }
 0x1c4   :  { %5354 = vmatprep.subr.bf16.mxu1 %v7623_v51  ;;  %v2599_v51 = vld [vmem:[#allocation11 + $0xd80] sm:$0xff] }
 0x1c5   :  { %5312 = vmatpush2.bf16.msra.mxu0 %v7494_v39  ;;  %v2431_v39 = vld [vmem:[#allocation11 + $0x840] sm:$0xff]  ;;  %v7863_v1 = vcombine.high %v2599_v51, %v2603_v29  ;;  %v7862_v8 = vcombine.low %v2599_v51, %v2603_v29 }
 0x1c6   :  { %5367 = vmatprep.subr.bf16.mxu0 %v7743_v60  ;;  %v7870_v60 = vcombine.low %v8777_v54, %v8779_v55  ;;  %v2423_v55 = vld [vmem:[#allocation11 + $0x800] sm:$0xff] }
 0x1c7   :  { %5355 = vmatpush2.bf16.msra.mxu1 %v7622_v59  ;;  %v2435_v59 = vld [vmem:[#allocation11 + $0x860] sm:$0xff]  ;;  %v7686_v24 = vcombine.low %v2423_v55, %v2427_v7 }
 0x1c8   :  { %5410 = vmatprep.subr.bf16.mxu1 %v7871_v0  ;;  %v1903_v9 = vpop.f32.mrf.mxu0  ;;  %5314 = vmatmul.mubr.bf16.vlgmr.msra.gmra.mxu0 %v8785_v3  ;;  %v7695_v54 = vcombine.high %v2431_v39, %v2435_v59  ;;  %v2511_v29 = vld [vmem:[#allocation11 + $0xac0] sm:$0xff] }
 0x1c9   :  { %5368 = vmatpush1.bf16.msra.mxu0 %v7742_v2  ;;  %v1904_v15 = vadd.f32 %v1903_v9, %v474_v4  ;;  %v7702_v2 = vcombine.low %v2439_v46, %v2443_v47  ;;  %v2523_v46 = vld [vmem:[#allocation11 + $0xb20] sm:$0xff] }
 0x1ca   :  { %v1946_v12 = vpop.f32.mrf.mxu1  ;;  %v1905_v16 = vpop.f32.mrf.mxu0  ;;  %5369 = vmatprep.subr.bf16.mxu0 %v7735_v5  ;;  %v2595_v5 = vld [vmem:[#allocation11 + $0xd60] sm:$0xff] }
 0x1cb   :  { %v1906_v20 = vadd.f32 %v1905_v16, %v478_v6  ;;  %v1947_v33 = vadd.f32 %v1946_v12, %v1904_v15  ;;  %v7694_v12 = vcombine.low %v2431_v39, %v2435_v59  ;;  %v2587_v15 = vld [vmem:[#allocation11 + $0xd20] sm:$0xff]  ;;  %v7687_v16 = vcombine.high %v2423_v55, %v2427_v7 }
 0x1cc   :  { %v1948_v21 = vpop.f32.mrf.mxu1  ;;  %v1907_v25 = vpop.f32.mrf.mxu0 }
 0x1cd   :  { %v1949_v27 = vadd.f32 %v1948_v21, %v1906_v20  ;;  %v1908_v28 = vadd.f32 %v1907_v25, %v474_v4  ;;  %5370 = vmatpush1.bf16.msra.mxu0 %v7734_v14  ;;  %v2129_v44 = vmul.f32 0.1, %v1947_v33  ;;  %v2591_v4 = vld [vmem:[#allocation11 + $0xd40] sm:$0xff] }
 0x1ce   :  { %v1950_v30 = vpop.f32.mrf.mxu1  ;;  %v1909_v34 = vpop.f32.mrf.mxu0  ;;  %5371 = vmatprep.subr.bf16.mxu0 %v7727_v18  ;;  %v7855_v9 = vcombine.high %v2591_v4, %v2595_v5  ;;  %v2583_v14 = vld [vmem:[#allocation11 + $0xd00] sm:$0xff]  ;;  %v7854_v21 = vcombine.low %v2591_v4, %v2595_v5 }
 0x1cf   :  { %v1951_v10 = vadd.f32 %v1950_v30, %v1908_v28  ;;  %v1910_v36 = vadd.f32 %v1909_v34, %v478_v6  ;;  %v2130_v41 = vmul.f32 0.1, %v1949_v27  ;;  %v2145_v52 = vmax.f32 %v1947_v33, %v2129_v44  ;;  %v2543_v18 = vld [vmem:[#allocation11 + $0xbc0] sm:$0xff] }
 0x1d0   :  { %v1952_v40 = vpop.f32.mrf.mxu1  ;;  %v7616_v6 = vcombine.low %v8798_v62, %v8800_v63  ;;  %v2547_v20 = vld [vmem:[#allocation11 + $0xbe0] sm:$0xff]  ;;  %v7847_v23 = vcombine.high %v2583_v14, %v2587_v15  ;;  %v7846_v33 = vcombine.low %v2583_v14, %v2587_v15 }
 0x1d1   :  { %v2137_v42 = vmul.f32 0.1, %v1951_v10  ;;  %v1953_v26 = vadd.f32 %v1952_v40, %v1910_v36  ;;  %5372 = vmatpush1.bf16.msra.mxu0 %v7726_v32  ;;  %v2146_v48 = vmax.f32 %v1949_v27, %v2130_v41  ;;  %v2575_v25 = vld [vmem:[#allocation11 + $0xcc0] sm:$0xff]  ;;  %v7807_v28 = vcombine.high %v2543_v18, %v2547_v20 }
 0x1d2   :  { %5373 = vmatprep.subr.bf16.mxu0 %v7719_v35  ;;  %v2579_v27 = vld [vmem:[#allocation11 + $0xce0] sm:$0xff]  ;;  %v7806_v35 = vcombine.low %v2543_v18, %v2547_v20 }
 0x1d3   :  { %v2138_v57 = vmul.f32 0.1, %v1953_v26  ;;  %v2153_v13 = vmax.f32 %v1951_v10, %v2137_v42  ;;  %v2535_v30 = vld [vmem:[#allocation11 + $0xb80] sm:$0xff]  ;;  %v7839_v34 = vcombine.high %v2575_v25, %v2579_v27  ;;  %v7838_v41 = vcombine.low %v2575_v25, %v2579_v27 }
 0x1d4   :  { %v2539_v32 = vld [vmem:[#allocation11 + $0xba0] sm:$0xff] }
 0x1d5   :  { %v2154_v49 = vmax.f32 %v1953_v26, %v2138_v57  ;;  %5374 = vmatpush1.bf16.msra.mxu0 %v7718_v43  ;;  %v8802_v0 = vpack.c.bf16 %v2153_v13, %v2145_v52  ;;  %v2567_v10 = vld [vmem:[#allocation11 + $0xc80] sm:$0xff]  ;;  %v7799_v37 = vcombine.high %v2535_v30, %v2539_v32  ;;  %v7798_v26 = vcombine.low %v2535_v30, %v2539_v32 }
 0x1d6   :  { %5375 = vmatprep.subr.bf16.mxu0 %v7711_v45  ;;  %v2571_v36 = vld [vmem:[#allocation11 + $0xca0] sm:$0xff] }
 0x1d7   :  { %v8794_v56 = vpack.c.bf16 %v2154_v49, %v2146_v48  ;;  %v2531_v40 = vld [vmem:[#allocation11 + $0xb60] sm:$0xff]  ;;  %v7831_v42 = vcombine.high %v2567_v10, %v2571_v36  ;;  %v7830_v47 = vcombine.low %v2567_v10, %v2571_v36  ;;  %v8808_v10 = vld [vmem:[#allocation11 + $0x1c8] sm:$0xff] }
 0x1d8   :  { %v2559_v43 = vld [vmem:[#allocation11 + $0xc40] sm:$0xff]  ;;  %v7791_v45 = vcombine.high %v2527_v38, %v2531_v40  ;;  %v7790_v48 = vcombine.low %v2527_v38, %v2531_v40  ;;  %v8810_v36 = vld [vmem:[#allocation11 + $0x1e8] sm:$0xff] }
 0x1d9   :  { %5356 = vmatprep.mubr.bf16.mxu1 %v8794_v56  ;;  %5376 = vmatpush1.bf16.msra.mxu0 %v7710_v50  ;;  %v2563_v44 = vld [vmem:[#allocation11 + $0xc60] sm:$0xff] }
 0x1da   :  { %5357 = vmatmul.mubr.bf16.vlgmr.msra.gmra.mxu1 %v8802_v0  ;;  %5377 = vmatprep.subr.bf16.mxu0 %v7703_v53  ;;  %v2519_v57 = vld [vmem:[#allocation11 + $0xb00] sm:$0xff]  ;;  %v7823_v13 = vcombine.high %v2559_v43, %v2563_v44  ;;  %v7822_v53 = vcombine.low %v2559_v43, %v2563_v44  ;;  %v7489_v43 = vcombine.high %v8808_v10, %v8810_v36  ;;  %v485_v44 = vsub.s32 5, %v8746_v19 }
 0x1db   :  { %5411 = vmatpush1.bf16.msra.mxu1 %v7870_v60  ;;  %v2551_v49 = vld [vmem:[#allocation11 + $0xc00] sm:$0xff]  ;;  %v7783_v51 = vcombine.high %v2519_v57, %v2523_v46  ;;  %v7782_v59 = vcombine.low %v2519_v57, %v2523_v46 }
 0x1dc   :  { %5412 = vmatprep.subr.bf16.mxu1 %v7863_v1  ;;  %v2555_v50 = vld [vmem:[#allocation11 + $0xc20] sm:$0xff] }
 0x1dd   :  { %5378 = vmatpush1.bf16.msra.mxu0 %v7702_v2  ;;  %v2515_v52 = vld [vmem:[#allocation11 + $0xae0] sm:$0xff]  ;;  %v7815_v39 = vcombine.high %v2551_v49, %v2555_v50 }
 0x1de   :  { %5379 = vmatprep.subr.bf16.mxu0 %v7695_v54  ;;  %v2671_v60 = vld [vmem:[#allocation11 + $0xfc0] sm:$0xff]  ;;  %v7775_v2 = vcombine.high %v2511_v29, %v2515_v52  ;;  %v7814_v54 = vcombine.low %v2551_v49, %v2555_v50  ;;  %v7774_v7 = vcombine.low %v2511_v29, %v2515_v52 }
 0x1df   :  { %5413 = vmatpush1.bf16.msra.mxu1 %v7862_v8  ;;  %v2675_v1 = vld [vmem:[#allocation11 + $0xfe0] sm:$0xff] }
 0x1e0   :  { %5414 = vmatprep.subr.bf16.mxu1 %v7855_v9  ;;  %v2503_v4 = vld [vmem:[#allocation11 + $0xa80] sm:$0xff]  ;;  %v7935_v55 = vcombine.high %v2671_v60, %v2675_v1 }
 0x1e1   :  { %5380 = vmatpush1.bf16.msra.mxu0 %v7694_v12  ;;  %v2507_v5 = vld [vmem:[#allocation11 + $0xaa0] sm:$0xff] }
 0x1e2   :  { %5381 = vmatprep.subr.bf16.mxu0 %v7687_v16  ;;  %v2663_v8 = vld [vmem:[#allocation11 + $0xf80] sm:$0xff]  ;;  %v7767_v12 = vcombine.high %v2503_v4, %v2507_v5  ;;  %v7934_v16 = vcombine.low %v2671_v60, %v2675_v1  ;;  %v7766_v20 = vcombine.low %v2503_v4, %v2507_v5 }
 0x1e3   :  { %5415 = vmatpush1.bf16.msra.mxu1 %v7854_v21  ;;  %v2667_v9 = vld [vmem:[#allocation11 + $0xfa0] sm:$0xff] }
 0x1e4   :  { %5416 = vmatprep.subr.bf16.mxu1 %v7847_v23  ;;  %v2495_v14 = vld [vmem:[#allocation11 + $0xa40] sm:$0xff]  ;;  %v7927_v18 = vcombine.high %v2663_v8, %v2667_v9 }
 0x1e5   :  { %5382 = vmatpush1.bf16.msra.mxu0 %v7686_v24  ;;  %v2499_v15 = vld [vmem:[#allocation11 + $0xa60] sm:$0xff] }
 0x1e6   :  { %5383 = vmatprep.subr.bf16.mxu0 %v7807_v28  ;;  %v2655_v21 = vld [vmem:[#allocation11 + $0xf40] sm:$0xff]  ;;  %v7759_v24 = vcombine.high %v2495_v14, %v2499_v15  ;;  %v7926_v28 = vcombine.low %v2663_v8, %v2667_v9  ;;  %v7758_v32 = vcombine.low %v2495_v14, %v2499_v15 }
 0x1e7   :  { %5417 = vmatpush1.bf16.msra.mxu1 %v7846_v33  ;;  %v2659_v23 = vld [vmem:[#allocation11 + $0xf60] sm:$0xff] }
 0x1e8   :  { %5418 = vmatprep.subr.bf16.mxu1 %v7839_v34  ;;  %v2487_v25 = vld [vmem:[#allocation11 + $0xa00] sm:$0xff]  ;;  %v7919_v30 = vcombine.high %v2655_v21, %v2659_v23 }
 0x1e9   :  { %5384 = vmatpush2.bf16.msra.mxu0 %v7806_v35  ;;  %v2491_v27 = vld [vmem:[#allocation11 + $0xa20] sm:$0xff] }
 0x1ea   :  { %5385 = vmatprep.subr.bf16.mxu0 %v7799_v37  ;;  %v2647_v33 = vld [vmem:[#allocation11 + $0xf00] sm:$0xff]  ;;  %v7751_v35 = vcombine.high %v2487_v25, %v2491_v27  ;;  %v7918_v37 = vcombine.low %v2655_v21, %v2659_v23  ;;  %v7750_v40 = vcombine.low %v2487_v25, %v2491_v27 }
 0x1eb   :  { %5419 = vmatpush1.bf16.msra.mxu1 %v7838_v41  ;;  %v2651_v34 = vld [vmem:[#allocation11 + $0xf20] sm:$0xff] }
 0x1ec   :  { %5420 = vmatprep.subr.bf16.mxu1 %v7831_v42  ;;  %v7911_v38 = vcombine.high %v2647_v33, %v2651_v34  ;;  %v2639_v41 = vld [vmem:[#allocation11 + $0xec0] sm:$0xff] }
 0x1ed   :  { %5386 = vmatpush2.bf16.msra.mxu0 %v7798_v26  ;;  %v2643_v42 = vld [vmem:[#allocation11 + $0xee0] sm:$0xff]  ;;  %v481_v26 = vsub.s32 4, %v8746_v19 }
 0x1ee   :  { %5387 = vmatprep.subr.bf16.mxu0 %v7791_v45  ;;  %v7910_v45 = vcombine.low %v2647_v33, %v2651_v34  ;;  %v7903_v57 = vcombine.high %v2639_v41, %v2643_v42  ;;  %v2631_v46 = vld [vmem:[#allocation11 + $0xe80] sm:$0xff]  ;;  %v7902_v49 = vcombine.low %v2639_v41, %v2643_v42  ;;  %v7488_v41 = vcombine.low %v8808_v10, %v8810_v36 }
 0x1ef   :  { %5421 = vmatpush1.bf16.msra.mxu1 %v7830_v47  ;;  %v2635_v47 = vld [vmem:[#allocation11 + $0xea0] sm:$0xff] }
 0x1f0   :  { %5422 = vmatprep.subr.bf16.mxu1 %v7823_v13  ;;  %v482_v13 = vrot.slane %v8751_v31, %v481_v26  ;;  %v2623_v52 = vld [vmem:[#allocation11 + $0xe40] sm:$0xff] }
 0x1f1   :  { %5388 = vmatpush2.bf16.msra.mxu0 %v7790_v48  ;;  %v486_v48 = vrot.slane %v8751_v31, %v485_v44  ;;  %v2619_v8 = vld [vmem:[#allocation11 + $0xe20] sm:$0xff] }
 0x1f2   :  { %5389 = vmatprep.subr.bf16.mxu0 %v7783_v51  ;;  %v7895_v51 = vcombine.high %v2631_v46, %v2635_v47 }
 0x1f3   :  { %5423 = vmatpush1.bf16.msra.mxu1 %v7822_v53  ;;  %v2627_v53 = vld [vmem:[#allocation11 + $0xe60] sm:$0xff] }
 0x1f4   :  { %5424 = vmatprep.subr.bf16.mxu1 %v7815_v39  ;;  %v7887_v5 = vcombine.high %v2623_v52, %v2627_v53 }
 0x1f5   :  { %5390 = vmatpush2.bf16.msra.mxu0 %v7782_v59 }
 0x1f6   :  { %5391 = vmatprep.subr.bf16.mxu0 %v7775_v2  ;;  %v7894_v2 = vcombine.low %v2631_v46, %v2635_v47 }
 0x1f7   :  { %5425 = vmatpush1.bf16.msra.mxu1 %v7814_v54 }
 0x1f8   :  { %5426 = vmatprep.subr.bf16.mxu1 %v7935_v55 }
 0x1f9   :  { %5392 = vmatpush2.bf16.msra.mxu0 %v7774_v7  ;;  %v2615_v7 = vld [vmem:[#allocation11 + $0xe00] sm:$0xff] }
 0x1fa   :  { %5393 = vmatprep.subr.bf16.mxu0 %v7767_v12 }
 0x1fb   :  { %5427 = vmatpush2.bf16.msra.mxu1 %v7934_v16  ;;  %v7886_v16 = vcombine.low %v2623_v52, %v2627_v53  ;;  %v2184_v52 = vld [vmem:[#allocation11 + $0x88] sm:$0xff] }
 0x1fc   :  { %5428 = vmatprep.subr.bf16.mxu1 %v7927_v18  ;;  %v2188_v53 = vld [vmem:[#allocation11 + $0xa8] sm:$0xff] }
 0x1fd   :  { %5394 = vmatpush2.bf16.msra.mxu0 %v7766_v20  ;;  %v7879_v20 = vcombine.high %v2615_v7, %v2619_v8 }
 0x1fe   :  { %5395 = vmatprep.subr.bf16.mxu0 %v7759_v24 }
 0x1ff   :  { %5429 = vmatpush2.bf16.msra.mxu1 %v7926_v28  ;;  %v7878_v28 = vcombine.low %v2615_v7, %v2619_v8  ;;  %v2288_v7 = vld [vmem:[#allocation11 + $0x3c8] sm:$0xff] }
 0x200   :  { %5430 = vmatprep.subr.bf16.mxu1 %v7919_v30  ;;  %v2292_v8 = vld [vmem:[#allocation11 + $0x3e8] sm:$0xff] }
 0x201   :  { %5396 = vmatpush2.bf16.msra.mxu0 %v7758_v32  ;;  %v7617_v32 = vcombine.high %v8798_v62, %v8800_v63 }
 0x202   :  { %5397 = vmatprep.subr.bf16.mxu0 %v7751_v35  ;;  %v2216_v35 = vld [vmem:[#allocation11 + $0x188] sm:$0xff] }
 0x203   :  { %5431 = vmatpush2.bf16.msra.mxu1 %v7918_v37  ;;  %v2220_v37 = vld [vmem:[#allocation11 + $0x1a8] sm:$0xff] }
 0x204   :  { %5432 = vmatprep.subr.bf16.mxu1 %v7911_v38  ;;  %v7480_v46 = vcombine.low %v2216_v35, %v2220_v37 }
 0x205   :  { %5398 = vmatpush2.bf16.msra.mxu0 %v7750_v40 }
 0x206   :  { %5453 = vmatprep.subr.bf16.mxu0 %v7489_v43  ;;  %v7481_v43 = vcombine.high %v2216_v35, %v2220_v37  ;;  %v493_v37 = vsub.s32 7, %v8746_v19 }
 0x207   :  { %5433 = vmatpush2.bf16.msra.mxu1 %v7910_v45  ;;  %v2208_v45 = vld [vmem:[#allocation11 + $0x148] sm:$0xff] }
 0x208   :  { %v1989_v50 = vpop.f32.mrf.mxu0  ;;  %5434 = vmatprep.subr.bf16.mxu1 %v7903_v57  ;;  %v2212_v57 = vld [vmem:[#allocation11 + $0x168] sm:$0xff] }
 0x209   :  { %v1990_v39 = vadd.f32 %v1989_v50, %v482_v13  ;;  %v7473_v47 = vcombine.high %v2208_v45, %v2212_v57  ;;  %v7472_v10 = vcombine.low %v2208_v45, %v2212_v57  ;;  %v2196_v50 = vld [vmem:[#allocation11 + $0xe8] sm:$0xff]  ;;  %v8341_v45 = vld [vmem:[#allocation10] sm:$0xff] }
 0x20a   :  { %v2032_v29 = vpop.f32.mrf.mxu1  ;;  %v1991_v59 = vpop.f32.mrf.mxu0 }
 0x20b   :  { %v1992_v60 = vadd.f32 %v1991_v59, %v486_v48  ;;  %5435 = vmatpush2.bf16.msra.mxu1 %v7902_v49  ;;  %v2033_v9 = vadd.f32 %v2032_v29, %v1990_v39  ;;  %v2192_v49 = vld [vmem:[#allocation11 + $0xc8] sm:$0xff]  ;;  %v7449_v59 = vcombine.high %v2184_v52, %v2188_v53 }
 0x20c   :  { %v2034_v1 = vpop.f32.mrf.mxu1  ;;  %v1993_v4 = vpop.f32.mrf.mxu0  ;;  %5436 = vmatprep.subr.bf16.mxu1 %v7895_v51  ;;  %v7457_v29 = vcombine.high %v2192_v49, %v2196_v50  ;;  %v7456_v39 = vcombine.low %v2192_v49, %v2196_v50  ;;  %v2244_v49 = vld [vmem:[#allocation11 + $0x268] sm:$0xff] }
 0x20d   :  { %v2035_v54 = vadd.f32 %v2034_v1, %v1992_v60  ;;  %v1994_v55 = vadd.f32 %v1993_v4, %v482_v13  ;;  %v2131_v25 = vmul.f32 0.1, %v2033_v9  ;;  %v2200_v13 = vld [vmem:[#allocation11 + $0x108] sm:$0xff] }
 0x20e   :  { %v2036_v31 = vpop.f32.mrf.mxu1  ;;  %v1995_v12 = vpop.f32.mrf.mxu0  ;;  %v2176_v60 = vld [vmem:[#allocation11 + $0x48] sm:$0xff] }
 0x20f   :  { %v2037_v14 = vadd.f32 %v2036_v31, %v1994_v55  ;;  %v1996_v15 = vadd.f32 %v1995_v12, %v486_v48  ;;  %5437 = vmatpush2.bf16.msra.mxu1 %v7894_v2  ;;  %v2132_v21 = vmul.f32 0.1, %v2035_v54  ;;  %v2147_v38 = vmax.f32 %v2033_v9, %v2131_v25  ;;  %v2204_v48 = vld [vmem:[#allocation11 + $0x128] sm:$0xff] }
 0x210   :  { %v2038_v18 = vpop.f32.mrf.mxu1  ;;  %5438 = vmatprep.subr.bf16.mxu1 %v7887_v5  ;;  %v7465_v36 = vcombine.high %v2200_v13, %v2204_v48  ;;  %v7464_v51 = vcombine.low %v2200_v13, %v2204_v48  ;;  %v2180_v1 = vld [vmem:[#allocation11 + $0x68] sm:$0xff]  ;;  %v7448_v2 = vcombine.low %v2184_v52, %v2188_v53  ;;  %v7553_v12 = vcombine.high %v2288_v7, %v2292_v8 }
 0x211   :  { %v2139_v23 = vmul.f32 0.1, %v2037_v14  ;;  %v2039_v24 = vadd.f32 %v2038_v18, %v1996_v15  ;;  %v2148_v33 = vmax.f32 %v2035_v54, %v2132_v21  ;;  %v7441_v4 = vcombine.high %v2176_v60, %v2180_v1  ;;  %v2168_v5 = vld [vmem:[#allocation11 + $0x8] sm:$0xff] }
 0x212   :  { %v2172_v54 = vld [vmem:[#allocation11 + $0x28] sm:$0xff]  ;;  %v7440_v55 = vcombine.low %v2176_v60, %v2180_v1 }
 0x213   :  { %v2140_v27 = vmul.f32 0.1, %v2039_v24  ;;  %5439 = vmatpush2.bf16.msra.mxu1 %v7886_v16  ;;  %v2155_v30 = vmax.f32 %v2037_v14, %v2139_v23  ;;  %v7433_v31 = vcombine.high %v2168_v5, %v2172_v54  ;;  %v7432_v9 = vcombine.low %v2168_v5, %v2172_v54  ;;  %v2280_v14 = vld [vmem:[#allocation11 + $0x388] sm:$0xff] }
 0x214   :  { %5440 = vmatprep.subr.bf16.mxu1 %v7879_v20  ;;  %v2284_v15 = vld [vmem:[#allocation11 + $0x3a8] sm:$0xff]  ;;  %v7552_v16 = vcombine.low %v2288_v7, %v2292_v8 }
 0x215   :  { %v2156_v34 = vmax.f32 %v2039_v24, %v2140_v27  ;;  %v8828_v42 = vpack.c.bf16 %v2155_v30, %v2147_v38  ;;  %v7545_v18 = vcombine.high %v2280_v14, %v2284_v15  ;;  %v2272_v20 = vld [vmem:[#allocation11 + $0x348] sm:$0xff]  ;;  %v7544_v23 = vcombine.low %v2280_v14, %v2284_v15 }
 0x216   :  { %v2276_v21 = vld [vmem:[#allocation11 + $0x368] sm:$0xff] }
 0x217   :  { %v8824_v40 = vpack.c.bf16 %v2156_v34, %v2148_v33  ;;  %5441 = vmatpush2.bf16.msra.mxu1 %v7878_v28  ;;  %v7537_v24 = vcombine.high %v2272_v20, %v2276_v21  ;;  %v2264_v25 = vld [vmem:[#allocation11 + $0x308] sm:$0xff]  ;;  %v7536_v28 = vcombine.low %v2272_v20, %v2276_v21  ;;  %v489_v34 = vsub.s32 6, %v8746_v19 }
 0x218   :  { %5496 = vmatprep.subr.bf16.mxu1 %v7617_v32  ;;  %v2268_v27 = vld [vmem:[#allocation11 + $0x328] sm:$0xff] }
 0x219   :  { %5399 = vmatprep.mubr.bf16.mxu0 %v8824_v40  ;;  %v7529_v30 = vcombine.high %v2264_v25, %v2268_v27  ;;  %v2256_v32 = vld [vmem:[#allocation11 + $0x2c8] sm:$0xff]  ;;  %v7528_v35 = vcombine.low %v2264_v25, %v2268_v27  ;;  %v490_v57 = vrot.slane %v8341_v45, %v489_v34 }
 0x21a   :  { %5400 = vmatmul.mubr.bf16.vlgmr.msra.gmra.mxu0 %v8828_v42  ;;  %v2260_v33 = vld [vmem:[#allocation11 + $0x2e8] sm:$0xff] }
 0x21b   :  { %5454 = vmatpush1.bf16.msra.mxu0 %v7488_v41  ;;  %5485 = vmatprep.mubr.bf16.mxu0 %v8765_v17  ;;  %v7521_v38 = vcombine.high %v2256_v32, %v2260_v33  ;;  %v2248_v41 = vld [vmem:[#allocation11 + $0x288] sm:$0xff] }
 0x21c   :  { %5455 = vmatprep.subr.bf16.mxu0 %v7481_v43  ;;  %v2252_v43 = vld [vmem:[#allocation11 + $0x2a8] sm:$0xff] }
 0x21d   :  { %v7513_v48 = vcombine.high %v2248_v41, %v2252_v43  ;;  %v7512_v53 = vcombine.low %v2248_v41, %v2252_v43  ;;  %v2236_v5 = vld [vmem:[#allocation11 + $0x228] sm:$0xff] }
 0x21e   :  { %v2484_v20 = vld [vmem:[#allocation11 + $0x9e8] sm:$0xff] }
 0x21f   :  { %5456 = vmatpush1.bf16.msra.mxu0 %v7480_v46  ;;  %v7520_v46 = vcombine.low %v2256_v32, %v2260_v33  ;;  %v2344_v32 = vld [vmem:[#allocation11 + $0x588] sm:$0xff] }
 0x220   :  { %5457 = vmatprep.subr.bf16.mxu0 %v7473_v47  ;;  %v494_v47 = vrot.slane %v8341_v45, %v493_v37  ;;  %v2476_v41 = vld [vmem:[#allocation11 + $0x9a8] sm:$0xff] }
 0x223   :  { %5458 = vmatpush1.bf16.msra.mxu0 %v7472_v10 }
 0x224   :  { %5459 = vmatprep.subr.bf16.mxu0 %v7465_v36  ;;  %v2240_v36 = vld [vmem:[#allocation11 + $0x248] sm:$0xff] }
 0x225   :  { %v7504_v8 = vcombine.low %v2240_v36, %v2244_v49 }
 0x227   :  { %5460 = vmatpush1.bf16.msra.mxu0 %v7464_v51 }
 0x228   :  { %5461 = vmatprep.subr.bf16.mxu0 %v7457_v29 }
 0x22b   :  { %5462 = vmatpush1.bf16.msra.mxu0 %v7456_v39 }
 0x22c   :  { %5463 = vmatprep.subr.bf16.mxu0 %v7449_v59  ;;  %v7505_v59 = vcombine.high %v2240_v36, %v2244_v49  ;;  %v2468_v36 = vld [vmem:[#allocation11 + $0x968] sm:$0xff] }
 0x22f   :  { %5464 = vmatpush1.bf16.msra.mxu0 %v7448_v2 }
 0x230   :  { %5465 = vmatprep.subr.bf16.mxu0 %v7441_v4  ;;  %v2232_v4 = vld [vmem:[#allocation11 + $0x208] sm:$0xff] }
 0x233   :  { %5466 = vmatpush1.bf16.msra.mxu0 %v7440_v55 }
 0x234   :  { %5467 = vmatprep.subr.bf16.mxu0 %v7433_v31 }
 0x237   :  { %5468 = vmatpush1.bf16.msra.mxu0 %v7432_v9 }
 0x238   :  { %5469 = vmatprep.subr.bf16.mxu0 %v7553_v12  ;;  %v7497_v12 = vcombine.high %v2232_v4, %v2236_v5 }
 0x23b   :  { %5470 = vmatpush2.bf16.msra.mxu0 %v7552_v16 }
 0x23c   :  { %5471 = vmatprep.subr.bf16.mxu0 %v7545_v18  ;;  %v2480_v18 = vld [vmem:[#allocation11 + $0x9c8] sm:$0xff] }
 0x23d   :  { %v7745_v27 = vcombine.high %v2480_v18, %v2484_v20  ;;  %v7744_v45 = vcombine.low %v2480_v18, %v2484_v20 }
 0x23f   :  { %5472 = vmatpush2.bf16.msra.mxu0 %v7544_v23 }
 0x240   :  { %5473 = vmatprep.subr.bf16.mxu0 %v7537_v24  ;;  %v7496_v24 = vcombine.low %v2232_v4, %v2236_v5  ;;  %v2448_v4 = vld [vmem:[#allocation11 + $0x8c8] sm:$0xff] }
 0x241   :  { %v2452_v5 = vld [vmem:[#allocation11 + $0x8e8] sm:$0xff] }
 0x243   :  { %5474 = vmatpush2.bf16.msra.mxu0 %v7536_v28 }
 0x244   :  { %5475 = vmatprep.subr.bf16.mxu0 %v7529_v30 }
 0x247   :  { %5476 = vmatpush2.bf16.msra.mxu0 %v7528_v35  ;;  %v2348_v35 = vld [vmem:[#allocation11 + $0x5a8] sm:$0xff] }
 0x248   :  { %v2075_v13 = vpop.f32.mrf.mxu0  ;;  %5477 = vmatprep.subr.bf16.mxu0 %v7521_v38  ;;  %v2472_v38 = vld [vmem:[#allocation11 + $0x988] sm:$0xff]  ;;  %v7608_v49 = vcombine.low %v2344_v32, %v2348_v35 }
 0x249   :  { %v2076_v50 = vadd.f32 %v2075_v13, %v490_v57  ;;  %v7737_v13 = vcombine.high %v2472_v38, %v2476_v41 }
 0x24a   :  { %v2118_v10 = vpop.f32.mrf.mxu1  ;;  %v2077_v51 = vpop.f32.mrf.mxu0 }
 0x24b   :  { %v2078_v29 = vadd.f32 %v2077_v51, %v494_v47  ;;  %5478 = vmatpush2.bf16.msra.mxu0 %v7520_v46  ;;  %v2119_v54 = vadd.f32 %v2118_v10, %v2076_v50  ;;  %v2336_v46 = vld [vmem:[#allocation11 + $0x548] sm:$0xff]  ;;  %v7736_v50 = vcombine.low %v2472_v38, %v2476_v41 }
 0x24c   :  { %v2120_v52 = vpop.f32.mrf.mxu1  ;;  %v2079_v39 = vpop.f32.mrf.mxu0  ;;  %5479 = vmatprep.subr.bf16.mxu0 %v7513_v48  ;;  %v2340_v48 = vld [vmem:[#allocation11 + $0x568] sm:$0xff] }
 0x24d   :  { %v2121_v60 = vadd.f32 %v2120_v52, %v2078_v29  ;;  %v2080_v1 = vadd.f32 %v2079_v39, %v490_v57  ;;  %v2133_v21 = vmul.f32 0.1, %v2119_v54  ;;  %v2464_v10 = vld [vmem:[#allocation11 + $0x948] sm:$0xff]  ;;  %v7601_v51 = vcombine.high %v2336_v46, %v2340_v48 }
 0x24e   :  { %v2122_v2 = vpop.f32.mrf.mxu1  ;;  %v2081_v55 = vpop.f32.mrf.mxu0  ;;  %v7729_v29 = vcombine.high %v2464_v10, %v2468_v36  ;;  %v2328_v52 = vld [vmem:[#allocation11 + $0x508] sm:$0xff]  ;;  %v7728_v62 = vcombine.low %v2464_v10, %v2468_v36 }
 0x24f   :  { %v2123_v31 = vadd.f32 %v2122_v2, %v2080_v1  ;;  %v2082_v7 = vadd.f32 %v2081_v55, %v494_v47  ;;  %5480 = vmatpush2.bf16.msra.mxu0 %v7512_v53  ;;  %v2134_v14 = vmul.f32 0.1, %v2121_v60  ;;  %v2149_v33 = vmax.f32 %v2119_v54, %v2133_v21  ;;  %v2332_v53 = vld [vmem:[#allocation11 + $0x528] sm:$0xff] }
 0x250   :  { %v2124_v9 = vpop.f32.mrf.mxu1  ;;  %5481 = vmatprep.subr.bf16.mxu0 %v7505_v59  ;;  %v7609_v47 = vcombine.high %v2344_v32, %v2348_v35  ;;  %v2456_v39 = vld [vmem:[#allocation11 + $0x908] sm:$0xff]  ;;  %v7593_v63 = vcombine.high %v2328_v52, %v2332_v53  ;;  %v7592_v54 = vcombine.low %v2328_v52, %v2332_v53 }
 0x251   :  { %v2141_v15 = vmul.f32 0.1, %v2123_v31  ;;  %v2125_v16 = vadd.f32 %v2124_v9, %v2082_v7  ;;  %v2150_v28 = vmax.f32 %v2121_v60, %v2134_v14  ;;  %v2460_v59 = vld [vmem:[#allocation11 + $0x928] sm:$0xff]  ;;  %v7600_v60 = vcombine.low %v2336_v46, %v2340_v48 }
 0x252   :  { %v2320_v1 = vld [vmem:[#allocation11 + $0x4c8] sm:$0xff]  ;;  %v7720_v55 = vcombine.low %v2456_v39, %v2460_v59  ;;  %v7713_v7 = vcombine.high %v2448_v4, %v2452_v5 }
 0x253   :  { %v2142_v23 = vmul.f32 0.1, %v2125_v16  ;;  %5482 = vmatpush2.bf16.msra.mxu0 %v7504_v8  ;;  %v2157_v25 = vmax.f32 %v2123_v31, %v2141_v15  ;;  %v2324_v2 = vld [vmem:[#allocation11 + $0x4e8] sm:$0xff] }
 0x254   :  { %5483 = vmatprep.subr.bf16.mxu0 %v7497_v12  ;;  %v7585_v31 = vcombine.high %v2320_v1, %v2324_v2  ;;  %v2312_v8 = vld [vmem:[#allocation11 + $0x488] sm:$0xff]  ;;  %v7584_v15 = vcombine.low %v2320_v1, %v2324_v2 }
 0x255   :  { %v2158_v30 = vmax.f32 %v2125_v16, %v2142_v23  ;;  %v8841_v57 = vpack.c.bf16 %v2157_v25, %v2149_v33  ;;  %v2316_v9 = vld [vmem:[#allocation11 + $0x4a8] sm:$0xff]  ;;  %v7712_v16 = vcombine.low %v2448_v4, %v2452_v5 }
 0x256   :  { %v2440_v12 = vld [vmem:[#allocation11 + $0x888] sm:$0xff]  ;;  %v7577_v18 = vcombine.high %v2312_v8, %v2316_v9 }
 0x257   :  { %v8839_v43 = vpack.c.bf16 %v2158_v30, %v2150_v28  ;;  %5484 = vmatpush2.bf16.msra.mxu0 %v7496_v24  ;;  %v2444_v14 = vld [vmem:[#allocation11 + $0x8a8] sm:$0xff] }
 0x258   :  { %5539 = vmatprep.subr.bf16.mxu0 %v7745_v27  ;;  %v7705_v20 = vcombine.high %v2440_v12, %v2444_v14  ;;  %v2304_v21 = vld [vmem:[#allocation11 + $0x448] sm:$0xff]  ;;  %v7576_v27 = vcombine.low %v2312_v8, %v2316_v9  ;;  %v7704_v28 = vcombine.low %v2440_v12, %v2444_v14 }
 0x259   :  { %5442 = vmatprep.mubr.bf16.mxu1 %v8839_v43  ;;  %v2308_v23 = vld [vmem:[#allocation11 + $0x468] sm:$0xff] }
 0x25a   :  { %5486 = vmatmul.mubr.bf16.vlgmr.msra.gmra.mxu0 %v8785_v3  ;;  %5443 = vmatmul.mubr.bf16.vlgmr.msra.gmra.mxu1 %v8841_v57  ;;  %v2432_v24 = vld [vmem:[#allocation11 + $0x848] sm:$0xff]  ;;  %v7569_v30 = vcombine.high %v2304_v21, %v2308_v23 }
 0x25b   :  { %5497 = vmatpush1.bf16.msra.mxu1 %v7616_v6  ;;  %5540 = vmatpush1.bf16.msra.mxu0 %v7744_v45  ;;  %v7721_v6 = vcombine.high %v2456_v39, %v2460_v59  ;;  %v2436_v25 = vld [vmem:[#allocation11 + $0x868] sm:$0xff]  ;;  %v7568_v45 = vcombine.low %v2304_v21, %v2308_v23 }
 0x25c   :  { %5571 = vmatprep.mubr.bf16.mxu0 %v8824_v40  ;;  %5528 = vmatprep.mubr.bf16.mxu1 %v8794_v56  ;;  %v7697_v32 = vcombine.high %v2432_v24, %v2436_v25  ;;  %v2296_v33 = vld [vmem:[#allocation11 + $0x408] sm:$0xff]  ;;  %v7696_v46 = vcombine.low %v2432_v24, %v2436_v25 }
 0x25d   :  { %5498 = vmatprep.subr.bf16.mxu1 %v7609_v47  ;;  %5541 = vmatprep.subr.bf16.mxu0 %v7737_v13  ;;  %v2300_v35 = vld [vmem:[#allocation11 + $0x428] sm:$0xff] }
 0x25e   :  { %v2424_v38 = vld [vmem:[#allocation11 + $0x808] sm:$0xff]  ;;  %v7561_v47 = vcombine.high %v2296_v33, %v2300_v35 }
 0x25f   :  { %5499 = vmatpush1.bf16.msra.mxu1 %v7608_v49  ;;  %5542 = vmatpush1.bf16.msra.mxu0 %v7736_v50  ;;  %v2428_v41 = vld [vmem:[#allocation11 + $0x828] sm:$0xff]  ;;  %v7560_v50 = vcombine.low %v2296_v33, %v2300_v35 }
 0x260   :  { %5500 = vmatprep.subr.bf16.mxu1 %v7601_v51  ;;  %5543 = vmatprep.subr.bf16.mxu0 %v7729_v29  ;;  %v7689_v13 = vcombine.high %v2424_v38, %v2428_v41  ;;  %v2416_v48 = vld [vmem:[#allocation11 + $0x7c8] sm:$0xff]  ;;  %v7688_v51 = vcombine.low %v2424_v38, %v2428_v41 }
 0x261   :  { %v2420_v10 = vld [vmem:[#allocation11 + $0x7e8] sm:$0xff] }
 0x262   :  { %v2544_v36 = vld [vmem:[#allocation11 + $0xbc8] sm:$0xff]  ;;  %v7681_v29 = vcombine.high %v2416_v48, %v2420_v10 }
 0x263   :  { %5501 = vmatpush1.bf16.msra.mxu1 %v7600_v60  ;;  %5544 = vmatpush1.bf16.msra.mxu0 %v7728_v62  ;;  %v2548_v49 = vld [vmem:[#allocation11 + $0xbe8] sm:$0xff]  ;;  %v7680_v62 = vcombine.low %v2416_v48, %v2420_v10 }
 0x264   :  { %5502 = vmatprep.subr.bf16.mxu1 %v7593_v63  ;;  %5545 = vmatprep.subr.bf16.mxu0 %v7721_v6  ;;  %v7809_v52 = vcombine.high %v2544_v36, %v2548_v49  ;;  %v2408_v53 = vld [vmem:[#allocation11 + $0x788] sm:$0xff]  ;;  %v7808_v63 = vcombine.low %v2544_v36, %v2548_v49 }
 0x265   :  { %v2412_v39 = vld [vmem:[#allocation11 + $0x7a8] sm:$0xff] }
 0x266   :  { %v2536_v59 = vld [vmem:[#allocation11 + $0xb88] sm:$0xff]  ;;  %v7673_v6 = vcombine.high %v2408_v53, %v2412_v39 }
 0x267   :  { %5503 = vmatpush1.bf16.msra.mxu1 %v7592_v54  ;;  %5546 = vmatpush1.bf16.msra.mxu0 %v7720_v55  ;;  %v2540_v60 = vld [vmem:[#allocation11 + $0xba8] sm:$0xff]  ;;  %v7672_v55 = vcombine.low %v2408_v53, %v2412_v39 }
 0x268   :  { %5504 = vmatprep.subr.bf16.mxu1 %v7585_v31  ;;  %5547 = vmatprep.subr.bf16.mxu0 %v7713_v7  ;;  %v7801_v1 = vcombine.high %v2536_v59, %v2540_v60  ;;  %v2400_v2 = vld [vmem:[#allocation11 + $0x748] sm:$0xff]  ;;  %v7800_v31 = vcombine.low %v2536_v59, %v2540_v60 }
 0x269   :  { %v2404_v4 = vld [vmem:[#allocation11 + $0x768] sm:$0xff] }
 0x26a   :  { %v2528_v5 = vld [vmem:[#allocation11 + $0xb48] sm:$0xff]  ;;  %v7665_v7 = vcombine.high %v2400_v2, %v2404_v4 }
 0x26b   :  { %5505 = vmatpush1.bf16.msra.mxu1 %v7584_v15  ;;  %5548 = vmatpush1.bf16.msra.mxu0 %v7712_v16  ;;  %v2532_v54 = vld [vmem:[#allocation11 + $0xb68] sm:$0xff]  ;;  %v7664_v16 = vcombine.low %v2400_v2, %v2404_v4 }
 0x26c   :  { %5506 = vmatprep.subr.bf16.mxu1 %v7577_v18  ;;  %5549 = vmatprep.subr.bf16.mxu0 %v7705_v20  ;;  %v7793_v8 = vcombine.high %v2528_v5, %v2532_v54  ;;  %v2392_v9 = vld [vmem:[#allocation11 + $0x708] sm:$0xff]  ;;  %v7792_v18 = vcombine.low %v2528_v5, %v2532_v54  ;;  %v2225_v54 = vld [vmem:[#allocation11 + $0x1d0] sm:$0xff] }
 0x26d   :  { %v2396_v12 = vld [vmem:[#allocation11 + $0x728] sm:$0xff] }
 0x26e   :  { %v2520_v14 = vld [vmem:[#allocation11 + $0xb08] sm:$0xff]  ;;  %v7657_v20 = vcombine.high %v2392_v9, %v2396_v12 }
 0x26f   :  { %5507 = vmatpush1.bf16.msra.mxu1 %v7576_v27  ;;  %5550 = vmatpush1.bf16.msra.mxu0 %v7704_v28  ;;  %v2524_v15 = vld [vmem:[#allocation11 + $0xb28] sm:$0xff]  ;;  %v7656_v28 = vcombine.low %v2392_v9, %v2396_v12 }
 0x270   :  { %5508 = vmatprep.subr.bf16.mxu1 %v7569_v30  ;;  %5551 = vmatprep.subr.bf16.mxu0 %v7697_v32  ;;  %v7785_v21 = vcombine.high %v2520_v14, %v2524_v15  ;;  %v2384_v23 = vld [vmem:[#allocation11 + $0x6c8] sm:$0xff]  ;;  %v7784_v30 = vcombine.low %v2520_v14, %v2524_v15 }
 0x271   :  { %v2388_v24 = vld [vmem:[#allocation11 + $0x6e8] sm:$0xff] }
 0x272   :  { %v2512_v25 = vld [vmem:[#allocation11 + $0xac8] sm:$0xff]  ;;  %v7649_v32 = vcombine.high %v2384_v23, %v2388_v24 }
 0x273   :  { %5509 = vmatpush1.bf16.msra.mxu1 %v7568_v45  ;;  %5552 = vmatpush1.bf16.msra.mxu0 %v7696_v46  ;;  %v2516_v27 = vld [vmem:[#allocation11 + $0xae8] sm:$0xff]  ;;  %v7648_v46 = vcombine.low %v2384_v23, %v2388_v24  ;;  %v2221_v23 = vld [vmem:[#allocation11 + $0x1b0] sm:$0xff] }
 0x274   :  { %5510 = vmatprep.subr.bf16.mxu1 %v7561_v47  ;;  %5553 = vmatprep.subr.bf16.mxu0 %v7689_v13  ;;  %v7777_v33 = vcombine.high %v2512_v25, %v2516_v27  ;;  %v2376_v35 = vld [vmem:[#allocation11 + $0x688] sm:$0xff]  ;;  %v7776_v47 = vcombine.low %v2512_v25, %v2516_v27 }
 0x275   :  { %v2380_v38 = vld [vmem:[#allocation11 + $0x6a8] sm:$0xff] }
 0x276   :  { %v2504_v41 = vld [vmem:[#allocation11 + $0xa88] sm:$0xff]  ;;  %v7641_v13 = vcombine.high %v2376_v35, %v2380_v38 }
 0x277   :  { %5511 = vmatpush1.bf16.msra.mxu1 %v7560_v50  ;;  %5554 = vmatpush1.bf16.msra.mxu0 %v7688_v51  ;;  %v2508_v45 = vld [vmem:[#allocation11 + $0xaa8] sm:$0xff]  ;;  %v7640_v51 = vcombine.low %v2376_v35, %v2380_v38 }
 0x278   :  { %5512 = vmatprep.subr.bf16.mxu1 %v7681_v29  ;;  %5555 = vmatprep.subr.bf16.mxu0 %v7809_v52  ;;  %v7769_v48 = vcombine.high %v2504_v41, %v2508_v45  ;;  %v2368_v10 = vld [vmem:[#allocation11 + $0x648] sm:$0xff]  ;;  %v7768_v29 = vcombine.low %v2504_v41, %v2508_v45  ;;  %v2209_v41 = vld [vmem:[#allocation11 + $0x150] sm:$0xff] }
 0x279   :  { %v2372_v36 = vld [vmem:[#allocation11 + $0x668] sm:$0xff]  ;;  %v2213_v45 = vld [vmem:[#allocation11 + $0x170] sm:$0xff] }
 0x27a   :  { %v2496_v49 = vld [vmem:[#allocation11 + $0xa48] sm:$0xff]  ;;  %v7633_v52 = vcombine.high %v2368_v10, %v2372_v36 }
 0x27b   :  { %5513 = vmatpush2.bf16.msra.mxu1 %v7680_v62  ;;  %5556 = vmatpush2.bf16.msra.mxu0 %v7808_v63  ;;  %v2500_v50 = vld [vmem:[#allocation11 + $0xa68] sm:$0xff]  ;;  %v7632_v63 = vcombine.low %v2368_v10, %v2372_v36 }
 0x27c   :  { %5514 = vmatprep.subr.bf16.mxu1 %v7673_v6  ;;  %5557 = vmatprep.subr.bf16.mxu0 %v7801_v1  ;;  %v7761_v53 = vcombine.high %v2496_v49, %v2500_v50  ;;  %v2360_v39 = vld [vmem:[#allocation11 + $0x608] sm:$0xff]  ;;  %v7760_v6 = vcombine.low %v2496_v49, %v2500_v50  ;;  %v7475_v49 = vcombine.high %v2209_v41, %v2213_v45 }
 0x27d   :  { %v2364_v59 = vld [vmem:[#allocation11 + $0x628] sm:$0xff] }
 0x27e   :  { %v2488_v60 = vld [vmem:[#allocation11 + $0xa08] sm:$0xff]  ;;  %v7625_v1 = vcombine.high %v2360_v39, %v2364_v59 }
 0x27f   :  { %5515 = vmatpush2.bf16.msra.mxu1 %v7672_v55  ;;  %5558 = vmatpush2.bf16.msra.mxu0 %v7800_v31  ;;  %v2492_v62 = vld [vmem:[#allocation11 + $0xa28] sm:$0xff]  ;;  %v2229_v55 = vld [vmem:[#allocation11 + $0x1f0] sm:$0xff]  ;;  %v2679_v31 = vld [vmem:[#allocation13] sm:$0xff] }
 0x280   :  { %5516 = vmatprep.subr.bf16.mxu1 %v7665_v7  ;;  %5559 = vmatprep.subr.bf16.mxu0 %v7793_v8  ;;  %v7753_v2 = vcombine.high %v2488_v60, %v2492_v62  ;;  %v2608_v4 = vld [vmem:[#allocation11 + $0xdc8] sm:$0xff]  ;;  %v7624_v8 = vcombine.low %v2360_v39, %v2364_v59  ;;  %v7752_v9 = vcombine.low %v2488_v60, %v2492_v62 }
 0x281   :  { %v2612_v5 = vld [vmem:[#allocation11 + $0xde8] sm:$0xff]  ;;  %v7491_v14 = vcombine.high %v2225_v54, %v2229_v55  ;;  %v2684_v15 = vrot.slane %v2679_v31, %v8769_v11  ;;  %v7490_v25 = vcombine.low %v2225_v54, %v2229_v55  ;;  %v7474_v60 = vcombine.low %v2209_v41, %v2213_v45  ;;  %v2173_v41 = vld [vmem:[#allocation11 + $0x30] sm:$0xff] }
 0x282   :  { %v7873_v12 = vcombine.high %v2608_v4, %v2612_v5  ;;  %v7872_v24 = vcombine.low %v2608_v4, %v2612_v5  ;;  %v2584_v50 = vld [vmem:[#allocation11 + $0xd08] sm:$0xff]  ;;  %v2197_v4 = vld [vmem:[#allocation11 + $0xf0] sm:$0xff] }
 0x283   :  { %5517 = vmatpush2.bf16.msra.mxu1 %v7664_v16  ;;  %5560 = vmatpush2.bf16.msra.mxu0 %v7792_v18  ;;  %v2600_v16 = vld [vmem:[#allocation11 + $0xd88] sm:$0xff] }
 0x284   :  { %5518 = vmatprep.subr.bf16.mxu1 %v7657_v20  ;;  %5561 = vmatprep.subr.bf16.mxu0 %v7785_v21  ;;  %v2604_v20 = vld [vmem:[#allocation11 + $0xda8] sm:$0xff]  ;;  %v2217_v21 = vld [vmem:[#allocation11 + $0x190] sm:$0xff] }
 0x287   :  { %5519 = vmatpush2.bf16.msra.mxu1 %v7656_v28  ;;  %5562 = vmatpush2.bf16.msra.mxu0 %v7784_v30  ;;  %v7865_v28 = vcombine.high %v2600_v16, %v2604_v20  ;;  %v7483_v30 = vcombine.high %v2217_v21, %v2221_v23 }
 0x288   :  { %5520 = vmatprep.subr.bf16.mxu1 %v7649_v32  ;;  %5563 = vmatprep.subr.bf16.mxu0 %v7777_v33  ;;  %v5315_v7 = vpop.f32.mrf.mxu0  ;;  %v2592_v32 = vld [vmem:[#allocation11 + $0xd48] sm:$0xff] }
 0x289   :  { %v5316_v27 = vadd.f32 %v5315_v7, %v2684_v15  ;;  %v2596_v33 = vld [vmem:[#allocation11 + $0xd68] sm:$0xff] }
 0x28a   :  { %v8852_v18 = vpop.f32.mrf.mxu0  ;;  %v7857_v10 = vcombine.high %v2592_v32, %v2596_v33  ;;  %v7856_v59 = vcombine.low %v2592_v32, %v2596_v33  ;;  %v2568_v7 = vld [vmem:[#allocation11 + $0xc88] sm:$0xff] }
 0x28b   :  { %5521 = vmatpush2.bf16.msra.mxu1 %v7648_v46  ;;  %5564 = vmatpush2.bf16.msra.mxu0 %v7776_v47  ;;  %v7864_v47 = vcombine.low %v2600_v16, %v2604_v20  ;;  %v2552_v33 = vld [vmem:[#allocation11 + $0xc08] sm:$0xff] }
 0x28c   :  { %5522 = vmatprep.subr.bf16.mxu1 %v7641_v13  ;;  %5565 = vmatprep.subr.bf16.mxu0 %v7769_v48  ;;  %v5319_v35 = vpop.f32.mrf.mxu0  ;;  %v7482_v48 = vcombine.low %v2217_v21, %v2221_v23  ;;  %v2560_v21 = vld [vmem:[#allocation11 + $0xc48] sm:$0xff] }
 0x28d   :  { %v5320_v36 = vadd.f32 %v5319_v35, %v2684_v15  ;;  %v2564_v23 = vld [vmem:[#allocation11 + $0xc68] sm:$0xff] }
 0x28e   :  { %v2556_v35 = vld [vmem:[#allocation11 + $0xc28] sm:$0xff]  ;;  %v7824_v45 = vcombine.low %v2560_v21, %v2564_v23 }
 0x28f   :  { %5523 = vmatpush2.bf16.msra.mxu1 %v7640_v51  ;;  %5566 = vmatpush2.bf16.msra.mxu0 %v7768_v29  ;;  %v2588_v51 = vld [vmem:[#allocation11 + $0xd28] sm:$0xff] }
 0x290   :  { %5524 = vmatprep.subr.bf16.mxu1 %v7633_v52  ;;  %5567 = vmatprep.subr.bf16.mxu0 %v7761_v53  ;;  %v2201_v52 = vld [vmem:[#allocation11 + $0x110] sm:$0xff]  ;;  %v7849_v62 = vcombine.high %v2584_v50, %v2588_v51  ;;  %v7848_v5 = vcombine.low %v2584_v50, %v2588_v51 }
 0x291   :  { %v2205_v53 = vld [vmem:[#allocation11 + $0x130] sm:$0xff] }
 0x292   :  { %v7466_v54 = vcombine.low %v2201_v52, %v2205_v53  ;;  %v2289_v50 = vld [vmem:[#allocation11 + $0x3d0] sm:$0xff] }
 0x293   :  { %5525 = vmatpush2.bf16.msra.mxu1 %v7632_v63  ;;  %5568 = vmatpush2.bf16.msra.mxu0 %v7760_v6  ;;  %v7467_v63 = vcombine.high %v2201_v52, %v2205_v53  ;;  %v2576_v6 = vld [vmem:[#allocation11 + $0xcc8] sm:$0xff]  ;;  %v2293_v51 = vld [vmem:[#allocation11 + $0x3f0] sm:$0xff] }
 0x294   :  { %5526 = vmatprep.subr.bf16.mxu1 %v7625_v1  ;;  %5569 = vmatprep.subr.bf16.mxu0 %v7753_v2  ;;  %v2580_v1 = vld [vmem:[#allocation11 + $0xce8] sm:$0xff]  ;;  %v2193_v2 = vld [vmem:[#allocation11 + $0xd0] sm:$0xff] }
 0x295   :  { %v7841_v55 = vcombine.high %v2576_v6, %v2580_v1  ;;  %v7459_v31 = vcombine.high %v2193_v2, %v2197_v4  ;;  %v7458_v15 = vcombine.low %v2193_v2, %v2197_v4  ;;  %v7554_v2 = vcombine.low %v2289_v50, %v2293_v51 }
 0x297   :  { %5527 = vmatpush2.bf16.msra.mxu1 %v7624_v8  ;;  %5570 = vmatpush2.bf16.msra.mxu0 %v7752_v9  ;;  %v2572_v8 = vld [vmem:[#allocation11 + $0xca8] sm:$0xff]  ;;  %v2185_v9 = vld [vmem:[#allocation11 + $0x90] sm:$0xff] }
 0x298   :  { %5582 = vmatprep.subr.bf16.mxu1 %v7873_v12  ;;  %5625 = vmatprep.subr.bf16.mxu0 %v7491_v14  ;;  %v2189_v12 = vld [vmem:[#allocation11 + $0xb0] sm:$0xff]  ;;  %v7840_v14 = vcombine.low %v2576_v6, %v2580_v1  ;;  %v7833_v16 = vcombine.high %v2568_v7, %v2572_v8 }
 0x299   :  { %v7451_v20 = vcombine.high %v2185_v9, %v2189_v12  ;;  %v2285_v6 = vld [vmem:[#allocation11 + $0x3b0] sm:$0xff] }
 0x29a   :  { %5529 = vmatmul.mubr.bf16.vlgmr.msra.gmra.mxu1 %v8802_v0  ;;  %5572 = vmatmul.mubr.bf16.vlgmr.msra.gmra.mxu0 %v8828_v42  ;;  %v5358_v38 = vpop.f32.mrf.mxu1 }
 0x29b   :  { %v8856_v46 = vadd.f32 %v5358_v38, %v5316_v27  ;;  %5583 = vmatpush1.bf16.msra.mxu1 %v7872_v24  ;;  %5614 = vmatprep.mubr.bf16.mxu1 %v8839_v43  ;;  %v2177_v24 = vld [vmem:[#allocation11 + $0x50] sm:$0xff]  ;;  %v7832_v27 = vcombine.low %v2568_v7, %v2572_v8 }
 0x29c   :  { %5626 = vmatpush1.bf16.msra.mxu0 %v7490_v25  ;;  %5657 = vmatprep.mubr.bf16.mxu0 %v8765_v17  ;;  %v8860_v13 = vpop.f32.mrf.mxu1  ;;  %v2181_v25 = vld [vmem:[#allocation11 + $0x70] sm:$0xff] }
 0x29d   :  { %5584 = vmatprep.subr.bf16.mxu1 %v7865_v28  ;;  %5627 = vmatprep.subr.bf16.mxu0 %v7483_v30  ;;  %v7450_v28 = vcombine.low %v2185_v9, %v2189_v12  ;;  %v7825_v30 = vcombine.high %v2560_v21, %v2564_v23  ;;  %v7443_v32 = vcombine.high %v2177_v24, %v2181_v25  ;;  %v2169_v38 = vld [vmem:[#allocation11 + $0x10] sm:$0xff] }
 0x29e   :  { %v5362_v29 = vpop.f32.mrf.mxu1  ;;  %v7434_v52 = vcombine.low %v2169_v38, %v2173_v41  ;;  %v2277_v7 = vld [vmem:[#allocation11 + $0x370] sm:$0xff] }
 0x29f   :  { %v8862_v39 = vadd.f32 %v5362_v29, %v5320_v36  ;;  %5585 = vmatpush1.bf16.msra.mxu1 %v7864_v47  ;;  %v7442_v47 = vcombine.low %v2177_v24, %v2181_v25  ;;  %v2672_v36 = vld [vmem:[#allocation11 + $0xfc8] sm:$0xff]  ;;  %v7816_v29 = vcombine.low %v2552_v33, %v2556_v35  ;;  %v2269_v21 = vld [vmem:[#allocation11 + $0x330] sm:$0xff] }
 0x2a0   :  { %5628 = vmatpush1.bf16.msra.mxu0 %v7482_v48  ;;  %5586 = vmatprep.subr.bf16.mxu1 %v7857_v10  ;;  %v7817_v48 = vcombine.high %v2552_v33, %v2556_v35  ;;  %v7435_v10 = vcombine.high %v2169_v38, %v2173_v41  ;;  %v2261_v33 = vld [vmem:[#allocation11 + $0x2f0] sm:$0xff] }
 0x2a1   :  { %5629 = vmatprep.subr.bf16.mxu0 %v7475_v49  ;;  %v2676_v49 = vld [vmem:[#allocation11 + $0xfe8] sm:$0xff] }
 0x2a2   :  { %v7937_v53 = vcombine.high %v2672_v36, %v2676_v49  ;;  %v7936_v1 = vcombine.low %v2672_v36, %v2676_v49  ;;  %v2253_v36 = vld [vmem:[#allocation11 + $0x2b0] sm:$0xff] }
 0x2a3   :  { %5587 = vmatpush1.bf16.msra.mxu1 %v7856_v59  ;;  %v7555_v59 = vcombine.high %v2289_v50, %v2293_v51 }
 0x2a4   :  { %5630 = vmatpush1.bf16.msra.mxu0 %v7474_v60  ;;  %5588 = vmatprep.subr.bf16.mxu1 %v7849_v62  ;;  %v2664_v60 = vld [vmem:[#allocation11 + $0xf88] sm:$0xff] }
 0x2a5   :  { %5631 = vmatprep.subr.bf16.mxu0 %v7467_v63  ;;  %v2668_v62 = vld [vmem:[#allocation11 + $0xfa8] sm:$0xff]  ;;  %v2281_v63 = vld [vmem:[#allocation11 + $0x390] sm:$0xff] }
 0x2a6   :  { %v7929_v4 = vcombine.high %v2664_v60, %v2668_v62  ;;  %v7928_v8 = vcombine.low %v2664_v60, %v2668_v62  ;;  %v7546_v9 = vcombine.low %v2281_v63, %v2285_v6  ;;  %v2245_v60 = vld [vmem:[#allocation11 + $0x270] sm:$0xff] }
 0x2a7   :  { %5589 = vmatpush1.bf16.msra.mxu1 %v7848_v5  ;;  %v7547_v5 = vcombine.high %v2281_v63, %v2285_v6 }
 0x2a8   :  { %5632 = vmatpush1.bf16.msra.mxu0 %v7466_v54  ;;  %5590 = vmatprep.subr.bf16.mxu1 %v7841_v55  ;;  %v2656_v54 = vld [vmem:[#allocation11 + $0xf48] sm:$0xff] }
 0x2a9   :  { %5633 = vmatprep.subr.bf16.mxu0 %v7459_v31  ;;  %v2660_v55 = vld [vmem:[#allocation11 + $0xf68] sm:$0xff]  ;;  %v2273_v31 = vld [vmem:[#allocation11 + $0x350] sm:$0xff] }
 0x2aa   :  { %v7921_v12 = vcombine.high %v2656_v54, %v2660_v55  ;;  %v7920_v23 = vcombine.low %v2656_v54, %v2660_v55  ;;  %v7538_v24 = vcombine.low %v2273_v31, %v2277_v7  ;;  %v2237_v54 = vld [vmem:[#allocation11 + $0x230] sm:$0xff] }
 0x2ab   :  { %5591 = vmatpush1.bf16.msra.mxu1 %v7840_v14  ;;  %v7539_v14 = vcombine.high %v2273_v31, %v2277_v7 }
 0x2ac   :  { %5634 = vmatpush1.bf16.msra.mxu0 %v7458_v15  ;;  %5592 = vmatprep.subr.bf16.mxu1 %v7833_v16  ;;  %v2648_v15 = vld [vmem:[#allocation11 + $0xf08] sm:$0xff] }
 0x2ad   :  { %5635 = vmatprep.subr.bf16.mxu0 %v7451_v20  ;;  %v2652_v16 = vld [vmem:[#allocation11 + $0xf28] sm:$0xff]  ;;  %v2265_v20 = vld [vmem:[#allocation11 + $0x310] sm:$0xff] }
 0x2ae   :  { %v7913_v25 = vcombine.high %v2648_v15, %v2652_v16  ;;  %v7912_v35 = vcombine.low %v2648_v15, %v2652_v16  ;;  %v7530_v38 = vcombine.low %v2265_v20, %v2269_v21  ;;  %v2485_v15 = vld [vmem:[#allocation11 + $0x9f0] sm:$0xff] }
 0x2af   :  { %5593 = vmatpush1.bf16.msra.mxu1 %v7832_v27  ;;  %v7531_v27 = vcombine.high %v2265_v20, %v2269_v21 }
 0x2b0   :  { %5636 = vmatpush1.bf16.msra.mxu0 %v7450_v28  ;;  %5594 = vmatprep.subr.bf16.mxu1 %v7825_v30  ;;  %v2640_v28 = vld [vmem:[#allocation11 + $0xec8] sm:$0xff] }
 0x2b1   :  { %5637 = vmatprep.subr.bf16.mxu0 %v7443_v32  ;;  %v2644_v30 = vld [vmem:[#allocation11 + $0xee8] sm:$0xff]  ;;  %v2257_v32 = vld [vmem:[#allocation11 + $0x2d0] sm:$0xff] }
 0x2b2   :  { %v7905_v41 = vcombine.high %v2640_v28, %v2644_v30  ;;  %v7904_v49 = vcombine.low %v2640_v28, %v2644_v30  ;;  %v7522_v50 = vcombine.low %v2257_v32, %v2261_v33  ;;  %v2473_v28 = vld [vmem:[#allocation11 + $0x990] sm:$0xff] }
 0x2b3   :  { %5595 = vmatpush1.bf16.msra.mxu1 %v7824_v45  ;;  %v7523_v45 = vcombine.high %v2257_v32, %v2261_v33  ;;  %v2477_v30 = vld [vmem:[#allocation11 + $0x9b0] sm:$0xff]  ;;  %v8864_v32 = vpop.f32.mrf.mxu0 }
 0x2b4   :  { %5638 = vmatpush1.bf16.msra.mxu0 %v7442_v47  ;;  %5596 = vmatprep.subr.bf16.mxu1 %v7817_v48  ;;  %v2632_v47 = vld [vmem:[#allocation11 + $0xe88] sm:$0xff] }
 0x2b5   :  { %5639 = vmatprep.subr.bf16.mxu0 %v7435_v10  ;;  %v2636_v48 = vld [vmem:[#allocation11 + $0xea8] sm:$0xff]  ;;  %v2249_v10 = vld [vmem:[#allocation11 + $0x290] sm:$0xff] }
 0x2b6   :  { %v7897_v51 = vcombine.high %v2632_v47, %v2636_v48  ;;  %v7896_v62 = vcombine.low %v2632_v47, %v2636_v48  ;;  %v7514_v63 = vcombine.low %v2249_v10, %v2253_v36  ;;  %v7739_v47 = vcombine.high %v2473_v28, %v2477_v30  ;;  %v2465_v48 = vld [vmem:[#allocation11 + $0x950] sm:$0xff] }
 0x2b7   :  { %5597 = vmatpush1.bf16.msra.mxu1 %v7816_v29  ;;  %v7515_v29 = vcombine.high %v2249_v10, %v2253_v36  ;;  %v2469_v10 = vld [vmem:[#allocation11 + $0x970] sm:$0xff] }
 0x2b8   :  { %5640 = vmatpush1.bf16.msra.mxu0 %v7434_v52  ;;  %5598 = vmatprep.subr.bf16.mxu1 %v7937_v53  ;;  %v2624_v52 = vld [vmem:[#allocation11 + $0xe48] sm:$0xff] }
 0x2b9   :  { %5641 = vmatprep.subr.bf16.mxu0 %v7555_v59  ;;  %v2628_v53 = vld [vmem:[#allocation11 + $0xe68] sm:$0xff]  ;;  %v2241_v59 = vld [vmem:[#allocation11 + $0x250] sm:$0xff] }
 0x2ba   :  { %v7889_v6 = vcombine.high %v2624_v52, %v2628_v53  ;;  %v7888_v55 = vcombine.low %v2624_v52, %v2628_v53  ;;  %v7506_v31 = vcombine.low %v2241_v59, %v2245_v60  ;;  %v7731_v52 = vcombine.high %v2465_v48, %v2469_v10  ;;  %v2329_v53 = vld [vmem:[#allocation11 + $0x510] sm:$0xff] }
 0x2bb   :  { %5599 = vmatpush2.bf16.msra.mxu1 %v7936_v1  ;;  %v7507_v1 = vcombine.high %v2241_v59, %v2245_v60  ;;  %v2333_v59 = vld [vmem:[#allocation11 + $0x530] sm:$0xff] }
 0x2bc   :  { %5642 = vmatpush2.bf16.msra.mxu0 %v7554_v2  ;;  %5600 = vmatprep.subr.bf16.mxu1 %v7929_v4  ;;  %v2616_v2 = vld [vmem:[#allocation11 + $0xe08] sm:$0xff] }
 0x2bd   :  { %5643 = vmatprep.subr.bf16.mxu0 %v7547_v5  ;;  %v2620_v4 = vld [vmem:[#allocation11 + $0xe28] sm:$0xff]  ;;  %v2233_v5 = vld [vmem:[#allocation11 + $0x210] sm:$0xff] }
 0x2be   :  { %v7881_v7 = vcombine.high %v2616_v2, %v2620_v4  ;;  %v7880_v16 = vcombine.low %v2616_v2, %v2620_v4  ;;  %v7498_v20 = vcombine.low %v2233_v5, %v2237_v54  ;;  %v7595_v2 = vcombine.high %v2329_v53, %v2333_v59 }
 0x2bf   :  { %5601 = vmatpush2.bf16.msra.mxu1 %v7928_v8  ;;  %v7499_v8 = vcombine.high %v2233_v5, %v2237_v54  ;;  %v2321_v5 = vld [vmem:[#allocation11 + $0x4d0] sm:$0xff] }
 0x2c0   :  { %5644 = vmatpush2.bf16.msra.mxu0 %v7546_v9  ;;  %5602 = vmatprep.subr.bf16.mxu1 %v7921_v12  ;;  %v2353_v9 = vld [vmem:[#allocation11 + $0x5d0] sm:$0xff] }
 0x2c1   :  { %5645 = vmatprep.subr.bf16.mxu0 %v7539_v14  ;;  %v2357_v12 = vld [vmem:[#allocation11 + $0x5f0] sm:$0xff] }
 0x2c2   :  { %v2481_v14 = vld [vmem:[#allocation11 + $0x9d0] sm:$0xff]  ;;  %v7619_v21 = vcombine.high %v2353_v9, %v2357_v12 }
 0x2c3   :  { %5603 = vmatpush2.bf16.msra.mxu1 %v7920_v23  ;;  %v7747_v23 = vcombine.high %v2481_v14, %v2485_v15  ;;  %v7746_v33 = vcombine.low %v2481_v14, %v2485_v15  ;;  %v2325_v54 = vld [vmem:[#allocation11 + $0x4f0] sm:$0xff] }
 0x2c4   :  { %5646 = vmatpush2.bf16.msra.mxu0 %v7538_v24  ;;  %5604 = vmatprep.subr.bf16.mxu1 %v7913_v25  ;;  %v2345_v24 = vld [vmem:[#allocation11 + $0x590] sm:$0xff] }
 0x2c5   :  { %5647 = vmatprep.subr.bf16.mxu0 %v7531_v27  ;;  %v2349_v25 = vld [vmem:[#allocation11 + $0x5b0] sm:$0xff]  ;;  %v7618_v27 = vcombine.low %v2353_v9, %v2357_v12  ;;  %v7587_v9 = vcombine.high %v2321_v5, %v2325_v54 }
 0x2c6   :  { %v2313_v12 = vld [vmem:[#allocation11 + $0x490] sm:$0xff] }
 0x2c7   :  { %5605 = vmatpush2.bf16.msra.mxu1 %v7912_v35  ;;  %v7611_v35 = vcombine.high %v2345_v24, %v2349_v25  ;;  %v2317_v14 = vld [vmem:[#allocation11 + $0x4b0] sm:$0xff] }
 0x2c8   :  { %5648 = vmatpush2.bf16.msra.mxu0 %v7530_v38  ;;  %5606 = vmatprep.subr.bf16.mxu1 %v7905_v41  ;;  %v2337_v38 = vld [vmem:[#allocation11 + $0x550] sm:$0xff] }
 0x2c9   :  { %5649 = vmatprep.subr.bf16.mxu0 %v7523_v45  ;;  %v2341_v41 = vld [vmem:[#allocation11 + $0x570] sm:$0xff] }
 0x2ca   :  { %v2441_v15 = vld [vmem:[#allocation11 + $0x890] sm:$0xff] }
 0x2cb   :  { %5607 = vmatpush2.bf16.msra.mxu1 %v7904_v49  ;;  %v7610_v49 = vcombine.low %v2345_v24, %v2349_v25  ;;  %v2305_v25 = vld [vmem:[#allocation11 + $0x450] sm:$0xff] }
 0x2cc   :  { %5650 = vmatpush2.bf16.msra.mxu0 %v7522_v50  ;;  %5608 = vmatprep.subr.bf16.mxu1 %v7897_v51  ;;  %v7738_v51 = vcombine.low %v2473_v28, %v2477_v30  ;;  %v2433_v28 = vld [vmem:[#allocation11 + $0x850] sm:$0xff] }
 0x2cd   :  { %5651 = vmatprep.subr.bf16.mxu0 %v7515_v29  ;;  %v7603_v29 = vcombine.high %v2337_v38, %v2341_v41  ;;  %v2437_v30 = vld [vmem:[#allocation11 + $0x870] sm:$0xff] }
 0x2cf   :  { %5609 = vmatpush2.bf16.msra.mxu1 %v7896_v62  ;;  %v2457_v62 = vld [vmem:[#allocation11 + $0x910] sm:$0xff] }
 0x2d0   :  { %5652 = vmatpush2.bf16.msra.mxu0 %v7514_v63  ;;  %5610 = vmatprep.subr.bf16.mxu1 %v7889_v6  ;;  %v7602_v6 = vcombine.low %v2337_v38, %v2341_v41  ;;  %v7699_v41 = vcombine.high %v2433_v28, %v2437_v30 }
 0x2d1   :  { %5653 = vmatprep.subr.bf16.mxu0 %v7507_v1  ;;  %v7730_v1 = vcombine.low %v2465_v48, %v2469_v10  ;;  %v2425_v48 = vld [vmem:[#allocation11 + $0x810] sm:$0xff] }
 0x2d2   :  { %v2429_v10 = vld [vmem:[#allocation11 + $0x830] sm:$0xff] }
 0x2d3   :  { %5611 = vmatpush2.bf16.msra.mxu1 %v7888_v55  ;;  %v2449_v55 = vld [vmem:[#allocation11 + $0x8d0] sm:$0xff] }
 0x2d4   :  { %5654 = vmatpush2.bf16.msra.mxu0 %v7506_v31  ;;  %5612 = vmatprep.subr.bf16.mxu1 %v7881_v7  ;;  %v2453_v31 = vld [vmem:[#allocation11 + $0x8f0] sm:$0xff]  ;;  %v7594_v7 = vcombine.low %v2329_v53, %v2333_v59 }
 0x2d5   :  { %5655 = vmatprep.subr.bf16.mxu0 %v7499_v8  ;;  %v2417_v53 = vld [vmem:[#allocation11 + $0x7d0] sm:$0xff] }
 0x2d6   :  { %v2421_v59 = vld [vmem:[#allocation11 + $0x7f0] sm:$0xff] }
 0x2d7   :  { %5613 = vmatpush2.bf16.msra.mxu1 %v7880_v16  ;;  %v2445_v16 = vld [vmem:[#allocation11 + $0x8b0] sm:$0xff] }
 0x2d8   :  { %5656 = vmatpush2.bf16.msra.mxu0 %v7498_v20  ;;  %5668 = vmatprep.subr.bf16.mxu1 %v7619_v21  ;;  %v7586_v20 = vcombine.low %v2321_v5, %v2325_v54  ;;  %v7714_v21 = vcombine.low %v2449_v55, %v2453_v31  ;;  %v7707_v24 = vcombine.high %v2441_v15, %v2445_v16  ;;  %v2413_v5 = vld [vmem:[#allocation11 + $0x7b0] sm:$0xff] }
 0x2d9   :  { %5711 = vmatprep.subr.bf16.mxu0 %v7747_v23  ;;  %v7579_v23 = vcombine.high %v2313_v12, %v2317_v14  ;;  %v2537_v54 = vld [vmem:[#allocation11 + $0xb90] sm:$0xff] }
 0x2da   :  { %5615 = vmatmul.mubr.bf16.vlgmr.msra.gmra.mxu1 %v8841_v57  ;;  %v5401_v45 = vpop.f32.mrf.mxu0 }
 0x2db   :  { %5658 = vmatmul.mubr.bf16.vlgmr.msra.gmra.mxu0 %v8785_v3  ;;  %v8869_v36 = vadd.f32 %v5401_v45, %v8856_v46  ;;  %5669 = vmatpush1.bf16.msra.mxu1 %v7618_v27  ;;  %v2461_v46 = vld [vmem:[#allocation11 + $0x930] sm:$0xff] }
 0x2dc   :  { %5700 = vmatprep.mubr.bf16.mxu1 %v8794_v56  ;;  %5712 = vmatpush1.bf16.msra.mxu0 %v7746_v33  ;;  %v8872_v50 = vpop.f32.mrf.mxu0  ;;  %v7723_v4 = vcombine.high %v2457_v62, %v2461_v46  ;;  %v7722_v8 = vcombine.low %v2457_v62, %v2461_v46  ;;  %v2309_v27 = vld [vmem:[#allocation11 + $0x470] sm:$0xff]  ;;  %v7578_v33 = vcombine.low %v2313_v12, %v2317_v14 }
 0x2dd   :  { %5743 = vmatprep.mubr.bf16.mxu0 %v8824_v40  ;;  %5670 = vmatprep.subr.bf16.mxu1 %v7611_v35  ;;  %v7706_v35 = vcombine.low %v2441_v15, %v2445_v16  ;;  %v7571_v38 = vcombine.high %v2305_v25, %v2309_v27  ;;  %v2297_v45 = vld [vmem:[#allocation11 + $0x410] sm:$0xff] }
 0x2de   :  { %5713 = vmatprep.subr.bf16.mxu0 %v7739_v47  ;;  %v5405_v60 = vpop.f32.mrf.mxu0  ;;  %v2301_v47 = vld [vmem:[#allocation11 + $0x430] sm:$0xff] }
 0x2df   :  { %v8876_v63 = vadd.f32 %v5405_v60, %v8862_v39  ;;  %5671 = vmatpush1.bf16.msra.mxu1 %v7610_v49  ;;  %v7715_v39 = vcombine.high %v2449_v55, %v2453_v31  ;;  %v7570_v49 = vcombine.low %v2305_v25, %v2309_v27  ;;  %v2545_v60 = vld [vmem:[#allocation11 + $0xbd0] sm:$0xff]  ;;  %v7562_v46 = vcombine.low %v2297_v45, %v2301_v47 }
 0x2e0   :  { %5714 = vmatpush1.bf16.msra.mxu0 %v7738_v51  ;;  %5672 = vmatprep.subr.bf16.mxu1 %v7603_v29  ;;  %v7698_v51 = vcombine.low %v2433_v28, %v2437_v30  ;;  %v7563_v29 = vcombine.high %v2297_v45, %v2301_v47  ;;  %v2549_v62 = vld [vmem:[#allocation11 + $0xbf0] sm:$0xff]  ;;  %v7682_v31 = vcombine.low %v2417_v53, %v2421_v59 }
 0x2e1   :  { %5715 = vmatprep.subr.bf16.mxu0 %v7731_v52  ;;  %v7691_v52 = vcombine.high %v2425_v48, %v2429_v10  ;;  %v2541_v55 = vld [vmem:[#allocation11 + $0xbb0] sm:$0xff] }
 0x2e2   :  { %v2405_v12 = vld [vmem:[#allocation11 + $0x770] sm:$0xff] }
 0x2e3   :  { %5673 = vmatpush1.bf16.msra.mxu1 %v7602_v6  ;;  %v7690_v6 = vcombine.low %v2425_v48, %v2429_v10  ;;  %v2529_v14 = vld [vmem:[#allocation11 + $0xb50] sm:$0xff] }
 0x2e4   :  { %5716 = vmatpush1.bf16.msra.mxu0 %v7730_v1  ;;  %5674 = vmatprep.subr.bf16.mxu1 %v7595_v2  ;;  %v7683_v1 = vcombine.high %v2417_v53, %v2421_v59  ;;  %v7811_v2 = vcombine.high %v2545_v60, %v2549_v62  ;;  %v2533_v15 = vld [vmem:[#allocation11 + $0xb70] sm:$0xff] }
 0x2e5   :  { %5717 = vmatprep.subr.bf16.mxu0 %v7723_v4  ;;  %v2409_v4 = vld [vmem:[#allocation11 + $0x790] sm:$0xff] }
 0x2e6   :  { %v7674_v16 = vcombine.low %v2409_v4, %v2413_v5  ;;  %v2397_v25 = vld [vmem:[#allocation11 + $0x730] sm:$0xff] }
 0x2e7   :  { %5675 = vmatpush1.bf16.msra.mxu1 %v7594_v7  ;;  %v7810_v7 = vcombine.low %v2545_v60, %v2549_v62  ;;  %v2521_v27 = vld [vmem:[#allocation11 + $0xb10] sm:$0xff] }
 0x2e8   :  { %5718 = vmatpush1.bf16.msra.mxu0 %v7722_v8  ;;  %5676 = vmatprep.subr.bf16.mxu1 %v7587_v9  ;;  %v7675_v8 = vcombine.high %v2409_v4, %v2413_v5  ;;  %v7803_v9 = vcombine.high %v2537_v54, %v2541_v55  ;;  %v2525_v28 = vld [vmem:[#allocation11 + $0xb30] sm:$0xff] }
 0x2e9   :  { %5719 = vmatprep.subr.bf16.mxu0 %v7715_v39  ;;  %v2401_v39 = vld [vmem:[#allocation11 + $0x750] sm:$0xff] }
 0x2ea   :  { %v7666_v30 = vcombine.low %v2401_v39, %v2405_v12  ;;  %v2389_v45 = vld [vmem:[#allocation11 + $0x6f0] sm:$0xff] }
 0x2eb   :  { %5677 = vmatpush1.bf16.msra.mxu1 %v7586_v20  ;;  %v7802_v20 = vcombine.low %v2537_v54, %v2541_v55  ;;  %v2513_v47 = vld [vmem:[#allocation11 + $0xad0] sm:$0xff] }
 0x2ec   :  { %5720 = vmatpush1.bf16.msra.mxu0 %v7714_v21  ;;  %5678 = vmatprep.subr.bf16.mxu1 %v7579_v23  ;;  %v7667_v21 = vcombine.high %v2401_v39, %v2405_v12  ;;  %v7795_v23 = vcombine.high %v2529_v14, %v2533_v15  ;;  %v2517_v48 = vld [vmem:[#allocation11 + $0xaf0] sm:$0xff] }
 0x2ed   :  { %5721 = vmatprep.subr.bf16.mxu0 %v7707_v24  ;;  %v2393_v24 = vld [vmem:[#allocation11 + $0x710] sm:$0xff] }
 0x2ee   :  { %v7658_v10 = vcombine.low %v2393_v24, %v2397_v25  ;;  %v2381_v53 = vld [vmem:[#allocation11 + $0x6b0] sm:$0xff] }
 0x2ef   :  { %5679 = vmatpush1.bf16.msra.mxu1 %v7578_v33  ;;  %v7794_v33 = vcombine.low %v2529_v14, %v2533_v15  ;;  %v2505_v59 = vld [vmem:[#allocation11 + $0xa90] sm:$0xff] }
 0x2f0   :  { %5722 = vmatpush1.bf16.msra.mxu0 %v7706_v35  ;;  %5680 = vmatprep.subr.bf16.mxu1 %v7571_v38  ;;  %v7659_v35 = vcombine.high %v2393_v24, %v2397_v25  ;;  %v7787_v38 = vcombine.high %v2521_v27, %v2525_v28  ;;  %v2509_v60 = vld [vmem:[#allocation11 + $0xab0] sm:$0xff]  ;;  %v2226_v25 = vld [vmem:[#allocation11 + $0x1d8] sm:$0xff] }
 0x2f1   :  { %5723 = vmatprep.subr.bf16.mxu0 %v7699_v41  ;;  %v2385_v41 = vld [vmem:[#allocation11 + $0x6d0] sm:$0xff] }
 0x2f2   :  { %v7650_v62 = vcombine.low %v2385_v41, %v2389_v45  ;;  %v2373_v4 = vld [vmem:[#allocation11 + $0x670] sm:$0xff] }
 0x2f3   :  { %5681 = vmatpush1.bf16.msra.mxu1 %v7570_v49  ;;  %v7786_v49 = vcombine.low %v2521_v27, %v2525_v28  ;;  %v2497_v5 = vld [vmem:[#allocation11 + $0xa50] sm:$0xff]  ;;  %v2230_v27 = vld [vmem:[#allocation11 + $0x1f8] sm:$0xff] }
 0x2f4   :  { %5724 = vmatpush1.bf16.msra.mxu0 %v7698_v51  ;;  %5682 = vmatprep.subr.bf16.mxu1 %v7563_v29  ;;  %v7651_v51 = vcombine.high %v2385_v41, %v2389_v45  ;;  %v7779_v29 = vcombine.high %v2513_v47, %v2517_v48  ;;  %v2501_v54 = vld [vmem:[#allocation11 + $0xa70] sm:$0xff] }
 0x2f5   :  { %5725 = vmatprep.subr.bf16.mxu0 %v7691_v52  ;;  %v2377_v52 = vld [vmem:[#allocation11 + $0x690] sm:$0xff] }
 0x2f6   :  { %v7642_v55 = vcombine.low %v2377_v52, %v2381_v53  ;;  %v2365_v39 = vld [vmem:[#allocation11 + $0x630] sm:$0xff] }
 0x2f7   :  { %5683 = vmatpush1.bf16.msra.mxu1 %v7562_v46  ;;  %v7778_v46 = vcombine.low %v2513_v47, %v2517_v48  ;;  %v2489_v12 = vld [vmem:[#allocation11 + $0xa10] sm:$0xff]  ;;  %v2218_v47 = vld [vmem:[#allocation11 + $0x198] sm:$0xff] }
 0x2f8   :  { %5726 = vmatpush1.bf16.msra.mxu0 %v7690_v6  ;;  %5684 = vmatprep.subr.bf16.mxu1 %v7683_v1  ;;  %v7643_v6 = vcombine.high %v2377_v52, %v2381_v53  ;;  %v7771_v1 = vcombine.high %v2505_v59, %v2509_v60  ;;  %v2493_v14 = vld [vmem:[#allocation11 + $0xa30] sm:$0xff]  ;;  %v2222_v48 = vld [vmem:[#allocation11 + $0x1b8] sm:$0xff] }
 0x2f9   :  { %5727 = vmatprep.subr.bf16.mxu0 %v7811_v2  ;;  %v2369_v2 = vld [vmem:[#allocation11 + $0x650] sm:$0xff] }
 0x2fa   :  { %v7634_v15 = vcombine.low %v2369_v2, %v2373_v4  ;;  %v2613_v24 = vld [vmem:[#allocation11 + $0xdf0] sm:$0xff] }
 0x2fb   :  { %5685 = vmatpush2.bf16.msra.mxu1 %v7682_v31  ;;  %v7770_v31 = vcombine.low %v2505_v59, %v2509_v60  ;;  %v2605_v41 = vld [vmem:[#allocation11 + $0xdb0] sm:$0xff]  ;;  %v7485_v59 = vcombine.high %v2218_v47, %v2222_v48  ;;  %v2210_v60 = vld [vmem:[#allocation11 + $0x158] sm:$0xff] }
 0x2fc   :  { %5728 = vmatpush2.bf16.msra.mxu0 %v7810_v7  ;;  %5686 = vmatprep.subr.bf16.mxu1 %v7675_v8  ;;  %v7635_v7 = vcombine.high %v2369_v2, %v2373_v4  ;;  %v7763_v8 = vcombine.high %v2497_v5, %v2501_v54  ;;  %v2597_v52 = vld [vmem:[#allocation11 + $0xd70] sm:$0xff]  ;;  %v7484_v2 = vcombine.low %v2218_v47, %v2222_v48 }
 0x2fd   :  { %5729 = vmatprep.subr.bf16.mxu0 %v7803_v9  ;;  %v2361_v9 = vld [vmem:[#allocation11 + $0x610] sm:$0xff] }
 0x2fe   :  { %v7626_v28 = vcombine.low %v2361_v9, %v2365_v39 }
 0x2ff   :  { %5687 = vmatpush2.bf16.msra.mxu1 %v7674_v16  ;;  %v7762_v16 = vcombine.low %v2497_v5, %v2501_v54  ;;  %v2585_v54 = vld [vmem:[#allocation11 + $0xd10] sm:$0xff] }
 0x300   :  { %5730 = vmatpush2.bf16.msra.mxu0 %v7802_v20  ;;  %5688 = vmatprep.subr.bf16.mxu1 %v7667_v21  ;;  %v7627_v20 = vcombine.high %v2361_v9, %v2365_v39  ;;  %v7755_v21 = vcombine.high %v2489_v12, %v2493_v14 }
 0x301   :  { %5731 = vmatprep.subr.bf16.mxu0 %v7795_v23  ;;  %v2609_v23 = vld [vmem:[#allocation11 + $0xdd0] sm:$0xff] }
 0x302   :  { %v7874_v45 = vcombine.low %v2609_v23, %v2613_v24 }
 0x303   :  { %5689 = vmatpush2.bf16.msra.mxu1 %v7666_v30  ;;  %v7754_v30 = vcombine.low %v2489_v12, %v2493_v14 }
 0x304   :  { %5732 = vmatpush2.bf16.msra.mxu0 %v7794_v33  ;;  %5690 = vmatprep.subr.bf16.mxu1 %v7659_v35  ;;  %v7875_v33 = vcombine.high %v2609_v23, %v2613_v24  ;;  %v7493_v35 = vcombine.high %v2226_v25, %v2230_v27  ;;  %v2198_v23 = vld [vmem:[#allocation11 + $0xf8] sm:$0xff] }
 0x305   :  { %5733 = vmatprep.subr.bf16.mxu0 %v7787_v38  ;;  %v2601_v38 = vld [vmem:[#allocation11 + $0xd90] sm:$0xff] }
 0x307   :  { %5691 = vmatpush2.bf16.msra.mxu1 %v7658_v10  ;;  %v8878_v10 = vpop.f32.mrf.mxu1 }
 0x308   :  { %5734 = vmatpush2.bf16.msra.mxu0 %v7786_v49  ;;  %5692 = vmatprep.subr.bf16.mxu1 %v7651_v51  ;;  %v7492_v49 = vcombine.low %v2226_v25, %v2230_v27  ;;  %v7867_v51 = vcombine.high %v2601_v38, %v2605_v41 }
 0x309   :  { %5735 = vmatprep.subr.bf16.mxu0 %v7779_v29  ;;  %v2593_v29 = vld [vmem:[#allocation11 + $0xd50] sm:$0xff] }
 0x30a   :  { %v7859_v4 = vcombine.high %v2593_v29, %v2597_v52  ;;  %v7858_v39 = vcombine.low %v2593_v29, %v2597_v52  ;;  %v2561_v29 = vld [vmem:[#allocation11 + $0xc50] sm:$0xff] }
 0x30b   :  { %5693 = vmatpush2.bf16.msra.mxu1 %v7650_v62  ;;  %v2214_v62 = vld [vmem:[#allocation11 + $0x178] sm:$0xff]  ;;  %v2565_v52 = vld [vmem:[#allocation11 + $0xc70] sm:$0xff] }
 0x30c   :  { %5736 = vmatpush2.bf16.msra.mxu0 %v7778_v46  ;;  %5694 = vmatprep.subr.bf16.mxu1 %v7643_v6  ;;  %v7866_v6 = vcombine.low %v2601_v38, %v2605_v41  ;;  %v7477_v5 = vcombine.high %v2210_v60, %v2214_v62  ;;  %v7476_v12 = vcombine.low %v2210_v60, %v2214_v62  ;;  %v2573_v38 = vld [vmem:[#allocation11 + $0xcb0] sm:$0xff]  ;;  %v2186_v41 = vld [vmem:[#allocation11 + $0x98] sm:$0xff] }
 0x30d   :  { %5737 = vmatprep.subr.bf16.mxu0 %v7771_v1 }
 0x30f   :  { %5695 = vmatpush2.bf16.msra.mxu1 %v7642_v55  ;;  %v2589_v55 = vld [vmem:[#allocation11 + $0xd30] sm:$0xff] }
 0x310   :  { %5738 = vmatpush2.bf16.msra.mxu0 %v7770_v31  ;;  %5696 = vmatprep.subr.bf16.mxu1 %v7635_v7  ;;  %v2202_v7 = vld [vmem:[#allocation11 + $0x118] sm:$0xff]  ;;  %v7851_v14 = vcombine.high %v2585_v54, %v2589_v55  ;;  %v7850_v27 = vcombine.low %v2585_v54, %v2589_v55  ;;  %v7826_v55 = vcombine.low %v2561_v29, %v2565_v52 }
 0x311   :  { %5739 = vmatprep.subr.bf16.mxu0 %v7763_v8  ;;  %v2206_v8 = vld [vmem:[#allocation11 + $0x138] sm:$0xff] }
 0x312   :  { %v2174_v54 = vld [vmem:[#allocation11 + $0x38] sm:$0xff] }
 0x313   :  { %5697 = vmatpush2.bf16.msra.mxu1 %v7634_v15 }
 0x314   :  { %5740 = vmatpush2.bf16.msra.mxu0 %v7762_v16  ;;  %5698 = vmatprep.subr.bf16.mxu1 %v7627_v20  ;;  %v2577_v16 = vld [vmem:[#allocation11 + $0xcd0] sm:$0xff] }
 0x315   :  { %5741 = vmatprep.subr.bf16.mxu0 %v7755_v21  ;;  %v2581_v20 = vld [vmem:[#allocation11 + $0xcf0] sm:$0xff]  ;;  %v2194_v21 = vld [vmem:[#allocation11 + $0xd8] sm:$0xff] }
 0x316   :  { %v7842_v47 = vcombine.low %v2577_v16, %v2581_v20  ;;  %v7460_v48 = vcombine.low %v2194_v21, %v2198_v23 }
 0x317   :  { %5699 = vmatpush2.bf16.msra.mxu1 %v7626_v28  ;;  %v7843_v28 = vcombine.high %v2577_v16, %v2581_v20  ;;  %v2665_v20 = vld [vmem:[#allocation11 + $0xf90] sm:$0xff] }
 0x318   :  { %5742 = vmatpush2.bf16.msra.mxu0 %v7754_v30  ;;  %5754 = vmatprep.subr.bf16.mxu1 %v7875_v33  ;;  %v7461_v33 = vcombine.high %v2194_v21, %v2198_v23  ;;  %v2669_v21 = vld [vmem:[#allocation11 + $0xfb0] sm:$0xff]  ;;  %v2282_v23 = vld [vmem:[#allocation11 + $0x398] sm:$0xff] }
 0x319   :  { %5797 = vmatprep.subr.bf16.mxu0 %v7493_v35  ;;  %v2569_v35 = vld [vmem:[#allocation11 + $0xc90] sm:$0xff] }
 0x31a   :  { %5701 = vmatmul.mubr.bf16.vlgmr.msra.gmra.mxu1 %v8802_v0  ;;  %v5444_v53 = vpop.f32.mrf.mxu1  ;;  %v7834_v60 = vcombine.low %v2569_v35, %v2573_v38 }
 0x31b   :  { %5744 = vmatmul.mubr.bf16.vlgmr.msra.gmra.mxu0 %v8828_v42  ;;  %v5445_v46 = vadd.f32 %v5444_v53, %v8869_v36  ;;  %5755 = vmatpush1.bf16.msra.mxu1 %v7874_v45  ;;  %v2190_v45 = vld [vmem:[#allocation11 + $0xb8] sm:$0xff] }
 0x31c   :  { %5786 = vmatprep.mubr.bf16.mxu1 %v8839_v43  ;;  %5798 = vmatpush1.bf16.msra.mxu0 %v7492_v49  ;;  %v8884_v1 = vpop.f32.mrf.mxu1  ;;  %v7835_v49 = vcombine.high %v2569_v35, %v2573_v38  ;;  %v2178_v53 = vld [vmem:[#allocation11 + $0x58] sm:$0xff]  ;;  %v7452_v62 = vcombine.low %v2186_v41, %v2190_v45  ;;  %v2661_v35 = vld [vmem:[#allocation11 + $0xf70] sm:$0xff] }
 0x31d   :  { %5829 = vmatprep.mubr.bf16.mxu0 %v8765_v17  ;;  %5756 = vmatprep.subr.bf16.mxu1 %v7867_v51  ;;  %v5969_v36 = vmul.f32 0.1, %v5445_v46  ;;  %v7469_v17 = vcombine.high %v2202_v7, %v2206_v8  ;;  %v7453_v51 = vcombine.high %v2186_v41, %v2190_v45  ;;  %v2274_v38 = vld [vmem:[#allocation11 + $0x358] sm:$0xff]  ;;  %v7930_v45 = vcombine.low %v2665_v20, %v2669_v21 }
 0x31e   :  { %5799 = vmatprep.subr.bf16.mxu0 %v7485_v59  ;;  %v5448_v31 = vpop.f32.mrf.mxu1  ;;  %v2182_v59 = vld [vmem:[#allocation11 + $0x78] sm:$0xff] }
 0x31f   :  { %v5449_v9 = vadd.f32 %v5448_v31, %v8876_v63  ;;  %5757 = vmatpush1.bf16.msra.mxu1 %v7866_v6  ;;  %v5985_v24 = vmax.f32 %v5445_v46, %v5969_v36  ;;  %v7468_v63 = vcombine.low %v2202_v7, %v2206_v8  ;;  %v7827_v46 = vcombine.high %v2561_v29, %v2565_v52  ;;  %v2673_v36 = vld [vmem:[#allocation11 + $0xfd0] sm:$0xff]  ;;  %v2278_v41 = vld [vmem:[#allocation11 + $0x378] sm:$0xff] }
 0x320   :  { %5800 = vmatpush1.bf16.msra.mxu0 %v7484_v2  ;;  %5758 = vmatprep.subr.bf16.mxu1 %v7859_v4  ;;  %v7445_v6 = vcombine.high %v2178_v53, %v2182_v59  ;;  %v2553_v2 = vld [vmem:[#allocation11 + $0xc10] sm:$0xff]  ;;  %v7444_v31 = vcombine.low %v2178_v53, %v2182_v59  ;;  %v2266_v52 = vld [vmem:[#allocation11 + $0x318] sm:$0xff] }
 0x321   :  { %v5977_v15 = vmul.f32 0.1, %v5449_v9  ;;  %5801 = vmatprep.subr.bf16.mxu0 %v7477_v5  ;;  %v2557_v4 = vld [vmem:[#allocation11 + $0xc30] sm:$0xff]  ;;  %v2170_v5 = vld [vmem:[#allocation11 + $0x18] sm:$0xff] }
 0x322   :  { %v7819_v7 = vcombine.high %v2553_v2, %v2557_v4  ;;  %v7437_v8 = vcombine.high %v2170_v5, %v2174_v54  ;;  %v2653_v29 = vld [vmem:[#allocation11 + $0xf30] sm:$0xff]  ;;  %v2270_v53 = vld [vmem:[#allocation11 + $0x338] sm:$0xff] }
 0x323   :  { %v5993_v25 = vmax.f32 %v5449_v9, %v5977_v15  ;;  %5759 = vmatpush1.bf16.msra.mxu1 %v7858_v39  ;;  %v2677_v9 = vld [vmem:[#allocation11 + $0xff0] sm:$0xff]  ;;  %v2290_v39 = vld [vmem:[#allocation11 + $0x3d8] sm:$0xff]  ;;  %v7436_v15 = vcombine.low %v2170_v5, %v2174_v54 }
 0x324   :  { %5802 = vmatpush1.bf16.msra.mxu0 %v7476_v12  ;;  %5760 = vmatprep.subr.bf16.mxu1 %v7851_v14  ;;  %v2294_v12 = vld [vmem:[#allocation11 + $0x3f8] sm:$0xff]  ;;  %v7818_v14 = vcombine.low %v2553_v2, %v2557_v4  ;;  %v2645_v2 = vld [vmem:[#allocation11 + $0xef0] sm:$0xff] }
 0x325   :  { %v8888_v30 = vpack.c.bf16 %v5993_v25, %v5985_v24  ;;  %5803 = vmatprep.subr.bf16.mxu0 %v7469_v17  ;;  %v7939_v17 = vcombine.high %v2673_v36, %v2677_v9  ;;  %v7557_v16 = vcombine.high %v2290_v39, %v2294_v12  ;;  %v2286_v24 = vld [vmem:[#allocation11 + $0x3b8] sm:$0xff]  ;;  %v7938_v25 = vcombine.low %v2673_v36, %v2677_v9  ;;  %v2637_v36 = vld [vmem:[#allocation11 + $0xeb0] sm:$0xff] }
 0x326   :  { %v2258_v4 = vld [vmem:[#allocation11 + $0x2d8] sm:$0xff] }
 0x327   :  { %5761 = vmatpush1.bf16.msra.mxu1 %v7850_v27  ;;  %v7556_v27 = vcombine.low %v2290_v39, %v2294_v12  ;;  %v2262_v5 = vld [vmem:[#allocation11 + $0x2f8] sm:$0xff] }
 0x328   :  { %5804 = vmatpush1.bf16.msra.mxu0 %v7468_v63  ;;  %5762 = vmatprep.subr.bf16.mxu1 %v7843_v28  ;;  %v7931_v63 = vcombine.high %v2665_v20, %v2669_v21  ;;  %v7549_v28 = vcombine.high %v2282_v23, %v2286_v24  ;;  %v2250_v9 = vld [vmem:[#allocation11 + $0x298] sm:$0xff]  ;;  %v2629_v20 = vld [vmem:[#allocation11 + $0xe70] sm:$0xff]  ;;  %v8890_v21 = vpop.f32.mrf.mxu0 }
 0x329   :  { %5805 = vmatprep.subr.bf16.mxu0 %v7461_v33  ;;  %v2657_v33 = vld [vmem:[#allocation11 + $0xf50] sm:$0xff]  ;;  %v2254_v39 = vld [vmem:[#allocation11 + $0x2b8] sm:$0xff] }
 0x32a   :  { %v7922_v59 = vcombine.low %v2657_v33, %v2661_v35 }
 0x32b   :  { %5763 = vmatpush1.bf16.msra.mxu1 %v7842_v47  ;;  %v7548_v47 = vcombine.low %v2282_v23, %v2286_v24  ;;  %v2242_v23 = vld [vmem:[#allocation11 + $0x258] sm:$0xff] }
 0x32c   :  { %5806 = vmatpush1.bf16.msra.mxu0 %v7460_v48  ;;  %5764 = vmatprep.subr.bf16.mxu1 %v7835_v49  ;;  %v7923_v48 = vcombine.high %v2657_v33, %v2661_v35  ;;  %v7541_v49 = vcombine.high %v2274_v38, %v2278_v41  ;;  %v2246_v24 = vld [vmem:[#allocation11 + $0x278] sm:$0xff]  ;;  %v2617_v35 = vld [vmem:[#allocation11 + $0xe10] sm:$0xff] }
 0x32d   :  { %5807 = vmatprep.subr.bf16.mxu0 %v7453_v51  ;;  %v2649_v51 = vld [vmem:[#allocation11 + $0xf10] sm:$0xff]  ;;  %v7509_v33 = vcombine.high %v2242_v23, %v2246_v24 }
 0x32e   :  { %v7914_v54 = vcombine.low %v2649_v51, %v2653_v29 }
 0x32f   :  { %5765 = vmatpush1.bf16.msra.mxu1 %v7834_v60  ;;  %v7540_v60 = vcombine.low %v2274_v38, %v2278_v41  ;;  %v2621_v38 = vld [vmem:[#allocation11 + $0xe30] sm:$0xff]  ;;  %v2234_v41 = vld [vmem:[#allocation11 + $0x218] sm:$0xff] }
 0x330   :  { %5808 = vmatpush1.bf16.msra.mxu0 %v7452_v62  ;;  %5766 = vmatprep.subr.bf16.mxu1 %v7827_v46  ;;  %v7915_v62 = vcombine.high %v2649_v51, %v2653_v29  ;;  %v7533_v46 = vcombine.high %v2266_v52, %v2270_v53  ;;  %v7883_v51 = vcombine.high %v2617_v35, %v2621_v38 }
 0x331   :  { %5809 = vmatprep.subr.bf16.mxu0 %v7445_v6  ;;  %v2641_v6 = vld [vmem:[#allocation11 + $0xed0] sm:$0xff] }
 0x332   :  { %v7906_v12 = vcombine.low %v2641_v6, %v2645_v2 }
 0x333   :  { %5767 = vmatpush1.bf16.msra.mxu1 %v7826_v55  ;;  %v7532_v55 = vcombine.low %v2266_v52, %v2270_v53  ;;  %v2354_v52 = vld [vmem:[#allocation11 + $0x5d8] sm:$0xff] }
 0x334   :  { %5810 = vmatpush1.bf16.msra.mxu0 %v7444_v31  ;;  %5768 = vmatprep.subr.bf16.mxu1 %v7819_v7  ;;  %v7907_v31 = vcombine.high %v2641_v6, %v2645_v2  ;;  %v7525_v7 = vcombine.high %v2258_v4, %v2262_v5  ;;  %v2358_v53 = vld [vmem:[#allocation11 + $0x5f8] sm:$0xff] }
 0x335   :  { %5811 = vmatprep.subr.bf16.mxu0 %v7437_v8  ;;  %v2633_v8 = vld [vmem:[#allocation11 + $0xe90] sm:$0xff]  ;;  %v7621_v2 = vcombine.high %v2354_v52, %v2358_v53 }
 0x337   :  { %5769 = vmatpush1.bf16.msra.mxu1 %v7818_v14  ;;  %v7524_v14 = vcombine.low %v2258_v4, %v2262_v5  ;;  %v8894_v4 = vld [vmem:[#allocation13] sm:$0xff] }
 0x338   :  { %5812 = vmatpush1.bf16.msra.mxu0 %v7436_v15  ;;  %5770 = vmatprep.subr.bf16.mxu1 %v7939_v17  ;;  %v7899_v15 = vcombine.high %v2633_v8, %v2637_v36  ;;  %v7517_v17 = vcombine.high %v2250_v9, %v2254_v39  ;;  %v2692_v5 = vrot.slane %v8894_v4, %v473_v58  ;;  %v2342_v58 = vld [vmem:[#allocation11 + $0x578] sm:$0xff] }
 0x339   :  { %5813 = vmatprep.subr.bf16.mxu0 %v7557_v16  ;;  %v2625_v16 = vld [vmem:[#allocation11 + $0xe50] sm:$0xff] }
 0x33b   :  { %5771 = vmatpush2.bf16.msra.mxu1 %v7938_v25  ;;  %v7898_v25 = vcombine.low %v2633_v8, %v2637_v36  ;;  %v2474_v8 = vld [vmem:[#allocation11 + $0x998] sm:$0xff] }
 0x33c   :  { %5814 = vmatpush2.bf16.msra.mxu0 %v7556_v27  ;;  %5772 = vmatprep.subr.bf16.mxu1 %v7931_v63  ;;  %v5487_v27 = vpop.f32.mrf.mxu0  ;;  %v7516_v63 = vcombine.low %v2250_v9, %v2254_v39  ;;  %v2478_v36 = vld [vmem:[#allocation11 + $0x9b8] sm:$0xff]  ;;  %v8901_v39 = vpop.f32.mrf.mxu1 }
 0x33d   :  { %5815 = vmatprep.subr.bf16.mxu0 %v7549_v28  ;;  %v7891_v28 = vcombine.high %v2625_v16, %v2629_v20 }
 0x33f   :  { %5773 = vmatpush2.bf16.msra.mxu1 %v7930_v45  ;;  %v2238_v45 = vld [vmem:[#allocation11 + $0x238] sm:$0xff] }
 0x340   :  { %5816 = vmatpush2.bf16.msra.mxu0 %v7548_v47  ;;  %5774 = vmatprep.subr.bf16.mxu1 %v7923_v48  ;;  %v7890_v47 = vcombine.low %v2625_v16, %v2629_v20  ;;  %v8892_v48 = vpop.f32.mrf.mxu0  ;;  %v7501_v29 = vcombine.high %v2234_v41, %v2238_v45  ;;  %v7500_v6 = vcombine.low %v2234_v41, %v2238_v45 }
 0x341   :  { %5817 = vmatprep.subr.bf16.mxu0 %v7541_v49  ;;  %v7508_v49 = vcombine.low %v2242_v23, %v2246_v24  ;;  %v7741_v23 = vcombine.high %v2474_v8, %v2478_v36  ;;  %v2466_v24 = vld [vmem:[#allocation11 + $0x958] sm:$0xff] }
 0x343   :  { %5775 = vmatpush2.bf16.msra.mxu1 %v7922_v59  ;;  %v2482_v59 = vld [vmem:[#allocation11 + $0x9d8] sm:$0xff] }
 0x344   :  { %5818 = vmatpush2.bf16.msra.mxu0 %v7540_v60  ;;  %5776 = vmatprep.subr.bf16.mxu1 %v7915_v62  ;;  %v2486_v60 = vld [vmem:[#allocation11 + $0x9f8] sm:$0xff]  ;;  %v7882_v62 = vcombine.low %v2617_v35, %v2621_v38  ;;  %v7740_v35 = vcombine.low %v2474_v8, %v2478_v36 }
 0x345   :  { %5819 = vmatprep.subr.bf16.mxu0 %v7533_v46  ;;  %v5491_v46 = vpop.f32.mrf.mxu0  ;;  %v2314_v36 = vld [vmem:[#allocation11 + $0x498] sm:$0xff] }
 0x346   :  { %v5492_v41 = vadd.f32 %v5491_v46, %v2692_v5 }
 0x347   :  { %5777 = vmatpush2.bf16.msra.mxu1 %v7914_v54  ;;  %v7749_v54 = vcombine.high %v2482_v59, %v2486_v60  ;;  %v8899_v9 = vpop.f32.mrf.mxu0 }
 0x348   :  { %5820 = vmatpush2.bf16.msra.mxu0 %v7532_v55  ;;  %5778 = vmatprep.subr.bf16.mxu1 %v7907_v31  ;;  %v2346_v55 = vld [vmem:[#allocation11 + $0x598] sm:$0xff] }
 0x349   :  { %5821 = vmatprep.subr.bf16.mxu0 %v7525_v7  ;;  %v2350_v31 = vld [vmem:[#allocation11 + $0x5b8] sm:$0xff]  ;;  %v7620_v7 = vcombine.low %v2354_v52, %v2358_v53 }
 0x34b   :  { %5779 = vmatpush2.bf16.msra.mxu1 %v7906_v12  ;;  %v7748_v12 = vcombine.low %v2482_v59, %v2486_v60 }
 0x34c   :  { %5822 = vmatpush2.bf16.msra.mxu0 %v7524_v14  ;;  %5780 = vmatprep.subr.bf16.mxu1 %v7899_v15  ;;  %v5488_v14 = vadd.f32 %v5487_v27, %v2692_v5  ;;  %v7613_v15 = vcombine.high %v2346_v55, %v2350_v31  ;;  %v2450_v5 = vld [vmem:[#allocation11 + $0x8d8] sm:$0xff] }
 0x34d   :  { %5823 = vmatprep.subr.bf16.mxu0 %v7517_v17  ;;  %v2338_v17 = vld [vmem:[#allocation11 + $0x558] sm:$0xff] }
 0x34e   :  { %v7605_v38 = vcombine.high %v2338_v17, %v2342_v58  ;;  %v7604_v53 = vcombine.low %v2338_v17, %v2342_v58 }
 0x34f   :  { %5781 = vmatpush2.bf16.msra.mxu1 %v7898_v25  ;;  %v2470_v25 = vld [vmem:[#allocation11 + $0x978] sm:$0xff] }
 0x350   :  { %5824 = vmatpush2.bf16.msra.mxu0 %v7516_v63  ;;  %5782 = vmatprep.subr.bf16.mxu1 %v7891_v28  ;;  %v7612_v28 = vcombine.low %v2346_v55, %v2350_v31  ;;  %v7732_v60 = vcombine.low %v2466_v24, %v2470_v25 }
 0x351   :  { %5825 = vmatprep.subr.bf16.mxu0 %v7509_v33 }
 0x353   :  { %5783 = vmatpush2.bf16.msra.mxu1 %v7890_v47  ;;  %v7733_v47 = vcombine.high %v2466_v24, %v2470_v25  ;;  %v2310_v24 = vld [vmem:[#allocation11 + $0x478] sm:$0xff] }
 0x354   :  { %5826 = vmatpush2.bf16.msra.mxu0 %v7508_v49  ;;  %5784 = vmatprep.subr.bf16.mxu1 %v7883_v51  ;;  %v2330_v49 = vld [vmem:[#allocation11 + $0x518] sm:$0xff] }
 0x355   :  { %5827 = vmatprep.subr.bf16.mxu0 %v7501_v29  ;;  %v2458_v29 = vld [vmem:[#allocation11 + $0x918] sm:$0xff] }
 0x356   :  { %v2434_v25 = vld [vmem:[#allocation11 + $0x858] sm:$0xff] }
 0x357   :  { %5785 = vmatpush2.bf16.msra.mxu1 %v7882_v62 }
 0x358   :  { %5828 = vmatpush2.bf16.msra.mxu0 %v7500_v6  ;;  %5840 = vmatprep.subr.bf16.mxu1 %v7621_v2  ;;  %v2322_v6 = vld [vmem:[#allocation11 + $0x4d8] sm:$0xff] }
 0x359   :  { %5883 = vmatprep.subr.bf16.mxu0 %v7749_v54  ;;  %v2326_v2 = vld [vmem:[#allocation11 + $0x4f8] sm:$0xff] }
 0x35a   :  { %v5530_v16 = vpop.f32.mrf.mxu1  ;;  %v5573_v20 = vpop.f32.mrf.mxu0  ;;  %5787 = vmatmul.mubr.bf16.vlgmr.msra.gmra.mxu1 %v8841_v57  ;;  %v2454_v54 = vld [vmem:[#allocation11 + $0x8f8] sm:$0xff]  ;;  %v7588_v17 = vcombine.low %v2322_v6, %v2326_v2 }
 0x35b   :  { %v5531_v63 = vadd.f32 %v5530_v16, %v5488_v14  ;;  %5830 = vmatmul.mubr.bf16.vlgmr.msra.gmra.mxu0 %v8785_v3  ;;  %5841 = vmatpush1.bf16.msra.mxu1 %v7620_v7  ;;  %v2334_v3 = vld [vmem:[#allocation11 + $0x538] sm:$0xff]  ;;  %v7589_v7 = vcombine.high %v2322_v6, %v2326_v2  ;;  %v7717_v8 = vcombine.high %v2450_v5, %v2454_v54 }
 0x35c   :  { %5872 = vmatprep.mubr.bf16.mxu1 %v8794_v56  ;;  %5884 = vmatpush1.bf16.msra.mxu0 %v7748_v12  ;;  %v8906_v27 = vpop.f32.mrf.mxu1  ;;  %v8908_v33 = vpop.f32.mrf.mxu0  ;;  %v2462_v56 = vld [vmem:[#allocation11 + $0x938] sm:$0xff]  ;;  %v7597_v62 = vcombine.high %v2330_v49, %v2334_v3  ;;  %v7596_v55 = vcombine.low %v2330_v49, %v2334_v3  ;;  %v7716_v58 = vcombine.low %v2450_v5, %v2454_v54 }
 0x35d   :  { %v8910_v45 = vadd.f32 %v5573_v20, %v5531_v63  ;;  %5915 = vmatprep.mubr.bf16.mxu0 %v8824_v40  ;;  %5842 = vmatprep.subr.bf16.mxu1 %v7613_v15  ;;  %v7725_v40 = vcombine.high %v2458_v29, %v2462_v56  ;;  %v7724_v31 = vcombine.low %v2458_v29, %v2462_v56  ;;  %v2318_v12 = vld [vmem:[#allocation11 + $0x4b8] sm:$0xff] }
 0x35e   :  { %v5534_v51 = vpop.f32.mrf.mxu1  ;;  %5885 = vmatprep.subr.bf16.mxu0 %v7741_v23  ;;  %v5577_v59 = vpop.f32.mrf.mxu0  ;;  %v2442_v14 = vld [vmem:[#allocation11 + $0x898] sm:$0xff]  ;;  %v7581_v16 = vcombine.high %v2314_v36, %v2318_v12 }
 0x35f   :  { %v5535_v52 = vadd.f32 %v5534_v51, %v5492_v41  ;;  %5843 = vmatpush1.bf16.msra.mxu1 %v7612_v28  ;;  %v2446_v15 = vld [vmem:[#allocation11 + $0x8b8] sm:$0xff]  ;;  %v7580_v28 = vcombine.low %v2314_v36, %v2318_v12 }
 0x360   :  { %5886 = vmatpush1.bf16.msra.mxu0 %v7740_v35  ;;  %5844 = vmatprep.subr.bf16.mxu1 %v7605_v38  ;;  %v7709_v20 = vcombine.high %v2442_v14, %v2446_v15  ;;  %v2306_v23 = vld [vmem:[#allocation11 + $0x458] sm:$0xff]  ;;  %v7708_v35 = vcombine.low %v2442_v14, %v2446_v15 }
 0x361   :  { %v8913_v46 = vadd.f32 %v5577_v59, %v5535_v52  ;;  %5887 = vmatprep.subr.bf16.mxu0 %v7733_v47  ;;  %v2438_v63 = vld [vmem:[#allocation11 + $0x878] sm:$0xff]  ;;  %v7573_v38 = vcombine.high %v2306_v23, %v2310_v24  ;;  %v7572_v29 = vcombine.low %v2306_v23, %v2310_v24 }
 0x362   :  { %v7701_v41 = vcombine.high %v2434_v25, %v2438_v63  ;;  %v2298_v47 = vld [vmem:[#allocation11 + $0x418] sm:$0xff]  ;;  %v7700_v56 = vcombine.low %v2434_v25, %v2438_v63 }
 0x363   :  { %5845 = vmatpush1.bf16.msra.mxu1 %v7604_v53  ;;  %v2302_v49 = vld [vmem:[#allocation11 + $0x438] sm:$0xff] }
 0x364   :  { %5888 = vmatpush1.bf16.msra.mxu0 %v7732_v60  ;;  %5846 = vmatprep.subr.bf16.mxu1 %v7597_v62  ;;  %v2426_v3 = vld [vmem:[#allocation11 + $0x818] sm:$0xff]  ;;  %v7565_v52 = vcombine.high %v2298_v47, %v2302_v49  ;;  %v7564_v6 = vcombine.low %v2298_v47, %v2302_v49 }
 0x365   :  { %5889 = vmatprep.subr.bf16.mxu0 %v7725_v40  ;;  %v2430_v51 = vld [vmem:[#allocation11 + $0x838] sm:$0xff] }
 0x366   :  { %v7693_v53 = vcombine.high %v2426_v3, %v2430_v51  ;;  %v2418_v59 = vld [vmem:[#allocation11 + $0x7d8] sm:$0xff]  ;;  %v7692_v2 = vcombine.low %v2426_v3, %v2430_v51 }
 0x367   :  { %5847 = vmatpush1.bf16.msra.mxu1 %v7596_v55  ;;  %v2422_v60 = vld [vmem:[#allocation11 + $0x7f8] sm:$0xff] }
 0x368   :  { %5890 = vmatpush1.bf16.msra.mxu0 %v7724_v31  ;;  %5848 = vmatprep.subr.bf16.mxu1 %v7589_v7  ;;  %v2546_v62 = vld [vmem:[#allocation11 + $0xbd8] sm:$0xff]  ;;  %v7685_v5 = vcombine.high %v2418_v59, %v2422_v60  ;;  %v7684_v36 = vcombine.low %v2418_v59, %v2422_v60 }
 0x369   :  { %5891 = vmatprep.subr.bf16.mxu0 %v7717_v8  ;;  %v2550_v40 = vld [vmem:[#allocation11 + $0xbf8] sm:$0xff] }
 0x36a   :  { %v7813_v54 = vcombine.high %v2546_v62, %v2550_v40  ;;  %v2410_v55 = vld [vmem:[#allocation11 + $0x798] sm:$0xff]  ;;  %v7812_v12 = vcombine.low %v2546_v62, %v2550_v40 }
 0x36b   :  { %5849 = vmatpush1.bf16.msra.mxu1 %v7588_v17  ;;  %v2414_v31 = vld [vmem:[#allocation11 + $0x7b8] sm:$0xff] }
 0x36c   :  { %5892 = vmatpush1.bf16.msra.mxu0 %v7716_v58  ;;  %5850 = vmatprep.subr.bf16.mxu1 %v7581_v16  ;;  %v2538_v7 = vld [vmem:[#allocation11 + $0xb98] sm:$0xff]  ;;  %v7677_v14 = vcombine.high %v2410_v55, %v2414_v31  ;;  %v7676_v23 = vcombine.low %v2410_v55, %v2414_v31  ;;  %v2688_v55 = vrot.slane %v8894_v4, %v8749_v22 }
 0x36d   :  { %5893 = vmatprep.subr.bf16.mxu0 %v7709_v20  ;;  %v2542_v8 = vld [vmem:[#allocation11 + $0xbb8] sm:$0xff] }
 0x36e   :  { %v7805_v15 = vcombine.high %v2538_v7, %v2542_v8  ;;  %v2402_v17 = vld [vmem:[#allocation11 + $0x758] sm:$0xff]  ;;  %v7804_v24 = vcombine.low %v2538_v7, %v2542_v8 }
 0x36f   :  { %5851 = vmatpush1.bf16.msra.mxu1 %v7580_v28  ;;  %v2406_v58 = vld [vmem:[#allocation11 + $0x778] sm:$0xff] }
 0x370   :  { %5894 = vmatpush1.bf16.msra.mxu0 %v7708_v35  ;;  %5852 = vmatprep.subr.bf16.mxu1 %v7573_v38  ;;  %v2530_v16 = vld [vmem:[#allocation11 + $0xb58] sm:$0xff]  ;;  %v7669_v25 = vcombine.high %v2402_v17, %v2406_v58  ;;  %v7668_v47 = vcombine.low %v2402_v17, %v2406_v58 }
 0x371   :  { %5895 = vmatprep.subr.bf16.mxu0 %v7701_v41  ;;  %v2534_v20 = vld [vmem:[#allocation11 + $0xb78] sm:$0xff] }
 0x372   :  { %v7797_v63 = vcombine.high %v2530_v16, %v2534_v20  ;;  %v2394_v28 = vld [vmem:[#allocation11 + $0x718] sm:$0xff]  ;;  %v7796_v49 = vcombine.low %v2530_v16, %v2534_v20  ;;  %v5318_v16 = vadd.f32 %v8852_v18, %v2688_v55 }
 0x373   :  { %5853 = vmatpush1.bf16.msra.mxu1 %v7572_v29  ;;  %v2398_v35 = vld [vmem:[#allocation11 + $0x738] sm:$0xff] }
 0x374   :  { %5896 = vmatpush1.bf16.msra.mxu0 %v7700_v56  ;;  %5854 = vmatprep.subr.bf16.mxu1 %v7565_v52  ;;  %v2522_v38 = vld [vmem:[#allocation11 + $0xb18] sm:$0xff]  ;;  %v7661_v3 = vcombine.high %v2394_v28, %v2398_v35  ;;  %v7660_v59 = vcombine.low %v2394_v28, %v2398_v35 }
 0x375   :  { %5897 = vmatprep.subr.bf16.mxu0 %v7693_v53  ;;  %v2526_v41 = vld [vmem:[#allocation11 + $0xb38] sm:$0xff] }
 0x376   :  { %v7789_v51 = vcombine.high %v2522_v38, %v2526_v41  ;;  %v2386_v29 = vld [vmem:[#allocation11 + $0x6d8] sm:$0xff]  ;;  %v7788_v60 = vcombine.low %v2522_v38, %v2526_v41 }
 0x377   :  { %5855 = vmatpush1.bf16.msra.mxu1 %v7564_v6  ;;  %v2390_v56 = vld [vmem:[#allocation11 + $0x6f8] sm:$0xff] }
 0x378   :  { %5898 = vmatpush1.bf16.msra.mxu0 %v7692_v2  ;;  %5856 = vmatprep.subr.bf16.mxu1 %v7685_v5  ;;  %v2514_v52 = vld [vmem:[#allocation11 + $0xad8] sm:$0xff]  ;;  %v7653_v62 = vcombine.high %v2386_v29, %v2390_v56  ;;  %v7652_v31 = vcombine.low %v2386_v29, %v2390_v56 }
 0x379   :  { %5899 = vmatprep.subr.bf16.mxu0 %v7813_v54  ;;  %v2518_v53 = vld [vmem:[#allocation11 + $0xaf8] sm:$0xff] }
 0x37a   :  { %v7781_v40 = vcombine.high %v2514_v52, %v2518_v53  ;;  %v2378_v6 = vld [vmem:[#allocation11 + $0x698] sm:$0xff]  ;;  %v7780_v7 = vcombine.low %v2514_v52, %v2518_v53 }
 0x37b   :  { %5857 = vmatpush2.bf16.msra.mxu1 %v7684_v36  ;;  %v2382_v2 = vld [vmem:[#allocation11 + $0x6b8] sm:$0xff]  ;;  %v5322_v36 = vadd.f32 %v8864_v32, %v2688_v55 }
 0x37c   :  { %5900 = vmatpush2.bf16.msra.mxu0 %v7812_v12  ;;  %5858 = vmatprep.subr.bf16.mxu1 %v7677_v14  ;;  %v2506_v5 = vld [vmem:[#allocation11 + $0xa98] sm:$0xff]  ;;  %v7645_v8 = vcombine.high %v2378_v6, %v2382_v2 }
 0x37d   :  { %5901 = vmatprep.subr.bf16.mxu0 %v7805_v15  ;;  %v2510_v54 = vld [vmem:[#allocation11 + $0xab8] sm:$0xff]  ;;  %v5365_v20 = vadd.f32 %v8878_v10, %v5322_v36  ;;  %v8135_v36 = vld [vmem:[#allocation14 + $0x64] ss:$8 sps:$4 sm:$0xff]  }
 0x37e   :  { %v7773_v12 = vcombine.high %v2506_v5, %v2510_v54  ;;  %v2370_v14 = vld [vmem:[#allocation11 + $0x658] sm:$0xff] }
 0x37f   :  { %5859 = vmatpush2.bf16.msra.mxu1 %v7676_v23  ;;  %v2374_v15 = vld [vmem:[#allocation11 + $0x678] sm:$0xff]  ;;  %v7644_v23 = vcombine.low %v2378_v6, %v2382_v2  ;;  %v5408_v32 = vadd.f32 %v8890_v21, %v5365_v20 }
 0x380   :  { %5902 = vmatpush2.bf16.msra.mxu0 %v7804_v24  ;;  %5860 = vmatprep.subr.bf16.mxu1 %v7669_v25  ;;  %v2498_v17 = vld [vmem:[#allocation11 + $0xa58] sm:$0xff]  ;;  %v7772_v24 = vcombine.low %v2506_v5, %v2510_v54  ;;  %v7637_v25 = vcombine.high %v2370_v14, %v2374_v15 }
 0x381   :  { %5903 = vmatprep.subr.bf16.mxu0 %v7797_v63  ;;  %v2502_v58 = vld [vmem:[#allocation11 + $0xa78] sm:$0xff]  ;;  %v5361_v63 = vadd.f32 %v8860_v13, %v5318_v16  ;;  %v5451_v10 = vadd.f32 %v8901_v39, %v5408_v32 }
 0x382   :  { %v7765_v28 = vcombine.high %v2498_v17, %v2502_v58  ;;  %v2362_v35 = vld [vmem:[#allocation11 + $0x618] sm:$0xff] }
 0x383   :  { %5861 = vmatpush2.bf16.msra.mxu1 %v7668_v47  ;;  %v2366_v38 = vld [vmem:[#allocation11 + $0x638] sm:$0xff]  ;;  %v5404_v18 = vadd.f32 %v8872_v50, %v5361_v63  ;;  %v5978_v52 = vmul.f32 0.1, %v5451_v10 }
 0x384   :  { %5904 = vmatpush2.bf16.msra.mxu0 %v7796_v49  ;;  %5862 = vmatprep.subr.bf16.mxu1 %v7661_v3  ;;  %v2490_v41 = vld [vmem:[#allocation11 + $0xa18] sm:$0xff]  ;;  %v7636_v49 = vcombine.low %v2370_v14, %v2374_v15  ;;  %v7764_v3 = vcombine.low %v2498_v17, %v2502_v58  ;;  %v7628_v53 = vcombine.low %v2362_v35, %v2366_v38  ;;  %v8133_v58 = vld [vmem:[#allocation14 + $0x60] ss:$8 sps:$4 sm:$0xff]  }
 0x385   :  { %5905 = vmatprep.subr.bf16.mxu0 %v7789_v51  ;;  %v2494_v47 = vld [vmem:[#allocation11 + $0xa38] sm:$0xff]  ;;  %v7629_v51 = vcombine.high %v2362_v35, %v2366_v38  ;;  %v5447_v13 = vadd.f32 %v8884_v1, %v5404_v18  ;;  %v5994_v6 = vmax.f32 %v5451_v10, %v5978_v52  ;;  %v8925_v1 = vpop.f32.mrf.mxu1  ;;  %v8139_v10 = vld [vmem:[#allocation14 + $0x40] ss:$8 sps:$4 sm:$0xff]   ;;  %v8147_v52 = vld [vmem:[#allocation14 + $0x24] ss:$8 sps:$4 sm:$0xff]  }
 0x386   :  { %v7757_v21 = vcombine.high %v2490_v41, %v2494_v47  ;;  %v2610_v29 = vld [vmem:[#allocation11 + $0xdd8] sm:$0xff]  ;;  %v7756_v50 = vcombine.low %v2490_v41, %v2494_v47 }
 0x387   :  { %5863 = vmatpush2.bf16.msra.mxu1 %v7660_v59  ;;  %v2614_v56 = vld [vmem:[#allocation11 + $0xdf8] sm:$0xff]  ;;  %v5970_v39 = vmul.f32 0.1, %v5447_v13 }
 0x388   :  { %5906 = vmatpush2.bf16.msra.mxu0 %v7788_v60  ;;  %5864 = vmatprep.subr.bf16.mxu1 %v7653_v62  ;;  %v7877_v59 = vcombine.high %v2610_v29, %v2614_v56  ;;  %v8132_v60 = vld [vmem:[#allocation14 + $0x74] ss:$8 sps:$4 sm:$0xff]   ;;  %v7876_v2 = vcombine.low %v2610_v29, %v2614_v56  ;;  %v8130_v5 = vld [vmem:[#allocation14 + $0x70] ss:$8 sps:$4 sm:$0xff]  }
 0x389   :  { %5907 = vmatprep.subr.bf16.mxu0 %v7781_v40  ;;  %v2602_v62 = vld [vmem:[#allocation11 + $0xd98] sm:$0xff]  ;;  %v5986_v54 = vmax.f32 %v5447_v13, %v5970_v39  ;;  %v8145_v39 = vld [vmem:[#allocation14 + $0x20] ss:$8 sps:$4 sm:$0xff]  }
 0x38a   :  { %v2606_v40 = vld [vmem:[#allocation11 + $0xdb8] sm:$0xff] }
 0x38b   :  { %5865 = vmatpush2.bf16.msra.mxu1 %v7652_v31  ;;  %v7869_v55 = vcombine.high %v2602_v62, %v2606_v40  ;;  %v2594_v31 = vld [vmem:[#allocation11 + $0xd58] sm:$0xff]  ;;  %v6002_v14 = vpack.c.bf16 %v5994_v6, %v5986_v54  ;;  %v7868_v15 = vcombine.low %v2602_v62, %v2606_v40 }
 0x38c   :  { %5908 = vmatpush2.bf16.msra.mxu0 %v7780_v7  ;;  %5866 = vmatprep.subr.bf16.mxu1 %v7645_v8  ;;  %v2598_v7 = vld [vmem:[#allocation11 + $0xd78] sm:$0xff] }
 0x38d   :  { %5909 = vmatprep.subr.bf16.mxu0 %v7773_v12  ;;  %v7861_v16 = vcombine.high %v2594_v31, %v2598_v7  ;;  %v8138_v20 = vld [vmem:[#allocation14 + $0x54] ss:$8 sps:$4 sm:$0xff]   ;;  %v8142_v29 = vld [vmem:[#allocation14 + $0x30] ss:$8 sps:$4 sm:$0xff]  }
 0x38e   :  { %v2578_v35 = vld [vmem:[#allocation11 + $0xcd8] sm:$0xff] }
 0x38f   :  { %5867 = vmatpush2.bf16.msra.mxu1 %v7644_v23  ;;  %v2586_v23 = vld [vmem:[#allocation11 + $0xd18] sm:$0xff] }
 0x390   :  { %5910 = vmatpush2.bf16.msra.mxu0 %v7772_v24  ;;  %5868 = vmatprep.subr.bf16.mxu1 %v7637_v25  ;;  %v7860_v25 = vcombine.low %v2594_v31, %v2598_v7  ;;  %v2582_v38 = vld [vmem:[#allocation11 + $0xcf8] sm:$0xff] }
 0x391   :  { %5911 = vmatprep.subr.bf16.mxu0 %v7765_v28  ;;  %v8141_v28 = vld [vmem:[#allocation14 + $0x44] ss:$8 sps:$4 sm:$0xff]   ;;  %v2574_v13 = vld [vmem:[#allocation11 + $0xcb8] sm:$0xff] }
 0x392   :  { %v8150_v62 = vld [vmem:[#allocation14 + $0x14] ss:$8 sps:$4 sm:$0xff]  }
 0x393   :  { %5869 = vmatpush2.bf16.msra.mxu1 %v7636_v49  ;;  %v7845_v49 = vcombine.high %v2578_v35, %v2582_v38  ;;  %v2554_v40 = vld [vmem:[#allocation11 + $0xc18] sm:$0xff] }
 0x394   :  { %5912 = vmatpush2.bf16.msra.mxu0 %v7764_v3  ;;  %5870 = vmatprep.subr.bf16.mxu1 %v7629_v51  ;;  %v8144_v3 = vld [vmem:[#allocation14 + $0x34] ss:$8 sps:$4 sm:$0xff]  }
 0x395   :  { %5913 = vmatprep.subr.bf16.mxu0 %v7757_v21  ;;  %v2570_v51 = vld [vmem:[#allocation11 + $0xc98] sm:$0xff]  ;;  %v7844_v21 = vcombine.low %v2578_v35, %v2582_v38 }
 0x396   :  { %v7837_v56 = vcombine.high %v2570_v51, %v2574_v13  ;;  %v2558_v6 = vld [vmem:[#allocation11 + $0xc38] sm:$0xff] }
 0x397   :  { %5871 = vmatpush2.bf16.msra.mxu1 %v7628_v53  ;;  %v2562_v53 = vld [vmem:[#allocation11 + $0xc58] sm:$0xff]  ;;  %v7821_v54 = vcombine.high %v2554_v40, %v2558_v6 }
 0x398   :  { %5914 = vmatpush2.bf16.msra.mxu0 %v7756_v50  ;;  %5926 = vmatprep.subr.bf16.mxu1 %v7877_v59  ;;  %v2566_v50 = vld [vmem:[#allocation11 + $0xc78] sm:$0xff]  ;;  %v7836_v59 = vcombine.low %v2570_v51, %v2574_v13  ;;  %v8163_v51 = vld [vmem:[#allocation14 + $0xc0] ss:$8 sps:$4 sm:$0xff]  }
 0x399   :  { %6789 = vmatprep.subr.bf16.mxu0 %v8132_v60  ;;  %v7829_v60 = vcombine.high %v2562_v53, %v2566_v50  ;;  %v2674_v31 = vld [vmem:[#allocation11 + $0xfd8] sm:$0xff] }
 0x39a   :  { %v5616_v8 = vpop.f32.mrf.mxu1  ;;  %5873 = vmatmul.mubr.bf16.vlgmr.msra.gmra.mxu1 %v8802_v0  ;;  %v2590_v0 = vld [vmem:[#allocation11 + $0xd38] sm:$0xff] }
 0x39b   :  { %v5617_v12 = vadd.f32 %v5616_v8, %v8910_v45  ;;  %5916 = vmatmul.mubr.bf16.vlgmr.msra.gmra.mxu0 %v8828_v42  ;;  %5927 = vmatpush1.bf16.msra.mxu1 %v7876_v2  ;;  %v7853_v63 = vcombine.high %v2586_v23, %v2590_v0  ;;  %v7852_v18 = vcombine.low %v2586_v23, %v2590_v0  ;;  %v2678_v7 = vld [vmem:[#allocation11 + $0xff8] sm:$0xff]  ;;  %v8159_v0 = vld [vmem:[#allocation14 + $0xe4] ss:$8 sps:$4 sm:$0xff]  }
 0x39c   :  { %5958 = vmatprep.mubr.bf16.mxu1 %v8839_v43  ;;  %6790 = vmatpush1.bf16.msra.mxu0 %v8130_v5  ;;  %v8931_v17 = vpop.f32.mrf.mxu1  ;;  %v8136_v43 = vld [vmem:[#allocation14 + $0x50] ss:$8 sps:$4 sm:$0xff]   ;;  %v7828_v2 = vcombine.low %v2562_v53, %v2566_v50  ;;  %v7820_v8 = vcombine.low %v2554_v40, %v2558_v6  ;;  %v5579_v6 = vpop.f32.mrf.mxu0 }
 0x39d   :  { %6821 = vmatprep.mubr.bf16.mxu0 %v6002_v14  ;;  %5928 = vmatprep.subr.bf16.mxu1 %v7869_v55  ;;  %v5971_v45 = vmul.f32 0.1, %v5617_v12  ;;  %v8148_v5 = vld [vmem:[#allocation14 + $0x10] ss:$8 sps:$4 sm:$0xff]   ;;  %v8153_v55 = vld [vmem:[#allocation14 + $0x4] ss:$8 sps:$4 sm:$0xff]  }
 0x39e   :  { %v5620_v24 = vpop.f32.mrf.mxu1  ;;  %6791 = vmatprep.subr.bf16.mxu0 %v8135_v36  ;;  %v8151_v36 = vld [vmem:[#allocation14] ss:$8 sps:$4 sm:$0xff]   ;;  %v8156_v14 = vld [vmem:[#allocation14 + $0xf4] ss:$8 sps:$4 sm:$0xff]   ;;  %v8160_v38 = vld [vmem:[#allocation14 + $0xd0] ss:$8 sps:$4 sm:$0xff]  }
 0x39f   :  { %v5621_v42 = vadd.f32 %v5620_v24, %v8913_v46  ;;  %5929 = vmatpush1.bf16.msra.mxu1 %v7868_v15  ;;  %v5987_v41 = vmax.f32 %v5617_v12, %v5971_v45  ;;  %v7941_v12 = vcombine.high %v2674_v31, %v2678_v7  ;;  %v2666_v15 = vld [vmem:[#allocation11 + $0xf98] sm:$0xff] }
 0x3a0   :  { %6792 = vmatpush1.bf16.msra.mxu0 %v8133_v58  ;;  %5930 = vmatprep.subr.bf16.mxu1 %v7861_v16  ;;  %v2670_v58 = vld [vmem:[#allocation11 + $0xfb8] sm:$0xff]  ;;  %v7940_v16 = vcombine.low %v2674_v31, %v2678_v7 }
 0x3a1   :  { %v5979_v32 = vmul.f32 0.1, %v5621_v42  ;;  %6793 = vmatprep.subr.bf16.mxu0 %v8138_v20  ;;  %v8154_v20 = vld [vmem:[#allocation14 + $0xf0] ss:$8 sps:$4 sm:$0xff]   ;;  %v7933_v23 = vcombine.high %v2666_v15, %v2670_v58 }
 0x3a2   :  { %v2658_v24 = vld [vmem:[#allocation11 + $0xf58] sm:$0xff] }
 0x3a3   :  { %v5995_v47 = vmax.f32 %v5621_v42, %v5979_v32  ;;  %5931 = vmatpush1.bf16.msra.mxu1 %v7860_v25  ;;  %v2662_v45 = vld [vmem:[#allocation11 + $0xf78] sm:$0xff]  ;;  %v7932_v42 = vcombine.low %v2666_v15, %v2670_v58  ;;  %v8157_v25 = vld [vmem:[#allocation14 + $0xe0] ss:$8 sps:$4 sm:$0xff]   ;;  %v8177_v15 = vld [vmem:[#allocation14 + $0x84] ss:$8 sps:$4 sm:$0xff]  }
 0x3a4   :  { %6794 = vmatpush1.bf16.msra.mxu0 %v8136_v43  ;;  %5932 = vmatprep.subr.bf16.mxu1 %v7853_v63  ;;  %v7925_v43 = vcombine.high %v2658_v24, %v2662_v45  ;;  %v8162_v63 = vld [vmem:[#allocation14 + $0xd4] ss:$8 sps:$4 sm:$0xff]   ;;  %v7924_v35 = vcombine.low %v2658_v24, %v2662_v45  ;;  %v8178_v45 = vld [vmem:[#allocation14 + $0x170] ss:$8 sps:$4 sm:$0xff]  }
 0x3a5   :  { %v8934_v46 = vpack.c.bf16 %v5995_v47, %v5987_v41  ;;  %6795 = vmatprep.subr.bf16.mxu0 %v8141_v28  ;;  %v2650_v32 = vld [vmem:[#allocation11 + $0xf18] sm:$0xff]  ;;  %v8165_v47 = vld [vmem:[#allocation14 + $0xc4] ss:$8 sps:$4 sm:$0xff]  }
 0x3a6   :  { %v2654_v28 = vld [vmem:[#allocation11 + $0xf38] sm:$0xff] }
 0x3a7   :  { %5933 = vmatpush1.bf16.msra.mxu1 %v7852_v18  ;;  %v7917_v41 = vcombine.high %v2650_v32, %v2654_v28  ;;  %v2642_v18 = vld [vmem:[#allocation11 + $0xed8] sm:$0xff] }
 0x3a8   :  { %6796 = vmatpush1.bf16.msra.mxu0 %v8139_v10  ;;  %5934 = vmatprep.subr.bf16.mxu1 %v7845_v49  ;;  %v2646_v10 = vld [vmem:[#allocation11 + $0xef8] sm:$0xff]  ;;  %v7916_v49 = vcombine.low %v2650_v32, %v2654_v28  ;;  %v8181_v32 = vld [vmem:[#allocation14 + $0x160] ss:$8 sps:$4 sm:$0xff]  }
 0x3a9   :  { %6797 = vmatprep.subr.bf16.mxu0 %v8144_v3  ;;  %v2696_v3 = vrot.slane %v8894_v4, %v477_v61  ;;  %v7909_v13 = vcombine.high %v2642_v18, %v2646_v10  ;;  %v7908_v53 = vcombine.low %v2642_v18, %v2646_v10  ;;  %v8171_v4 = vld [vmem:[#allocation14 + $0xa4] ss:$8 sps:$4 sm:$0xff]   ;;  %v2622_v31 = vld [vmem:[#allocation11 + $0xe38] sm:$0xff]  ;;  %v8187_v10 = vld [vmem:[#allocation14 + $0x140] ss:$8 sps:$4 sm:$0xff]  }
 0x3aa   :  { %v8186_v28 = vld [vmem:[#allocation14 + $0x154] ss:$8 sps:$4 sm:$0xff]   ;;  %v8205_v18 = vld [vmem:[#allocation14 + $0x250] ss:$8 sps:$4 sm:$0xff]  }
 0x3ab   :  { %5935 = vmatpush1.bf16.msra.mxu1 %v7844_v21  ;;  %v8168_v21 = vld [vmem:[#allocation14 + $0xb4] ss:$8 sps:$4 sm:$0xff]   ;;  %v5490_v50 = vadd.f32 %v8892_v48, %v2696_v3  ;;  %v8169_v48 = vld [vmem:[#allocation14 + $0xa0] ss:$8 sps:$4 sm:$0xff]  }
 0x3ac   :  { %6798 = vmatpush1.bf16.msra.mxu0 %v8142_v29  ;;  %5936 = vmatprep.subr.bf16.mxu1 %v7837_v56  ;;  %v2634_v29 = vld [vmem:[#allocation11 + $0xe98] sm:$0xff] }
 0x3ad   :  { %6799 = vmatprep.subr.bf16.mxu0 %v8147_v52  ;;  %v2638_v56 = vld [vmem:[#allocation11 + $0xeb8] sm:$0xff]  ;;  %v5494_v52 = vadd.f32 %v8899_v9, %v2696_v3  ;;  %v5533_v40 = vadd.f32 %v8906_v27, %v5490_v50 }
 0x3ae   :  { %v7901_v61 = vcombine.high %v2634_v29, %v2638_v56  ;;  %v7900_v9 = vcombine.low %v2634_v29, %v2638_v56  ;;  %v8219_v3 = vld [vmem:[#allocation14 + $0x234] ss:$8 sps:$4 sm:$0xff]   ;;  %v8225_v29 = vld [vmem:[#allocation14 + $0x224] ss:$8 sps:$4 sm:$0xff]   ;;  %v8196_v56 = vld [vmem:[#allocation14 + $0x120] ss:$8 sps:$4 sm:$0xff]  }
 0x3af   :  { %5937 = vmatpush1.bf16.msra.mxu1 %v7836_v59  ;;  %v5537_v59 = vadd.f32 %v8925_v1, %v5494_v52  ;;  %v8174_v1 = vld [vmem:[#allocation14 + $0x94] ss:$8 sps:$4 sm:$0xff]   ;;  %v5576_v7 = vadd.f32 %v8908_v33, %v5533_v40  ;;  %v8235_v40 = vld [vmem:[#allocation14 + $0x200] ss:$8 sps:$4 sm:$0xff]  }
 0x3b0   :  { %6800 = vmatpush1.bf16.msra.mxu0 %v8145_v39  ;;  %5938 = vmatprep.subr.bf16.mxu1 %v7829_v60  ;;  %v8166_v39 = vld [vmem:[#allocation14 + $0xb0] ss:$8 sps:$4 sm:$0xff]   ;;  %v8195_v33 = vld [vmem:[#allocation14 + $0x274] ss:$8 sps:$4 sm:$0xff]  }
 0x3b1   :  { %6801 = vmatprep.subr.bf16.mxu0 %v8150_v62  ;;  %v2626_v60 = vld [vmem:[#allocation11 + $0xe58] sm:$0xff]  ;;  %v5619_v27 = vadd.f32 %v8931_v17, %v5576_v7 }
 0x3b2   :  { %v2630_v62 = vld [vmem:[#allocation11 + $0xe78] sm:$0xff] }
 0x3b3   :  { %5939 = vmatpush1.bf16.msra.mxu1 %v7828_v2  ;;  %v5622_v2 = vpop.f32.mrf.mxu1  ;;  %v8204_v52 = vld [vmem:[#allocation14 + $0x114] ss:$8 sps:$4 sm:$0xff]   ;;  %v8226_v7 = vld [vmem:[#allocation14 + $0x1d0] ss:$8 sps:$4 sm:$0xff]  }
 0x3b4   :  { %6802 = vmatpush1.bf16.msra.mxu0 %v8148_v5  ;;  %5940 = vmatprep.subr.bf16.mxu1 %v7821_v54  ;;  %v5580_v5 = vadd.f32 %v5579_v6, %v5537_v59  ;;  %v7893_v54 = vcombine.high %v2626_v60, %v2630_v62  ;;  %v8231_v50 = vld [vmem:[#allocation14 + $0x214] ss:$8 sps:$4 sm:$0xff]   ;;  %v8202_v59 = vld [vmem:[#allocation14 + $0x110] ss:$8 sps:$4 sm:$0xff]  }
 0x3b5   :  { %6803 = vmatprep.subr.bf16.mxu0 %v8153_v55  ;;  %v2618_v55 = vld [vmem:[#allocation11 + $0xe18] sm:$0xff] }
 0x3b6   :  { %v8243_v6 = vld [vmem:[#allocation14 + $0x2f4] ss:$8 sps:$4 sm:$0xff]  }
 0x3b7   :  { %5941 = vmatpush1.bf16.msra.mxu1 %v7820_v8  ;;  %v5623_v8 = vadd.f32 %v5622_v2, %v5580_v5  ;;  %v8214_v2 = vld [vmem:[#allocation14 + $0x1f0] ss:$8 sps:$4 sm:$0xff]  }
 0x3b8   :  { %6804 = vmatpush1.bf16.msra.mxu0 %v8151_v36  ;;  %5942 = vmatprep.subr.bf16.mxu1 %v7941_v12  ;;  %v7892_v36 = vcombine.low %v2626_v60, %v2630_v62  ;;  %v8172_v12 = vld [vmem:[#allocation14 + $0x90] ss:$8 sps:$4 sm:$0xff]   ;;  %v8208_v60 = vld [vmem:[#allocation14 + $0x100] ss:$8 sps:$4 sm:$0xff]   ;;  %v8216_v62 = vld [vmem:[#allocation14 + $0x1f4] ss:$8 sps:$4 sm:$0xff]  }
 0x3b9   :  { %6805 = vmatprep.subr.bf16.mxu0 %v8156_v14  ;;  %v7885_v14 = vcombine.high %v2618_v55, %v2622_v31  ;;  %v5980_v58 = vmul.f32 0.1, %v5623_v8  ;;  %v8241_v5 = vld [vmem:[#allocation14 + $0x2f0] ss:$8 sps:$4 sm:$0xff]  }
 0x3bb   :  { %5943 = vmatpush2.bf16.msra.mxu1 %v7940_v16  ;;  %v7884_v16 = vcombine.low %v2618_v55, %v2622_v31  ;;  %v5996_v24 = vmax.f32 %v5623_v8, %v5980_v58  ;;  %v8247_v55 = vld [vmem:[#allocation14 + $0x2e0] ss:$8 sps:$4 sm:$0xff]   ;;  %v8255_v31 = vld [vmem:[#allocation14 + $0x2d4] ss:$8 sps:$4 sm:$0xff]   ;;  %v8234_v8 = vld [vmem:[#allocation14 + $0x1c4] ss:$8 sps:$4 sm:$0xff]  }
 0x3bc   :  { %6806 = vmatpush2.bf16.msra.mxu0 %v8154_v20  ;;  %5944 = vmatprep.subr.bf16.mxu1 %v7933_v23  ;;  %v5972_v20 = vmul.f32 0.1, %v5619_v27  ;;  %v8175_v23 = vld [vmem:[#allocation14 + $0x80] ss:$8 sps:$4 sm:$0xff]  }
 0x3bd   :  { %6807 = vmatprep.subr.bf16.mxu0 %v8159_v0  ;;  %v8180_v0 = vld [vmem:[#allocation14 + $0x174] ss:$8 sps:$4 sm:$0xff]   ;;  %v8259_v58 = vld [vmem:[#allocation14 + $0x2c0] ss:$8 sps:$4 sm:$0xff]  }
 0x3be   :  { %v5988_v17 = vmax.f32 %v5619_v27, %v5972_v20  ;;  %v8261_v27 = vld [vmem:[#allocation14 + $0x2c4] ss:$8 sps:$4 sm:$0xff]   ;;  %v8238_v20 = vld [vmem:[#allocation14 + $0x1b0] ss:$8 sps:$4 sm:$0xff]  }
 0x3bf   :  { %5945 = vmatpush2.bf16.msra.mxu1 %v7932_v42  ;;  %v8183_v42 = vld [vmem:[#allocation14 + $0x164] ss:$8 sps:$4 sm:$0xff]  }
 0x3c0   :  { %6808 = vmatpush2.bf16.msra.mxu0 %v8157_v25  ;;  %5946 = vmatprep.subr.bf16.mxu1 %v7925_v43  ;;  %v8193_v25 = vld [vmem:[#allocation14 + $0x270] ss:$8 sps:$4 sm:$0xff]   ;;  %v6004_v43 = vpack.c.bf16 %v5996_v24, %v5988_v17  ;;  %v8267_v24 = vld [vmem:[#allocation14 + $0x2a4] ss:$8 sps:$4 sm:$0xff]  }
 0x3c1   :  { %6809 = vmatprep.subr.bf16.mxu0 %v8162_v63  ;;  %v8201_v63 = vld [vmem:[#allocation14 + $0x264] ss:$8 sps:$4 sm:$0xff]  }
 0x3c3   :  { %5947 = vmatpush2.bf16.msra.mxu1 %v7924_v35  ;;  %v8199_v35 = vld [vmem:[#allocation14 + $0x260] ss:$8 sps:$4 sm:$0xff]  }
 0x3c4   :  { %6810 = vmatpush2.bf16.msra.mxu0 %v8160_v38  ;;  %5948 = vmatprep.subr.bf16.mxu1 %v7917_v41  ;;  %v8207_v38 = vld [vmem:[#allocation14 + $0x254] ss:$8 sps:$4 sm:$0xff]   ;;  %v8184_v41 = vld [vmem:[#allocation14 + $0x150] ss:$8 sps:$4 sm:$0xff]  }
 0x3c5   :  { %6811 = vmatprep.subr.bf16.mxu0 %v8165_v47  ;;  %v8189_v47 = vld [vmem:[#allocation14 + $0x144] ss:$8 sps:$4 sm:$0xff]  }
 0x3c7   :  { %5949 = vmatpush2.bf16.msra.mxu1 %v7916_v49  ;;  %v8211_v49 = vld [vmem:[#allocation14 + $0x240] ss:$8 sps:$4 sm:$0xff]  }
 0x3c8   :  { %6812 = vmatpush2.bf16.msra.mxu0 %v8163_v51  ;;  %5950 = vmatprep.subr.bf16.mxu1 %v7909_v13  ;;  %v8190_v51 = vld [vmem:[#allocation14 + $0x130] ss:$8 sps:$4 sm:$0xff]   ;;  %v8198_v13 = vld [vmem:[#allocation14 + $0x124] ss:$8 sps:$4 sm:$0xff]  }
 0x3c9   :  { %6813 = vmatprep.subr.bf16.mxu0 %v8168_v21  ;;  %v8217_v21 = vld [vmem:[#allocation14 + $0x230] ss:$8 sps:$4 sm:$0xff]  }
 0x3cb   :  { %5951 = vmatpush2.bf16.msra.mxu1 %v7908_v53  ;;  %v8223_v53 = vld [vmem:[#allocation14 + $0x220] ss:$8 sps:$4 sm:$0xff]  }
 0x3cc   :  { %6814 = vmatpush2.bf16.msra.mxu0 %v8166_v39  ;;  %5952 = vmatprep.subr.bf16.mxu1 %v7901_v61  ;;  %v8210_v39 = vld [vmem:[#allocation14 + $0x104] ss:$8 sps:$4 sm:$0xff]   ;;  %v8229_v61 = vld [vmem:[#allocation14 + $0x210] ss:$8 sps:$4 sm:$0xff]  }
 0x3cd   :  { %6815 = vmatprep.subr.bf16.mxu0 %v8171_v4  ;;  %v8237_v4 = vld [vmem:[#allocation14 + $0x204] ss:$8 sps:$4 sm:$0xff]  }
 0x3cf   :  { %5953 = vmatpush2.bf16.msra.mxu1 %v7900_v9  ;;  %v8222_v9 = vld [vmem:[#allocation14 + $0x1e4] ss:$8 sps:$4 sm:$0xff]  }
 0x3d0   :  { %6816 = vmatpush2.bf16.msra.mxu0 %v8169_v48  ;;  %5954 = vmatprep.subr.bf16.mxu1 %v7893_v54  ;;  %v8249_v48 = vld [vmem:[#allocation14 + $0x2e4] ss:$8 sps:$4 sm:$0xff]   ;;  %v8220_v54 = vld [vmem:[#allocation14 + $0x1e0] ss:$8 sps:$4 sm:$0xff]  }
 0x3d1   :  { %6817 = vmatprep.subr.bf16.mxu0 %v8174_v1  ;;  %v8228_v1 = vld [vmem:[#allocation14 + $0x1d4] ss:$8 sps:$4 sm:$0xff]  }
 0x3d3   :  { %5955 = vmatpush2.bf16.msra.mxu1 %v7892_v36  ;;  %v8253_v36 = vld [vmem:[#allocation14 + $0x2d0] ss:$8 sps:$4 sm:$0xff]  }
 0x3d4   :  { %6818 = vmatpush2.bf16.msra.mxu0 %v8172_v12  ;;  %5956 = vmatprep.subr.bf16.mxu1 %v7885_v14  ;;  %v8232_v12 = vld [vmem:[#allocation14 + $0x1c0] ss:$8 sps:$4 sm:$0xff]   ;;  %v5659_v14 = vpop.f32.mrf.mxu0 }
 0x3d5   :  { %6819 = vmatprep.subr.bf16.mxu0 %v8177_v15  ;;  %v8240_v15 = vld [vmem:[#allocation14 + $0x1b4] ss:$8 sps:$4 sm:$0xff]  }
 0x3d7   :  { %5957 = vmatpush2.bf16.msra.mxu1 %v7884_v16  ;;  %v8264_v16 = vld [vmem:[#allocation14 + $0x2b4] ss:$8 sps:$4 sm:$0xff]  }
 0x3d8   :  { %6820 = vmatpush2.bf16.msra.mxu0 %v8175_v23  ;;  %6832 = vmatprep.subr.bf16.mxu1 %v8180_v0  ;;  %v5661_v23 = vpop.f32.mrf.mxu0  ;;  %v8246_v0 = vld [vmem:[#allocation14 + $0x1a4] ss:$8 sps:$4 sm:$0xff]  }
 0x3d9   :  { %6875 = vmatprep.subr.bf16.mxu0 %v8195_v33  ;;  %v8262_v33 = vld [vmem:[#allocation14 + $0x2b0] ss:$8 sps:$4 sm:$0xff]  }
 0x3da   :  { %5959 = vmatmul.mubr.bf16.vlgmr.msra.gmra.mxu1 %v8841_v57  ;;  %v8213_v57 = vld [vmem:[#allocation14 + $0x244] ss:$8 sps:$4 sm:$0xff]   ;;  %v5663_v17 = vpop.f32.mrf.mxu0 }
 0x3db   :  { %6822 = vmatmul.mubr.bf16.vlgmr.msra.gmra.mxu0 %v8888_v30  ;;  %6833 = vmatpush1.bf16.msra.mxu1 %v8178_v45  ;;  %v8192_v30 = vld [vmem:[#allocation14 + $0x134] ss:$8 sps:$4 sm:$0xff]   ;;  %v8244_v45 = vld [vmem:[#allocation14 + $0x1a0] ss:$8 sps:$4 sm:$0xff]  }
 0x3dc   :  { %6864 = vmatprep.mubr.bf16.mxu1 %v6004_v43  ;;  %6834 = vmatprep.subr.bf16.mxu1 %v8183_v42  ;;  %v5702_v42 = vpop.f32.mrf.mxu1  ;;  %v8265_v43 = vld [vmem:[#allocation14 + $0x2a0] ss:$8 sps:$4 sm:$0xff]  }
 0x3dd   :  { %6876 = vmatpush1.bf16.msra.mxu0 %v8193_v25  ;;  %v8252_v25 = vld [vmem:[#allocation14 + $0x194] ss:$8 sps:$4 sm:$0xff]  }
 0x3de   :  { %6877 = vmatprep.subr.bf16.mxu0 %v8201_v63  ;;  %v8270_v63 = vld [vmem:[#allocation14 + $0x294] ss:$8 sps:$4 sm:$0xff]  }
 0x3df   :  { %6835 = vmatpush1.bf16.msra.mxu1 %v8181_v32  ;;  %v8250_v32 = vld [vmem:[#allocation14 + $0x190] ss:$8 sps:$4 sm:$0xff]  }
 0x3e0   :  { %6836 = vmatprep.subr.bf16.mxu1 %v8186_v28  ;;  %v5665_v28 = vpop.f32.mrf.mxu0 }
 0x3e1   :  { %6878 = vmatpush1.bf16.msra.mxu0 %v8199_v35  ;;  %v5704_v35 = vpop.f32.mrf.mxu1 }
 0x3e2   :  { %6879 = vmatprep.subr.bf16.mxu0 %v8207_v38  ;;  %v8258_v38 = vld [vmem:[#allocation14 + $0x184] ss:$8 sps:$4 sm:$0xff]  }
 0x3e3   :  { %6837 = vmatpush1.bf16.msra.mxu1 %v8184_v41  ;;  %v8947_v41 = vld [vmem:[#allocation13] sm:$0xff] }
 0x3e4   :  { %6838 = vmatprep.subr.bf16.mxu1 %v8189_v47  ;;  %v2704_v47 = vrot.slane %v8947_v41, %v485_v44 }
 0x3e5   :  { %6880 = vmatpush1.bf16.msra.mxu0 %v8205_v18  ;;  %v8268_v18 = vld [vmem:[#allocation14 + $0x290] ss:$8 sps:$4 sm:$0xff]  }
 0x3e6   :  { %6881 = vmatprep.subr.bf16.mxu0 %v8213_v57  ;;  %v2700_v57 = vrot.slane %v8947_v41, %v481_v26 }
 0x3e7   :  { %6839 = vmatpush1.bf16.msra.mxu1 %v8187_v10  ;;  %v5745_v10 = vpop.f32.mrf.mxu0 }
 0x3e8   :  { %6840 = vmatprep.subr.bf16.mxu1 %v8192_v30  ;;  %v8273_v30 = vld [vmem:[#allocation14 + $0x284] ss:$8 sps:$4 sm:$0xff]   ;;  %v5664_v44 = vadd.f32 %v5663_v17, %v2700_v57 }
 0x3e9   :  { %6882 = vmatpush1.bf16.msra.mxu0 %v8211_v49  ;;  %v8256_v49 = vld [vmem:[#allocation14 + $0x180] ss:$8 sps:$4 sm:$0xff]  }
 0x3ea   :  { %6883 = vmatprep.subr.bf16.mxu0 %v8219_v3  ;;  %v5706_v3 = vpop.f32.mrf.mxu1 }
 0x3eb   :  { %6841 = vmatpush1.bf16.msra.mxu1 %v8190_v51  ;;  %v8276_v51 = vld [vmem:[#allocation14 + $0x374] ss:$8 sps:$4 sm:$0xff]  }
 0x3ec   :  { %6842 = vmatprep.subr.bf16.mxu1 %v8198_v13  ;;  %v5662_v13 = vadd.f32 %v5661_v23, %v2704_v47  ;;  %v5708_v26 = vpop.f32.mrf.mxu1 }
 0x3ed   :  { %6884 = vmatpush1.bf16.msra.mxu0 %v8217_v21  ;;  %v8271_v21 = vld [vmem:[#allocation14 + $0x280] ss:$8 sps:$4 sm:$0xff]  }
 0x3ee   :  { %6885 = vmatprep.subr.bf16.mxu0 %v8225_v29  ;;  %v5660_v29 = vadd.f32 %v5659_v14, %v2700_v57  ;;  %v8303_v57 = vld [vmem:[#allocation14 + $0x3e4] ss:$8 sps:$4 sm:$0xff]  }
 0x3ef   :  { %6843 = vmatpush1.bf16.msra.mxu1 %v8196_v56  ;;  %v5747_v56 = vpop.f32.mrf.mxu0 }
 0x3f0   :  { %6844 = vmatprep.subr.bf16.mxu1 %v8204_v52  ;;  %v5705_v52 = vadd.f32 %v5704_v35, %v5662_v13  ;;  %v8297_v35 = vld [vmem:[#allocation14 + $0x304] ss:$8 sps:$4 sm:$0xff]   ;;  %v8312_v13 = vld [vmem:[#allocation14 + $0x3b4] ss:$8 sps:$4 sm:$0xff]  }
 0x3f1   :  { %6886 = vmatpush1.bf16.msra.mxu0 %v8223_v53  ;;  %v8274_v53 = vld [vmem:[#allocation14 + $0x370] ss:$8 sps:$4 sm:$0xff]  }
 0x3f2   :  { %6887 = vmatprep.subr.bf16.mxu0 %v8231_v50  ;;  %v5703_v50 = vadd.f32 %v5702_v42, %v5660_v29  ;;  %v8286_v42 = vld [vmem:[#allocation14 + $0x330] ss:$8 sps:$4 sm:$0xff]   ;;  %v8315_v29 = vld [vmem:[#allocation14 + $0x3a4] ss:$8 sps:$4 sm:$0xff]  }
 0x3f3   :  { %6845 = vmatpush1.bf16.msra.mxu1 %v8202_v59  ;;  %v8279_v59 = vld [vmem:[#allocation14 + $0x364] ss:$8 sps:$4 sm:$0xff]  }
 0x3f4   :  { %6846 = vmatprep.subr.bf16.mxu1 %v8210_v39  ;;  %v5666_v39 = vadd.f32 %v5665_v28, %v2704_v47  ;;  %v8292_v28 = vld [vmem:[#allocation14 + $0x310] ss:$8 sps:$4 sm:$0xff]   ;;  %v8300_v47 = vld [vmem:[#allocation14 + $0x3f4] ss:$8 sps:$4 sm:$0xff]  }
 0x3f5   :  { %6888 = vmatpush1.bf16.msra.mxu0 %v8229_v61  ;;  %v5707_v61 = vadd.f32 %v5706_v3, %v5664_v44  ;;  %v8309_v3 = vld [vmem:[#allocation14 + $0x3c4] ss:$8 sps:$4 sm:$0xff]   ;;  %v8318_v44 = vld [vmem:[#allocation14 + $0x394] ss:$8 sps:$4 sm:$0xff]  }
 0x3f6   :  { %6889 = vmatprep.subr.bf16.mxu0 %v8237_v4  ;;  %v5749_v4 = vpop.f32.mrf.mxu0 }
 0x3f7   :  { %6847 = vmatpush1.bf16.msra.mxu1 %v8208_v60 }
 0x3f8   :  { %6848 = vmatprep.subr.bf16.mxu1 %v8216_v62  ;;  %v5748_v62 = vadd.f32 %v5747_v56, %v5705_v52  ;;  %v8313_v56 = vld [vmem:[#allocation14 + $0x3a0] ss:$8 sps:$4 sm:$0xff]   ;;  %v8316_v52 = vld [vmem:[#allocation14 + $0x390] ss:$8 sps:$4 sm:$0xff]  }
 0x3f9   :  { %6890 = vmatpush1.bf16.msra.mxu0 %v8235_v40  ;;  %v5709_v40 = vadd.f32 %v5708_v26, %v5666_v39  ;;  %v8322_v26 = vld [vmem:[#allocation17 + $0x78] sm:$0xff]   ;;  %v8324_v39 = vld [vmem:[#allocation17 + $0x70] sm:$0xff]  }
 0x3fa   :  { %6891 = vmatprep.subr.bf16.mxu0 %v8243_v6  ;;  %v8277_v6 = vld [vmem:[#allocation14 + $0x360] ss:$8 sps:$4 sm:$0xff]  }
 0x3fb   :  { %6849 = vmatpush2.bf16.msra.mxu1 %v8214_v2  ;;  %v5746_v2 = vadd.f32 %v5745_v10, %v5703_v50  ;;  %v8301_v10 = vld [vmem:[#allocation14 + $0x3e0] ss:$8 sps:$4 sm:$0xff]  }
 0x3fc   :  { %6850 = vmatprep.subr.bf16.mxu1 %v8222_v9  ;;  %v8319_v50 = vld [vmem:[#allocation14 + $0x380] ss:$8 sps:$4 sm:$0xff]  }
 0x3fd   :  { %6892 = vmatpush2.bf16.msra.mxu0 %v8241_v5  ;;  %v8282_v5 = vld [vmem:[#allocation14 + $0x354] ss:$8 sps:$4 sm:$0xff]  }
 0x3fe   :  { %6893 = vmatprep.subr.bf16.mxu0 %v8249_v48  ;;  %v5750_v48 = vadd.f32 %v5749_v4, %v5707_v61  ;;  %v8325_v61 = vld [vmem:[#allocation17 + $0x30] sm:$0xff]   ;;  %v8326_v4 = vld [vmem:[#allocation17 + $0x68] sm:$0xff]  }
 0x3ff   :  { %6851 = vmatpush2.bf16.msra.mxu1 %v8220_v54 }
 0x400   :  { %6852 = vmatprep.subr.bf16.mxu1 %v8228_v1  ;;  %v5751_v1 = vpop.f32.mrf.mxu0 }
 0x401   :  { %6894 = vmatpush2.bf16.msra.mxu0 %v8247_v55 }
 0x402   :  { %6895 = vmatprep.subr.bf16.mxu0 %v8255_v31 }
 0x403   :  { %6853 = vmatpush2.bf16.msra.mxu1 %v8226_v7  ;;  %v5752_v7 = vadd.f32 %v5751_v1, %v5709_v40  ;;  %v8329_v40 = vld [vmem:[#allocation17 + $0x20] sm:$0xff]   ;;  %v2712_v1 = vrot.slane %v8947_v41, %v493_v37 }
 0x404   :  { %6854 = vmatprep.subr.bf16.mxu1 %v8234_v8 }
 0x405   :  { %6896 = vmatpush2.bf16.msra.mxu0 %v8253_v36  ;;  %v8280_v36 = vld [vmem:[#allocation14 + $0x350] ss:$8 sps:$4 sm:$0xff]  }
 0x406   :  { %6897 = vmatprep.subr.bf16.mxu0 %v8261_v27 }
 0x407   :  { %6855 = vmatpush2.bf16.msra.mxu1 %v8232_v12 }
 0x408   :  { %6856 = vmatprep.subr.bf16.mxu1 %v8240_v15 }
 0x409   :  { %6898 = vmatpush2.bf16.msra.mxu0 %v8259_v58 }
 0x40a   :  { %6899 = vmatprep.subr.bf16.mxu0 %v8264_v16 }
 0x40b   :  { %6857 = vmatpush2.bf16.msra.mxu1 %v8238_v20  ;;  %v8283_v20 = vld [vmem:[#allocation14 + $0x340] ss:$8 sps:$4 sm:$0xff]  }
 0x40c   :  { %6858 = vmatprep.subr.bf16.mxu1 %v8246_v0  ;;  %v8288_v0 = vld [vmem:[#allocation14 + $0x334] ss:$8 sps:$4 sm:$0xff]  }
 0x40d   :  { %6900 = vmatpush2.bf16.msra.mxu0 %v8262_v33 }
 0x40e   :  { %6901 = vmatprep.subr.bf16.mxu0 %v8267_v24 }
 0x40f   :  { %6859 = vmatpush2.bf16.msra.mxu1 %v8244_v45 }
 0x410   :  { %6860 = vmatprep.subr.bf16.mxu1 %v8252_v25 }
 0x411   :  { %6902 = vmatpush2.bf16.msra.mxu0 %v8265_v43  ;;  %v8291_v43 = vld [vmem:[#allocation14 + $0x324] ss:$8 sps:$4 sm:$0xff]  }
 0x412   :  { %6903 = vmatprep.subr.bf16.mxu0 %v8270_v63  ;;  %v8289_v63 = vld [vmem:[#allocation14 + $0x320] ss:$8 sps:$4 sm:$0xff]  }
 0x413   :  { %6861 = vmatpush2.bf16.msra.mxu1 %v8250_v32  ;;  %v8294_v32 = vld [vmem:[#allocation14 + $0x314] ss:$8 sps:$4 sm:$0xff]  }
 0x414   :  { %6862 = vmatprep.subr.bf16.mxu1 %v8258_v38  ;;  %v8295_v38 = vld [vmem:[#allocation14 + $0x300] ss:$8 sps:$4 sm:$0xff]  }
 0x415   :  { %6904 = vmatpush2.bf16.msra.mxu0 %v8268_v18  ;;  %v8298_v18 = vld [vmem:[#allocation14 + $0x3f0] ss:$8 sps:$4 sm:$0xff]  }
 0x416   :  { %6905 = vmatprep.subr.bf16.mxu0 %v8273_v30  ;;  %v8306_v30 = vld [vmem:[#allocation14 + $0x3d4] ss:$8 sps:$4 sm:$0xff]  }
 0x417   :  { %6863 = vmatpush2.bf16.msra.mxu1 %v8256_v49  ;;  %v8304_v49 = vld [vmem:[#allocation14 + $0x3d0] ss:$8 sps:$4 sm:$0xff]  }
 0x418   :  { %6918 = vmatprep.subr.bf16.mxu1 %v8276_v51  ;;  %v8307_v51 = vld [vmem:[#allocation14 + $0x3c0] ss:$8 sps:$4 sm:$0xff]  }
 0x419   :  { %6906 = vmatpush2.bf16.msra.mxu0 %v8271_v21  ;;  %v8310_v21 = vld [vmem:[#allocation14 + $0x3b0] ss:$8 sps:$4 sm:$0xff]  }
 0x41a   :  { %v5788_v60 = vpop.f32.mrf.mxu1  ;;  %6865 = vmatmul.mubr.bf16.vlgmr.msra.gmra.mxu1 %v8934_v46  ;;  %v8285_v46 = vld [vmem:[#allocation14 + $0x344] ss:$8 sps:$4 sm:$0xff]   ;;  %8087 = vmatprep.subr.bf16.mxu0 %v8322_v26 }
 0x41b   :  { %6919 = vmatpush1.bf16.msra.mxu1 %v8274_v53  ;;  %v5789_v55 = vadd.f32 %v5788_v60, %v5746_v2  ;;  %v8321_v53 = vld [vmem:[#allocation14 + $0x384] ss:$8 sps:$4 sm:$0xff]  }
 0x41c   :  { %v5790_v9 = vpop.f32.mrf.mxu1  ;;  %6920 = vmatprep.subr.bf16.mxu1 %v8279_v59  ;;  %v8323_v59 = vld [vmem:[#allocation17 + $0x38] sm:$0xff]   ;;  %v8327_v60 = vld [vmem:[#allocation17 + $0x28] sm:$0xff]  }
 0x41d   :  { %v5791_v54 = vadd.f32 %v5790_v9, %v5748_v62  ;;  %v5973_v58 = vmul.f32 0.1, %v5789_v55  ;;  %v8328_v62 = vld [vmem:[#allocation17 + $0x60] sm:$0xff]  }
 0x41e   :  { %v5792_v31 = vpop.f32.mrf.mxu1 }
 0x41f   :  { %v5793_v8 = vadd.f32 %v5792_v31, %v5750_v48  ;;  %6921 = vmatpush1.bf16.msra.mxu1 %v8277_v6  ;;  %v5974_v12 = vmul.f32 0.1, %v5791_v54  ;;  %v5989_v45 = vmax.f32 %v5789_v55, %v5973_v58  ;;  %v5831_v6 = vpop.f32.mrf.mxu0  ;;  %v2708_v55 = vrot.slane %v8947_v41, %v489_v34 }
 0x420   :  { %v5794_v27 = vpop.f32.mrf.mxu1  ;;  %6922 = vmatprep.subr.bf16.mxu1 %v8282_v5 }
 0x421   :  { %v5981_v14 = vmul.f32 0.1, %v5793_v8  ;;  %v5795_v15 = vadd.f32 %v5794_v27, %v5752_v7  ;;  %v5990_v33 = vmax.f32 %v5791_v54, %v5974_v12  ;;  %v5833_v2 = vpop.f32.mrf.mxu0 }
 0x423   :  { %v5982_v16 = vmul.f32 0.1, %v5795_v15  ;;  %6923 = vmatpush1.bf16.msra.mxu1 %v8280_v36  ;;  %v5997_v23 = vmax.f32 %v5793_v8, %v5981_v14  ;;  %v5835_v9 = vpop.f32.mrf.mxu0  ;;  %v5834_v8 = vadd.f32 %v5833_v2, %v2712_v1  ;;  %v5832_v36 = vadd.f32 %v5831_v6, %v2708_v55 }
 0x424   :  { %6924 = vmatprep.subr.bf16.mxu1 %v8285_v46  ;;  %v5836_v46 = vadd.f32 %v5835_v9, %v2708_v55 }
 0x425   :  { %v5998_v24 = vmax.f32 %v5795_v15, %v5982_v16  ;;  %v6005_v25 = vpack.c.bf16 %v5997_v23, %v5989_v45  ;;  %v5837_v48 = vpop.f32.mrf.mxu0 }
 0x426   :  { %v5838_v58 = vadd.f32 %v5837_v48, %v2712_v1 }
 0x427   :  { %v6006_v17 = vpack.c.bf16 %v5998_v24, %v5990_v33  ;;  %6925 = vmatpush1.bf16.msra.mxu1 %v8283_v20 }
 0x428   :  { %6926 = vmatprep.subr.bf16.mxu1 %v8288_v0 }
 0x429   :  { %6907 = vmatprep.mubr.bf16.mxu0 %v6006_v17 }
 0x42a   :  { %6908 = vmatmul.mubr.bf16.vlgmr.msra.gmra.mxu0 %v6005_v25 }
 0x42b   :  { %6927 = vmatpush1.bf16.msra.mxu1 %v8286_v42  ;;  %8088 = vmatpush3.bf16.msra.mxu0 %v8323_v59 }
 0x42c   :  { %6928 = vmatprep.subr.bf16.mxu1 %v8291_v43  ;;  %8089 = vmatprep.subr.bf16.mxu0 %v8324_v39 }
 0x42f   :  { %6929 = vmatpush1.bf16.msra.mxu1 %v8289_v63  ;;  %8090 = vmatpush3.bf16.msra.mxu0 %v8325_v61 }
 0x430   :  { %6930 = vmatprep.subr.bf16.mxu1 %v8294_v32  ;;  %8091 = vmatprep.subr.bf16.mxu0 %v8326_v4 }
 0x433   :  { %6931 = vmatpush1.bf16.msra.mxu1 %v8292_v28  ;;  %8092 = vmatpush3.bf16.msra.mxu0 %v8327_v60  ;;  %v6137_v60 = vld [vmem:[#allocation16] sm:$0x3] }
 0x434   :  { %6932 = vmatprep.subr.bf16.mxu1 %v8297_v35  ;;  %8093 = vmatprep.subr.bf16.mxu0 %v8328_v62  ;;  %v6146_v62 = vrot.slane %v6137_v60, %v8749_v22 }
 0x437   :  { %6933 = vmatpush1.bf16.msra.mxu1 %v8295_v38  ;;  %8094 = vmatpush3.bf16.msra.mxu0 %v8329_v40  ;;  %v6142_v40 = vrot.slane %v6137_v60, %v8769_v11 }
 0x438   :  { %6934 = vmatprep.subr.bf16.mxu1 %v8300_v47 }
 0x43b   :  { %6935 = vmatpush2.bf16.msra.mxu1 %v8298_v18 }
 0x43c   :  { %6936 = vmatprep.subr.bf16.mxu1 %v8303_v57 }
 0x43f   :  { %6937 = vmatpush2.bf16.msra.mxu1 %v8301_v10 }
 0x440   :  { %6938 = vmatprep.subr.bf16.mxu1 %v8306_v30 }
 0x443   :  { %6939 = vmatpush2.bf16.msra.mxu1 %v8304_v49 }
 0x444   :  { %6940 = vmatprep.subr.bf16.mxu1 %v8309_v3  ;;  %v8330_v3 = vld [vmem:[#allocation17 + $0x58] sm:$0xff]  }
 0x445   :  { %8095 = vmatprep.subr.bf16.mxu0 %v8330_v3 }
 0x447   :  { %6941 = vmatpush2.bf16.msra.mxu1 %v8307_v51  ;;  %v8331_v51 = vld [vmem:[#allocation17 + $0x18] sm:$0xff]  }
 0x448   :  { %6942 = vmatprep.subr.bf16.mxu1 %v8312_v13  ;;  %8096 = vmatpush3.bf16.msra.mxu0 %v8331_v51  ;;  %v8332_v13 = vld [vmem:[#allocation17 + $0x50] sm:$0xff]  }
 0x449   :  { %8097 = vmatprep.subr.bf16.mxu0 %v8332_v13 }
 0x44b   :  { %6943 = vmatpush2.bf16.msra.mxu1 %v8310_v21  ;;  %v8333_v21 = vld [vmem:[#allocation17 + $0x10] sm:$0xff]  }
 0x44c   :  { %6944 = vmatprep.subr.bf16.mxu1 %v8315_v29  ;;  %8098 = vmatpush3.bf16.msra.mxu0 %v8333_v21  ;;  %v8334_v29 = vld [vmem:[#allocation17 + $0x48] sm:$0xff]  }
 0x44d   :  { %8099 = vmatprep.subr.bf16.mxu0 %v8334_v29 }
 0x44f   :  { %6945 = vmatpush2.bf16.msra.mxu1 %v8313_v56  ;;  %v8335_v56 = vld [vmem:[#allocation17 + $0x8] sm:$0xff]  }
 0x450   :  { %6946 = vmatprep.subr.bf16.mxu1 %v8318_v44  ;;  %8100 = vmatpush3.bf16.msra.mxu0 %v8335_v56  ;;  %v8336_v44 = vld [vmem:[#allocation17 + $0x40] sm:$0xff]  }
 0x451   :  { %8101 = vmatprep.subr.bf16.mxu0 %v8336_v44 }
 0x453   :  { %6947 = vmatpush2.bf16.msra.mxu1 %v8316_v52  ;;  %v8337_v52 = vld [vmem:[#allocation17] sm:$0xff]  }
 0x454   :  { %6948 = vmatprep.subr.bf16.mxu1 %v8321_v53  ;;  %8102 = vmatpush3.bf16.msra.mxu0 %v8337_v52 }
 0x457   :  { %6949 = vmatpush2.bf16.msra.mxu1 %v8319_v50 }
 0x45a   :  { %v5874_v5 = vpop.f32.mrf.mxu1 }
 0x45b   :  { %v5917_v31 = vpop.f32.mrf.mxu0  ;;  %v5875_v14 = vadd.f32 %v5874_v5, %v5832_v36 }
 0x45c   :  { %v5876_v54 = vpop.f32.mrf.mxu1 }
 0x45d   :  { %v5919_v27 = vpop.f32.mrf.mxu0  ;;  %v5877_v12 = vadd.f32 %v5876_v54, %v5834_v8  ;;  %v5918_v37 = vadd.f32 %v5917_v31, %v5875_v14 }
 0x45e   :  { %v5878_v7 = vpop.f32.mrf.mxu1 }
 0x45f   :  { %v5879_v16 = vadd.f32 %v5878_v7, %v5836_v46  ;;  %v5921_v20 = vpop.f32.mrf.mxu0  ;;  %v5920_v0 = vadd.f32 %v5919_v27, %v5877_v12 }
 0x460   :  { %v5880_v15 = vpop.f32.mrf.mxu1 }
 0x461   :  { %v5881_v33 = vadd.f32 %v5880_v15, %v5838_v58  ;;  %v5922_v19 = vadd.f32 %v5921_v20, %v5879_v16  ;;  %v5923_v34 = vpop.f32.mrf.mxu0 }
 0x463   :  { %v5924_v42 = vadd.f32 %v5923_v34, %v5881_v33 }
 0x49a   :  { %v5960_v23 = vpop.f32.mrf.mxu1 }
 0x49b   :  { %v5961_v41 = vadd.f32 %v5960_v23, %v5918_v37  ;;  %v6823_v53 = vpop.f32.mrf.mxu0 }
 0x49c   :  { %v5962_v24 = vpop.f32.mrf.mxu1  ;;  %v6824_v5 = vadd.f32 %v6823_v53, %v6142_v40 }
 0x49d   :  { %v5963_v45 = vadd.f32 %v5962_v24, %v5920_v0  ;;  %v5975_v35 = vmul.f32 0.1, %v5961_v41  ;;  %v6825_v50 = vpop.f32.mrf.mxu0 }
 0x49e   :  { %v5964_v17 = vpop.f32.mrf.mxu1  ;;  %v6826_v9 = vadd.f32 %v6825_v50, %v6146_v62 }
 0x49f   :  { %v5965_v25 = vadd.f32 %v5964_v17, %v5922_v19  ;;  %v5976_v63 = vmul.f32 0.1, %v5963_v45  ;;  %v5991_v10 = vmax.f32 %v5961_v41, %v5975_v35  ;;  %v6827_v26 = vpop.f32.mrf.mxu0 }
 0x4a0   :  { %v5966_v43 = vpop.f32.mrf.mxu1  ;;  %v6828_v1 = vadd.f32 %v6827_v26, %v6142_v40 }
 0x4a1   :  { %v5983_v32 = vmul.f32 0.1, %v5965_v25  ;;  %v5967_v28 = vadd.f32 %v5966_v43, %v5924_v42  ;;  %v5992_v18 = vmax.f32 %v5963_v45, %v5976_v63  ;;  %v6829_v39 = vpop.f32.mrf.mxu0 }
 0x4a2   :  { %v6830_v8 = vadd.f32 %v6829_v39, %v6146_v62 }
 0x4a3   :  { %v5984_v38 = vmul.f32 0.1, %v5967_v28  ;;  %v5999_v47 = vmax.f32 %v5965_v25, %v5983_v32  ;;  %v8070_v32 = vld [vmem:[#allocation19] ss:$0 sm:$0xff] }
 0x4a5   :  { %v6000_v57 = vmax.f32 %v5967_v28, %v5984_v38  ;;  %v6007_v49 = vpack.c.bf16 %v5999_v47, %v5991_v10 }
 0x4a7   :  { %v6008_v30 = vpack.c.bf16 %v6000_v57, %v5992_v18 }
 0x4a9   :  { %6950 = vmatprep.mubr.bf16.mxu1 %v6008_v30 }
 0x4aa   :  { %6951 = vmatmul.mubr.bf16.vlgmr.msra.gmra.mxu1 %v6007_v49 }
 0x4da   :  { %v6866_v59 = vpop.f32.mrf.mxu1 }
 0x4db   :  { %v6867_v31 = vadd.f32 %v6866_v59, %v6824_v5 }
 0x4dc   :  { %v6868_v61 = vpop.f32.mrf.mxu1 }
 0x4dd   :  { %v6869_v55 = vadd.f32 %v6868_v61, %v6826_v9 }
 0x4de   :  { %v6870_v6 = vpop.f32.mrf.mxu1 }
 0x4df   :  { %v6871_v36 = vadd.f32 %v6870_v6, %v6828_v1 }
 0x4e0   :  { %v6872_v48 = vpop.f32.mrf.mxu1 }
 0x4e1   :  { %v6873_v15 = vadd.f32 %v6872_v48, %v6830_v8 }
 0x4ea   :  { %v6909_v4 = vpop.f32.mrf.mxu0 }
 0x4eb   :  { %v6910_v46 = vadd.f32 %v6909_v4, %v6867_v31 }
 0x4ec   :  { %v6911_v2 = vpop.f32.mrf.mxu0 }
 0x4ed   :  { %v6912_v27 = vadd.f32 %v6911_v2, %v6869_v55 }
 0x4ee   :  { %v6913_v54 = vpop.f32.mrf.mxu0 }
 0x4ef   :  { %v6914_v22 = vadd.f32 %v6913_v54, %v6871_v36 }
 0x4f0   :  { %v6915_v12 = vpop.f32.mrf.mxu0 }
 0x4f1   :  { %v6916_v20 = vadd.f32 %v6915_v12, %v6873_v15 }
 0x56a   :  { %v6952_v7 = vpop.f32.mrf.mxu1 }
 0x56b   :  { %v6953_v11 = vadd.f32 %v6952_v7, %v6910_v46 }
 0x56c   :  { %v6954_v14 = vpop.f32.mrf.mxu1 }
 0x56d   :  { %v6955_v58 = vadd.f32 %v6954_v14, %v6912_v27  ;;  %v6961_v19 = vmul.f32 0.1, %v6953_v11 }
 0x56e   :  { %v6956_v16 = vpop.f32.mrf.mxu1 }
 0x56f   :  { %v6957_v23 = vadd.f32 %v6956_v16, %v6914_v22  ;;  %v6962_v33 = vmul.f32 0.1, %v6955_v58  ;;  %v6965_v42 = vmax.f32 %v6953_v11, %v6961_v19 }
 0x570   :  { %v6958_v0 = vpop.f32.mrf.mxu1 }
 0x571   :  { %v6963_v37 = vmul.f32 0.1, %v6957_v23  ;;  %v6959_v24 = vadd.f32 %v6958_v0, %v6916_v20  ;;  %v6966_v41 = vmax.f32 %v6955_v58, %v6962_v33 }
 0x573   :  { %v6964_v45 = vmul.f32 0.1, %v6959_v24  ;;  %v6967_v34 = vmax.f32 %v6957_v23, %v6963_v37 }
 0x575   :  { %v6968_v17 = vmax.f32 %v6959_v24, %v6964_v45  ;;  %v6969_v43 = vpack.c.bf16 %v6967_v34, %v6965_v42 }
 0x577   :  { %v6970_v25 = vpack.c.bf16 %v6968_v17, %v6966_v41 }
 0x579   :  { %7138 = vmatprep.mubr.bf16.mxu0 %v6970_v25 }
 0x57a   :  { %7139 = vmatmul.mubr.bf16.vlgmr.msra.gmra.mxu0 %v6969_v43 }
 0x63a   :  { %v8103_v63 = vpop.f32.mrf.mxu0 }
 0x63c   :  { %v8104_v28 = vpop.f32.mrf.mxu0 }
 0x63d   :  { %v8105_v35 = vadd.f32 %v8104_v28, %v8103_v63 }
 0x63e   :  { %v8106_v38 = vpop.f32.mrf.mxu0 }
 0x63f   :  { %v7141_v47 = vadd.f32 %v8105_v35, %v8070_v32 }
 0x640   :  { %v8107_v18 = vpop.f32.mrf.mxu0 }
 0x641   :  { %7147 = vst [vmem:[#allocation20] sm:$0xff] %v7141_v47  ;;  %v8108_v57 = vadd.f32 %v8107_v18, %v8106_v38 }
 0x643   :  { %v7144_v10 = vadd.f32 %v8108_v57, %v8070_v32 }
 0x645   :  { %7148 = vst [vmem:[#allocation20 + $0x8] sm:$0xff] %v7144_v10 }
 0x646   :  { %8575 = shalt.err (!%p8572_p3)
}
 0x647   :  { %7160 = dma.vmem_to_hbm [thread:$0]  %s7155_s10, 256, %s8981_s11, [#allocation4], %s8606_s3, %s8606_s3, %s8607_s19  }
 0x648   :  { %8596 = dma.done.wait [#allocation4], 256  }
 0x649   :  { %8597 = vsyncadd [#allocation4], 4294967040 }
 0x64a   :  { %7164 = vsyncpa [#allocation3], 1 }
 0x64b   :  { %7165 = vsyncpa [#allocation6], 1 }
 0x64c   :  { %7166 = vsyncpa [#allocation9], 1 }
 0x64d   :  { %7167 = vsyncpa [#allocation12], 1 }
 0x64e   :  { %7168 = vsyncpa [#allocation15], 1 }
 0x64f   :  { %7169 = vsyncpa [#allocation18], 1 }
 0x650   :  { %7170 = vsyncpa [#allocation4], 1 }

</bundles_post_ra>
